<compile_context>
chip_gen: v6e
topology: v6e:2x2x1
jax: 0.10.0
libtpu: 0.0.40
codegen_flags: <defaults>
</compile_context>

<pallas_src>
import functools

import jax
import jax.numpy as jnp
import numpy as np
from jax.experimental import pallas as pl
from jax.experimental.pallas import tpu as pltpu

_PAD = 8               # aligned halo rows in the VMEM scratch buffer
_MAX_BLOCK_ROWS = 128  # per-tile activation rows (tune up for production sizes)


def _choose_tile_rows(H, Wp, max_rows=_MAX_BLOCK_ROWS):
    # Largest divisor of H whose row-block fits and is a multiple of 8 rows.
    cands = [d for d in range(1, H + 1)
             if H % d == 0 and d * Wp <= max_rows and (d == H or (d * Wp) % 8 == 0)]
    return max(cands) if cands else H


# ----------------------------- Pallas kernels ------------------------------

def _regular_bottleneck_kernel(xp_ref, mask_ref,
                               w1_ref, s1_ref, b1_ref,
                               w2_ref, s2_ref, b2_ref,
                               w3_ref, s3_ref, b3_ref,
                               o_ref, t1_ref, *, Wp, TH, tap_starts):
    t = pl.program_id(1)
    Lc = TH * Wp
    T1 = (TH + 2) * Wp
    cr = w1_ref.shape[1]
    base = t * Lc

    # 1x1 conv + BN + ReLU on the tile rows plus one halo image-row each side.
    x_ext = xp_ref[pl.ds(base, T1), :]
    m_ext = mask_ref[pl.ds(base, T1), :]
    t1 = jnp.dot(x_ext.astype(jnp.bfloat16), w1_ref[...],
                 preferred_element_type=jnp.float32)
    t1 = jnp.maximum(t1 * s1_ref[...] + b1_ref[...], 0.0) * m_ext

    zeros = jnp.zeros((_PAD, cr), jnp.float32)
    t1_ref[0:_PAD, :] = zeros
    t1_ref[_PAD + T1:_PAD + T1 + _PAD, :] = zeros
    t1_ref[_PAD:_PAD + T1, :] = t1

    # 3x3 conv: 9 constant row shifts flattened into one K = 9*cr matmul.
    cols = [t1_ref[s:s + Lc, :] for s in tap_starts]
    xn = jnp.concatenate(cols, axis=1)
    t2 = jnp.dot(xn.astype(jnp.bfloat16), w2_ref[...],
                 preferred_element_type=jnp.float32)
    t2 = jnp.maximum(t2 * s2_ref[...] + b2_ref[...], 0.0)

    # Final 1x1 + BN + ReLU, residual add, output ReLU, zero width pads.
    y = jnp.dot(t2.astype(jnp.bfloat16), w3_ref[...],
                preferred_element_type=jnp.float32)
    y = jnp.maximum(y * s3_ref[...] + b3_ref[...], 0.0)
    res = xp_ref[pl.ds(base + Wp, Lc), :]
    m_out = mask_ref[pl.ds(base + Wp, Lc), :]
    o_ref[...] = jnp.maximum(y + res, 0.0) * m_out


def _upsample_bottleneck_kernel(xp_ref, mask_ref, pid_ref,
                                wp_ref, sp_ref, bp_ref,
                                w1_ref, s1_ref, b1_ref,
                                w2p_ref, s2_ref, b2_ref,
                                w3_ref, s3_ref, b3_ref,
                                o_ref, t1_ref, *, Wp, TH, nbr_starts):
    t = pl.program_id(1)
    Lc = TH * Wp
    T1 = (TH + 2) * Wp
    cr = w1_ref.shape[1]
    base = t * Lc

    # Conv branch, stage 1: 1x1 + BN + ReLU (halo rows included, pads zeroed).
    x_ext = xp_ref[pl.ds(base, T1), :]
    m_ext = mask_ref[pl.ds(base, T1), :]
    t1 = jnp.dot(x_ext.astype(jnp.bfloat16), w1_ref[...],
                 preferred_element_type=jnp.float32)
    t1 = jnp.maximum(t1 * s1_ref[...] + b1_ref[...], 0.0) * m_ext
    zeros = jnp.zeros((_PAD, cr), jnp.float32)
    t1_ref[0:_PAD, :] = zeros
    t1_ref[_PAD + T1:_PAD + T1 + _PAD, :] = zeros
    t1_ref[_PAD:_PAD + T1, :] = t1

    x_out = xp_ref[pl.ds(base + Wp, Lc), :]
    m_out = mask_ref[pl.ds(base + Wp, Lc), :]

    # Pooling branch: 1x1 conv + BN (no ReLU).  MaxUnpool2d becomes a dense
    # compare/select against the precomputed phase id (no scatter).
    pooled = jnp.dot(x_out.astype(jnp.bfloat16), wp_ref[...],
                     preferred_element_type=jnp.float32)
    pooled = pooled * sp_ref[...] + bp_ref[...]
    pid = pid_ref[...]

    # ConvTranspose2d(3, s=2, p=1, op=1) via the 4-phase decomposition: the 4
    # input neighbours are concatenated once; one flattened matmul per phase.
    cols = [t1_ref[s:s + Lc, :] for s in nbr_starts]
    xn = jnp.concatenate(cols, axis=1)

    outs = []
    for ph in range(4):
        t2 = jnp.dot(xn.astype(jnp.bfloat16), w2p_ref[ph],
                     preferred_element_type=jnp.float32)
        t2 = jnp.maximum(t2 * s2_ref[...] + b2_ref[...], 0.0)
        y = jnp.dot(t2.astype(jnp.bfloat16), w3_ref[...],
                    preferred_element_type=jnp.float32)
        y = jnp.maximum(y * s3_ref[...] + b3_ref[...], 0.0)
        unp = jnp.where(pid == ph, pooled, 0.0)
        outs.append(jnp.maximum(y + unp, 0.0) * m_out)
    o_ref[...] = jnp.concatenate(outs, axis=1)   # lane-dense (Lc, 4*Cout) store


def _fullconv_kernel(x_ref, w_ref, b_ref, o_ref):
    # ConvTranspose2d(2, stride=2) is non-overlapping: one matmul, 4*cout cols.
    y = jnp.dot(x_ref[...].astype(jnp.bfloat16), w_ref[...],
                preferred_element_type=jnp.float32)
    o_ref[...] = y + b_ref[...]


# ------------------------------- host glue ---------------------------------

def _interior_mask(H, W):
    m = jnp.pad(jnp.ones((H, W), jnp.float32), ((1, 1), (1, 1)))
    return m.reshape((H + 2) * (W + 2), 1)


def _nhwc_to_flat_padded(x):
    N, H, W, C = x.shape
    xp = jnp.pad(x, ((0, 0), (1, 1), (1, 1), (0, 0)))
    return xp.reshape(N, (H + 2) * (W + 2), C)


def _flat_height_pad(flat, W):
    Wp = W + 2
    return jnp.pad(flat, ((0, 0), (Wp, Wp), (0, 0)))


def _phases_flat_to_nhwc(y, H, W, C):
    # (N, H*(W+2), 4*C) with columns ordered (ey, ex, c) -> (N, 2H, 2W, C).
    N = y.shape[0]
    Wp = W + 2
    y = y.reshape(N, H, Wp, 2, 2, C)[:, :, 1:W + 1]
    y = jnp.transpose(y, (0, 1, 3, 2, 4, 5))
    return y.reshape(N, 2 * H, 2 * W, C)


def _pool_indices_to_phase_id(idx_nchw):
    # TODO(synk): assumes MaxPool-style indices that stay inside their own 2x2
    # window (always true for encoder-produced indices); arbitrary MaxUnpool
    # scatter targets are not supported.
    n, c, h, w = idx_nchw.shape
    dy = (idx_nchw // (2 * w)) % 2
    dx = idx_nchw % 2
    pid = (2 * dy + dx).astype(jnp.int32)
    pid = jnp.transpose(pid, (0, 2, 3, 1))                 # NHWC
    pid = jnp.pad(pid, ((0, 0), (0, 0), (1, 1), (0, 0)))   # width pad
    return pid.reshape(n, h * (w + 2), c)


# ------------------------------ layer wrappers ------------------------------

def _bottleneck_regular(flat_pad_in, H, W, p):
    N, _, Cin = flat_pad_in.shape
    Wp = W + 2
    cr = p['w1'].shape[1]
    Cout = p['w3'].shape[1]
    assert Cin == Cout
    TH = _choose_tile_rows(H, Wp)
    NT = H // TH
    Lc, T1 = TH * Wp, (TH + 2) * Wp
    tap_starts = tuple(_PAD + ky * Wp + kx - 1 for ky in range(3) for kx in range(3))
    mask = _interior_mask(H, W)

    kernel = functools.partial(_regular_bottleneck_kernel, Wp=Wp, TH=TH,
                               tap_starts=tap_starts)
    rep2 = lambda n, t: (0, 0)
    return pl.pallas_call(
        kernel,
        out_shape=jax.ShapeDtypeStruct((N, H * Wp, Cout), jnp.float32),
        grid=(N, NT),
        in_specs=[
            pl.BlockSpec((None, (H + 2) * Wp, Cin), lambda n, t: (n, 0, 0)),
            pl.BlockSpec(((H + 2) * Wp, 1), rep2),
            pl.BlockSpec((Cin, cr), rep2),
            pl.BlockSpec((1, cr), rep2),
            pl.BlockSpec((1, cr), rep2),
            pl.BlockSpec((9 * cr, cr), rep2),
            pl.BlockSpec((1, cr), rep2),
            pl.BlockSpec((1, cr), rep2),
            pl.BlockSpec((cr, Cout), rep2),
            pl.BlockSpec((1, Cout), rep2),
            pl.BlockSpec((1, Cout), rep2),
        ],
        out_specs=pl.BlockSpec((None, Lc, Cout), lambda n, t: (n, t, 0)),
        scratch_shapes=[pltpu.VMEM((T1 + 2 * _PAD, cr), jnp.float32)],
        compiler_params=pltpu.CompilerParams(
            dimension_semantics=("parallel", "parallel")),
    )(flat_pad_in, mask, p['w1'], p['s1'], p['b1'],
      p['w2'], p['s2'], p['b2'], p['w3'], p['s3'], p['b3'])


def _bottleneck_upsample(flat_pad_in, idx_nchw, H, W, p):
    N, _, Cin = flat_pad_in.shape
    Wp = W + 2
    cr = p['w1'].shape[1]
    Cout = p['w3'].shape[1]
    TH = _choose_tile_rows(H, Wp)
    NT = H // TH
    Lc, T1 = TH * Wp, (TH + 2) * Wp
    nbr_starts = (_PAD + Wp, _PAD + Wp + 1, _PAD + 2 * Wp, _PAD + 2 * Wp + 1)
    mask = _interior_mask(H, W)
    pid = _pool_indices_to_phase_id(idx_nchw)              # (N, H*Wp, Cout)

    kernel = functools.partial(_upsample_bottleneck_kernel, Wp=Wp, TH=TH,
                               nbr_starts=nbr_starts)
    rep2 = lambda n, t: (0, 0)
    return pl.pallas_call(
        kernel,
        out_shape=jax.ShapeDtypeStruct((N, H * Wp, 4 * Cout), jnp.float32),
        grid=(N, NT),
        in_specs=[
            pl.BlockSpec((None, (H + 2) * Wp, Cin), lambda n, t: (n, 0, 0)),
            pl.BlockSpec(((H + 2) * Wp, 1), rep2),
            pl.BlockSpec((None, Lc, Cout), lambda n, t: (n, t, 0)),
            pl.BlockSpec((Cin, Cout), rep2),
            pl.BlockSpec((1, Cout), rep2),
            pl.BlockSpec((1, Cout), rep2),
            pl.BlockSpec((Cin, cr), rep2),
            pl.BlockSpec((1, cr), rep2),
            pl.BlockSpec((1, cr), rep2),
            pl.BlockSpec((4, 4 * cr, cr), lambda n, t: (0, 0, 0)),
            pl.BlockSpec((1, cr), rep2),
            pl.BlockSpec((1, cr), rep2),
            pl.BlockSpec((cr, Cout), rep2),
            pl.BlockSpec((1, Cout), rep2),
            pl.BlockSpec((1, Cout), rep2),
        ],
        out_specs=pl.BlockSpec((None, Lc, 4 * Cout), lambda n, t: (n, t, 0)),
        scratch_shapes=[pltpu.VMEM((T1 + 2 * _PAD, cr), jnp.float32)],
        compiler_params=pltpu.CompilerParams(
            dimension_semantics=("parallel", "parallel")),
    )(flat_pad_in, mask, pid,
      p['wp'], p['sp'], p['bp'],
      p['w1'], p['s1'], p['b1'],
      p['w2p'], p['s2'], p['b2'],
      p['w3'], p['s3'], p['b3'])


def _fullconv(flat_in, H, W, p):
    N, _, Cin = flat_in.shape
    Wp = W + 2
    c4 = p['w'].shape[1]
    TH = _choose_tile_rows(H, Wp)
    NT = H // TH
    Lc = TH * Wp
    rep2 = lambda n, t: (0, 0)
    return pl.pallas_call(
        _fullconv_kernel,
        out_shape=jax.ShapeDtypeStruct((N, H * Wp, c4), jnp.float32),
        grid=(N, NT),
        in_specs=[
            pl.BlockSpec((None, Lc, Cin), lambda n, t: (n, t, 0)),
            pl.BlockSpec((Cin, c4), rep2),
            pl.BlockSpec((1, c4), rep2),
        ],
        out_specs=pl.BlockSpec((None, Lc, c4), lambda n, t: (n, t, 0)),
        compiler_params=pltpu.CompilerParams(
            dimension_semantics=("parallel", "parallel")),
    )(flat_in, p['w'], p['b'])


# ----------------------------- parameter helpers ----------------------------

def _init_conv(key, cout, cin, kh, kw):
    return (1.0 / np.sqrt(cin * kh * kw)) * jax.random.normal(
        key, (cout, cin, kh, kw), jnp.float32)


def _init_bn(key, c):
    k1, k2, k3, k4 = jax.random.split(key, 4)
    gamma = 1.0 + 0.1 * jax.random.normal(k1, (c,), jnp.float32)
    beta = 0.1 * jax.random.normal(k2, (c,), jnp.float32)
    mean = 0.1 * jax.random.normal(k3, (c,), jnp.float32)
    var = 1.0 + 0.1 * jax.random.uniform(k4, (c,), jnp.float32)
    return gamma, beta, mean, var


def _bn_fold(bn, conv_bias=None, eps=1e-3):
    # Eval-mode BatchNorm2d(eps=0.001) folded to scale/bias; conv bias folded in.
    gamma, beta, mean, var = bn
    scale = gamma / jnp.sqrt(var + eps)
    bias = beta - mean * scale
    if conv_bias is not None:
        bias = bias + conv_bias * scale
    return scale[None, :].astype(jnp.float32), bias[None, :].astype(jnp.float32)


def _w1x1(w_oihw):
    return jnp.transpose(w_oihw[:, :, 0, 0], (1, 0)).astype(jnp.bfloat16)


def _w3x3_flat(w_oihw):
    cout, cin = w_oihw.shape[0], w_oihw.shape[1]
    return jnp.transpose(w_oihw, (2, 3, 1, 0)).reshape(9 * cin, cout).astype(jnp.bfloat16)


def _wT3x3_phases(w_iohw):
    # ConvTranspose2d(3, s=2, p=1, op=1) as 4 per-output-parity weights
    # (4, 4*cr, cr); rows are grouped by neighbour (da, db) in {00,01,10,11}.
    cr = w_iohw.shape[0]
    blocks = []
    for ey in (0, 1):
        for ex in (0, 1):
            nb = []
            for da in (0, 1):
                for db in (0, 1):
                    if (ey == 1 or da == 0) and (ex == 1 or db == 0):
                        ky = 1 if ey == 0 else (2 if da == 0 else 0)
                        kx = 1 if ex == 0 else (2 if db == 0 else 0)
                        nb.append(w_iohw[:, :, ky, kx])
                    else:
                        nb.append(jnp.zeros((cr, cr), jnp.float32))
            blocks.append(jnp.concatenate(nb, axis=0))
    return jnp.stack(blocks, axis=0).astype(jnp.bfloat16)


def make_regular_bottleneck_params(key, cin, cout):
    cr = cout // 4
    ks = jax.random.split(key, 8)
    w1, bn1 = _init_conv(ks[0], cr, cin, 1, 1), _init_bn(ks[1], cr)
    w2 = _init_conv(ks[2], cr, cr, 3, 3)
    b2 = 0.1 * jax.random.normal(ks[3], (cr,), jnp.float32)
    bn2 = _init_bn(ks[4], cr)
    w3 = _init_conv(ks[5], cout, cr, 1, 1)
    b3 = 0.1 * jax.random.normal(ks[6], (cout,), jnp.float32)
    bn3 = _init_bn(ks[7], cout)
    s1, bb1 = _bn_fold(bn1)
    s2, bb2 = _bn_fold(bn2, b2)
    s3, bb3 = _bn_fold(bn3, b3)
    return dict(w1=_w1x1(w1), s1=s1, b1=bb1,
                w2=_w3x3_flat(w2), s2=s2, b2=bb2,
                w3=_w1x1(w3), s3=s3, b3=bb3)


def make_upsample_bottleneck_params(key, cin, cout):
    cr = cout // 4
    ks = jax.random.split(key, 10)
    wp, bnp_ = _init_conv(ks[0], cout, cin, 1, 1), _init_bn(ks[1], cout)
    w1, bn1 = _init_conv(ks[2], cr, cin, 1, 1), _init_bn(ks[3], cr)
    wt = (1.0 / np.sqrt(cr * 9)) * jax.random.normal(ks[4], (cr, cr, 3, 3), jnp.float32)
    b2 = 0.1 * jax.random.normal(ks[5], (cr,), jnp.float32)
    bn2 = _init_bn(ks[6], cr)
    w3 = _init_conv(ks[7], cout, cr, 1, 1)
    b3 = 0.1 * jax.random.normal(ks[8], (cout,), jnp.float32)
    bn3 = _init_bn(ks[9], cout)
    sp, bbp = _bn_fold(bnp_)
    s1, bb1 = _bn_fold(bn1)
    s2, bb2 = _bn_fold(bn2, b2)
    s3, bb3 = _bn_fold(bn3, b3)
    return dict(wp=_w1x1(wp), sp=sp, bp=bbp,
                w1=_w1x1(w1), s1=s1, b1=bb1,
                w2p=_wT3x3_phases(wt), s2=s2, b2=bb2,
                w3=_w1x1(w3), s3=s3, b3=bb3)


def make_fullconv_params(key, cin, cout):
    k1, k2 = jax.random.split(key)
    w = (1.0 / np.sqrt(cin * 4)) * jax.random.normal(k1, (cin, cout, 2, 2), jnp.float32)
    b = 0.1 * jax.random.normal(k2, (cout,), jnp.float32)
    w_eff = jnp.transpose(w, (0, 2, 3, 1)).reshape(cin, 4 * cout).astype(jnp.bfloat16)
    b_eff = jnp.tile(b, 4)[None].astype(jnp.float32)
    return dict(w=w_eff, b=b_eff)


def make_decoder_params(key, output_channels):
    ks = jax.random.split(key, 6)
    return dict(
        bottleneck_4_0=make_upsample_bottleneck_params(ks[0], 128, 64),
        bottleneck_4_1=make_regular_bottleneck_params(ks[1], 64, 64),
        bottleneck_4_2=make_regular_bottleneck_params(ks[2], 64, 64),
        bottleneck_5_0=make_upsample_bottleneck_params(ks[3], 64, 16),
        bottleneck_5_1=make_regular_bottleneck_params(ks[4], 16, 16),
        fullconv=make_fullconv_params(ks[5], 16, output_channels),
    )


# ------------------------------ decoder forward -----------------------------

def decoder_forward(params, x_nchw, pooling_stack):
    # TODO(synk): Dropout2d is identity (eval mode); BatchNorm uses running stats.
    stack = list(pooling_stack)
    x = jnp.transpose(x_nchw, (0, 2, 3, 1)).astype(jnp.float32)      # NCHW -> NHWC
    N, H, W, _ = x.shape

    # bottleneck_4_0 (upsampling, 128 -> 64)
    y = _bottleneck_upsample(_nhwc_to_flat_padded(x), stack.pop(), H, W,
                             params['bottleneck_4_0'])
    x = _phases_flat_to_nhwc(y, H, W, 64)
    H, W = 2 * H, 2 * W

    # bottleneck_4_1, bottleneck_4_2 (regular, 64 -> 64)
    f = _bottleneck_regular(_nhwc_to_flat_padded(x), H, W, params['bottleneck_4_1'])
    f = _bottleneck_regular(_flat_height_pad(f, W), H, W, params['bottleneck_4_2'])

    # bottleneck_5_0 (upsampling, 64 -> 16)
    y = _bottleneck_upsample(_flat_height_pad(f, W), stack.pop(), H, W,
                             params['bottleneck_5_0'])
    x = _phases_flat_to_nhwc(y, H, W, 16)
    H, W = 2 * H, 2 * W

    # bottleneck_5_1 (regular, 16 -> 16)
    f = _bottleneck_regular(_nhwc_to_flat_padded(x), H, W, params['bottleneck_5_1'])

    # fullconv: ConvTranspose2d(16, out_ch, 2, stride=2) + bias
    cout = params['fullconv']['w'].shape[1] // 4
    y = _fullconv(f, H, W, params['fullconv'])
    out = _phases_flat_to_nhwc(y, H, W, cout)
    return jnp.transpose(out, (0, 3, 1, 2))                          # NHWC -> NCHW


# ---------------------------------- main -------------------------------------

if __name__ == "__main__":
    key = jax.random.PRNGKey(0)
    kp, kx, ki1, ki2 = jax.random.split(key, 4)

    output_channels = 5
    N, H, W = 2, 4, 4                                  # encoder output spatial size
    params = make_decoder_params(kp, output_channels)
    x = jax.random.normal(kx, (N, 128, H, W), jnp.float32)

    def make_pool_indices(k, n, c, h, w):
        # flat indices into a (2h, 2w) map, consistent with 2x2 / stride-2 max pooling
        ka, kb = jax.random.split(k)
        a = jax.random.randint(ka, (n, c, h, w), 0, 2)
        b = jax.random.randint(kb, (n, c, h, w), 0, 2)
        yy = 2 * jnp.arange(h)[None, None, :, None] + a
        xx = 2 * jnp.arange(w)[None, None, None, :] + b
        return (yy * (2 * w) + xx).astype(jnp.int32)

    # encoder pushes level-1 indices first, level-2 last; decoder pops in reverse
    pooling_stack = (
        make_pool_indices(ki1, N, 16, 2 * H, 2 * W),   # used by bottleneck_5_0
        make_pool_indices(ki2, N, 64, H, W),           # used by bottleneck_4_0
    )

    fwd = jax.jit(decoder_forward)
    out = jax.block_until_ready(fwd(params, x, pooling_stack))
    assert out.shape == (N, output_channels, 8 * H, 8 * W), out.shape
    assert bool(jnp.all(jnp.isfinite(out)))
    print("KERNEL_OK")
</pallas_src>

<mosaic_0001>
module attributes {stable_mosaic.version = 11 : i64} {
  func.func @_regular_bottleneck_kernel(%arg0: i32, %arg1: i32, %arg2: memref<1x100x64xf32, #tpu.memory_space<vmem>>, %arg3: memref<100x1xf32, #tpu.memory_space<vmem>>, %arg4: memref<64x16xbf16, #tpu.memory_space<vmem>>, %arg5: memref<1x16xf32, #tpu.memory_space<vmem>>, %arg6: memref<1x16xf32, #tpu.memory_space<vmem>>, %arg7: memref<144x16xbf16, #tpu.memory_space<vmem>>, %arg8: memref<1x16xf32, #tpu.memory_space<vmem>>, %arg9: memref<1x16xf32, #tpu.memory_space<vmem>>, %arg10: memref<16x64xbf16, #tpu.memory_space<vmem>>, %arg11: memref<1x64xf32, #tpu.memory_space<vmem>>, %arg12: memref<1x64xf32, #tpu.memory_space<vmem>>, %arg13: memref<1x80x64xf32, #tpu.memory_space<vmem>>, %arg14: memref<116x16xf32, #tpu.memory_space<vmem>>) attributes {dimension_semantics = [#tpu.dimension_semantics<parallel>, #tpu.dimension_semantics<parallel>], iteration_bounds = array<i64: 2, 1>, scalar_prefetch = 0 : i64, scratch_operands = 1 : i64, tpu.core_type = #tpu.core_type<tc>, window_params = [{transform_indices = @transform_0, window_bounds = array<i64: 1, 100, 64>}, {pipeline_mode = #tpu.pipeline_mode<synchronous>, transform_indices = @transform_1, window_bounds = array<i64: 100, 1>}, {pipeline_mode = #tpu.pipeline_mode<synchronous>, transform_indices = @transform_2, window_bounds = array<i64: 64, 16>}, {pipeline_mode = #tpu.pipeline_mode<synchronous>, transform_indices = @transform_3, window_bounds = array<i64: 1, 16>}, {pipeline_mode = #tpu.pipeline_mode<synchronous>, transform_indices = @transform_4, window_bounds = array<i64: 1, 16>}, {pipeline_mode = #tpu.pipeline_mode<synchronous>, transform_indices = @transform_5, window_bounds = array<i64: 144, 16>}, {pipeline_mode = #tpu.pipeline_mode<synchronous>, transform_indices = @transform_6, window_bounds = array<i64: 1, 16>}, {pipeline_mode = #tpu.pipeline_mode<synchronous>, transform_indices = @transform_7, window_bounds = array<i64: 1, 16>}, {pipeline_mode = #tpu.pipeline_mode<synchronous>, transform_indices = @transform_8, window_bounds = array<i64: 16, 64>}, {pipeline_mode = #tpu.pipeline_mode<synchronous>, transform_indices = @transform_9, window_bounds = array<i64: 1, 64>}, {pipeline_mode = #tpu.pipeline_mode<synchronous>, transform_indices = @transform_10, window_bounds = array<i64: 1, 64>}, {transform_indices = @transform_11, window_bounds = array<i64: 1, 80, 64>}]} {
    %c80_i32 = arith.constant 80 : i32
    %0 = arith.muli %arg1, %c80_i32 : i32
    %c0 = arith.constant 0 : index
    %1 = arith.index_cast %0 : i32 to index
    %c0_0 = arith.constant 0 : index
    %2 = vector.load %arg2[%c0, %1, %c0_0] : memref<1x100x64xf32, #tpu.memory_space<vmem>>, vector<1x100x64xf32>
    %3 = vector.shape_cast %2 : vector<1x100x64xf32> to vector<100x64xf32>
    %4 = arith.index_cast %0 : i32 to index
    %c0_1 = arith.constant 0 : index
    %5 = vector.load %arg3[%4, %c0_1] : memref<100x1xf32, #tpu.memory_space<vmem>>, vector<100x1xf32>
    %6 = arith.truncf %3 : vector<100x64xf32> to vector<100x64xbf16>
    %c0_2 = arith.constant 0 : index
    %c0_3 = arith.constant 0 : index
    %7 = vector.load %arg4[%c0_2, %c0_3] : memref<64x16xbf16, #tpu.memory_space<vmem>>, vector<64x16xbf16>
    %cst = arith.constant dense<0.000000e+00> : vector<100x16xf32>
    %8 = tpu.matmul %6, %7, %cst {dimension_numbers = #tpu.dot_dimension_numbers<[1], [0], [0], [1], [0, 0, 1, 1], [], []>} : vector<100x64xbf16>, vector<64x16xbf16>, vector<100x16xf32> -> vector<100x16xf32>
    %c0_4 = arith.constant 0 : index
    %c0_5 = arith.constant 0 : index
    %9 = vector.load %arg5[%c0_4, %c0_5] : memref<1x16xf32, #tpu.memory_space<vmem>>, vector<1x16xf32>
    %10 = vector.broadcast %9 : vector<1x16xf32> to vector<100x16xf32>
    %11 = arith.mulf %8, %10 : vector<100x16xf32>
    %c0_6 = arith.constant 0 : index
    %c0_7 = arith.constant 0 : index
    %12 = vector.load %arg6[%c0_6, %c0_7] : memref<1x16xf32, #tpu.memory_space<vmem>>, vector<1x16xf32>
    %13 = vector.broadcast %12 : vector<1x16xf32> to vector<100x16xf32>
    %14 = arith.addf %11, %13 : vector<100x16xf32>
    %cst_8 = arith.constant 0.000000e+00 : f32
    %15 = vector.broadcast %cst_8 : f32 to vector<100x16xf32>
    %16 = arith.maximumf %14, %15 : vector<100x16xf32>
    %17 = vector.broadcast %5 : vector<100x1xf32> to vector<100x16xf32>
    %18 = arith.mulf %16, %17 : vector<100x16xf32>
    %cst_9 = arith.constant 0.000000e+00 : f32
    %19 = vector.broadcast %cst_9 : f32 to vector<8x16xf32>
    %c0_10 = arith.constant 0 : index
    %c0_11 = arith.constant 0 : index
    %20 = vector.load %arg14[%c0_10, %c0_11] : memref<116x16xf32, #tpu.memory_space<vmem>>, vector<8x16xf32>
    tpu.vector_store %arg14[%c0_10, %c0_11], %19 {strides = array<i32>} : memref<116x16xf32, #tpu.memory_space<vmem>>, vector<8x16xf32>,
    %c108 = arith.constant 108 : index
    %c0_12 = arith.constant 0 : index
    %21 = vector.load %arg14[%c108, %c0_12] : memref<116x16xf32, #tpu.memory_space<vmem>>, vector<8x16xf32>
    tpu.vector_store %arg14[%c108, %c0_12], %19 {strides = array<i32>} : memref<116x16xf32, #tpu.memory_space<vmem>>, vector<8x16xf32>,
    %c8 = arith.constant 8 : index
    %c0_13 = arith.constant 0 : index
    %22 = vector.load %arg14[%c8, %c0_13] : memref<116x16xf32, #tpu.memory_space<vmem>>, vector<100x16xf32>
    tpu.vector_store %arg14[%c8, %c0_13], %18 {strides = array<i32>} : memref<116x16xf32, #tpu.memory_space<vmem>>, vector<100x16xf32>,
    %c7 = arith.constant 7 : index
    %c0_14 = arith.constant 0 : index
    %23 = vector.load %arg14[%c7, %c0_14] : memref<116x16xf32, #tpu.memory_space<vmem>>, vector<80x16xf32>
    %c8_15 = arith.constant 8 : index
    %c0_16 = arith.constant 0 : index
    %24 = vector.load %arg14[%c8_15, %c0_16] : memref<116x16xf32, #tpu.memory_space<vmem>>, vector<80x16xf32>
    %c9 = arith.constant 9 : index
    %c0_17 = arith.constant 0 : index
    %25 = vector.load %arg14[%c9, %c0_17] : memref<116x16xf32, #tpu.memory_space<vmem>>, vector<80x16xf32>
    %c17 = arith.constant 17 : index
    %c0_18 = arith.constant 0 : index
    %26 = vector.load %arg14[%c17, %c0_18] : memref<116x16xf32, #tpu.memory_space<vmem>>, vector<80x16xf32>
    %c18 = arith.constant 18 : index
    %c0_19 = arith.constant 0 : index
    %27 = vector.load %arg14[%c18, %c0_19] : memref<116x16xf32, #tpu.memory_space<vmem>>, vector<80x16xf32>
    %c19 = arith.constant 19 : index
    %c0_20 = arith.constant 0 : index
    %28 = vector.load %arg14[%c19, %c0_20] : memref<116x16xf32, #tpu.memory_space<vmem>>, vector<80x16xf32>
    %c27 = arith.constant 27 : index
    %c0_21 = arith.constant 0 : index
    %29 = vector.load %arg14[%c27, %c0_21] : memref<116x16xf32, #tpu.memory_space<vmem>>, vector<80x16xf32>
    %c28 = arith.constant 28 : index
    %c0_22 = arith.constant 0 : index
    %30 = vector.load %arg14[%c28, %c0_22] : memref<116x16xf32, #tpu.memory_space<vmem>>, vector<80x16xf32>
    %c29 = arith.constant 29 : index
    %c0_23 = arith.constant 0 : index
    %31 = vector.load %arg14[%c29, %c0_23] : memref<116x16xf32, #tpu.memory_space<vmem>>, vector<80x16xf32>
    %32 = tpu.concatenate %23, %24, %25, %26, %27, %28, %29, %30, %31 in 1 : vector<80x16xf32>, vector<80x16xf32>, vector<80x16xf32>, vector<80x16xf32>, vector<80x16xf32>, vector<80x16xf32>, vector<80x16xf32>, vector<80x16xf32>, vector<80x16xf32> -> vector<80x144xf32>
    %33 = arith.truncf %32 : vector<80x144xf32> to vector<80x144xbf16>
    %c0_24 = arith.constant 0 : index
    %c0_25 = arith.constant 0 : index
    %34 = vector.load %arg7[%c0_24, %c0_25] : memref<144x16xbf16, #tpu.memory_space<vmem>>, vector<144x16xbf16>
    %cst_26 = arith.constant dense<0.000000e+00> : vector<80x16xf32>
    %35 = tpu.matmul %33, %34, %cst_26 {dimension_numbers = #tpu.dot_dimension_numbers<[1], [0], [0], [1], [0, 0, 1, 1], [], []>} : vector<80x144xbf16>, vector<144x16xbf16>, vector<80x16xf32> -> vector<80x16xf32>
    %c0_27 = arith.constant 0 : index
    %c0_28 = arith.constant 0 : index
    %36 = vector.load %arg8[%c0_27, %c0_28] : memref<1x16xf32, #tpu.memory_space<vmem>>, vector<1x16xf32>
    %37 = vector.broadcast %36 : vector<1x16xf32> to vector<80x16xf32>
    %38 = arith.mulf %35, %37 : vector<80x16xf32>
    %c0_29 = arith.constant 0 : index
    %c0_30 = arith.constant 0 : index
    %39 = vector.load %arg9[%c0_29, %c0_30] : memref<1x16xf32, #tpu.memory_space<vmem>>, vector<1x16xf32>
    %40 = vector.broadcast %39 : vector<1x16xf32> to vector<80x16xf32>
    %41 = arith.addf %38, %40 : vector<80x16xf32>
    %cst_31 = arith.constant 0.000000e+00 : f32
    %42 = vector.broadcast %cst_31 : f32 to vector<80x16xf32>
    %43 = arith.maximumf %41, %42 : vector<80x16xf32>
    %44 = arith.truncf %43 : vector<80x16xf32> to vector<80x16xbf16>
    %c0_32 = arith.constant 0 : index
    %c0_33 = arith.constant 0 : index
    %45 = vector.load %arg10[%c0_32, %c0_33] : memref<16x64xbf16, #tpu.memory_space<vmem>>, vector<16x64xbf16>
    %cst_34 = arith.constant dense<0.000000e+00> : vector<80x64xf32>
    %46 = tpu.matmul %44, %45, %cst_34 {dimension_numbers = #tpu.dot_dimension_numbers<[1], [0], [0], [1], [0, 0, 1, 1], [], []>} : vector<80x16xbf16>, vector<16x64xbf16>, vector<80x64xf32> -> vector<80x64xf32>
    %c0_35 = arith.constant 0 : index
    %c0_36 = arith.constant 0 : index
    %47 = vector.load %arg11[%c0_35, %c0_36] : memref<1x64xf32, #tpu.memory_space<vmem>>, vector<1x64xf32>
    %48 = vector.broadcast %47 : vector<1x64xf32> to vector<80x64xf32>
    %49 = arith.mulf %46, %48 : vector<80x64xf32>
    %c0_37 = arith.constant 0 : index
    %c0_38 = arith.constant 0 : index
    %50 = vector.load %arg12[%c0_37, %c0_38] : memref<1x64xf32, #tpu.memory_space<vmem>>, vector<1x64xf32>
    %51 = vector.broadcast %50 : vector<1x64xf32> to vector<80x64xf32>
    %52 = arith.addf %49, %51 : vector<80x64xf32>
    %cst_39 = arith.constant 0.000000e+00 : f32
    %53 = vector.broadcast %cst_39 : f32 to vector<80x64xf32>
    %54 = arith.maximumf %52, %53 : vector<80x64xf32>
    %c10_i32 = arith.constant 10 : i32
    %55 = arith.addi %0, %c10_i32 : i32
    %c0_40 = arith.constant 0 : index
    %56 = arith.index_cast %55 : i32 to index
    %c0_41 = arith.constant 0 : index
    %57 = vector.load %arg2[%c0_40, %56, %c0_41] : memref<1x100x64xf32, #tpu.memory_space<vmem>>, vector<1x80x64xf32>
    %58 = vector.shape_cast %57 : vector<1x80x64xf32> to vector<80x64xf32>
    %c10_i32_42 = arith.constant 10 : i32
    %59 = arith.addi %0, %c10_i32_42 : i32
    %60 = arith.index_cast %59 : i32 to index
    %c0_43 = arith.constant 0 : index
    %61 = vector.load %arg3[%60, %c0_43] : memref<100x1xf32, #tpu.memory_space<vmem>>, vector<80x1xf32>
    %62 = arith.addf %54, %58 : vector<80x64xf32>
    %cst_44 = arith.constant 0.000000e+00 : f32
    %63 = vector.broadcast %cst_44 : f32 to vector<80x64xf32>
    %64 = arith.maximumf %62, %63 : vector<80x64xf32>
    %65 = vector.broadcast %61 : vector<80x1xf32> to vector<80x64xf32>
    %66 = arith.mulf %64, %65 : vector<80x64xf32>
    %c0_45 = arith.constant 0 : index
    %c0_46 = arith.constant 0 : index
    %c0_47 = arith.constant 0 : index
    %67 = vector.load %arg13[%c0_45, %c0_46, %c0_47] : memref<1x80x64xf32, #tpu.memory_space<vmem>>, vector<1x80x64xf32>
    %68 = vector.shape_cast %67 : vector<1x80x64xf32> to vector<80x64xf32>
    %69 = vector.shape_cast %66 : vector<80x64xf32> to vector<1x80x64xf32>
    tpu.vector_store %arg13[%c0_45, %c0_46, %c0_47], %69 {strides = array<i32>} : memref<1x80x64xf32, #tpu.memory_space<vmem>>, vector<1x80x64xf32>,
    return
  }
  func.func @transform_0(%arg0: i32, %arg1: i32) -> (i32, i32, i32) {
    %c0_i32 = arith.constant 0 : i32
    %c0_i32_0 = arith.constant 0 : i32
    %c0_i32_1 = arith.constant 0 : i32
    return %arg0, %c0_i32, %c0_i32_0 : i32, i32, i32
  }
  func.func @transform_1(%arg0: i32, %arg1: i32) -> (i32, i32) {
    %c0_i32 = arith.constant 0 : i32
    %c0_i32_0 = arith.constant 0 : i32
    %c0_i32_1 = arith.constant 0 : i32
    return %c0_i32, %c0_i32_0 : i32, i32
  }
  func.func @transform_2(%arg0: i32, %arg1: i32) -> (i32, i32) {
    %c0_i32 = arith.constant 0 : i32
    %c0_i32_0 = arith.constant 0 : i32
    %c0_i32_1 = arith.constant 0 : i32
    return %c0_i32, %c0_i32_0 : i32, i32
  }
  func.func @transform_3(%arg0: i32, %arg1: i32) -> (i32, i32) {
    %c0_i32 = arith.constant 0 : i32
    %c0_i32_0 = arith.constant 0 : i32
    %c0_i32_1 = arith.constant 0 : i32
    return %c0_i32, %c0_i32_0 : i32, i32
  }
  func.func @transform_4(%arg0: i32, %arg1: i32) -> (i32, i32) {
    %c0_i32 = arith.constant 0 : i32
    %c0_i32_0 = arith.constant 0 : i32
    %c0_i32_1 = arith.constant 0 : i32
    return %c0_i32, %c0_i32_0 : i32, i32
  }
  func.func @transform_5(%arg0: i32, %arg1: i32) -> (i32, i32) {
    %c0_i32 = arith.constant 0 : i32
    %c0_i32_0 = arith.constant 0 : i32
    %c0_i32_1 = arith.constant 0 : i32
    return %c0_i32, %c0_i32_0 : i32, i32
  }
  func.func @transform_6(%arg0: i32, %arg1: i32) -> (i32, i32) {
    %c0_i32 = arith.constant 0 : i32
    %c0_i32_0 = arith.constant 0 : i32
    %c0_i32_1 = arith.constant 0 : i32
    return %c0_i32, %c0_i32_0 : i32, i32
  }
  func.func @transform_7(%arg0: i32, %arg1: i32) -> (i32, i32) {
    %c0_i32 = arith.constant 0 : i32
    %c0_i32_0 = arith.constant 0 : i32
    %c0_i32_1 = arith.constant 0 : i32
    return %c0_i32, %c0_i32_0 : i32, i32
  }
  func.func @transform_8(%arg0: i32, %arg1: i32) -> (i32, i32) {
    %c0_i32 = arith.constant 0 : i32
    %c0_i32_0 = arith.constant 0 : i32
    %c0_i32_1 = arith.constant 0 : i32
    return %c0_i32, %c0_i32_0 : i32, i32
  }
  func.func @transform_9(%arg0: i32, %arg1: i32) -> (i32, i32) {
    %c0_i32 = arith.constant 0 : i32
    %c0_i32_0 = arith.constant 0 : i32
    %c0_i32_1 = arith.constant 0 : i32
    return %c0_i32, %c0_i32_0 : i32, i32
  }
  func.func @transform_10(%arg0: i32, %arg1: i32) -> (i32, i32) {
    %c0_i32 = arith.constant 0 : i32
    %c0_i32_0 = arith.constant 0 : i32
    %c0_i32_1 = arith.constant 0 : i32
    return %c0_i32, %c0_i32_0 : i32, i32
  }
  func.func @transform_11(%arg0: i32, %arg1: i32) -> (i32, i32, i32) {
    %c0_i32 = arith.constant 0 : i32
    %c0_i32_0 = arith.constant 0 : i32
    return %arg0, %arg1, %c0_i32 : i32, i32, i32
  }
}

module attributes {stable_mosaic.version = 11 : i64} {
  func.func @_upsample_bottleneck_kernel(%arg0: i32, %arg1: i32, %arg2: memref<1x36x128xf32, #tpu.memory_space<vmem>>, %arg3: memref<36x1xf32, #tpu.memory_space<vmem>>, %arg4: memref<1x24x64xi32, #tpu.memory_space<vmem>>, %arg5: memref<128x64xbf16, #tpu.memory_space<vmem>>, %arg6: memref<1x64xf32, #tpu.memory_space<vmem>>, %arg7: memref<1x64xf32, #tpu.memory_space<vmem>>, %arg8: memref<128x16xbf16, #tpu.memory_space<vmem>>, %arg9: memref<1x16xf32, #tpu.memory_space<vmem>>, %arg10: memref<1x16xf32, #tpu.memory_space<vmem>>, %arg11: memref<4x64x16xbf16, #tpu.memory_space<vmem>>, %arg12: memref<1x16xf32, #tpu.memory_space<vmem>>, %arg13: memref<1x16xf32, #tpu.memory_space<vmem>>, %arg14: memref<16x64xbf16, #tpu.memory_space<vmem>>, %arg15: memref<1x64xf32, #tpu.memory_space<vmem>>, %arg16: memref<1x64xf32, #tpu.memory_space<vmem>>, %arg17: memref<1x24x256xf32, #tpu.memory_space<vmem>>, %arg18: memref<52x16xf32, #tpu.memory_space<vmem>>) attributes {dimension_semantics = [#tpu.dimension_semantics<parallel>, #tpu.dimension_semantics<parallel>], iteration_bounds = array<i64: 2, 1>, scalar_prefetch = 0 : i64, scratch_operands = 1 : i64, tpu.core_type = #tpu.core_type<tc>, window_params = [{transform_indices = @transform_0, window_bounds = array<i64: 1, 36, 128>}, {pipeline_mode = #tpu.pipeline_mode<synchronous>, transform_indices = @transform_1, window_bounds = array<i64: 36, 1>}, {transform_indices = @transform_2, window_bounds = array<i64: 1, 24, 64>}, {pipeline_mode = #tpu.pipeline_mode<synchronous>, transform_indices = @transform_3, window_bounds = array<i64: 128, 64>}, {pipeline_mode = #tpu.pipeline_mode<synchronous>, transform_indices = @transform_4, window_bounds = array<i64: 1, 64>}, {pipeline_mode = #tpu.pipeline_mode<synchronous>, transform_indices = @transform_5, window_bounds = array<i64: 1, 64>}, {pipeline_mode = #tpu.pipeline_mode<synchronous>, transform_indices = @transform_6, window_bounds = array<i64: 128, 16>}, {pipeline_mode = #tpu.pipeline_mode<synchronous>, transform_indices = @transform_7, window_bounds = array<i64: 1, 16>}, {pipeline_mode = #tpu.pipeline_mode<synchronous>, transform_indices = @transform_8, window_bounds = array<i64: 1, 16>}, {pipeline_mode = #tpu.pipeline_mode<synchronous>, transform_indices = @transform_9, window_bounds = array<i64: 4, 64, 16>}, {pipeline_mode = #tpu.pipeline_mode<synchronous>, transform_indices = @transform_10, window_bounds = array<i64: 1, 16>}, {pipeline_mode = #tpu.pipeline_mode<synchronous>, transform_indices = @transform_11, window_bounds = array<i64: 1, 16>}, {pipeline_mode = #tpu.pipeline_mode<synchronous>, transform_indices = @transform_12, window_bounds = array<i64: 16, 64>}, {pipeline_mode = #tpu.pipeline_mode<synchronous>, transform_indices = @transform_13, window_bounds = array<i64: 1, 64>}, {pipeline_mode = #tpu.pipeline_mode<synchronous>, transform_indices = @transform_14, window_bounds = array<i64: 1, 64>}, {transform_indices = @transform_15, window_bounds = array<i64: 1, 24, 256>}]} {
    %c24_i32 = arith.constant 24 : i32
    %0 = arith.muli %arg1, %c24_i32 : i32
    %c0 = arith.constant 0 : index
    %1 = arith.index_cast %0 : i32 to index
    %c0_0 = arith.constant 0 : index
    %2 = vector.load %arg2[%c0, %1, %c0_0] : memref<1x36x128xf32, #tpu.memory_space<vmem>>, vector<1x36x128xf32>
    %3 = vector.shape_cast %2 : vector<1x36x128xf32> to vector<36x128xf32>
    %4 = arith.index_cast %0 : i32 to index
    %c0_1 = arith.constant 0 : index
    %5 = vector.load %arg3[%4, %c0_1] : memref<36x1xf32, #tpu.memory_space<vmem>>, vector<36x1xf32>
    %6 = arith.truncf %3 : vector<36x128xf32> to vector<36x128xbf16>
    %c0_2 = arith.constant 0 : index
    %c0_3 = arith.constant 0 : index
    %7 = vector.load %arg8[%c0_2, %c0_3] : memref<128x16xbf16, #tpu.memory_space<vmem>>, vector<128x16xbf16>
    %cst = arith.constant dense<0.000000e+00> : vector<36x16xf32>
    %8 = tpu.matmul %6, %7, %cst {dimension_numbers = #tpu.dot_dimension_numbers<[1], [0], [0], [1], [0, 0, 1, 1], [], []>} : vector<36x128xbf16>, vector<128x16xbf16>, vector<36x16xf32> -> vector<36x16xf32>
    %c0_4 = arith.constant 0 : index
    %c0_5 = arith.constant 0 : index
    %9 = vector.load %arg9[%c0_4, %c0_5] : memref<1x16xf32, #tpu.memory_space<vmem>>, vector<1x16xf32>
    %10 = vector.broadcast %9 : vector<1x16xf32> to vector<36x16xf32>
    %11 = arith.mulf %8, %10 : vector<36x16xf32>
    %c0_6 = arith.constant 0 : index
    %c0_7 = arith.constant 0 : index
    %12 = vector.load %arg10[%c0_6, %c0_7] : memref<1x16xf32, #tpu.memory_space<vmem>>, vector<1x16xf32>
    %13 = vector.broadcast %12 : vector<1x16xf32> to vector<36x16xf32>
    %14 = arith.addf %11, %13 : vector<36x16xf32>
    %cst_8 = arith.constant 0.000000e+00 : f32
    %15 = vector.broadcast %cst_8 : f32 to vector<36x16xf32>
    %16 = arith.maximumf %14, %15 : vector<36x16xf32>
    %17 = vector.broadcast %5 : vector<36x1xf32> to vector<36x16xf32>
    %18 = arith.mulf %16, %17 : vector<36x16xf32>
    %cst_9 = arith.constant 0.000000e+00 : f32
    %19 = vector.broadcast %cst_9 : f32 to vector<8x16xf32>
    %c0_10 = arith.constant 0 : index
    %c0_11 = arith.constant 0 : index
    %20 = vector.load %arg18[%c0_10, %c0_11] : memref<52x16xf32, #tpu.memory_space<vmem>>, vector<8x16xf32>
    tpu.vector_store %arg18[%c0_10, %c0_11], %19 {strides = array<i32>} : memref<52x16xf32, #tpu.memory_space<vmem>>, vector<8x16xf32>,
    %c44 = arith.constant 44 : index
    %c0_12 = arith.constant 0 : index
    %21 = vector.load %arg18[%c44, %c0_12] : memref<52x16xf32, #tpu.memory_space<vmem>>, vector<8x16xf32>
    tpu.vector_store %arg18[%c44, %c0_12], %19 {strides = array<i32>} : memref<52x16xf32, #tpu.memory_space<vmem>>, vector<8x16xf32>,
    %c8 = arith.constant 8 : index
    %c0_13 = arith.constant 0 : index
    %22 = vector.load %arg18[%c8, %c0_13] : memref<52x16xf32, #tpu.memory_space<vmem>>, vector<36x16xf32>
    tpu.vector_store %arg18[%c8, %c0_13], %18 {strides = array<i32>} : memref<52x16xf32, #tpu.memory_space<vmem>>, vector<36x16xf32>,
    %c6_i32 = arith.constant 6 : i32
    %23 = arith.addi %0, %c6_i32 : i32
    %c0_14 = arith.constant 0 : index
    %24 = arith.index_cast %23 : i32 to index
    %c0_15 = arith.constant 0 : index
    %25 = vector.load %arg2[%c0_14, %24, %c0_15] : memref<1x36x128xf32, #tpu.memory_space<vmem>>, vector<1x24x128xf32>
    %26 = vector.shape_cast %25 : vector<1x24x128xf32> to vector<24x128xf32>
    %c6_i32_16 = arith.constant 6 : i32
    %27 = arith.addi %0, %c6_i32_16 : i32
    %28 = arith.index_cast %27 : i32 to index
    %c0_17 = arith.constant 0 : index
    %29 = vector.load %arg3[%28, %c0_17] : memref<36x1xf32, #tpu.memory_space<vmem>>, vector<24x1xf32>
    %30 = arith.truncf %26 : vector<24x128xf32> to vector<24x128xbf16>
    %c0_18 = arith.constant 0 : index
    %c0_19 = arith.constant 0 : index
    %31 = vector.load %arg5[%c0_18, %c0_19] : memref<128x64xbf16, #tpu.memory_space<vmem>>, vector<128x64xbf16>
    %cst_20 = arith.constant dense<0.000000e+00> : vector<24x64xf32>
    %32 = tpu.matmul %30, %31, %cst_20 {dimension_numbers = #tpu.dot_dimension_numbers<[1], [0], [0], [1], [0, 0, 1, 1], [], []>} : vector<24x128xbf16>, vector<128x64xbf16>, vector<24x64xf32> -> vector<24x64xf32>
    %c0_21 = arith.constant 0 : index
    %c0_22 = arith.constant 0 : index
    %33 = vector.load %arg6[%c0_21, %c0_22] : memref<1x64xf32, #tpu.memory_space<vmem>>, vector<1x64xf32>
    %34 = vector.broadcast %33 : vector<1x64xf32> to vector<24x64xf32>
    %35 = arith.mulf %32, %34 : vector<24x64xf32>
    %c0_23 = arith.constant 0 : index
    %c0_24 = arith.constant 0 : index
    %36 = vector.load %arg7[%c0_23, %c0_24] : memref<1x64xf32, #tpu.memory_space<vmem>>, vector<1x64xf32>
    %37 = vector.broadcast %36 : vector<1x64xf32> to vector<24x64xf32>
    %38 = arith.addf %35, %37 : vector<24x64xf32>
    %c0_25 = arith.constant 0 : index
    %c0_26 = arith.constant 0 : index
    %c0_27 = arith.constant 0 : index
    %39 = vector.load %arg4[%c0_25, %c0_26, %c0_27] : memref<1x24x64xi32, #tpu.memory_space<vmem>>, vector<1x24x64xi32>
    %40 = vector.shape_cast %39 : vector<1x24x64xi32> to vector<24x64xi32>
    %c14 = arith.constant 14 : index
    %c0_28 = arith.constant 0 : index
    %41 = vector.load %arg18[%c14, %c0_28] : memref<52x16xf32, #tpu.memory_space<vmem>>, vector<24x16xf32>
    %c15 = arith.constant 15 : index
    %c0_29 = arith.constant 0 : index
    %42 = vector.load %arg18[%c15, %c0_29] : memref<52x16xf32, #tpu.memory_space<vmem>>, vector<24x16xf32>
    %c20 = arith.constant 20 : index
    %c0_30 = arith.constant 0 : index
    %43 = vector.load %arg18[%c20, %c0_30] : memref<52x16xf32, #tpu.memory_space<vmem>>, vector<24x16xf32>
    %c21 = arith.constant 21 : index
    %c0_31 = arith.constant 0 : index
    %44 = vector.load %arg18[%c21, %c0_31] : memref<52x16xf32, #tpu.memory_space<vmem>>, vector<24x16xf32>
    %45 = tpu.concatenate %41, %42, %43, %44 in 1 : vector<24x16xf32>, vector<24x16xf32>, vector<24x16xf32>, vector<24x16xf32> -> vector<24x64xf32>
    %46 = arith.truncf %45 : vector<24x64xf32> to vector<24x64xbf16>
    %c0_32 = arith.constant 0 : index
    %c0_33 = arith.constant 0 : index
    %c0_34 = arith.constant 0 : index
    %47 = vector.load %arg11[%c0_32, %c0_33, %c0_34] : memref<4x64x16xbf16, #tpu.memory_space<vmem>>, vector<1x64x16xbf16>
    %48 = vector.shape_cast %47 : vector<1x64x16xbf16> to vector<64x16xbf16>
    %cst_35 = arith.constant dense<0.000000e+00> : vector<24x16xf32>
    %49 = tpu.matmul %46, %48, %cst_35 {dimension_numbers = #tpu.dot_dimension_numbers<[1], [0], [0], [1], [0, 0, 1, 1], [], []>} : vector<24x64xbf16>, vector<64x16xbf16>, vector<24x16xf32> -> vector<24x16xf32>
    %c0_36 = arith.constant 0 : index
    %c0_37 = arith.constant 0 : index
    %50 = vector.load %arg12[%c0_36, %c0_37] : memref<1x16xf32, #tpu.memory_space<vmem>>, vector<1x16xf32>
    %51 = vector.broadcast %50 : vector<1x16xf32> to vector<24x16xf32>
    %52 = arith.mulf %49, %51 : vector<24x16xf32>
    %c0_38 = arith.constant 0 : index
    %c0_39 = arith.constant 0 : index
    %53 = vector.load %arg13[%c0_38, %c0_39] : memref<1x16xf32, #tpu.memory_space<vmem>>, vector<1x16xf32>
    %54 = vector.broadcast %53 : vector<1x16xf32> to vector<24x16xf32>
    %55 = arith.addf %52, %54 : vector<24x16xf32>
    %cst_40 = arith.constant 0.000000e+00 : f32
    %56 = vector.broadcast %cst_40 : f32 to vector<24x16xf32>
    %57 = arith.maximumf %55, %56 : vector<24x16xf32>
    %58 = arith.truncf %57 : vector<24x16xf32> to vector<24x16xbf16>
    %c0_41 = arith.constant 0 : index
    %c0_42 = arith.constant 0 : index
    %59 = vector.load %arg14[%c0_41, %c0_42] : memref<16x64xbf16, #tpu.memory_space<vmem>>, vector<16x64xbf16>
    %cst_43 = arith.constant dense<0.000000e+00> : vector<24x64xf32>
    %60 = tpu.matmul %58, %59, %cst_43 {dimension_numbers = #tpu.dot_dimension_numbers<[1], [0], [0], [1], [0, 0, 1, 1], [], []>} : vector<24x16xbf16>, vector<16x64xbf16>, vector<24x64xf32> -> vector<24x64xf32>
    %c0_44 = arith.constant 0 : index
    %c0_45 = arith.constant 0 : index
    %61 = vector.load %arg15[%c0_44, %c0_45] : memref<1x64xf32, #tpu.memory_space<vmem>>, vector<1x64xf32>
    %62 = vector.broadcast %61 : vector<1x64xf32> to vector<24x64xf32>
    %63 = arith.mulf %60, %62 : vector<24x64xf32>
    %c0_46 = arith.constant 0 : index
    %c0_47 = arith.constant 0 : index
    %64 = vector.load %arg16[%c0_46, %c0_47] : memref<1x64xf32, #tpu.memory_space<vmem>>, vector<1x64xf32>
    %65 = vector.broadcast %64 : vector<1x64xf32> to vector<24x64xf32>
    %66 = arith.addf %63, %65 : vector<24x64xf32>
    %cst_48 = arith.constant 0.000000e+00 : f32
    %67 = vector.broadcast %cst_48 : f32 to vector<24x64xf32>
    %68 = arith.maximumf %66, %67 : vector<24x64xf32>
    %c0_i32 = arith.constant 0 : i32
    %69 = vector.broadcast %c0_i32 : i32 to vector<24x64xi32>
    %70 = arith.cmpi eq, %40, %69 : vector<24x64xi32>
    %cst_49 = arith.constant 0.000000e+00 : f32
    %71 = vector.broadcast %cst_49 : f32 to vector<24x64xf32>
    %72 = arith.select %70, %38, %71 : vector<24x64xi1>, vector<24x64xf32>
    %73 = arith.addf %68, %72 : vector<24x64xf32>
    %cst_50 = arith.constant 0.000000e+00 : f32
    %74 = vector.broadcast %cst_50 : f32 to vector<24x64xf32>
    %75 = arith.maximumf %73, %74 : vector<24x64xf32>
    %76 = vector.broadcast %29 : vector<24x1xf32> to vector<24x64xf32>
    %77 = arith.mulf %75, %76 : vector<24x64xf32>
    %78 = arith.truncf %45 : vector<24x64xf32> to vector<24x64xbf16>
    %c1 = arith.constant 1 : index
    %c0_51 = arith.constant 0 : index
    %c0_52 = arith.constant 0 : index
    %79 = vector.load %arg11[%c1, %c0_51, %c0_52] : memref<4x64x16xbf16, #tpu.memory_space<vmem>>, vector<1x64x16xbf16>
    %80 = vector.shape_cast %79 : vector<1x64x16xbf16> to vector<64x16xbf16>
    %cst_53 = arith.constant dense<0.000000e+00> : vector<24x16xf32>
    %81 = tpu.matmul %78, %80, %cst_53 {dimension_numbers = #tpu.dot_dimension_numbers<[1], [0], [0], [1], [0, 0, 1, 1], [], []>} : vector<24x64xbf16>, vector<64x16xbf16>, vector<24x16xf32> -> vector<24x16xf32>
    %c0_54 = arith.constant 0 : index
    %c0_55 = arith.constant 0 : index
    %82 = vector.load %arg12[%c0_54, %c0_55] : memref<1x16xf32, #tpu.memory_space<vmem>>, vector<1x16xf32>
    %83 = vector.broadcast %82 : vector<1x16xf32> to vector<24x16xf32>
    %84 = arith.mulf %81, %83 : vector<24x16xf32>
    %c0_56 = arith.constant 0 : index
    %c0_57 = arith.constant 0 : index
    %85 = vector.load %arg13[%c0_56, %c0_57] : memref<1x16xf32, #tpu.memory_space<vmem>>, vector<1x16xf32>
    %86 = vector.broadcast %85 : vector<1x16xf32> to vector<24x16xf32>
    %87 = arith.addf %84, %86 : vector<24x16xf32>
    %cst_58 = arith.constant 0.000000e+00 : f32
    %88 = vector.broadcast %cst_58 : f32 to vector<24x16xf32>
    %89 = arith.maximumf %87, %88 : vector<24x16xf32>
    %90 = arith.truncf %89 : vector<24x16xf32> to vector<24x16xbf16>
    %c0_59 = arith.constant 0 : index
    %c0_60 = arith.constant 0 : index
    %91 = vector.load %arg14[%c0_59, %c0_60] : memref<16x64xbf16, #tpu.memory_space<vmem>>, vector<16x64xbf16>
    %cst_61 = arith.constant dense<0.000000e+00> : vector<24x64xf32>
    %92 = tpu.matmul %90, %91, %cst_61 {dimension_numbers = #tpu.dot_dimension_numbers<[1], [0], [0], [1], [0, 0, 1, 1], [], []>} : vector<24x16xbf16>, vector<16x64xbf16>, vector<24x64xf32> -> vector<24x64xf32>
    %c0_62 = arith.constant 0 : index
    %c0_63 = arith.constant 0 : index
    %93 = vector.load %arg15[%c0_62, %c0_63] : memref<1x64xf32, #tpu.memory_space<vmem>>, vector<1x64xf32>
    %94 = vector.broadcast %93 : vector<1x64xf32> to vector<24x64xf32>
    %95 = arith.mulf %92, %94 : vector<24x64xf32>
    %c0_64 = arith.constant 0 : index
    %c0_65 = arith.constant 0 : index
    %96 = vector.load %arg16[%c0_64, %c0_65] : memref<1x64xf32, #tpu.memory_space<vmem>>, vector<1x64xf32>
    %97 = vector.broadcast %96 : vector<1x64xf32> to vector<24x64xf32>
    %98 = arith.addf %95, %97 : vector<24x64xf32>
    %cst_66 = arith.constant 0.000000e+00 : f32
    %99 = vector.broadcast %cst_66 : f32 to vector<24x64xf32>
    %100 = arith.maximumf %98, %99 : vector<24x64xf32>
    %c1_i32 = arith.constant 1 : i32
    %101 = vector.broadcast %c1_i32 : i32 to vector<24x64xi32>
    %102 = arith.cmpi eq, %40, %101 : vector<24x64xi32>
    %cst_67 = arith.constant 0.000000e+00 : f32
    %103 = vector.broadcast %cst_67 : f32 to vector<24x64xf32>
    %104 = arith.select %102, %38, %103 : vector<24x64xi1>, vector<24x64xf32>
    %105 = arith.addf %100, %104 : vector<24x64xf32>
    %cst_68 = arith.constant 0.000000e+00 : f32
    %106 = vector.broadcast %cst_68 : f32 to vector<24x64xf32>
    %107 = arith.maximumf %105, %106 : vector<24x64xf32>
    %108 = vector.broadcast %29 : vector<24x1xf32> to vector<24x64xf32>
    %109 = arith.mulf %107, %108 : vector<24x64xf32>
    %110 = arith.truncf %45 : vector<24x64xf32> to vector<24x64xbf16>
    %c2 = arith.constant 2 : index
    %c0_69 = arith.constant 0 : index
    %c0_70 = arith.constant 0 : index
    %111 = vector.load %arg11[%c2, %c0_69, %c0_70] : memref<4x64x16xbf16, #tpu.memory_space<vmem>>, vector<1x64x16xbf16>
    %112 = vector.shape_cast %111 : vector<1x64x16xbf16> to vector<64x16xbf16>
    %cst_71 = arith.constant dense<0.000000e+00> : vector<24x16xf32>
    %113 = tpu.matmul %110, %112, %cst_71 {dimension_numbers = #tpu.dot_dimension_numbers<[1], [0], [0], [1], [0, 0, 1, 1], [], []>} : vector<24x64xbf16>, vector<64x16xbf16>, vector<24x16xf32> -> vector<24x16xf32>
    %c0_72 = arith.constant 0 : index
    %c0_73 = arith.constant 0 : index
    %114 = vector.load %arg12[%c0_72, %c0_73] : memref<1x16xf32, #tpu.memory_space<vmem>>, vector<1x16xf32>
    %115 = vector.broadcast %114 : vector<1x16xf32> to vector<24x16xf32>
    %116 = arith.mulf %113, %115 : vector<24x16xf32>
    %c0_74 = arith.constant 0 : index
    %c0_75 = arith.constant 0 : index
    %117 = vector.load %arg13[%c0_74, %c0_75] : memref<1x16xf32, #tpu.memory_space<vmem>>, vector<1x16xf32>
    %118 = vector.broadcast %117 : vector<1x16xf32> to vector<24x16xf32>
    %119 = arith.addf %116, %118 : vector<24x16xf32>
    %cst_76 = arith.constant 0.000000e+00 : f32
    %120 = vector.broadcast %cst_76 : f32 to vector<24x16xf32>
    %121 = arith.maximumf %119, %120 : vector<24x16xf32>
    %122 = arith.truncf %121 : vector<24x16xf32> to vector<24x16xbf16>
    %c0_77 = arith.constant 0 : index
    %c0_78 = arith.constant 0 : index
    %123 = vector.load %arg14[%c0_77, %c0_78] : memref<16x64xbf16, #tpu.memory_space<vmem>>, vector<16x64xbf16>
    %cst_79 = arith.constant dense<0.000000e+00> : vector<24x64xf32>
    %124 = tpu.matmul %122, %123, %cst_79 {dimension_numbers = #tpu.dot_dimension_numbers<[1], [0], [0], [1], [0, 0, 1, 1], [], []>} : vector<24x16xbf16>, vector<16x64xbf16>, vector<24x64xf32> -> vector<24x64xf32>
    %c0_80 = arith.constant 0 : index
    %c0_81 = arith.constant 0 : index
    %125 = vector.load %arg15[%c0_80, %c0_81] : memref<1x64xf32, #tpu.memory_space<vmem>>, vector<1x64xf32>
    %126 = vector.broadcast %125 : vector<1x64xf32> to vector<24x64xf32>
    %127 = arith.mulf %124, %126 : vector<24x64xf32>
    %c0_82 = arith.constant 0 : index
    %c0_83 = arith.constant 0 : index
    %128 = vector.load %arg16[%c0_82, %c0_83] : memref<1x64xf32, #tpu.memory_space<vmem>>, vector<1x64xf32>
    %129 = vector.broadcast %128 : vector<1x64xf32> to vector<24x64xf32>
    %130 = arith.addf %127, %129 : vector<24x64xf32>
    %cst_84 = arith.constant 0.000000e+00 : f32
    %131 = vector.broadcast %cst_84 : f32 to vector<24x64xf32>
    %132 = arith.maximumf %130, %131 : vector<24x64xf32>
    %c2_i32 = arith.constant 2 : i32
    %133 = vector.broadcast %c2_i32 : i32 to vector<24x64xi32>
    %134 = arith.cmpi eq, %40, %133 : vector<24x64xi32>
    %cst_85 = arith.constant 0.000000e+00 : f32
    %135 = vector.broadcast %cst_85 : f32 to vector<24x64xf32>
    %136 = arith.select %134, %38, %135 : vector<24x64xi1>, vector<24x64xf32>
    %137 = arith.addf %132, %136 : vector<24x64xf32>
    %cst_86 = arith.constant 0.000000e+00 : f32
    %138 = vector.broadcast %cst_86 : f32 to vector<24x64xf32>
    %139 = arith.maximumf %137, %138 : vector<24x64xf32>
    %140 = vector.broadcast %29 : vector<24x1xf32> to vector<24x64xf32>
    %141 = arith.mulf %139, %140 : vector<24x64xf32>
    %142 = arith.truncf %45 : vector<24x64xf32> to vector<24x64xbf16>
    %c3 = arith.constant 3 : index
    %c0_87 = arith.constant 0 : index
    %c0_88 = arith.constant 0 : index
    %143 = vector.load %arg11[%c3, %c0_87, %c0_88] : memref<4x64x16xbf16, #tpu.memory_space<vmem>>, vector<1x64x16xbf16>
    %144 = vector.shape_cast %143 : vector<1x64x16xbf16> to vector<64x16xbf16>
    %cst_89 = arith.constant dense<0.000000e+00> : vector<24x16xf32>
    %145 = tpu.matmul %142, %144, %cst_89 {dimension_numbers = #tpu.dot_dimension_numbers<[1], [0], [0], [1], [0, 0, 1, 1], [], []>} : vector<24x64xbf16>, vector<64x16xbf16>, vector<24x16xf32> -> vector<24x16xf32>
    %c0_90 = arith.constant 0 : index
    %c0_91 = arith.constant 0 : index
    %146 = vector.load %arg12[%c0_90, %c0_91] : memref<1x16xf32, #tpu.memory_space<vmem>>, vector<1x16xf32>
    %147 = vector.broadcast %146 : vector<1x16xf32> to vector<24x16xf32>
    %148 = arith.mulf %145, %147 : vector<24x16xf32>
    %c0_92 = arith.constant 0 : index
    %c0_93 = arith.constant 0 : index
    %149 = vector.load %arg13[%c0_92, %c0_93] : memref<1x16xf32, #tpu.memory_space<vmem>>, vector<1x16xf32>
    %150 = vector.broadcast %149 : vector<1x16xf32> to vector<24x16xf32>
    %151 = arith.addf %148, %150 : vector<24x16xf32>
    %cst_94 = arith.constant 0.000000e+00 : f32
    %152 = vector.broadcast %cst_94 : f32 to vector<24x16xf32>
    %153 = arith.maximumf %151, %152 : vector<24x16xf32>
    %154 = arith.truncf %153 : vector<24x16xf32> to vector<24x16xbf16>
    %c0_95 = arith.constant 0 : index
    %c0_96 = arith.constant 0 : index
    %155 = vector.load %arg14[%c0_95, %c0_96] : memref<16x64xbf16, #tpu.memory_space<vmem>>, vector<16x64xbf16>
    %cst_97 = arith.constant dense<0.000000e+00> : vector<24x64xf32>
    %156 = tpu.matmul %154, %155, %cst_97 {dimension_numbers = #tpu.dot_dimension_numbers<[1], [0], [0], [1], [0, 0, 1, 1], [], []>} : vector<24x16xbf16>, vector<16x64xbf16>, vector<24x64xf32> -> vector<24x64xf32>
    %c0_98 = arith.constant 0 : index
    %c0_99 = arith.constant 0 : index
    %157 = vector.load %arg15[%c0_98, %c0_99] : memref<1x64xf32, #tpu.memory_space<vmem>>, vector<1x64xf32>
    %158 = vector.broadcast %157 : vector<1x64xf32> to vector<24x64xf32>
    %159 = arith.mulf %156, %158 : vector<24x64xf32>
    %c0_100 = arith.constant 0 : index
    %c0_101 = arith.constant 0 : index
    %160 = vector.load %arg16[%c0_100, %c0_101] : memref<1x64xf32, #tpu.memory_space<vmem>>, vector<1x64xf32>
    %161 = vector.broadcast %160 : vector<1x64xf32> to vector<24x64xf32>
    %162 = arith.addf %159, %161 : vector<24x64xf32>
    %cst_102 = arith.constant 0.000000e+00 : f32
    %163 = vector.broadcast %cst_102 : f32 to vector<24x64xf32>
    %164 = arith.maximumf %162, %163 : vector<24x64xf32>
    %c3_i32 = arith.constant 3 : i32
    %165 = vector.broadcast %c3_i32 : i32 to vector<24x64xi32>
    %166 = arith.cmpi eq, %40, %165 : vector<24x64xi32>
    %cst_103 = arith.constant 0.000000e+00 : f32
    %167 = vector.broadcast %cst_103 : f32 to vector<24x64xf32>
    %168 = arith.select %166, %38, %167 : vector<24x64xi1>, vector<24x64xf32>
    %169 = arith.addf %164, %168 : vector<24x64xf32>
    %cst_104 = arith.constant 0.000000e+00 : f32
    %170 = vector.broadcast %cst_104 : f32 to vector<24x64xf32>
    %171 = arith.maximumf %169, %170 : vector<24x64xf32>
    %172 = vector.broadcast %29 : vector<24x1xf32> to vector<24x64xf32>
    %173 = arith.mulf %171, %172 : vector<24x64xf32>
    %174 = tpu.concatenate %77, %109, %141, %173 in 1 : vector<24x64xf32>, vector<24x64xf32>, vector<24x64xf32>, vector<24x64xf32> -> vector<24x256xf32>
    %c0_105 = arith.constant 0 : index
    %c0_106 = arith.constant 0 : index
    %c0_107 = arith.constant 0 : index
    %175 = vector.load %arg17[%c0_105, %c0_106, %c0_107] : memref<1x24x256xf32, #tpu.memory_space<vmem>>, vector<1x24x256xf32>
    %176 = vector.shape_cast %175 : vector<1x24x256xf32> to vector<24x256xf32>
    %177 = vector.shape_cast %174 : vector<24x256xf32> to vector<1x24x256xf32>
    tpu.vector_store %arg17[%c0_105, %c0_106, %c0_107], %177 {strides = array<i32>} : memref<1x24x256xf32, #tpu.memory_space<vmem>>, vector<1x24x256xf32>,
    return
  }
  func.func @transform_0(%arg0: i32, %arg1: i32) -> (i32, i32, i32) {
    %c0_i32 = arith.constant 0 : i32
    %c0_i32_0 = arith.constant 0 : i32
    %c0_i32_1 = arith.constant 0 : i32
    return %arg0, %c0_i32, %c0_i32_0 : i32, i32, i32
  }
  func.func @transform_1(%arg0: i32, %arg1: i32) -> (i32, i32) {
    %c0_i32 = arith.constant 0 : i32
    %c0_i32_0 = arith.constant 0 : i32
    %c0_i32_1 = arith.constant 0 : i32
    return %c0_i32, %c0_i32_0 : i32, i32
  }
  func.func @transform_2(%arg0: i32, %arg1: i32) -> (i32, i32, i32) {
    %c0_i32 = arith.constant 0 : i32
    %c0_i32_0 = arith.constant 0 : i32
    return %arg0, %arg1, %c0_i32 : i32, i32, i32
  }
  func.func @transform_3(%arg0: i32, %arg1: i32) -> (i32, i32) {
    %c0_i32 = arith.constant 0 : i32
    %c0_i32_0 = arith.constant 0 : i32
    %c0_i32_1 = arith.constant 0 : i32
    return %c0_i32, %c0_i32_0 : i32, i32
  }
  func.func @transform_4(%arg0: i32, %arg1: i32) -> (i32, i32) {
    %c0_i32 = arith.constant 0 : i32
    %c0_i32_0 = arith.constant 0 : i32
    %c0_i32_1 = arith.constant 0 : i32
    return %c0_i32, %c0_i32_0 : i32, i32
  }
  func.func @transform_5(%arg0: i32, %arg1: i32) -> (i32, i32) {
    %c0_i32 = arith.constant 0 : i32
    %c0_i32_0 = arith.constant 0 : i32
    %c0_i32_1 = arith.constant 0 : i32
    return %c0_i32, %c0_i32_0 : i32, i32
  }
  func.func @transform_6(%arg0: i32, %arg1: i32) -> (i32, i32) {
    %c0_i32 = arith.constant 0 : i32
    %c0_i32_0 = arith.constant 0 : i32
    %c0_i32_1 = arith.constant 0 : i32
    return %c0_i32, %c0_i32_0 : i32, i32
  }
  func.func @transform_7(%arg0: i32, %arg1: i32) -> (i32, i32) {
    %c0_i32 = arith.constant 0 : i32
    %c0_i32_0 = arith.constant 0 : i32
    %c0_i32_1 = arith.constant 0 : i32
    return %c0_i32, %c0_i32_0 : i32, i32
  }
  func.func @transform_8(%arg0: i32, %arg1: i32) -> (i32, i32) {
    %c0_i32 = arith.constant 0 : i32
    %c0_i32_0 = arith.constant 0 : i32
    %c0_i32_1 = arith.constant 0 : i32
    return %c0_i32, %c0_i32_0 : i32, i32
  }
  func.func @transform_9(%arg0: i32, %arg1: i32) -> (i32, i32, i32) {
    %c0_i32 = arith.constant 0 : i32
    %c0_i32_0 = arith.constant 0 : i32
    %c0_i32_1 = arith.constant 0 : i32
    %c0_i32_2 = arith.constant 0 : i32
    return %c0_i32, %c0_i32_0, %c0_i32_1 : i32, i32, i32
  }
  func.func @transform_10(%arg0: i32, %arg1: i32) -> (i32, i32) {
    %c0_i32 = arith.constant 0 : i32
    %c0_i32_0 = arith.constant 0 : i32
    %c0_i32_1 = arith.constant 0 : i32
    return %c0_i32, %c0_i32_0 : i32, i32
  }
  func.func @transform_11(%arg0: i32, %arg1: i32) -> (i32, i32) {
    %c0_i32 = arith.constant 0 : i32
    %c0_i32_0 = arith.constant 0 : i32
    %c0_i32_1 = arith.constant 0 : i32
    return %c0_i32, %c0_i32_0 : i32, i32
  }
  func.func @transform_12(%arg0: i32, %arg1: i32) -> (i32, i32) {
    %c0_i32 = arith.constant 0 : i32
    %c0_i32_0 = arith.constant 0 : i32
    %c0_i32_1 = arith.constant 0 : i32
    return %c0_i32, %c0_i32_0 : i32, i32
  }
  func.func @transform_13(%arg0: i32, %arg1: i32) -> (i32, i32) {
    %c0_i32 = arith.constant 0 : i32
    %c0_i32_0 = arith.constant 0 : i32
    %c0_i32_1 = arith.constant 0 : i32
    return %c0_i32, %c0_i32_0 : i32, i32
  }
  func.func @transform_14(%arg0: i32, %arg1: i32) -> (i32, i32) {
    %c0_i32 = arith.constant 0 : i32
    %c0_i32_0 = arith.constant 0 : i32
    %c0_i32_1 = arith.constant 0 : i32
    return %c0_i32, %c0_i32_0 : i32, i32
  }
  func.func @transform_15(%arg0: i32, %arg1: i32) -> (i32, i32, i32) {
    %c0_i32 = arith.constant 0 : i32
    %c0_i32_0 = arith.constant 0 : i32
    return %arg0, %arg1, %c0_i32 : i32, i32, i32
  }
}

module attributes {stable_mosaic.version = 11 : i64} {
  func.func @_upsample_bottleneck_kernel(%arg0: i32, %arg1: i32, %arg2: memref<1x100x64xf32, #tpu.memory_space<vmem>>, %arg3: memref<100x1xf32, #tpu.memory_space<vmem>>, %arg4: memref<1x80x16xi32, #tpu.memory_space<vmem>>, %arg5: memref<64x16xbf16, #tpu.memory_space<vmem>>, %arg6: memref<1x16xf32, #tpu.memory_space<vmem>>, %arg7: memref<1x16xf32, #tpu.memory_space<vmem>>, %arg8: memref<64x4xbf16, #tpu.memory_space<vmem>>, %arg9: memref<1x4xf32, #tpu.memory_space<vmem>>, %arg10: memref<1x4xf32, #tpu.memory_space<vmem>>, %arg11: memref<4x16x4xbf16, #tpu.memory_space<vmem>>, %arg12: memref<1x4xf32, #tpu.memory_space<vmem>>, %arg13: memref<1x4xf32, #tpu.memory_space<vmem>>, %arg14: memref<4x16xbf16, #tpu.memory_space<vmem>>, %arg15: memref<1x16xf32, #tpu.memory_space<vmem>>, %arg16: memref<1x16xf32, #tpu.memory_space<vmem>>, %arg17: memref<1x80x64xf32, #tpu.memory_space<vmem>>, %arg18: memref<116x4xf32, #tpu.memory_space<vmem>>) attributes {dimension_semantics = [#tpu.dimension_semantics<parallel>, #tpu.dimension_semantics<parallel>], iteration_bounds = array<i64: 2, 1>, scalar_prefetch = 0 : i64, scratch_operands = 1 : i64, tpu.core_type = #tpu.core_type<tc>, window_params = [{transform_indices = @transform_0, window_bounds = array<i64: 1, 100, 64>}, {pipeline_mode = #tpu.pipeline_mode<synchronous>, transform_indices = @transform_1, window_bounds = array<i64: 100, 1>}, {transform_indices = @transform_2, window_bounds = array<i64: 1, 80, 16>}, {pipeline_mode = #tpu.pipeline_mode<synchronous>, transform_indices = @transform_3, window_bounds = array<i64: 64, 16>}, {pipeline_mode = #tpu.pipeline_mode<synchronous>, transform_indices = @transform_4, window_bounds = array<i64: 1, 16>}, {pipeline_mode = #tpu.pipeline_mode<synchronous>, transform_indices = @transform_5, window_bounds = array<i64: 1, 16>}, {pipeline_mode = #tpu.pipeline_mode<synchronous>, transform_indices = @transform_6, window_bounds = array<i64: 64, 4>}, {pipeline_mode = #tpu.pipeline_mode<synchronous>, transform_indices = @transform_7, window_bounds = array<i64: 1, 4>}, {pipeline_mode = #tpu.pipeline_mode<synchronous>, transform_indices = @transform_8, window_bounds = array<i64: 1, 4>}, {pipeline_mode = #tpu.pipeline_mode<synchronous>, transform_indices = @transform_9, window_bounds = array<i64: 4, 16, 4>}, {pipeline_mode = #tpu.pipeline_mode<synchronous>, transform_indices = @transform_10, window_bounds = array<i64: 1, 4>}, {pipeline_mode = #tpu.pipeline_mode<synchronous>, transform_indices = @transform_11, window_bounds = array<i64: 1, 4>}, {pipeline_mode = #tpu.pipeline_mode<synchronous>, transform_indices = @transform_12, window_bounds = array<i64: 4, 16>}, {pipeline_mode = #tpu.pipeline_mode<synchronous>, transform_indices = @transform_13, window_bounds = array<i64: 1, 16>}, {pipeline_mode = #tpu.pipeline_mode<synchronous>, transform_indices = @transform_14, window_bounds = array<i64: 1, 16>}, {transform_indices = @transform_15, window_bounds = array<i64: 1, 80, 64>}]} {
    %c80_i32 = arith.constant 80 : i32
    %0 = arith.muli %arg1, %c80_i32 : i32
    %c0 = arith.constant 0 : index
    %1 = arith.index_cast %0 : i32 to index
    %c0_0 = arith.constant 0 : index
    %2 = vector.load %arg2[%c0, %1, %c0_0] : memref<1x100x64xf32, #tpu.memory_space<vmem>>, vector<1x100x64xf32>
    %3 = vector.shape_cast %2 : vector<1x100x64xf32> to vector<100x64xf32>
    %4 = arith.index_cast %0 : i32 to index
    %c0_1 = arith.constant 0 : index
    %5 = vector.load %arg3[%4, %c0_1] : memref<100x1xf32, #tpu.memory_space<vmem>>, vector<100x1xf32>
    %6 = arith.truncf %3 : vector<100x64xf32> to vector<100x64xbf16>
    %c0_2 = arith.constant 0 : index
    %c0_3 = arith.constant 0 : index
    %7 = vector.load %arg8[%c0_2, %c0_3] : memref<64x4xbf16, #tpu.memory_space<vmem>>, vector<64x4xbf16>
    %cst = arith.constant dense<0.000000e+00> : vector<100x4xf32>
    %8 = tpu.matmul %6, %7, %cst {dimension_numbers = #tpu.dot_dimension_numbers<[1], [0], [0], [1], [0, 0, 1, 1], [], []>} : vector<100x64xbf16>, vector<64x4xbf16>, vector<100x4xf32> -> vector<100x4xf32>
    %c0_4 = arith.constant 0 : index
    %c0_5 = arith.constant 0 : index
    %9 = vector.load %arg9[%c0_4, %c0_5] : memref<1x4xf32, #tpu.memory_space<vmem>>, vector<1x4xf32>
    %10 = vector.broadcast %9 : vector<1x4xf32> to vector<100x4xf32>
    %11 = arith.mulf %8, %10 : vector<100x4xf32>
    %c0_6 = arith.constant 0 : index
    %c0_7 = arith.constant 0 : index
    %12 = vector.load %arg10[%c0_6, %c0_7] : memref<1x4xf32, #tpu.memory_space<vmem>>, vector<1x4xf32>
    %13 = vector.broadcast %12 : vector<1x4xf32> to vector<100x4xf32>
    %14 = arith.addf %11, %13 : vector<100x4xf32>
    %cst_8 = arith.constant 0.000000e+00 : f32
    %15 = vector.broadcast %cst_8 : f32 to vector<100x4xf32>
    %16 = arith.maximumf %14, %15 : vector<100x4xf32>
    %17 = vector.broadcast %5 : vector<100x1xf32> to vector<100x4xf32>
    %18 = arith.mulf %16, %17 : vector<100x4xf32>
    %cst_9 = arith.constant 0.000000e+00 : f32
    %19 = vector.broadcast %cst_9 : f32 to vector<8x4xf32>
    %c0_10 = arith.constant 0 : index
    %c0_11 = arith.constant 0 : index
    %20 = vector.load %arg18[%c0_10, %c0_11] : memref<116x4xf32, #tpu.memory_space<vmem>>, vector<8x4xf32>
    tpu.vector_store %arg18[%c0_10, %c0_11], %19 {strides = array<i32>} : memref<116x4xf32, #tpu.memory_space<vmem>>, vector<8x4xf32>,
    %c108 = arith.constant 108 : index
    %c0_12 = arith.constant 0 : index
    %21 = vector.load %arg18[%c108, %c0_12] : memref<116x4xf32, #tpu.memory_space<vmem>>, vector<8x4xf32>
    tpu.vector_store %arg18[%c108, %c0_12], %19 {strides = array<i32>} : memref<116x4xf32, #tpu.memory_space<vmem>>, vector<8x4xf32>,
    %c8 = arith.constant 8 : index
    %c0_13 = arith.constant 0 : index
    %22 = vector.load %arg18[%c8, %c0_13] : memref<116x4xf32, #tpu.memory_space<vmem>>, vector<100x4xf32>
    tpu.vector_store %arg18[%c8, %c0_13], %18 {strides = array<i32>} : memref<116x4xf32, #tpu.memory_space<vmem>>, vector<100x4xf32>,
    %c10_i32 = arith.constant 10 : i32
    %23 = arith.addi %0, %c10_i32 : i32
    %c0_14 = arith.constant 0 : index
    %24 = arith.index_cast %23 : i32 to index
    %c0_15 = arith.constant 0 : index
    %25 = vector.load %arg2[%c0_14, %24, %c0_15] : memref<1x100x64xf32, #tpu.memory_space<vmem>>, vector<1x80x64xf32>
    %26 = vector.shape_cast %25 : vector<1x80x64xf32> to vector<80x64xf32>
    %c10_i32_16 = arith.constant 10 : i32
    %27 = arith.addi %0, %c10_i32_16 : i32
    %28 = arith.index_cast %27 : i32 to index
    %c0_17 = arith.constant 0 : index
    %29 = vector.load %arg3[%28, %c0_17] : memref<100x1xf32, #tpu.memory_space<vmem>>, vector<80x1xf32>
    %30 = arith.truncf %26 : vector<80x64xf32> to vector<80x64xbf16>
    %c0_18 = arith.constant 0 : index
    %c0_19 = arith.constant 0 : index
    %31 = vector.load %arg5[%c0_18, %c0_19] : memref<64x16xbf16, #tpu.memory_space<vmem>>, vector<64x16xbf16>
    %cst_20 = arith.constant dense<0.000000e+00> : vector<80x16xf32>
    %32 = tpu.matmul %30, %31, %cst_20 {dimension_numbers = #tpu.dot_dimension_numbers<[1], [0], [0], [1], [0, 0, 1, 1], [], []>} : vector<80x64xbf16>, vector<64x16xbf16>, vector<80x16xf32> -> vector<80x16xf32>
    %c0_21 = arith.constant 0 : index
    %c0_22 = arith.constant 0 : index
    %33 = vector.load %arg6[%c0_21, %c0_22] : memref<1x16xf32, #tpu.memory_space<vmem>>, vector<1x16xf32>
    %34 = vector.broadcast %33 : vector<1x16xf32> to vector<80x16xf32>
    %35 = arith.mulf %32, %34 : vector<80x16xf32>
    %c0_23 = arith.constant 0 : index
    %c0_24 = arith.constant 0 : index
    %36 = vector.load %arg7[%c0_23, %c0_24] : memref<1x16xf32, #tpu.memory_space<vmem>>, vector<1x16xf32>
    %37 = vector.broadcast %36 : vector<1x16xf32> to vector<80x16xf32>
    %38 = arith.addf %35, %37 : vector<80x16xf32>
    %c0_25 = arith.constant 0 : index
    %c0_26 = arith.constant 0 : index
    %c0_27 = arith.constant 0 : index
    %39 = vector.load %arg4[%c0_25, %c0_26, %c0_27] : memref<1x80x16xi32, #tpu.memory_space<vmem>>, vector<1x80x16xi32>
    %40 = vector.shape_cast %39 : vector<1x80x16xi32> to vector<80x16xi32>
    %c18 = arith.constant 18 : index
    %c0_28 = arith.constant 0 : index
    %41 = vector.load %arg18[%c18, %c0_28] : memref<116x4xf32, #tpu.memory_space<vmem>>, vector<80x4xf32>
    %c19 = arith.constant 19 : index
    %c0_29 = arith.constant 0 : index
    %42 = vector.load %arg18[%c19, %c0_29] : memref<116x4xf32, #tpu.memory_space<vmem>>, vector<80x4xf32>
    %c28 = arith.constant 28 : index
    %c0_30 = arith.constant 0 : index
    %43 = vector.load %arg18[%c28, %c0_30] : memref<116x4xf32, #tpu.memory_space<vmem>>, vector<80x4xf32>
    %c29 = arith.constant 29 : index
    %c0_31 = arith.constant 0 : index
    %44 = vector.load %arg18[%c29, %c0_31] : memref<116x4xf32, #tpu.memory_space<vmem>>, vector<80x4xf32>
    %45 = tpu.concatenate %41, %42, %43, %44 in 1 : vector<80x4xf32>, vector<80x4xf32>, vector<80x4xf32>, vector<80x4xf32> -> vector<80x16xf32>
    %46 = arith.truncf %45 : vector<80x16xf32> to vector<80x16xbf16>
    %c0_32 = arith.constant 0 : index
    %c0_33 = arith.constant 0 : index
    %c0_34 = arith.constant 0 : index
    %47 = vector.load %arg11[%c0_32, %c0_33, %c0_34] : memref<4x16x4xbf16, #tpu.memory_space<vmem>>, vector<1x16x4xbf16>
    %48 = vector.shape_cast %47 : vector<1x16x4xbf16> to vector<16x4xbf16>
    %cst_35 = arith.constant dense<0.000000e+00> : vector<80x4xf32>
    %49 = tpu.matmul %46, %48, %cst_35 {dimension_numbers = #tpu.dot_dimension_numbers<[1], [0], [0], [1], [0, 0, 1, 1], [], []>} : vector<80x16xbf16>, vector<16x4xbf16>, vector<80x4xf32> -> vector<80x4xf32>
    %c0_36 = arith.constant 0 : index
    %c0_37 = arith.constant 0 : index
    %50 = vector.load %arg12[%c0_36, %c0_37] : memref<1x4xf32, #tpu.memory_space<vmem>>, vector<1x4xf32>
    %51 = vector.broadcast %50 : vector<1x4xf32> to vector<80x4xf32>
    %52 = arith.mulf %49, %51 : vector<80x4xf32>
    %c0_38 = arith.constant 0 : index
    %c0_39 = arith.constant 0 : index
    %53 = vector.load %arg13[%c0_38, %c0_39] : memref<1x4xf32, #tpu.memory_space<vmem>>, vector<1x4xf32>
    %54 = vector.broadcast %53 : vector<1x4xf32> to vector<80x4xf32>
    %55 = arith.addf %52, %54 : vector<80x4xf32>
    %cst_40 = arith.constant 0.000000e+00 : f32
    %56 = vector.broadcast %cst_40 : f32 to vector<80x4xf32>
    %57 = arith.maximumf %55, %56 : vector<80x4xf32>
    %58 = arith.truncf %57 : vector<80x4xf32> to vector<80x4xbf16>
    %c0_41 = arith.constant 0 : index
    %c0_42 = arith.constant 0 : index
    %59 = vector.load %arg14[%c0_41, %c0_42] : memref<4x16xbf16, #tpu.memory_space<vmem>>, vector<4x16xbf16>
    %cst_43 = arith.constant dense<0.000000e+00> : vector<80x16xf32>
    %60 = tpu.matmul %58, %59, %cst_43 {dimension_numbers = #tpu.dot_dimension_numbers<[1], [0], [0], [1], [0, 0, 1, 1], [], []>} : vector<80x4xbf16>, vector<4x16xbf16>, vector<80x16xf32> -> vector<80x16xf32>
    %c0_44 = arith.constant 0 : index
    %c0_45 = arith.constant 0 : index
    %61 = vector.load %arg15[%c0_44, %c0_45] : memref<1x16xf32, #tpu.memory_space<vmem>>, vector<1x16xf32>
    %62 = vector.broadcast %61 : vector<1x16xf32> to vector<80x16xf32>
    %63 = arith.mulf %60, %62 : vector<80x16xf32>
    %c0_46 = arith.constant 0 : index
    %c0_47 = arith.constant 0 : index
    %64 = vector.load %arg16[%c0_46, %c0_47] : memref<1x16xf32, #tpu.memory_space<vmem>>, vector<1x16xf32>
    %65 = vector.broadcast %64 : vector<1x16xf32> to vector<80x16xf32>
    %66 = arith.addf %63, %65 : vector<80x16xf32>
    %cst_48 = arith.constant 0.000000e+00 : f32
    %67 = vector.broadcast %cst_48 : f32 to vector<80x16xf32>
    %68 = arith.maximumf %66, %67 : vector<80x16xf32>
    %c0_i32 = arith.constant 0 : i32
    %69 = vector.broadcast %c0_i32 : i32 to vector<80x16xi32>
    %70 = arith.cmpi eq, %40, %69 : vector<80x16xi32>
    %cst_49 = arith.constant 0.000000e+00 : f32
    %71 = vector.broadcast %cst_49 : f32 to vector<80x16xf32>
    %72 = arith.select %70, %38, %71 : vector<80x16xi1>, vector<80x16xf32>
    %73 = arith.addf %68, %72 : vector<80x16xf32>
    %cst_50 = arith.constant 0.000000e+00 : f32
    %74 = vector.broadcast %cst_50 : f32 to vector<80x16xf32>
    %75 = arith.maximumf %73, %74 : vector<80x16xf32>
    %76 = vector.broadcast %29 : vector<80x1xf32> to vector<80x16xf32>
    %77 = arith.mulf %75, %76 : vector<80x16xf32>
    %78 = arith.truncf %45 : vector<80x16xf32> to vector<80x16xbf16>
    %c1 = arith.constant 1 : index
    %c0_51 = arith.constant 0 : index
    %c0_52 = arith.constant 0 : index
    %79 = vector.load %arg11[%c1, %c0_51, %c0_52] : memref<4x16x4xbf16, #tpu.memory_space<vmem>>, vector<1x16x4xbf16>
    %80 = vector.shape_cast %79 : vector<1x16x4xbf16> to vector<16x4xbf16>
    %cst_53 = arith.constant dense<0.000000e+00> : vector<80x4xf32>
    %81 = tpu.matmul %78, %80, %cst_53 {dimension_numbers = #tpu.dot_dimension_numbers<[1], [0], [0], [1], [0, 0, 1, 1], [], []>} : vector<80x16xbf16>, vector<16x4xbf16>, vector<80x4xf32> -> vector<80x4xf32>
    %c0_54 = arith.constant 0 : index
    %c0_55 = arith.constant 0 : index
    %82 = vector.load %arg12[%c0_54, %c0_55] : memref<1x4xf32, #tpu.memory_space<vmem>>, vector<1x4xf32>
    %83 = vector.broadcast %82 : vector<1x4xf32> to vector<80x4xf32>
    %84 = arith.mulf %81, %83 : vector<80x4xf32>
    %c0_56 = arith.constant 0 : index
    %c0_57 = arith.constant 0 : index
    %85 = vector.load %arg13[%c0_56, %c0_57] : memref<1x4xf32, #tpu.memory_space<vmem>>, vector<1x4xf32>
    %86 = vector.broadcast %85 : vector<1x4xf32> to vector<80x4xf32>
    %87 = arith.addf %84, %86 : vector<80x4xf32>
    %cst_58 = arith.constant 0.000000e+00 : f32
    %88 = vector.broadcast %cst_58 : f32 to vector<80x4xf32>
    %89 = arith.maximumf %87, %88 : vector<80x4xf32>
    %90 = arith.truncf %89 : vector<80x4xf32> to vector<80x4xbf16>
    %c0_59 = arith.constant 0 : index
    %c0_60 = arith.constant 0 : index
    %91 = vector.load %arg14[%c0_59, %c0_60] : memref<4x16xbf16, #tpu.memory_space<vmem>>, vector<4x16xbf16>
    %cst_61 = arith.constant dense<0.000000e+00> : vector<80x16xf32>
    %92 = tpu.matmul %90, %91, %cst_61 {dimension_numbers = #tpu.dot_dimension_numbers<[1], [0], [0], [1], [0, 0, 1, 1], [], []>} : vector<80x4xbf16>, vector<4x16xbf16>, vector<80x16xf32> -> vector<80x16xf32>
    %c0_62 = arith.constant 0 : index
    %c0_63 = arith.constant 0 : index
    %93 = vector.load %arg15[%c0_62, %c0_63] : memref<1x16xf32, #tpu.memory_space<vmem>>, vector<1x16xf32>
    %94 = vector.broadcast %93 : vector<1x16xf32> to vector<80x16xf32>
    %95 = arith.mulf %92, %94 : vector<80x16xf32>
    %c0_64 = arith.constant 0 : index
    %c0_65 = arith.constant 0 : index
    %96 = vector.load %arg16[%c0_64, %c0_65] : memref<1x16xf32, #tpu.memory_space<vmem>>, vector<1x16xf32>
    %97 = vector.broadcast %96 : vector<1x16xf32> to vector<80x16xf32>
    %98 = arith.addf %95, %97 : vector<80x16xf32>
    %cst_66 = arith.constant 0.000000e+00 : f32
    %99 = vector.broadcast %cst_66 : f32 to vector<80x16xf32>
    %100 = arith.maximumf %98, %99 : vector<80x16xf32>
    %c1_i32 = arith.constant 1 : i32
    %101 = vector.broadcast %c1_i32 : i32 to vector<80x16xi32>
    %102 = arith.cmpi eq, %40, %101 : vector<80x16xi32>
    %cst_67 = arith.constant 0.000000e+00 : f32
    %103 = vector.broadcast %cst_67 : f32 to vector<80x16xf32>
    %104 = arith.select %102, %38, %103 : vector<80x16xi1>, vector<80x16xf32>
    %105 = arith.addf %100, %104 : vector<80x16xf32>
    %cst_68 = arith.constant 0.000000e+00 : f32
    %106 = vector.broadcast %cst_68 : f32 to vector<80x16xf32>
    %107 = arith.maximumf %105, %106 : vector<80x16xf32>
    %108 = vector.broadcast %29 : vector<80x1xf32> to vector<80x16xf32>
    %109 = arith.mulf %107, %108 : vector<80x16xf32>
    %110 = arith.truncf %45 : vector<80x16xf32> to vector<80x16xbf16>
    %c2 = arith.constant 2 : index
    %c0_69 = arith.constant 0 : index
    %c0_70 = arith.constant 0 : index
    %111 = vector.load %arg11[%c2, %c0_69, %c0_70] : memref<4x16x4xbf16, #tpu.memory_space<vmem>>, vector<1x16x4xbf16>
    %112 = vector.shape_cast %111 : vector<1x16x4xbf16> to vector<16x4xbf16>
    %cst_71 = arith.constant dense<0.000000e+00> : vector<80x4xf32>
    %113 = tpu.matmul %110, %112, %cst_71 {dimension_numbers = #tpu.dot_dimension_numbers<[1], [0], [0], [1], [0, 0, 1, 1], [], []>} : vector<80x16xbf16>, vector<16x4xbf16>, vector<80x4xf32> -> vector<80x4xf32>
    %c0_72 = arith.constant 0 : index
    %c0_73 = arith.constant 0 : index
    %114 = vector.load %arg12[%c0_72, %c0_73] : memref<1x4xf32, #tpu.memory_space<vmem>>, vector<1x4xf32>
    %115 = vector.broadcast %114 : vector<1x4xf32> to vector<80x4xf32>
    %116 = arith.mulf %113, %115 : vector<80x4xf32>
    %c0_74 = arith.constant 0 : index
    %c0_75 = arith.constant 0 : index
    %117 = vector.load %arg13[%c0_74, %c0_75] : memref<1x4xf32, #tpu.memory_space<vmem>>, vector<1x4xf32>
    %118 = vector.broadcast %117 : vector<1x4xf32> to vector<80x4xf32>
    %119 = arith.addf %116, %118 : vector<80x4xf32>
    %cst_76 = arith.constant 0.000000e+00 : f32
    %120 = vector.broadcast %cst_76 : f32 to vector<80x4xf32>
    %121 = arith.maximumf %119, %120 : vector<80x4xf32>
    %122 = arith.truncf %121 : vector<80x4xf32> to vector<80x4xbf16>
    %c0_77 = arith.constant 0 : index
    %c0_78 = arith.constant 0 : index
    %123 = vector.load %arg14[%c0_77, %c0_78] : memref<4x16xbf16, #tpu.memory_space<vmem>>, vector<4x16xbf16>
    %cst_79 = arith.constant dense<0.000000e+00> : vector<80x16xf32>
    %124 = tpu.matmul %122, %123, %cst_79 {dimension_numbers = #tpu.dot_dimension_numbers<[1], [0], [0], [1], [0, 0, 1, 1], [], []>} : vector<80x4xbf16>, vector<4x16xbf16>, vector<80x16xf32> -> vector<80x16xf32>
    %c0_80 = arith.constant 0 : index
    %c0_81 = arith.constant 0 : index
    %125 = vector.load %arg15[%c0_80, %c0_81] : memref<1x16xf32, #tpu.memory_space<vmem>>, vector<1x16xf32>
    %126 = vector.broadcast %125 : vector<1x16xf32> to vector<80x16xf32>
    %127 = arith.mulf %124, %126 : vector<80x16xf32>
    %c0_82 = arith.constant 0 : index
    %c0_83 = arith.constant 0 : index
    %128 = vector.load %arg16[%c0_82, %c0_83] : memref<1x16xf32, #tpu.memory_space<vmem>>, vector<1x16xf32>
    %129 = vector.broadcast %128 : vector<1x16xf32> to vector<80x16xf32>
    %130 = arith.addf %127, %129 : vector<80x16xf32>
    %cst_84 = arith.constant 0.000000e+00 : f32
    %131 = vector.broadcast %cst_84 : f32 to vector<80x16xf32>
    %132 = arith.maximumf %130, %131 : vector<80x16xf32>
    %c2_i32 = arith.constant 2 : i32
    %133 = vector.broadcast %c2_i32 : i32 to vector<80x16xi32>
    %134 = arith.cmpi eq, %40, %133 : vector<80x16xi32>
    %cst_85 = arith.constant 0.000000e+00 : f32
    %135 = vector.broadcast %cst_85 : f32 to vector<80x16xf32>
    %136 = arith.select %134, %38, %135 : vector<80x16xi1>, vector<80x16xf32>
    %137 = arith.addf %132, %136 : vector<80x16xf32>
    %cst_86 = arith.constant 0.000000e+00 : f32
    %138 = vector.broadcast %cst_86 : f32 to vector<80x16xf32>
    %139 = arith.maximumf %137, %138 : vector<80x16xf32>
    %140 = vector.broadcast %29 : vector<80x1xf32> to vector<80x16xf32>
    %141 = arith.mulf %139, %140 : vector<80x16xf32>
    %142 = arith.truncf %45 : vector<80x16xf32> to vector<80x16xbf16>
    %c3 = arith.constant 3 : index
    %c0_87 = arith.constant 0 : index
    %c0_88 = arith.constant 0 : index
    %143 = vector.load %arg11[%c3, %c0_87, %c0_88] : memref<4x16x4xbf16, #tpu.memory_space<vmem>>, vector<1x16x4xbf16>
    %144 = vector.shape_cast %143 : vector<1x16x4xbf16> to vector<16x4xbf16>
    %cst_89 = arith.constant dense<0.000000e+00> : vector<80x4xf32>
    %145 = tpu.matmul %142, %144, %cst_89 {dimension_numbers = #tpu.dot_dimension_numbers<[1], [0], [0], [1], [0, 0, 1, 1], [], []>} : vector<80x16xbf16>, vector<16x4xbf16>, vector<80x4xf32> -> vector<80x4xf32>
    %c0_90 = arith.constant 0 : index
    %c0_91 = arith.constant 0 : index
    %146 = vector.load %arg12[%c0_90, %c0_91] : memref<1x4xf32, #tpu.memory_space<vmem>>, vector<1x4xf32>
    %147 = vector.broadcast %146 : vector<1x4xf32> to vector<80x4xf32>
    %148 = arith.mulf %145, %147 : vector<80x4xf32>
    %c0_92 = arith.constant 0 : index
    %c0_93 = arith.constant 0 : index
    %149 = vector.load %arg13[%c0_92, %c0_93] : memref<1x4xf32, #tpu.memory_space<vmem>>, vector<1x4xf32>
    %150 = vector.broadcast %149 : vector<1x4xf32> to vector<80x4xf32>
    %151 = arith.addf %148, %150 : vector<80x4xf32>
    %cst_94 = arith.constant 0.000000e+00 : f32
    %152 = vector.broadcast %cst_94 : f32 to vector<80x4xf32>
    %153 = arith.maximumf %151, %152 : vector<80x4xf32>
    %154 = arith.truncf %153 : vector<80x4xf32> to vector<80x4xbf16>
    %c0_95 = arith.constant 0 : index
    %c0_96 = arith.constant 0 : index
    %155 = vector.load %arg14[%c0_95, %c0_96] : memref<4x16xbf16, #tpu.memory_space<vmem>>, vector<4x16xbf16>
    %cst_97 = arith.constant dense<0.000000e+00> : vector<80x16xf32>
    %156 = tpu.matmul %154, %155, %cst_97 {dimension_numbers = #tpu.dot_dimension_numbers<[1], [0], [0], [1], [0, 0, 1, 1], [], []>} : vector<80x4xbf16>, vector<4x16xbf16>, vector<80x16xf32> -> vector<80x16xf32>
    %c0_98 = arith.constant 0 : index
    %c0_99 = arith.constant 0 : index
    %157 = vector.load %arg15[%c0_98, %c0_99] : memref<1x16xf32, #tpu.memory_space<vmem>>, vector<1x16xf32>
    %158 = vector.broadcast %157 : vector<1x16xf32> to vector<80x16xf32>
    %159 = arith.mulf %156, %158 : vector<80x16xf32>
    %c0_100 = arith.constant 0 : index
    %c0_101 = arith.constant 0 : index
    %160 = vector.load %arg16[%c0_100, %c0_101] : memref<1x16xf32, #tpu.memory_space<vmem>>, vector<1x16xf32>
    %161 = vector.broadcast %160 : vector<1x16xf32> to vector<80x16xf32>
    %162 = arith.addf %159, %161 : vector<80x16xf32>
    %cst_102 = arith.constant 0.000000e+00 : f32
    %163 = vector.broadcast %cst_102 : f32 to vector<80x16xf32>
    %164 = arith.maximumf %162, %163 : vector<80x16xf32>
    %c3_i32 = arith.constant 3 : i32
    %165 = vector.broadcast %c3_i32 : i32 to vector<80x16xi32>
    %166 = arith.cmpi eq, %40, %165 : vector<80x16xi32>
    %cst_103 = arith.constant 0.000000e+00 : f32
    %167 = vector.broadcast %cst_103 : f32 to vector<80x16xf32>
    %168 = arith.select %166, %38, %167 : vector<80x16xi1>, vector<80x16xf32>
    %169 = arith.addf %164, %168 : vector<80x16xf32>
    %cst_104 = arith.constant 0.000000e+00 : f32
    %170 = vector.broadcast %cst_104 : f32 to vector<80x16xf32>
    %171 = arith.maximumf %169, %170 : vector<80x16xf32>
    %172 = vector.broadcast %29 : vector<80x1xf32> to vector<80x16xf32>
    %173 = arith.mulf %171, %172 : vector<80x16xf32>
    %174 = tpu.concatenate %77, %109, %141, %173 in 1 : vector<80x16xf32>, vector<80x16xf32>, vector<80x16xf32>, vector<80x16xf32> -> vector<80x64xf32>
    %c0_105 = arith.constant 0 : index
    %c0_106 = arith.constant 0 : index
    %c0_107 = arith.constant 0 : index
    %175 = vector.load %arg17[%c0_105, %c0_106, %c0_107] : memref<1x80x64xf32, #tpu.memory_space<vmem>>, vector<1x80x64xf32>
    %176 = vector.shape_cast %175 : vector<1x80x64xf32> to vector<80x64xf32>
    %177 = vector.shape_cast %174 : vector<80x64xf32> to vector<1x80x64xf32>
    tpu.vector_store %arg17[%c0_105, %c0_106, %c0_107], %177 {strides = array<i32>} : memref<1x80x64xf32, #tpu.memory_space<vmem>>, vector<1x80x64xf32>,
    return
  }
  func.func @transform_0(%arg0: i32, %arg1: i32) -> (i32, i32, i32) {
    %c0_i32 = arith.constant 0 : i32
    %c0_i32_0 = arith.constant 0 : i32
    %c0_i32_1 = arith.constant 0 : i32
    return %arg0, %c0_i32, %c0_i32_0 : i32, i32, i32
  }
  func.func @transform_1(%arg0: i32, %arg1: i32) -> (i32, i32) {
    %c0_i32 = arith.constant 0 : i32
    %c0_i32_0 = arith.constant 0 : i32
    %c0_i32_1 = arith.constant 0 : i32
    return %c0_i32, %c0_i32_0 : i32, i32
  }
  func.func @transform_2(%arg0: i32, %arg1: i32) -> (i32, i32, i32) {
    %c0_i32 = arith.constant 0 : i32
    %c0_i32_0 = arith.constant 0 : i32
    return %arg0, %arg1, %c0_i32 : i32, i32, i32
  }
  func.func @transform_3(%arg0: i32, %arg1: i32) -> (i32, i32) {
    %c0_i32 = arith.constant 0 : i32
    %c0_i32_0 = arith.constant 0 : i32
    %c0_i32_1 = arith.constant 0 : i32
    return %c0_i32, %c0_i32_0 : i32, i32
  }
  func.func @transform_4(%arg0: i32, %arg1: i32) -> (i32, i32) {
    %c0_i32 = arith.constant 0 : i32
    %c0_i32_0 = arith.constant 0 : i32
    %c0_i32_1 = arith.constant 0 : i32
    return %c0_i32, %c0_i32_0 : i32, i32
  }
  func.func @transform_5(%arg0: i32, %arg1: i32) -> (i32, i32) {
    %c0_i32 = arith.constant 0 : i32
    %c0_i32_0 = arith.constant 0 : i32
    %c0_i32_1 = arith.constant 0 : i32
    return %c0_i32, %c0_i32_0 : i32, i32
  }
  func.func @transform_6(%arg0: i32, %arg1: i32) -> (i32, i32) {
    %c0_i32 = arith.constant 0 : i32
    %c0_i32_0 = arith.constant 0 : i32
    %c0_i32_1 = arith.constant 0 : i32
    return %c0_i32, %c0_i32_0 : i32, i32
  }
  func.func @transform_7(%arg0: i32, %arg1: i32) -> (i32, i32) {
    %c0_i32 = arith.constant 0 : i32
    %c0_i32_0 = arith.constant 0 : i32
    %c0_i32_1 = arith.constant 0 : i32
    return %c0_i32, %c0_i32_0 : i32, i32
  }
  func.func @transform_8(%arg0: i32, %arg1: i32) -> (i32, i32) {
    %c0_i32 = arith.constant 0 : i32
    %c0_i32_0 = arith.constant 0 : i32
    %c0_i32_1 = arith.constant 0 : i32
    return %c0_i32, %c0_i32_0 : i32, i32
  }
  func.func @transform_9(%arg0: i32, %arg1: i32) -> (i32, i32, i32) {
    %c0_i32 = arith.constant 0 : i32
    %c0_i32_0 = arith.constant 0 : i32
    %c0_i32_1 = arith.constant 0 : i32
    %c0_i32_2 = arith.constant 0 : i32
    return %c0_i32, %c0_i32_0, %c0_i32_1 : i32, i32, i32
  }
  func.func @transform_10(%arg0: i32, %arg1: i32) -> (i32, i32) {
    %c0_i32 = arith.constant 0 : i32
    %c0_i32_0 = arith.constant 0 : i32
    %c0_i32_1 = arith.constant 0 : i32
    return %c0_i32, %c0_i32_0 : i32, i32
  }
  func.func @transform_11(%arg0: i32, %arg1: i32) -> (i32, i32) {
    %c0_i32 = arith.constant 0 : i32
    %c0_i32_0 = arith.constant 0 : i32
    %c0_i32_1 = arith.constant 0 : i32
    return %c0_i32, %c0_i32_0 : i32, i32
  }
  func.func @transform_12(%arg0: i32, %arg1: i32) -> (i32, i32) {
    %c0_i32 = arith.constant 0 : i32
    %c0_i32_0 = arith.constant 0 : i32
    %c0_i32_1 = arith.constant 0 : i32
    return %c0_i32, %c0_i32_0 : i32, i32
  }
  func.func @transform_13(%arg0: i32, %arg1: i32) -> (i32, i32) {
    %c0_i32 = arith.constant 0 : i32
    %c0_i32_0 = arith.constant 0 : i32
    %c0_i32_1 = arith.constant 0 : i32
    return %c0_i32, %c0_i32_0 : i32, i32
  }
  func.func @transform_14(%arg0: i32, %arg1: i32) -> (i32, i32) {
    %c0_i32 = arith.constant 0 : i32
    %c0_i32_0 = arith.constant 0 : i32
    %c0_i32_1 = arith.constant 0 : i32
    return %c0_i32, %c0_i32_0 : i32, i32
  }
  func.func @transform_15(%arg0: i32, %arg1: i32) -> (i32, i32, i32) {
    %c0_i32 = arith.constant 0 : i32
    %c0_i32_0 = arith.constant 0 : i32
    return %arg0, %arg1, %c0_i32 : i32, i32, i32
  }
}

module attributes {stable_mosaic.version = 11 : i64} {
  func.func @_fullconv_kernel(%arg0: i32, %arg1: i32, %arg2: memref<1x72x16xf32, #tpu.memory_space<vmem>>, %arg3: memref<16x20xbf16, #tpu.memory_space<vmem>>, %arg4: memref<1x20xf32, #tpu.memory_space<vmem>>, %arg5: memref<1x72x20xf32, #tpu.memory_space<vmem>>) attributes {dimension_semantics = [#tpu.dimension_semantics<parallel>, #tpu.dimension_semantics<parallel>], iteration_bounds = array<i64: 2, 4>, scalar_prefetch = 0 : i64, scratch_operands = 0 : i64, tpu.core_type = #tpu.core_type<tc>, window_params = [{transform_indices = @transform_0, window_bounds = array<i64: 1, 72, 16>}, {pipeline_mode = #tpu.pipeline_mode<synchronous>, transform_indices = @transform_1, window_bounds = array<i64: 16, 20>}, {pipeline_mode = #tpu.pipeline_mode<synchronous>, transform_indices = @transform_2, window_bounds = array<i64: 1, 20>}, {transform_indices = @transform_3, window_bounds = array<i64: 1, 72, 20>}]} {
    %c0 = arith.constant 0 : index
    %c0_0 = arith.constant 0 : index
    %c0_1 = arith.constant 0 : index
    %0 = vector.load %arg2[%c0, %c0_0, %c0_1] : memref<1x72x16xf32, #tpu.memory_space<vmem>>, vector<1x72x16xf32>
    %1 = vector.shape_cast %0 : vector<1x72x16xf32> to vector<72x16xf32>
    %2 = arith.truncf %1 : vector<72x16xf32> to vector<72x16xbf16>
    %c0_2 = arith.constant 0 : index
    %c0_3 = arith.constant 0 : index
    %3 = vector.load %arg3[%c0_2, %c0_3] : memref<16x20xbf16, #tpu.memory_space<vmem>>, vector<16x20xbf16>
    %cst = arith.constant dense<0.000000e+00> : vector<72x20xf32>
    %4 = tpu.matmul %2, %3, %cst {dimension_numbers = #tpu.dot_dimension_numbers<[1], [0], [0], [1], [0, 0, 1, 1], [], []>} : vector<72x16xbf16>, vector<16x20xbf16>, vector<72x20xf32> -> vector<72x20xf32>
    %c0_4 = arith.constant 0 : index
    %c0_5 = arith.constant 0 : index
    %5 = vector.load %arg4[%c0_4, %c0_5] : memref<1x20xf32, #tpu.memory_space<vmem>>, vector<1x20xf32>
    %6 = vector.broadcast %5 : vector<1x20xf32> to vector<72x20xf32>
    %7 = arith.addf %4, %6 : vector<72x20xf32>
    %c0_6 = arith.constant 0 : index
    %c0_7 = arith.constant 0 : index
    %c0_8 = arith.constant 0 : index
    %8 = vector.load %arg5[%c0_6, %c0_7, %c0_8] : memref<1x72x20xf32, #tpu.memory_space<vmem>>, vector<1x72x20xf32>
    %9 = vector.shape_cast %8 : vector<1x72x20xf32> to vector<72x20xf32>
    %10 = vector.shape_cast %7 : vector<72x20xf32> to vector<1x72x20xf32>
    tpu.vector_store %arg5[%c0_6, %c0_7, %c0_8], %10 {strides = array<i32>} : memref<1x72x20xf32, #tpu.memory_space<vmem>>, vector<1x72x20xf32>,
    return
  }
  func.func @transform_0(%arg0: i32, %arg1: i32) -> (i32, i32, i32) {
    %c0_i32 = arith.constant 0 : i32
    %c0_i32_0 = arith.constant 0 : i32
    return %arg0, %arg1, %c0_i32 : i32, i32, i32
  }
  func.func @transform_1(%arg0: i32, %arg1: i32) -> (i32, i32) {
    %c0_i32 = arith.constant 0 : i32
    %c0_i32_0 = arith.constant 0 : i32
    %c0_i32_1 = arith.constant 0 : i32
    return %c0_i32, %c0_i32_0 : i32, i32
  }
  func.func @transform_2(%arg0: i32, %arg1: i32) -> (i32, i32) {
    %c0_i32 = arith.constant 0 : i32
    %c0_i32_0 = arith.constant 0 : i32
    %c0_i32_1 = arith.constant 0 : i32
    return %c0_i32, %c0_i32_0 : i32, i32
  }
  func.func @transform_3(%arg0: i32, %arg1: i32) -> (i32, i32, i32) {
    %c0_i32 = arith.constant 0 : i32
    %c0_i32_0 = arith.constant 0 : i32
    return %arg0, %arg1, %c0_i32 : i32, i32, i32
  }
}

module attributes {stable_mosaic.version = 11 : i64} {
  func.func @_regular_bottleneck_kernel(%arg0: i32, %arg1: i32, %arg2: memref<1x324x16xf32, #tpu.memory_space<vmem>>, %arg3: memref<324x1xf32, #tpu.memory_space<vmem>>, %arg4: memref<16x4xbf16, #tpu.memory_space<vmem>>, %arg5: memref<1x4xf32, #tpu.memory_space<vmem>>, %arg6: memref<1x4xf32, #tpu.memory_space<vmem>>, %arg7: memref<36x4xbf16, #tpu.memory_space<vmem>>, %arg8: memref<1x4xf32, #tpu.memory_space<vmem>>, %arg9: memref<1x4xf32, #tpu.memory_space<vmem>>, %arg10: memref<4x16xbf16, #tpu.memory_space<vmem>>, %arg11: memref<1x16xf32, #tpu.memory_space<vmem>>, %arg12: memref<1x16xf32, #tpu.memory_space<vmem>>, %arg13: memref<1x72x16xf32, #tpu.memory_space<vmem>>, %arg14: memref<124x4xf32, #tpu.memory_space<vmem>>) attributes {dimension_semantics = [#tpu.dimension_semantics<parallel>, #tpu.dimension_semantics<parallel>], iteration_bounds = array<i64: 2, 4>, scalar_prefetch = 0 : i64, scratch_operands = 1 : i64, tpu.core_type = #tpu.core_type<tc>, window_params = [{transform_indices = @transform_0, window_bounds = array<i64: 1, 324, 16>}, {pipeline_mode = #tpu.pipeline_mode<synchronous>, transform_indices = @transform_1, window_bounds = array<i64: 324, 1>}, {pipeline_mode = #tpu.pipeline_mode<synchronous>, transform_indices = @transform_2, window_bounds = array<i64: 16, 4>}, {pipeline_mode = #tpu.pipeline_mode<synchronous>, transform_indices = @transform_3, window_bounds = array<i64: 1, 4>}, {pipeline_mode = #tpu.pipeline_mode<synchronous>, transform_indices = @transform_4, window_bounds = array<i64: 1, 4>}, {pipeline_mode = #tpu.pipeline_mode<synchronous>, transform_indices = @transform_5, window_bounds = array<i64: 36, 4>}, {pipeline_mode = #tpu.pipeline_mode<synchronous>, transform_indices = @transform_6, window_bounds = array<i64: 1, 4>}, {pipeline_mode = #tpu.pipeline_mode<synchronous>, transform_indices = @transform_7, window_bounds = array<i64: 1, 4>}, {pipeline_mode = #tpu.pipeline_mode<synchronous>, transform_indices = @transform_8, window_bounds = array<i64: 4, 16>}, {pipeline_mode = #tpu.pipeline_mode<synchronous>, transform_indices = @transform_9, window_bounds = array<i64: 1, 16>}, {pipeline_mode = #tpu.pipeline_mode<synchronous>, transform_indices = @transform_10, window_bounds = array<i64: 1, 16>}, {transform_indices = @transform_11, window_bounds = array<i64: 1, 72, 16>}]} {
    %c72_i32 = arith.constant 72 : i32
    %0 = arith.muli %arg1, %c72_i32 : i32
    %c0 = arith.constant 0 : index
    %1 = arith.index_cast %0 : i32 to index
    %c0_0 = arith.constant 0 : index
    %2 = vector.load %arg2[%c0, %1, %c0_0] : memref<1x324x16xf32, #tpu.memory_space<vmem>>, vector<1x108x16xf32>
    %3 = vector.shape_cast %2 : vector<1x108x16xf32> to vector<108x16xf32>
    %4 = arith.index_cast %0 : i32 to index
    %c0_1 = arith.constant 0 : index
    %5 = vector.load %arg3[%4, %c0_1] : memref<324x1xf32, #tpu.memory_space<vmem>>, vector<108x1xf32>
    %6 = arith.truncf %3 : vector<108x16xf32> to vector<108x16xbf16>
    %c0_2 = arith.constant 0 : index
    %c0_3 = arith.constant 0 : index
    %7 = vector.load %arg4[%c0_2, %c0_3] : memref<16x4xbf16, #tpu.memory_space<vmem>>, vector<16x4xbf16>
    %cst = arith.constant dense<0.000000e+00> : vector<108x4xf32>
    %8 = tpu.matmul %6, %7, %cst {dimension_numbers = #tpu.dot_dimension_numbers<[1], [0], [0], [1], [0, 0, 1, 1], [], []>} : vector<108x16xbf16>, vector<16x4xbf16>, vector<108x4xf32> -> vector<108x4xf32>
    %c0_4 = arith.constant 0 : index
    %c0_5 = arith.constant 0 : index
    %9 = vector.load %arg5[%c0_4, %c0_5] : memref<1x4xf32, #tpu.memory_space<vmem>>, vector<1x4xf32>
    %10 = vector.broadcast %9 : vector<1x4xf32> to vector<108x4xf32>
    %11 = arith.mulf %8, %10 : vector<108x4xf32>
    %c0_6 = arith.constant 0 : index
    %c0_7 = arith.constant 0 : index
    %12 = vector.load %arg6[%c0_6, %c0_7] : memref<1x4xf32, #tpu.memory_space<vmem>>, vector<1x4xf32>
    %13 = vector.broadcast %12 : vector<1x4xf32> to vector<108x4xf32>
    %14 = arith.addf %11, %13 : vector<108x4xf32>
    %cst_8 = arith.constant 0.000000e+00 : f32
    %15 = vector.broadcast %cst_8 : f32 to vector<108x4xf32>
    %16 = arith.maximumf %14, %15 : vector<108x4xf32>
    %17 = vector.broadcast %5 : vector<108x1xf32> to vector<108x4xf32>
    %18 = arith.mulf %16, %17 : vector<108x4xf32>
    %cst_9 = arith.constant 0.000000e+00 : f32
    %19 = vector.broadcast %cst_9 : f32 to vector<8x4xf32>
    %c0_10 = arith.constant 0 : index
    %c0_11 = arith.constant 0 : index
    %20 = vector.load %arg14[%c0_10, %c0_11] : memref<124x4xf32, #tpu.memory_space<vmem>>, vector<8x4xf32>
    tpu.vector_store %arg14[%c0_10, %c0_11], %19 {strides = array<i32>} : memref<124x4xf32, #tpu.memory_space<vmem>>, vector<8x4xf32>,
    %c116 = arith.constant 116 : index
    %c0_12 = arith.constant 0 : index
    %21 = vector.load %arg14[%c116, %c0_12] : memref<124x4xf32, #tpu.memory_space<vmem>>, vector<8x4xf32>
    tpu.vector_store %arg14[%c116, %c0_12], %19 {strides = array<i32>} : memref<124x4xf32, #tpu.memory_space<vmem>>, vector<8x4xf32>,
    %c8 = arith.constant 8 : index
    %c0_13 = arith.constant 0 : index
    %22 = vector.load %arg14[%c8, %c0_13] : memref<124x4xf32, #tpu.memory_space<vmem>>, vector<108x4xf32>
    tpu.vector_store %arg14[%c8, %c0_13], %18 {strides = array<i32>} : memref<124x4xf32, #tpu.memory_space<vmem>>, vector<108x4xf32>,
    %c7 = arith.constant 7 : index
    %c0_14 = arith.constant 0 : index
    %23 = vector.load %arg14[%c7, %c0_14] : memref<124x4xf32, #tpu.memory_space<vmem>>, vector<72x4xf32>
    %c8_15 = arith.constant 8 : index
    %c0_16 = arith.constant 0 : index
    %24 = vector.load %arg14[%c8_15, %c0_16] : memref<124x4xf32, #tpu.memory_space<vmem>>, vector<72x4xf32>
    %c9 = arith.constant 9 : index
    %c0_17 = arith.constant 0 : index
    %25 = vector.load %arg14[%c9, %c0_17] : memref<124x4xf32, #tpu.memory_space<vmem>>, vector<72x4xf32>
    %c25 = arith.constant 25 : index
    %c0_18 = arith.constant 0 : index
    %26 = vector.load %arg14[%c25, %c0_18] : memref<124x4xf32, #tpu.memory_space<vmem>>, vector<72x4xf32>
    %c26 = arith.constant 26 : index
    %c0_19 = arith.constant 0 : index
    %27 = vector.load %arg14[%c26, %c0_19] : memref<124x4xf32, #tpu.memory_space<vmem>>, vector<72x4xf32>
    %c27 = arith.constant 27 : index
    %c0_20 = arith.constant 0 : index
    %28 = vector.load %arg14[%c27, %c0_20] : memref<124x4xf32, #tpu.memory_space<vmem>>, vector<72x4xf32>
    %c43 = arith.constant 43 : index
    %c0_21 = arith.constant 0 : index
    %29 = vector.load %arg14[%c43, %c0_21] : memref<124x4xf32, #tpu.memory_space<vmem>>, vector<72x4xf32>
    %c44 = arith.constant 44 : index
    %c0_22 = arith.constant 0 : index
    %30 = vector.load %arg14[%c44, %c0_22] : memref<124x4xf32, #tpu.memory_space<vmem>>, vector<72x4xf32>
    %c45 = arith.constant 45 : index
    %c0_23 = arith.constant 0 : index
    %31 = vector.load %arg14[%c45, %c0_23] : memref<124x4xf32, #tpu.memory_space<vmem>>, vector<72x4xf32>
    %32 = tpu.concatenate %23, %24, %25, %26, %27, %28, %29, %30, %31 in 1 : vector<72x4xf32>, vector<72x4xf32>, vector<72x4xf32>, vector<72x4xf32>, vector<72x4xf32>, vector<72x4xf32>, vector<72x4xf32>, vector<72x4xf32>, vector<72x4xf32> -> vector<72x36xf32>
    %33 = arith.truncf %32 : vector<72x36xf32> to vector<72x36xbf16>
    %c0_24 = arith.constant 0 : index
    %c0_25 = arith.constant 0 : index
    %34 = vector.load %arg7[%c0_24, %c0_25] : memref<36x4xbf16, #tpu.memory_space<vmem>>, vector<36x4xbf16>
    %cst_26 = arith.constant dense<0.000000e+00> : vector<72x4xf32>
    %35 = tpu.matmul %33, %34, %cst_26 {dimension_numbers = #tpu.dot_dimension_numbers<[1], [0], [0], [1], [0, 0, 1, 1], [], []>} : vector<72x36xbf16>, vector<36x4xbf16>, vector<72x4xf32> -> vector<72x4xf32>
    %c0_27 = arith.constant 0 : index
    %c0_28 = arith.constant 0 : index
    %36 = vector.load %arg8[%c0_27, %c0_28] : memref<1x4xf32, #tpu.memory_space<vmem>>, vector<1x4xf32>
    %37 = vector.broadcast %36 : vector<1x4xf32> to vector<72x4xf32>
    %38 = arith.mulf %35, %37 : vector<72x4xf32>
    %c0_29 = arith.constant 0 : index
    %c0_30 = arith.constant 0 : index
    %39 = vector.load %arg9[%c0_29, %c0_30] : memref<1x4xf32, #tpu.memory_space<vmem>>, vector<1x4xf32>
    %40 = vector.broadcast %39 : vector<1x4xf32> to vector<72x4xf32>
    %41 = arith.addf %38, %40 : vector<72x4xf32>
    %cst_31 = arith.constant 0.000000e+00 : f32
    %42 = vector.broadcast %cst_31 : f32 to vector<72x4xf32>
    %43 = arith.maximumf %41, %42 : vector<72x4xf32>
    %44 = arith.truncf %43 : vector<72x4xf32> to vector<72x4xbf16>
    %c0_32 = arith.constant 0 : index
    %c0_33 = arith.constant 0 : index
    %45 = vector.load %arg10[%c0_32, %c0_33] : memref<4x16xbf16, #tpu.memory_space<vmem>>, vector<4x16xbf16>
    %cst_34 = arith.constant dense<0.000000e+00> : vector<72x16xf32>
    %46 = tpu.matmul %44, %45, %cst_34 {dimension_numbers = #tpu.dot_dimension_numbers<[1], [0], [0], [1], [0, 0, 1, 1], [], []>} : vector<72x4xbf16>, vector<4x16xbf16>, vector<72x16xf32> -> vector<72x16xf32>
    %c0_35 = arith.constant 0 : index
    %c0_36 = arith.constant 0 : index
    %47 = vector.load %arg11[%c0_35, %c0_36] : memref<1x16xf32, #tpu.memory_space<vmem>>, vector<1x16xf32>
    %48 = vector.broadcast %47 : vector<1x16xf32> to vector<72x16xf32>
    %49 = arith.mulf %46, %48 : vector<72x16xf32>
    %c0_37 = arith.constant 0 : index
    %c0_38 = arith.constant 0 : index
    %50 = vector.load %arg12[%c0_37, %c0_38] : memref<1x16xf32, #tpu.memory_space<vmem>>, vector<1x16xf32>
    %51 = vector.broadcast %50 : vector<1x16xf32> to vector<72x16xf32>
    %52 = arith.addf %49, %51 : vector<72x16xf32>
    %cst_39 = arith.constant 0.000000e+00 : f32
    %53 = vector.broadcast %cst_39 : f32 to vector<72x16xf32>
    %54 = arith.maximumf %52, %53 : vector<72x16xf32>
    %c18_i32 = arith.constant 18 : i32
    %55 = arith.addi %0, %c18_i32 : i32
    %c0_40 = arith.constant 0 : index
    %56 = arith.index_cast %55 : i32 to index
    %c0_41 = arith.constant 0 : index
    %57 = vector.load %arg2[%c0_40, %56, %c0_41] : memref<1x324x16xf32, #tpu.memory_space<vmem>>, vector<1x72x16xf32>
    %58 = vector.shape_cast %57 : vector<1x72x16xf32> to vector<72x16xf32>
    %c18_i32_42 = arith.constant 18 : i32
    %59 = arith.addi %0, %c18_i32_42 : i32
    %60 = arith.index_cast %59 : i32 to index
    %c0_43 = arith.constant 0 : index
    %61 = vector.load %arg3[%60, %c0_43] : memref<324x1xf32, #tpu.memory_space<vmem>>, vector<72x1xf32>
    %62 = arith.addf %54, %58 : vector<72x16xf32>
    %cst_44 = arith.constant 0.000000e+00 : f32
    %63 = vector.broadcast %cst_44 : f32 to vector<72x16xf32>
    %64 = arith.maximumf %62, %63 : vector<72x16xf32>
    %65 = vector.broadcast %61 : vector<72x1xf32> to vector<72x16xf32>
    %66 = arith.mulf %64, %65 : vector<72x16xf32>
    %c0_45 = arith.constant 0 : index
    %c0_46 = arith.constant 0 : index
    %c0_47 = arith.constant 0 : index
    %67 = vector.load %arg13[%c0_45, %c0_46, %c0_47] : memref<1x72x16xf32, #tpu.memory_space<vmem>>, vector<1x72x16xf32>
    %68 = vector.shape_cast %67 : vector<1x72x16xf32> to vector<72x16xf32>
    %69 = vector.shape_cast %66 : vector<72x16xf32> to vector<1x72x16xf32>
    tpu.vector_store %arg13[%c0_45, %c0_46, %c0_47], %69 {strides = array<i32>} : memref<1x72x16xf32, #tpu.memory_space<vmem>>, vector<1x72x16xf32>,
    return
  }
  func.func @transform_0(%arg0: i32, %arg1: i32) -> (i32, i32, i32) {
    %c0_i32 = arith.constant 0 : i32
    %c0_i32_0 = arith.constant 0 : i32
    %c0_i32_1 = arith.constant 0 : i32
    return %arg0, %c0_i32, %c0_i32_0 : i32, i32, i32
  }
  func.func @transform_1(%arg0: i32, %arg1: i32) -> (i32, i32) {
    %c0_i32 = arith.constant 0 : i32
    %c0_i32_0 = arith.constant 0 : i32
    %c0_i32_1 = arith.constant 0 : i32
    return %c0_i32, %c0_i32_0 : i32, i32
  }
  func.func @transform_2(%arg0: i32, %arg1: i32) -> (i32, i32) {
    %c0_i32 = arith.constant 0 : i32
    %c0_i32_0 = arith.constant 0 : i32
    %c0_i32_1 = arith.constant 0 : i32
    return %c0_i32, %c0_i32_0 : i32, i32
  }
  func.func @transform_3(%arg0: i32, %arg1: i32) -> (i32, i32) {
    %c0_i32 = arith.constant 0 : i32
    %c0_i32_0 = arith.constant 0 : i32
    %c0_i32_1 = arith.constant 0 : i32
    return %c0_i32, %c0_i32_0 : i32, i32
  }
  func.func @transform_4(%arg0: i32, %arg1: i32) -> (i32, i32) {
    %c0_i32 = arith.constant 0 : i32
    %c0_i32_0 = arith.constant 0 : i32
    %c0_i32_1 = arith.constant 0 : i32
    return %c0_i32, %c0_i32_0 : i32, i32
  }
  func.func @transform_5(%arg0: i32, %arg1: i32) -> (i32, i32) {
    %c0_i32 = arith.constant 0 : i32
    %c0_i32_0 = arith.constant 0 : i32
    %c0_i32_1 = arith.constant 0 : i32
    return %c0_i32, %c0_i32_0 : i32, i32
  }
  func.func @transform_6(%arg0: i32, %arg1: i32) -> (i32, i32) {
    %c0_i32 = arith.constant 0 : i32
    %c0_i32_0 = arith.constant 0 : i32
    %c0_i32_1 = arith.constant 0 : i32
    return %c0_i32, %c0_i32_0 : i32, i32
  }
  func.func @transform_7(%arg0: i32, %arg1: i32) -> (i32, i32) {
    %c0_i32 = arith.constant 0 : i32
    %c0_i32_0 = arith.constant 0 : i32
    %c0_i32_1 = arith.constant 0 : i32
    return %c0_i32, %c0_i32_0 : i32, i32
  }
  func.func @transform_8(%arg0: i32, %arg1: i32) -> (i32, i32) {
    %c0_i32 = arith.constant 0 : i32
    %c0_i32_0 = arith.constant 0 : i32
    %c0_i32_1 = arith.constant 0 : i32
    return %c0_i32, %c0_i32_0 : i32, i32
  }
  func.func @transform_9(%arg0: i32, %arg1: i32) -> (i32, i32) {
    %c0_i32 = arith.constant 0 : i32
    %c0_i32_0 = arith.constant 0 : i32
    %c0_i32_1 = arith.constant 0 : i32
    return %c0_i32, %c0_i32_0 : i32, i32
  }
  func.func @transform_10(%arg0: i32, %arg1: i32) -> (i32, i32) {
    %c0_i32 = arith.constant 0 : i32
    %c0_i32_0 = arith.constant 0 : i32
    %c0_i32_1 = arith.constant 0 : i32
    return %c0_i32, %c0_i32_0 : i32, i32
  }
  func.func @transform_11(%arg0: i32, %arg1: i32) -> (i32, i32, i32) {
    %c0_i32 = arith.constant 0 : i32
    %c0_i32_0 = arith.constant 0 : i32
    return %arg0, %arg1, %c0_i32 : i32, i32, i32
  }
}

</mosaic_0001>

<bundles_post_ra>
// kernel: decoder_forward.7
= control target key start
LH: loop header
LB: loop body
LE: loop exit
PB: predicated region body
PF: predicated region fallthrough
CT: control target
= control target key end

     0   :  { %s2173_s17 = smov 0   ;;  %s2175_s18 = smov 0   ;;  %s2631_s0 = inlined_call_operand.vmem [shape: f32[2,100,64], index: 0, kind: input, shape index: {}]   ;;  %s2632_s1 = inlined_call_operand.vmem [shape: f32[100,1], index: 1, kind: input, shape index: {}]   ;;  %s2633_s2 = inlined_call_operand.vmem [shape: bf16[64,16], index: 2, kind: input, shape index: {}]   ;;  %s2634_s3 = inlined_call_operand.vmem [shape: f32[1,16], index: 3, kind: input, shape index: {}]   ;;  %s2635_s4 = inlined_call_operand.vmem [shape: f32[1,16], index: 4, kind: input, shape index: {}]   ;;  %s2636_s5 = inlined_call_operand.vmem [shape: bf16[144,16], index: 5, kind: input, shape index: {}]   ;;  %s2637_s6 = inlined_call_operand.vmem [shape: f32[1,16], index: 6, kind: input, shape index: {}]   ;;  %s2638_s7 = inlined_call_operand.vmem [shape: f32[1,16], index: 7, kind: input, shape index: {}]   ;;  %s2639_s8 = inlined_call_operand.vmem [shape: bf16[16,64], index: 8, kind: input, shape index: {}]   ;;  %s2640_s9 = inlined_call_operand.vmem [shape: f32[1,64], index: 9, kind: input, shape index: {}]   ;;  %s2641_s10 = inlined_call_operand.vmem [shape: f32[1,64], index: 10, kind: input, shape index: {}]   ;;  %s2642_s11 = inlined_call_operand.vmem [shape: f32[2,80,64], index: 11, kind: output, shape index: {}]  }
   0x1   :  { %s2177_s19 = smov 0  }
   0x2 LB: > { %s33_s20 = sadd.s32 1, %s2097_s18  ;;  %p1713_p0 = scmp.ge.s32.totalorder %s2101_s19, 1  ;;  %s2101_s19 = sphi %s2177_s19, %s21_s19   ;;  %s2097_s18 = sphi %s2175_s18, %s2644_s18   ;;  %s2093_s17 = sphi %s2173_s17, %s2643_s17  }
   0x3   : > { %p35_p1 = scmp.ge.s32.totalorder %s33_s20, 2  ;;  %p351_p2 = scmp.lt.s32.totalorder %s2101_s19, 3 }
   0x5   : > { %s2646_s20 = smov (%p35_p1, %s33_s20), 0  ;;  %p352_p3 = pnand %p1713_p0, %p351_p2 }
   0x6   : > { %p395_p4 = scmp.lt.s32.totalorder (!%p352_p3), %s2093_s17, 1  ;;  %s2106_s15 = smov (!%p352_p3), 16  }
   0x7   : > { %355 = sbr.rel (%p352_p3) target bundleno = 852 (0x354), region = 64  ;;  %s2107_s23 = smov (!%p352_p3), 32  }
   0x8   : > { %s2108_s26 = smov (!%p352_p3), 64   ;;  %s2109_s27 = smov (!%p352_p3), 48  }
   0x9   : > { %s2110_s28 = smov (!%p352_p3), 80   ;;  %s2111_s29 = smov (!%p352_p3), 112  }
   0xa   : > { %s2112_s30 = smov (!%p352_p3), 96  }
   0xc   : > { %v2065_v0 = vld [vmem:[%s2633_s2 + $0x18] sm:$0xff]   ;;  %v2103_v1 = vmov 0.0   ;;  %v2066_v2 = vld [vmem:[%s2633_s2 + $0x10] sm:$0xff]   ;;  %vm2104_vm0 = vmmov 0   ;;  %s2648_s17 = smov (!%p395_p4, %s2093_s17), 1  ;;  %v427_v3 = vld [vmem:[%s2632_s1] sm:$0xff] }
   0xd   : > { %1792 = vmatprep.subr.bf16.mxu0 %v2103_v1  ;;  %1800 = vmatprep.mubr.msk.bf16.mxu0 %vm2104_vm0, %v2103_v1  ;;  %v429_v4 = vld [vmem:[%s2632_s1 + $0x10] sm:$0xff]  ;;  %v2105_v5 = vmov 0   ;;  %v2067_v6 = vld [vmem:[%s2633_s2 + $0x8] sm:$0xff]   ;;  %s1852_s12 = smul.u32 104, %s2648_s17  ;;  %v430_v8 = vld [vmem:[%s2632_s1 + $0x18] sm:$0xff]  ;;  %vm479_vm1 = vcmask 523264  }
   0xe   : > { %1793 = vmatpush3.bf16.msra.mxu0 %v2065_v0  ;;  %1888 = vset.pattern.permute.xlu0 %v2105_v5  ;;  %v428_v7 = vld [vmem:[%s2632_s1 + $0x8] sm:$0xff]  ;;  %v2068_v9 = vld [vmem:[%s2633_s2] sm:$0xff]   ;;  %v433_v15 = vld [vmem:[%s2632_s1 + $0x30] sm:$0xff]  ;;  %vm720_vm2 = vcmask 130048   ;;  %vm735_vm3 = vcmask 125952   ;;  %vm1081_vm4 = vcmask 261120  }
   0xf   : > { %1794 = vmatprep.subr.bf16.mxu0 %v2103_v1  ;;  %1889 = vset.pattern.permute.xlu1 %v2105_v5  ;;  %s2222_s21 = scalar_lea.vmem %s2631_s0, %s1852_s12  ;;  %v431_v12 = vld [vmem:[%s2632_s1 + $0x20] sm:$0xff]  ;;  %v432_v13 = vld [vmem:[%s2632_s1 + $0x28] sm:$0xff]  ;;  %v434_v16 = vld [vmem:[%s2632_s1 + $0x38] sm:$0xff]  ;;  %721 = vst.msk [vmem:[#allocation2] sm:$0xff] %vm720_vm2, %v2103_v1  ;;  %vm1092_vm5 = vcmask 392192   ;;  %vm1113_vm6 = vcmask 654336  }
  0x10   : > { %644 = vperm.xlu0 %1888, %v427_v3   ;;  %654 = vperm.xlu1 %1889, %v429_v4   ;;  %v413_v10 = vld [vmem:[%s2222_s21] sm:$0xff]  ;;  %v414_v11 = vld [vmem:[%s2222_s21 + $0x8] sm:$0xff]  ;;  %v415_v17 = vld [vmem:[%s2222_s21 + $0x10] sm:$0xff]  ;;  %722 = vst.msk [vmem:[#allocation2 + $0x6c] sm:$0xff] %vm720_vm2, %v2103_v1  ;;  %vm1124_vm7 = vcmask 785408   ;;  %vm1135_vm8 = vcmask 916480  }
  0x11   : > { %1243 = vmatprep.subr.bf16.mxu1 %v2105_v5  ;;  %v440_v14 = vpack.c.bf16 %v414_v11, %v413_v10  ;;  %v416_v18 = vld [vmem:[%s2222_s21 + $0x18] sm:$0xff]  ;;  %v435_v19 = vld [vmem:[%s2632_s1 + $0x40] sm:$0xff]  ;;  %v436_v20 = vld [vmem:[%s2632_s1 + $0x48] sm:$0xff]  ;;  %s1853_s14 = smul.u32 80, %s2648_s17 }
  0x12   : > { %1795 = vmatpush3.bf16.msra.mxu0 %v2066_v2  ;;  %v441_v21 = vpack.c.bf16 %v416_v18, %v415_v17  ;;  %v437_v22 = vld [vmem:[%s2632_s1 + $0x50] sm:$0xff]  ;;  %v438_v23 = vld [vmem:[%s2632_s1 + $0x58] sm:$0xff]  ;;  %v417_v24 = vld [vmem:[%s2222_s21 + $0x20] sm:$0xff] }
  0x13   : > { %1796 = vmatprep.subr.bf16.mxu0 %v2103_v1  ;;  %v418_v25 = vld [vmem:[%s2222_s21 + $0x28] sm:$0xff]  ;;  %v439_v26 = vld [vmem:[%s2632_s1 + $0x60] sm:$0xf]  ;;  %v419_v28 = vld [vmem:[%s2222_s21 + $0x30] sm:$0xff]  ;;  %s2576_s22 = scalar_lea.vmem %s2642_s11, %s1853_s14 }
  0x14   : > { %649 = vperm.xlu0 %1888, %v428_v7   ;;  %659 = vperm.xlu1 %1889, %v430_v8   ;;  %v442_v27 = vpack.c.bf16 %v418_v25, %v417_v24  ;;  %v420_v29 = vld [vmem:[%s2222_s21 + $0x38] sm:$0xff]  ;;  %v421_v31 = vld [vmem:[%s2222_s21 + $0x40] sm:$0xff]  ;;  %v422_v32 = vld [vmem:[%s2222_s21 + $0x48] sm:$0xff] }
  0x15   : > { %v443_v30 = vpack.c.bf16 %v420_v29, %v419_v28  ;;  %v444_v33 = vpack.c.bf16 %v422_v32, %v421_v31  ;;  %v423_v34 = vld [vmem:[%s2222_s21 + $0x50] sm:$0xff]  ;;  %v424_v35 = vld [vmem:[%s2222_s21 + $0x58] sm:$0xff]  ;;  %v425_v37 = vld [vmem:[%s2222_s21 + $0x60] sm:$0xf] }
  0x16   : > { %1797 = vmatpush3.bf16.msra.mxu0 %v2067_v6  ;;  %v445_v36 = vpack.c.bf16 %v424_v35, %v423_v34  ;;  %v446_v38 = vpack.c.bf16 %v425_v37, %v425_v37  ;;  %v2069_v39 = vld [vmem:[%s2636_s5 + $0x38] sm:$0xff]   ;;  %v2070_v40 = vld [vmem:[%s2636_s5 + $0x30] sm:$0xff]   ;;  %v2071_v41 = vld [vmem:[%s2636_s5 + $0x28] sm:$0xff]  }
  0x17   : > { %1798 = vmatprep.subr.bf16.mxu0 %v2103_v1  ;;  %1244 = vmatpush1.bf16.msra.mxu1 %v2069_v39  ;;  %v2072_v42 = vld [vmem:[%s2636_s5 + $0x20] sm:$0xff]   ;;  %v2073_v2 = vld [vmem:[%s2636_s5 + $0x18] sm:$0xff]   ;;  %v2074_v10 = vld [vmem:[%s2636_s5 + $0x10] sm:$0xff]  }
  0x18   : > { %664 = vperm.xlu0 %1888, %v431_v12   ;;  %669 = vperm.xlu1 %1889, %v432_v13   ;;  %v2315_v43 = vld [vmem:[%s2634_s3] ss:$0 sm:$0xff] }
  0x19   : > { %1245 = vmatprep.subr.bf16.mxu1 %v2105_v5  ;;  %v2321_v45 = vld [vmem:[%s2635_s4] ss:$0 sm:$0xff] }
  0x1a   : > { %1799 = vmatpush3.bf16.msra.mxu0 %v2068_v9  ;;  %v2076_v34 = vld [vmem:[%s2636_s5] sm:$0xff]  }
  0x1b   : > { %1828 = vmatprep.subr.bf16.mxu0 %v2103_v1  ;;  %1246 = vmatpush1.bf16.msra.mxu1 %v2070_v40 }
  0x1c   : > { %674 = vperm.xlu0 %1888, %v433_v15   ;;  %679 = vperm.xlu1 %1889, %v434_v16  }
  0x1d   : > { %1801 = vmatmul.mubr.msk.bf16.vlgmr.msra.gmra.mxu0 %vm479_vm1, %v440_v14  ;;  %1247 = vmatprep.subr.bf16.mxu1 %v2105_v5 }
  0x1e   : > { %1804 = vmatprep.mubr.msk.bf16.mxu0 %vm2104_vm0, %v2103_v1 }
  0x1f   : > { %1248 = vmatpush1.bf16.msra.mxu1 %v2071_v41 }
  0x20   : > { %684 = vperm.xlu0 %1888, %v435_v19   ;;  %689 = vperm.xlu1 %1889, %v436_v20  }
  0x21   : > { %1249 = vmatprep.subr.bf16.mxu1 %v2105_v5 }
  0x23   : > { %1250 = vmatpush1.bf16.msra.mxu1 %v2072_v42 }
  0x24   : > { %694 = vperm.xlu0 %1888, %v437_v22   ;;  %699 = vperm.xlu1 %1889, %v438_v23   ;;  %v2075_v23 = vld [vmem:[%s2636_s5 + $0x8] sm:$0xff]  }
  0x25   : > { %1805 = vmatmul.mubr.msk.bf16.gmra.mxu0 %vm479_vm1, %v441_v21  ;;  %1251 = vmatprep.subr.bf16.mxu1 %v2105_v5 }
  0x26   : > { %1808 = vmatprep.mubr.msk.bf16.mxu0 %vm2104_vm0, %v2103_v1 }
  0x27   : > { %1252 = vmatpush1.bf16.msra.mxu1 %v2073_v2 }
  0x28   : > { %704 = vperm.xlu0 %1888, %v439_v26   ;;  %1253 = vmatprep.subr.bf16.mxu1 %v2105_v5 }
  0x2b   : > { %1254 = vmatpush1.bf16.msra.mxu1 %v2074_v10 }
  0x2c   : > { %1255 = vmatprep.subr.bf16.mxu1 %v2105_v5 }
  0x2d   : > { %1809 = vmatmul.mubr.msk.bf16.gmra.mxu0 %vm479_vm1, %v442_v27 }
  0x2e   : > { %1812 = vmatprep.mubr.msk.bf16.mxu0 %vm2104_vm0, %v2103_v1 }
  0x2f   : > { %1256 = vmatpush1.bf16.msra.mxu1 %v2075_v23 }
  0x30   : > { %1257 = vmatprep.subr.bf16.mxu1 %v2105_v5 }
  0x33   : > { %1258 = vmatpush1.bf16.msra.mxu1 %v2076_v34 }
  0x34   : > { %1273 = vmatprep.subr.bf16.mxu1 %v2105_v5 }
  0x35   : > { %1813 = vmatmul.mubr.msk.bf16.gmra.mxu0 %vm479_vm1, %v443_v30 }
  0x36   : > { %1816 = vmatprep.mubr.msk.bf16.mxu0 %vm2104_vm0, %v2103_v1 }
  0x3d   : > { %1817 = vmatmul.mubr.msk.bf16.gmra.mxu0 %vm479_vm1, %v444_v33 }
  0x3e   : > { %1820 = vmatprep.mubr.msk.bf16.mxu0 %vm2104_vm0, %v2103_v1 }
  0x45   : > { %1821 = vmatmul.mubr.msk.bf16.gmra.mxu0 %vm479_vm1, %v445_v36 }
  0x46   : > { %1824 = vmatprep.mubr.msk.bf16.mxu0 %vm2104_vm0, %v2103_v1 }
  0x4d   : > { %1825 = vmatmul.mubr.msk.bf16.gmra.mxu0 %vm479_vm1, %v446_v38 }
  0x4e   : > { %1830 = vmatprep.mubr.msk.bf16.mxu0 %vm2104_vm0, %v2103_v1 }
  0x8b   : > { %v645_v49 = vpop.permute.xlu0 %644  ;;  %v655_v63 = vpop.permute.xlu1 %654 }
  0x8f   : > { %v650_v59 = vpop.permute.xlu0 %649  ;;  %v660_v13 = vpop.permute.xlu1 %659 }
  0x93   : > { %v665_v24 = vpop.permute.xlu0 %664  ;;  %v670_v35 = vpop.permute.xlu1 %669 }
  0x97   : > { %v680_v2 = vpop.permute.xlu1 %679 }
  0xdd   : > { %v535_v44 = vpop.f32.mrf.mxu0 }
  0xde   : > { %v596_v46 = vmul.f32 %v2315_v43, %v535_v44 }
  0xdf   : > { %v1802_v47 = vpop.f32.mrf.mxu0 }
  0xe0   : > { %v616_v48 = vadd.f32 %v2321_v45, %v596_v46 }
  0xe1   : > { %v538_v50 = vpop.f32.mrf.mxu0 }
  0xe2   : > { %v629_v51 = vmax.f32 %v616_v48, 0.0  ;;  %v597_v52 = vmul.f32 %v2315_v43, %v538_v50  ;;  %v675_v50 = vpop.permute.xlu0 %674 }
  0xe3   : > { %v1803_v53 = vpop.f32.mrf.mxu0 }
  0xe4   : > { %v707_v54 = vmul.f32 %v645_v49, %v629_v51  ;;  %v617_v55 = vadd.f32 %v2321_v45, %v597_v52  ;;  %v2077_v53 = vld [vmem:[%s2636_s5 + $0x40] sm:$0xff]  }
  0xe5   : > { %v543_v56 = vpop.f32.mrf.mxu0  ;;  %1274 = vmatpush2.bf16.msra.mxu1 %v2077_v53 }
  0xe6   : > { %723 = vst.msk [vmem:[#allocation2 + $0x8] sm:$0xff] %vm720_vm2, %v707_v54  ;;  %v630_v57 = vmax.f32 %v617_v55, 0.0  ;;  %v598_v58 = vmul.f32 %v2315_v43, %v543_v56  ;;  %1850 = vmatprep.subr.bf16.mxu1 %v2103_v1 }
  0xe7   : > { %v1806_v60 = vpop.f32.mrf.mxu0 }
  0xe8   : > { %v708_v61 = vmul.f32 %v650_v59, %v630_v57  ;;  %v618_v62 = vadd.f32 %v2321_v45, %v598_v58 }
  0xe9   : > { %v546_v0 = vpop.f32.mrf.mxu0 }
  0xea   : > { %724 = vst.msk [vmem:[#allocation2 + $0x10] sm:$0xff] %vm720_vm2, %v708_v61  ;;  %v631_v3 = vmax.f32 %v618_v62, 0.0  ;;  %v599_v4 = vmul.f32 %v2315_v43, %v546_v0 }
  0xeb   : > { %v1807_v6 = vpop.f32.mrf.mxu0 }
  0xec   : > { %v709_v7 = vmul.f32 %v655_v63, %v631_v3  ;;  %v619_v8 = vadd.f32 %v2321_v45, %v599_v4 }
  0xed   : > { %v551_v9 = vpop.f32.mrf.mxu0  ;;  %v747_v18 = vld [vmem:[#allocation2 + $0x8] sm:$0xff] }
  0xee   : > { %725 = vst.msk [vmem:[#allocation2 + $0x18] sm:$0xff] %vm720_vm2, %v709_v7  ;;  %v632_v11 = vmax.f32 %v619_v8, 0.0  ;;  %v600_v12 = vmul.f32 %v2315_v43, %v551_v9 }
  0xef   : > { %v1810_v14 = vpop.f32.mrf.mxu0 }
  0xf0   : > { %v710_v15 = vmul.f32 %v660_v13, %v632_v11  ;;  %v620_v16 = vadd.f32 %v2321_v45, %v600_v12 }
  0xf1   : > { %v554_v17 = vpop.f32.mrf.mxu0  ;;  %v748_v19 = vld [vmem:[#allocation2 + $0x10] sm:$0xff] }
  0xf2   : > { %726 = vst.msk [vmem:[#allocation2 + $0x20] sm:$0xff] %vm720_vm2, %v710_v15  ;;  %v633_v20 = vmax.f32 %v620_v16, 0.0  ;;  %v601_v21 = vmul.f32 %v2315_v43, %v554_v17  ;;  %v1890_v22 = vpack.i.bf16 %v748_v19, %v747_v18  ;;  %v757_v29 = vld [vmem:[#allocation2 + $0x9] sm:$0xff]  ;;  %v685_v15 = vpop.permute.xlu0 %684 }
  0xf3   : > { %v1811_v25 = vpop.f32.mrf.mxu0 }
  0xf4   : > { %v711_v26 = vmul.f32 %v665_v24, %v633_v20  ;;  %v621_v27 = vadd.f32 %v2321_v45, %v601_v21  ;;  %1891 = vrot.lane.b32.xlu1 %v1890_v22, %s2106_s15 }
  0xf5   : > { %v559_v28 = vpop.f32.mrf.mxu0  ;;  %v758_v30 = vld [vmem:[#allocation2 + $0x11] sm:$0xff] }
  0xf6   : > { %727 = vst.msk [vmem:[#allocation2 + $0x28] sm:$0xff] %vm720_vm2, %v711_v26  ;;  %v634_v31 = vmax.f32 %v621_v27, 0.0  ;;  %v602_v32 = vmul.f32 %v2315_v43, %v559_v28  ;;  %v1895_v33 = vpack.i.bf16 %v758_v30, %v757_v29  ;;  %v768_v40 = vld [vmem:[#allocation2 + $0x12] sm:$0xff]  ;;  %v690_v26 = vpop.permute.xlu1 %689 }
  0xf7   : > { %v1814_v36 = vpop.f32.mrf.mxu0  ;;  %v778_v5 = vld [vmem:[#allocation2 + $0x13] sm:$0xff] }
  0xf8   : > { %v712_v37 = vmul.f32 %v670_v35, %v634_v31  ;;  %v622_v38 = vadd.f32 %v2321_v45, %v602_v32  ;;  %1896 = vrot.lane.b32.xlu0 %v1895_v33, %s2107_s23  ;;  %v749_v58 = vld [vmem:[#allocation2 + $0x18] sm:$0xff] }
  0xf9   : > { %v562_v39 = vpop.f32.mrf.mxu0  ;;  %v769_v41 = vld [vmem:[#allocation2 + $0x1a] sm:$0xff] }
  0xfa   : > { %v2360_v42 = vld [vmem:[#allocation2 + $0x19] sm:$0xff]  ;;  %728 = vst.msk [vmem:[#allocation2 + $0x30] sm:$0xff] %vm720_vm2, %v712_v37  ;;  %v635_v44 = vmax.f32 %v622_v38, 0.0  ;;  %v603_v46 = vmul.f32 %v2315_v43, %v562_v39  ;;  %v1905_v47 = vpack.i.bf16 %v769_v41, %v768_v40  ;;  %v695_v38 = vpop.permute.xlu0 %694  ;;  %v700_v53 = vpop.permute.xlu1 %699 }
  0xfb   : > { %v1900_v48 = vpack.i.bf16 %v2360_v42, %v758_v30  ;;  %v779_v49 = vld [vmem:[#allocation2 + $0x1b] sm:$0xff]  ;;  %v1815_v51 = vpop.f32.mrf.mxu0 }
  0xfc   : > { %v750_v52 = vld [vmem:[#allocation2 + $0x20] sm:$0xff]  ;;  %v713_v54 = vmul.f32 %v675_v50, %v635_v44  ;;  %v623_v55 = vadd.f32 %v2321_v45, %v603_v46  ;;  %1906 = vrot.lane.b32.xlu0 %v1905_v47, %s2108_s26  ;;  %v1910_v57 = vpack.i.bf16 %v779_v49, %v778_v5 }
  0xfd   : > { %1901 = vrot.lane.b32.xlu1 %v1900_v48, %s2109_s27  ;;  %v567_v56 = vpop.f32.mrf.mxu0  ;;  %v799_v59 = vld [vmem:[#allocation2 + $0x1d] sm:$0xff]  ;;  %v800_v60 = vld [vmem:[#allocation2 + $0x25] sm:$0xff]  ;;  %v1915_v63 = vpack.i.bf16 %v750_v52, %v749_v58 }
  0xfe   : > { %729 = vst.msk [vmem:[#allocation2 + $0x38] sm:$0xff] %vm720_vm2, %v713_v54  ;;  %v636_v61 = vmax.f32 %v623_v55, 0.0  ;;  %v604_v62 = vmul.f32 %v2315_v43, %v567_v56  ;;  %v1147_v0 = vpack.c.bf16 %v800_v60, %v799_v59  ;;  %v790_v4 = vld [vmem:[#allocation2 + $0x24] sm:$0xff]  ;;  %v789_v10 = vld [vmem:[#allocation2 + $0x1c] sm:$0xff] }
  0xff   : > { %v1818_v3 = vpop.f32.mrf.mxu0  ;;  %v780_v6 = vld [vmem:[#allocation2 + $0x23] sm:$0xff]  ;;  %v1925_v13 = vpack.i.bf16 %v790_v4, %v789_v10 }
 0x100   : > { %v714_v7 = vmul.f32 %v680_v2, %v636_v61  ;;  %v624_v8 = vadd.f32 %v2321_v45, %v604_v62  ;;  %1916 = vrot.lane.b32.xlu0 %v1915_v63, %s2106_s15  ;;  %1738 = vmatprep.mubr.msk.bf16.mxu1 %vm720_vm2, %v1147_v0  ;;  %v1920_v14 = vpack.i.bf16 %v780_v6, %v779_v49  ;;  %v760_v17 = vld [vmem:[#allocation2 + $0x21] sm:$0xff]  ;;  %v705_v61 = vpop.permute.xlu0 %704 }
 0x101   : > { %1911 = vrot.lane.b32.xlu1 %v1910_v57, %s2110_s28  ;;  %v570_v9 = vpop.f32.mrf.mxu0  ;;  %v2381_v18 = vld [vmem:[#allocation2 + $0x29] sm:$0xff]  ;;  %v1930_v24 = vpack.i.bf16 %v760_v17, %v2360_v42 }
 0x102   : > { %730 = vst.msk [vmem:[#allocation2 + $0x40] sm:$0xff] %vm720_vm2, %v714_v7  ;;  %v637_v11 = vmax.f32 %v624_v8, 0.0  ;;  %v605_v12 = vmul.f32 %v2315_v43, %v570_v9  ;;  %v1935_v25 = vpack.i.bf16 %v2381_v18, %v760_v17  ;;  %v771_v28 = vld [vmem:[#allocation2 + $0x2a] sm:$0xff]  ;;  %v770_v33 = vld [vmem:[#allocation2 + $0x22] sm:$0xff] }
 0x103   : > { %v1819_v16 = vpop.f32.mrf.mxu0  ;;  %v781_v29 = vld [vmem:[#allocation2 + $0x2b] sm:$0xff]  ;;  %v1940_v36 = vpack.i.bf16 %v771_v28, %v770_v33 }
 0x104   : > { %v715_v19 = vmul.f32 %v685_v15, %v637_v11  ;;  %v625_v20 = vadd.f32 %v2321_v45, %v605_v12  ;;  %1921 = vrot.lane.b32.xlu0 %v1920_v14, %s2112_s30  ;;  %v1945_v37 = vpack.i.bf16 %v781_v29, %v780_v6  ;;  %v752_v40 = vld [vmem:[#allocation2 + $0x30] sm:$0xff]  ;;  %v751_v47 = vld [vmem:[#allocation2 + $0x28] sm:$0xff] }
 0x105   : > { %1926 = vrot.lane.b32.xlu1 %v1925_v13, %s2111_s29  ;;  %v575_v21 = vpop.f32.mrf.mxu0  ;;  %v792_v41 = vld [vmem:[#allocation2 + $0x34] sm:$0xff]  ;;  %v791_v48 = vld [vmem:[#allocation2 + $0x2c] sm:$0xff]  ;;  %v1950_v51 = vpack.i.bf16 %v752_v40, %v751_v47 }
 0x106   : > { %731 = vst.msk [vmem:[#allocation2 + $0x48] sm:$0xff] %vm720_vm2, %v715_v19  ;;  %v638_v22 = vmax.f32 %v625_v20, 0.0  ;;  %v606_v23 = vmul.f32 %v2315_v43, %v575_v21  ;;  %v1960_v52 = vpack.i.bf16 %v792_v41, %v791_v48  ;;  %v782_v54 = vld [vmem:[#allocation2 + $0x33] sm:$0xff]  ;;  %v1763_v48 = vld [vmem:[%s2632_s1 + $0xa] sm:$0xff] }
 0x107   : > { %v1822_v27 = vpop.f32.mrf.mxu0  ;;  %v762_v55 = vld [vmem:[#allocation2 + $0x31] sm:$0xff]  ;;  %v1955_v60 = vpack.i.bf16 %v782_v54, %v781_v29 }
 0x108   : > { %v716_v30 = vmul.f32 %v690_v26, %v638_v22  ;;  %v626_v31 = vadd.f32 %v2321_v45, %v606_v23  ;;  %1936 = vrot.lane.b32.xlu0 %v1935_v25, %s2109_s27  ;;  %v753_v8 = vld [vmem:[#allocation2 + $0x38] sm:$0xff] }
 0x109   : > { %1931 = vrot.lane.b32.xlu1 %v1930_v24, %s2107_s23  ;;  %v578_v32 = vpop.f32.mrf.mxu0  ;;  %v773_v62 = vld [vmem:[#allocation2 + $0x3a] sm:$0xff] }
 0x10a   : > { %732 = vst.msk [vmem:[#allocation2 + $0x50] sm:$0xff] %vm720_vm2, %v716_v30  ;;  %v639_v34 = vmax.f32 %v626_v31, 0.0  ;;  %v607_v35 = vmul.f32 %v2315_v43, %v578_v32  ;;  %v763_v63 = vld [vmem:[#allocation2 + $0x39] sm:$0xff] }
 0x10b   : > { %v1823_v39 = vpop.f32.mrf.mxu0  ;;  %v1970_v4 = vpack.i.bf16 %v763_v63, %v762_v55  ;;  %v783_v6 = vld [vmem:[#allocation2 + $0x3b] sm:$0xff] }
 0x10c   : > { %v717_v42 = vmul.f32 %v695_v38, %v639_v34  ;;  %v627_v44 = vadd.f32 %v2321_v45, %v607_v35  ;;  %1946 = vrot.lane.b32.xlu0 %v1945_v37, %s2110_s28  ;;  %v754_v7 = vld [vmem:[#allocation2 + $0x40] sm:$0xff]  ;;  %v1980_v9 = vpack.i.bf16 %v783_v6, %v782_v54  ;;  %v1768_v54 = vld [vmem:[%s2632_s1 + $0x32] sm:$0xff] }
 0x10d   : > { %1941 = vrot.lane.b32.xlu1 %v1940_v36, %s2108_s26  ;;  %v583_v46 = vpop.f32.mrf.mxu0  ;;  %v1985_v10 = vpack.i.bf16 %v754_v7, %v753_v8  ;;  %v794_v11 = vld [vmem:[#allocation2 + $0x44] sm:$0xff]  ;;  %v793_v13 = vld [vmem:[#allocation2 + $0x3c] sm:$0xff] }
 0x10e   : > { %733 = vst.msk [vmem:[#allocation2 + $0x58] sm:$0xff] %vm720_vm2, %v717_v42  ;;  %v640_v49 = vmax.f32 %v627_v44, 0.0  ;;  %v608_v50 = vmul.f32 %v2315_v43, %v583_v46  ;;  %v1965_v43 = vpack.i.bf16 %v762_v55, %v2381_v18  ;;  %v784_v12 = vld [vmem:[#allocation2 + $0x43] sm:$0xff]  ;;  %v1995_v14 = vpack.i.bf16 %v794_v11, %v793_v13  ;;  %v1769_v55 = vld [vmem:[%s2632_s1 + $0x3a] sm:$0xff] }
 0x10f   : > { %v1826_v5 = vpop.f32.mrf.mxu0  ;;  %v1990_v15 = vpack.i.bf16 %v784_v12, %v783_v6  ;;  %v764_v16 = vld [vmem:[#allocation2 + $0x41] sm:$0xff]  ;;  %v738_v6 = vld [vmem:[#allocation2 + $0xf] sm:$0xff] }
 0x110   : > { %v718_v56 = vmul.f32 %v700_v53, %v640_v49  ;;  %v628_v57 = vadd.f32 %v2321_v45, %v608_v50  ;;  %1961 = vrot.lane.b32.xlu0 %v1960_v52, %s2111_s29  ;;  %v772_v45 = vld [vmem:[#allocation2 + $0x32] sm:$0xff]  ;;  %v2000_v18 = vpack.i.bf16 %v764_v16, %v763_v63  ;;  %v774_v22 = vld [vmem:[#allocation2 + $0x42] sm:$0xff]  ;;  %v1767_v53 = vld [vmem:[%s2632_s1 + $0x2a] sm:$0xff] }
 0x111   : > { %1951 = vrot.lane.b32.xlu1 %v1950_v51, %s2106_s15  ;;  %v586_v58 = vpop.f32.mrf.mxu0  ;;  %v1975_v3 = vpack.i.bf16 %v773_v62, %v772_v45  ;;  %v765_v17 = vld [vmem:[#allocation2 + $0x49] sm:$0xff]  ;;  %v1764_v50 = vld [vmem:[%s2632_s1 + $0x12] sm:$0xff]  ;;  %v1765_v51 = vld [vmem:[%s2632_s1 + $0x1a] sm:$0xff] }
 0x112   : > { %734 = vst.msk [vmem:[#allocation2 + $0x60] sm:$0xff] %vm720_vm2, %v718_v56  ;;  %v641_v59 = vmax.f32 %v628_v57, 0.0  ;;  %v2005_v19 = vpack.i.bf16 %v765_v17, %v764_v16  ;;  %v775_v20 = vld [vmem:[#allocation2 + $0x4a] sm:$0xff]  ;;  %v1766_v52 = vld [vmem:[%s2632_s1 + $0x22] sm:$0xff]  ;;  %v1772_v58 = vld [vmem:[%s2632_s1 + $0x52] sm:$0xff] }
 0x113   : > { %v1827_v0 = vpop.f32.mrf.mxu0  ;;  %v785_v21 = vld [vmem:[#allocation2 + $0x4b] sm:$0xff]  ;;  %v2010_v23 = vpack.i.bf16 %v775_v20, %v774_v22  ;;  %v1770_v5 = vld [vmem:[%s2632_s1 + $0x42] sm:$0xff] }
 0x114   : > { %v719_v2 = vmul.f32 %v705_v61, %v641_v59  ;;  %1966 = vrot.lane.b32.xlu0 %v1965_v43, %s2107_s23  ;;  %v2015_v24 = vpack.i.bf16 %v785_v21, %v784_v12  ;;  %v756_v25 = vld [vmem:[#allocation2 + $0x50] sm:$0xff]  ;;  %v755_v27 = vld [vmem:[#allocation2 + $0x48] sm:$0xff]  ;;  %v2456_v57 = vld [vmem:[%s2639_s8] sm:$0xff]  }
 0x115   : > { %1956 = vrot.lane.b32.xlu1 %v1955_v60, %s2112_s30  ;;  %v796_v26 = vld [vmem:[#allocation2 + $0x54] sm:$0xff]  ;;  %v795_v28 = vld [vmem:[#allocation2 + $0x4c] sm:$0xff]  ;;  %v2020_v29 = vpack.i.bf16 %v756_v25, %v755_v27  ;;  %1829 = vmatpush3.bf16.msra.mxu0 %v2456_v57 }
 0x116   : > { %736 = vst.msk [vmem:[#allocation2 + $0x68] sm:$0xf] %vm735_vm3, %v719_v2  ;;  %v2030_v30 = vpack.i.bf16 %v796_v26, %v795_v28  ;;  %v786_v31 = vld [vmem:[#allocation2 + $0x53] sm:$0xff]  ;;  %v1771_v56 = vld [vmem:[%s2632_s1 + $0x4a] sm:$0xff] }
 0x117   : > { %v766_v32 = vld [vmem:[#allocation2 + $0x51] sm:$0xff]  ;;  %v2025_v33 = vpack.i.bf16 %v786_v31, %v785_v21 }
 0x118   : > { %1976 = vrot.lane.b32.xlu0 %v1975_v3, %s2108_s26  ;;  %v2035_v34 = vpack.i.bf16 %v766_v32, %v765_v17  ;;  %v776_v37 = vld [vmem:[#allocation2 + $0x52] sm:$0xff] }
 0x119   : > { %1971 = vrot.lane.b32.xlu1 %v1970_v4, %s2109_s27  ;;  %v777_v35 = vld [vmem:[#allocation2 + $0x5a] sm:$0xff]  ;;  %v737_v4 = vld [vmem:[#allocation2 + $0x7] sm:$0xff] }
 0x11a   : > { %v767_v36 = vld [vmem:[#allocation2 + $0x59] sm:$0xff]  ;;  %v2045_v38 = vpack.i.bf16 %v777_v35, %v776_v37 }
 0x11b   : > { %v2040_v39 = vpack.i.bf16 %v767_v36, %v766_v32  ;;  %v787_v40 = vld [vmem:[#allocation2 + $0x5b] sm:$0xff] }
 0x11c   : > { %1986 = vrot.lane.b32.xlu0 %v1985_v10, %s2106_s15  ;;  %v2050_v42 = vpack.i.bf16 %v787_v40, %v786_v31  ;;  %v797_v47 = vld [vmem:[#allocation2 + $0x5c] sm:$0xff] }
 0x11d   : > { %1981 = vrot.lane.b32.xlu1 %v1980_v9, %s2110_s28  ;;  %v788_v41 = vld [vmem:[#allocation2 + $0x63] sm:$0xff]  ;;  %v802_v35 = vld [vmem:[#allocation2 + $0x35] sm:$0xff] }
 0x11e   : > { %v2055_v44 = vpack.i.bf16 %v788_v41, %v787_v40  ;;  %v798_v46 = vld [vmem:[#allocation2 + $0x64] sm:$0xff] }
 0x11f   : > { %v2060_v49 = vpack.i.bf16 %v798_v46, %v797_v47  ;;  %v739_v47 = vld [vmem:[#allocation2 + $0x17] sm:$0xff] }
 0x120   : > { %1991 = vrot.lane.b32.xlu0 %v1990_v15, %s2112_s30 }
 0x121   : > { %1996 = vrot.lane.b32.xlu1 %v1995_v14, %s2111_s29 }
 0x124   : > { %2006 = vrot.lane.b32.xlu0 %v2005_v19, %s2109_s27 }
 0x125   : > { %2001 = vrot.lane.b32.xlu1 %v2000_v18, %s2107_s23 }
 0x128   : > { %2016 = vrot.lane.b32.xlu0 %v2015_v24, %s2110_s28 }
 0x129   : > { %2011 = vrot.lane.b32.xlu1 %v2010_v23, %s2108_s26 }
 0x12c   : > { %2031 = vrot.lane.b32.xlu0 %v2030_v30, %s2111_s29 }
 0x12d   : > { %2021 = vrot.lane.b32.xlu1 %v2020_v29, %s2106_s15 }
 0x130   : > { %2036 = vrot.lane.b32.xlu0 %v2035_v34, %s2107_s23 }
 0x131   : > { %2026 = vrot.lane.b32.xlu1 %v2025_v33, %s2112_s30 }
 0x134   : > { %2046 = vrot.lane.b32.xlu0 %v2045_v38, %s2108_s26 }
 0x135   : > { %2041 = vrot.lane.b32.xlu1 %v2040_v39, %s2109_s27  ;;  %v801_v39 = vld [vmem:[#allocation2 + $0x2d] sm:$0xff] }
 0x138   : > { %2056 = vrot.lane.b32.xlu0 %v2055_v44, %s2112_s30 }
 0x139   : > { %2051 = vrot.lane.b32.xlu1 %v2050_v42, %s2110_s28  ;;  %v1149_v42 = vpack.c.bf16 %v802_v35, %v801_v39 }
 0x13c   : > { %1550 = vperm.xlu0 %1888, %v1763_v48   ;;  %v740_v48 = vld [vmem:[#allocation2 + $0x1f] sm:$0xff] }
 0x13d   : > { %2061 = vrot.lane.b32.xlu1 %v2060_v49, %s2111_s29 }
 0x140   : > { %1560 = vperm.xlu0 %1888, %v1765_v51  }
 0x141   : > { %1555 = vperm.xlu1 %1889, %v1764_v50  }
 0x144   : > { %1570 = vperm.xlu0 %1888, %v1767_v53  }
 0x145   : > { %1565 = vperm.xlu1 %1889, %v1766_v52  }
 0x148   : > { %1580 = vperm.xlu0 %1888, %v1769_v55  }
 0x149   : > { %1575 = vperm.xlu1 %1889, %v1768_v54  }
 0x14c   : > { %1590 = vperm.xlu0 %1888, %v1771_v56  }
 0x14d   : > { %1585 = vperm.xlu1 %1889, %v1770_v5  }
 0x151   : > { %1595 = vperm.xlu1 %1889, %v1772_v58  }
 0x166   : > { %v1892_v59 = vpop.permute.xlu1 %1891 }
 0x167   : > { %v1894_v43 = vunpack.i.h.bf16 %v1892_v59  ;;  %v1893_v61 = vunpack.i.l.bf16 %v1892_v59 }
 0x169   : > { %v1071_v7 = vsel %vm720_vm2, %v737_v4, %v1893_v61  ;;  %v1072_v8 = vsel %vm720_vm2, %v738_v6, %v1894_v43 }
 0x16a   : > { %v1897_v60 = vpop.permute.xlu0 %1896 }
 0x16b   : > { %v1899_v62 = vunpack.i.h.bf16 %v1897_v60  ;;  %v1898_v63 = vunpack.i.l.bf16 %v1897_v60 }
 0x16d   : > { %v1083_v9 = vsel %vm1081_vm4, %v1072_v8, %v1899_v62  ;;  %v1082_v10 = vsel %vm1081_vm4, %v1071_v7, %v1898_v63 }
 0x16e   : > { %v1907_v0 = vpop.permute.xlu0 %1906 }
 0x16f   : > { %v1902_v2 = vpop.permute.xlu1 %1901  ;;  %v1909_v11 = vunpack.i.h.bf16 %v1907_v0  ;;  %v1908_v12 = vunpack.i.l.bf16 %v1907_v0 }
 0x170   : > { %v1904_v45 = vunpack.i.h.bf16 %v1902_v2  ;;  %v1903_v3 = vunpack.i.l.bf16 %v1902_v2 }
 0x172   : > { %v1917_v14 = vpop.permute.xlu0 %1916  ;;  %v1094_v15 = vsel %vm1092_vm5, %v1083_v9, %v1904_v45  ;;  %v1093_v16 = vsel %vm1092_vm5, %v1082_v10, %v1903_v3 }
 0x173   : > { %v1912_v13 = vpop.permute.xlu1 %1911  ;;  %v1103_v19 = vsel %vm479_vm1, %v1093_v16, %v1908_v12  ;;  %v1104_v20 = vsel %vm479_vm1, %v1094_v15, %v1909_v11  ;;  %v1919_v36 = vunpack.i.h.bf16 %v1917_v14  ;;  %v1918_v37 = vunpack.i.l.bf16 %v1917_v14 }
 0x174   : > { %v1914_v17 = vunpack.i.h.bf16 %v1912_v13  ;;  %v1913_v18 = vunpack.i.l.bf16 %v1912_v13 }
 0x175   : > { %v1073_v49 = vsel %vm720_vm2, %v739_v47, %v1918_v37  ;;  %v1074_v50 = vsel %vm720_vm2, %v740_v48, %v1919_v36 }
 0x176   : > { %v1922_v22 = vpop.permute.xlu0 %1921  ;;  %v1114_v27 = vsel %vm1113_vm6, %v1103_v19, %v1913_v18  ;;  %v1115_v28 = vsel %vm1113_vm6, %v1104_v20, %v1914_v17  ;;  %v804_v18 = vld [vmem:[#allocation2 + $0x45] sm:$0xff] }
 0x177   : > { %v1927_v21 = vpop.permute.xlu1 %1926  ;;  %v1924_v25 = vunpack.i.h.bf16 %v1922_v22  ;;  %v1923_v26 = vunpack.i.l.bf16 %v1922_v22  ;;  %v742_v22 = vld [vmem:[#allocation2 + $0x2f] sm:$0xff] }
 0x178   : > { %v1929_v23 = vunpack.i.h.bf16 %v1927_v21  ;;  %v1928_v24 = vunpack.i.l.bf16 %v1927_v21  ;;  %v741_v21 = vld [vmem:[#allocation2 + $0x27] sm:$0xff] }
 0x179   : > { %v1126_v29 = vsel %vm1124_vm7, %v1115_v28, %v1924_v25  ;;  %v1125_v30 = vsel %vm1124_vm7, %v1114_v27, %v1923_v26 }
 0x17a   : > { %v1937_v32 = vpop.permute.xlu0 %1936  ;;  %v1136_v33 = vsel %vm1135_vm8, %v1125_v30, %v1928_v24  ;;  %v1137_v34 = vsel %vm1135_vm8, %v1126_v29, %v1929_v23  ;;  %v803_v24 = vld [vmem:[#allocation2 + $0x3d] sm:$0xff] }
 0x17b   : > { %v1932_v31 = vpop.permute.xlu1 %1931  ;;  %v1146_v38 = vpack.c.bf16 %v1137_v34, %v1136_v33  ;;  %v1939_v51 = vunpack.i.h.bf16 %v1937_v32  ;;  %v1938_v52 = vunpack.i.l.bf16 %v1937_v32  ;;  %v1151_v27 = vpack.c.bf16 %v804_v18, %v803_v24 }
 0x17c   : > { %v1934_v40 = vunpack.i.h.bf16 %v1932_v31  ;;  %v1933_v41 = vunpack.i.l.bf16 %v1932_v31 }
 0x17d   : > { %1276 = vmatmul.mubr.bf16.vlgmr.msra.gmra.mxu1 %v1146_v38 }
 0x17e   : > { %v1947_v46 = vpop.permute.xlu0 %1946  ;;  %1739 = vmatprep.mubr.msk.bf16.mxu1 %vm720_vm2, %v1149_v42  ;;  %1851 = vmatpush3.bf16.msra.mxu1 %v2456_v57  ;;  %v1085_v53 = vsel %vm1081_vm4, %v1074_v50, %v1934_v40  ;;  %v1084_v54 = vsel %vm1081_vm4, %v1073_v49, %v1933_v41 }
 0x17f   : > { %v1942_v44 = vpop.permute.xlu1 %1941  ;;  %v1096_v59 = vsel %vm1092_vm5, %v1085_v53, %v1939_v51  ;;  %v1095_v60 = vsel %vm1092_vm5, %v1084_v54, %v1938_v52  ;;  %v1949_v43 = vunpack.i.h.bf16 %v1947_v46  ;;  %v1948_v57 = vunpack.i.l.bf16 %v1947_v46 }
 0x180   : > { %v1944_v55 = vunpack.i.h.bf16 %v1942_v44  ;;  %v1943_v5 = vunpack.i.l.bf16 %v1942_v44 }
 0x182   : > { %v1962_v58 = vpop.permute.xlu0 %1961  ;;  %v1105_v61 = vsel %vm479_vm1, %v1095_v60, %v1943_v5  ;;  %v1106_v62 = vsel %vm479_vm1, %v1096_v59, %v1944_v55 }
 0x183   : > { %v1952_v56 = vpop.permute.xlu1 %1951  ;;  %v1116_v3 = vsel %vm1113_vm6, %v1105_v61, %v1948_v57  ;;  %v1117_v4 = vsel %vm1113_vm6, %v1106_v62, %v1949_v43  ;;  %v1964_v6 = vunpack.i.h.bf16 %v1962_v58  ;;  %v1963_v7 = vunpack.i.l.bf16 %v1962_v58  ;;  %v805_v43 = vld [vmem:[#allocation2 + $0x4d] sm:$0xff]  ;;  %v743_v57 = vld [vmem:[#allocation2 + $0x37] sm:$0xff] }
 0x184   : > { %v1954_v8 = vunpack.i.h.bf16 %v1952_v56  ;;  %v1953_v9 = vunpack.i.l.bf16 %v1952_v56  ;;  %v806_v56 = vld [vmem:[#allocation2 + $0x55] sm:$0xff] }
 0x185   : > { %v1153_v62 = vpack.c.bf16 %v806_v56, %v805_v43 }
 0x186   : > { %v1967_v0 = vpop.permute.xlu0 %1966  ;;  %v1075_v25 = vsel %vm720_vm2, %v741_v21, %v1953_v9  ;;  %v1076_v26 = vsel %vm720_vm2, %v742_v22, %v1954_v8 }
 0x187   : > { %v1957_v63 = vpop.permute.xlu1 %1956  ;;  %v1969_v12 = vunpack.i.h.bf16 %v1967_v0  ;;  %v1968_v13 = vunpack.i.l.bf16 %v1967_v0 }
 0x188   : > { %v1959_v2 = vunpack.i.h.bf16 %v1957_v63  ;;  %v1958_v45 = vunpack.i.l.bf16 %v1957_v63 }
 0x189   : > { %v1087_v28 = vsel %vm1081_vm4, %v1076_v26, %v1969_v12  ;;  %v1086_v29 = vsel %vm1081_vm4, %v1075_v25, %v1968_v13 }
 0x18a   : > { %v1128_v10 = vsel %vm1124_vm7, %v1117_v4, %v1959_v2  ;;  %v1127_v11 = vsel %vm1124_vm7, %v1116_v3, %v1958_v45  ;;  %v1977_v14 = vpop.permute.xlu0 %1976  ;;  %v744_v3 = vld [vmem:[#allocation2 + $0x3f] sm:$0xff] }
 0x18b   : > { %v1972_v15 = vpop.permute.xlu1 %1971  ;;  %v1138_v16 = vsel %vm1135_vm8, %v1127_v11, %v1963_v7  ;;  %v1139_v17 = vsel %vm1135_vm8, %v1128_v10, %v1964_v6  ;;  %v1979_v30 = vunpack.i.h.bf16 %v1977_v14  ;;  %v1978_v31 = vunpack.i.l.bf16 %v1977_v14 }
 0x18c   : > { %v1974_v19 = vunpack.i.h.bf16 %v1972_v15  ;;  %v1973_v20 = vunpack.i.l.bf16 %v1972_v15  ;;  %v1148_v23 = vpack.c.bf16 %v1139_v17, %v1138_v16 }
 0x18e   : > { %1284 = vmatmul.mubr.bf16.gmra.mxu1 %v1148_v23  ;;  %v1987_v33 = vpop.permute.xlu0 %1986  ;;  %v1098_v34 = vsel %vm1092_vm5, %v1087_v28, %v1974_v19  ;;  %v1097_v35 = vsel %vm1092_vm5, %v1086_v29, %v1973_v20 }
 0x18f   : > { %v1982_v32 = vpop.permute.xlu1 %1981  ;;  %1740 = vmatprep.mubr.msk.bf16.mxu1 %vm720_vm2, %v1151_v27  ;;  %v1107_v38 = vsel %vm479_vm1, %v1097_v35, %v1978_v31  ;;  %v1108_v39 = vsel %vm479_vm1, %v1098_v34, %v1979_v30  ;;  %v1988_v52 = vunpack.i.l.bf16 %v1987_v33  ;;  %v1989_v59 = vunpack.i.h.bf16 %v1987_v33  ;;  %v746_v31 = vld [vmem:[#allocation2 + $0x4f] sm:$0xff]  ;;  %v745_v34 = vld [vmem:[#allocation2 + $0x47] sm:$0xff] }
 0x190   : > { %v1984_v36 = vunpack.i.h.bf16 %v1982_v32  ;;  %v1983_v37 = vunpack.i.l.bf16 %v1982_v32 }
 0x191   : > { %v1077_v63 = vsel %vm720_vm2, %v743_v57, %v1988_v52  ;;  %v1078_v7 = vsel %vm720_vm2, %v744_v3, %v1989_v59 }
 0x192   : > { %v1992_v41 = vpop.permute.xlu0 %1991  ;;  %v1118_v48 = vsel %vm1113_vm6, %v1107_v38, %v1983_v37  ;;  %v1119_v49 = vsel %vm1113_vm6, %v1108_v39, %v1984_v36 }
 0x193   : > { %v1997_v40 = vpop.permute.xlu1 %1996  ;;  %v1994_v46 = vunpack.i.h.bf16 %v1992_v41  ;;  %v1993_v47 = vunpack.i.l.bf16 %v1992_v41 }
 0x194   : > { %v1999_v42 = vunpack.i.h.bf16 %v1997_v40  ;;  %v1998_v44 = vunpack.i.l.bf16 %v1997_v40  ;;  %v808_v40 = vld [vmem:[#allocation2 + $0x65] sm:$0xff] }
 0x195   : > { %v1130_v50 = vsel %vm1124_vm7, %v1119_v49, %v1994_v46  ;;  %v1129_v51 = vsel %vm1124_vm7, %v1118_v48, %v1993_v47 }
 0x196   : > { %v2007_v54 = vpop.permute.xlu0 %2006  ;;  %v1140_v55 = vsel %vm1135_vm8, %v1129_v51, %v1998_v44  ;;  %v1141_v5 = vsel %vm1135_vm8, %v1130_v50, %v1999_v42  ;;  %v807_v51 = vld [vmem:[#allocation2 + $0x5d] sm:$0xff] }
 0x197   : > { %v2002_v53 = vpop.permute.xlu1 %2001  ;;  %v1150_v60 = vpack.c.bf16 %v1141_v5, %v1140_v55  ;;  %v2008_v0 = vunpack.i.l.bf16 %v2007_v54  ;;  %v2009_v8 = vunpack.i.h.bf16 %v2007_v54  ;;  %v1155_v54 = vpack.c.bf16 %v808_v40, %v807_v51 }
 0x198   : > { %v2003_v58 = vunpack.i.l.bf16 %v2002_v53  ;;  %v2004_v61 = vunpack.i.h.bf16 %v2002_v53 }
 0x199   : > { %1292 = vmatmul.mubr.bf16.gmra.mxu1 %v1150_v60 }
 0x19a   : > { %v2017_v45 = vpop.permute.xlu0 %2016  ;;  %v1088_v4 = vsel %vm1081_vm4, %v1077_v63, %v2003_v58  ;;  %1741 = vmatprep.mubr.msk.bf16.mxu1 %vm720_vm2, %v1153_v62  ;;  %v1089_v9 = vsel %vm1081_vm4, %v1078_v7, %v2004_v61 }
 0x19b   : > { %v2012_v2 = vpop.permute.xlu1 %2011  ;;  %v1099_v11 = vsel %vm1092_vm5, %v1088_v4, %v2008_v0  ;;  %v2018_v12 = vunpack.i.l.bf16 %v2017_v45  ;;  %v1100_v16 = vsel %vm1092_vm5, %v1089_v9, %v2009_v8  ;;  %v2019_v17 = vunpack.i.h.bf16 %v2017_v45  ;;  %v1743_v8 = vld [vmem:[%s2637_s6] ss:$0 sm:$0xff] }
 0x19c   : > { %v2013_v6 = vunpack.i.l.bf16 %v2012_v2  ;;  %v2014_v10 = vunpack.i.h.bf16 %v2012_v2 }
 0x19e   : > { %v2032_v14 = vpop.permute.xlu0 %2031  ;;  %v1109_v15 = vsel %vm479_vm1, %v1099_v11, %v2013_v6  ;;  %v1110_v18 = vsel %vm479_vm1, %v1100_v16, %v2014_v10  ;;  %v1744_v11 = vld [vmem:[%s2638_s7] ss:$0 sm:$0xff] }
 0x19f   : > { %v2022_v13 = vpop.permute.xlu1 %2021  ;;  %v1120_v19 = vsel %vm1113_vm6, %v1109_v15, %v2018_v12  ;;  %v1121_v27 = vsel %vm1113_vm6, %v1110_v18, %v2019_v17  ;;  %v2034_v28 = vunpack.i.h.bf16 %v2032_v14  ;;  %v2033_v29 = vunpack.i.l.bf16 %v2032_v14 }
 0x1a0   : > { %v2024_v20 = vunpack.i.h.bf16 %v2022_v13  ;;  %v2023_v23 = vunpack.i.l.bf16 %v2022_v13 }
 0x1a2   : > { %v2037_v22 = vpop.permute.xlu0 %2036  ;;  %v1080_v35 = vsel %vm720_vm2, %v746_v31, %v2024_v20  ;;  %v1079_v41 = vsel %vm720_vm2, %v745_v34, %v2023_v23 }
 0x1a3   : > { %v2027_v21 = vpop.permute.xlu1 %2026  ;;  %v2039_v26 = vunpack.i.h.bf16 %v2037_v22  ;;  %v2038_v30 = vunpack.i.l.bf16 %v2037_v22 }
 0x1a4   : > { %v2029_v24 = vunpack.i.h.bf16 %v2027_v21  ;;  %v2028_v25 = vunpack.i.l.bf16 %v2027_v21 }
 0x1a5   : > { %v1091_v42 = vsel %vm1081_vm4, %v1080_v35, %v2039_v26  ;;  %v1090_v47 = vsel %vm1081_vm4, %v1079_v41, %v2038_v30 }
 0x1a6   : > { %v1132_v32 = vsel %vm1124_vm7, %v1121_v27, %v2029_v24  ;;  %v1131_v33 = vsel %vm1124_vm7, %v1120_v19, %v2028_v25  ;;  %v2047_v36 = vpop.permute.xlu0 %2046 }
 0x1a7   : > { %v2042_v37 = vpop.permute.xlu1 %2041  ;;  %v1142_v38 = vsel %vm1135_vm8, %v1131_v33, %v2033_v29  ;;  %v1143_v39 = vsel %vm1135_vm8, %v1132_v32, %v2034_v28  ;;  %v2049_v48 = vunpack.i.h.bf16 %v2047_v36  ;;  %v2048_v49 = vunpack.i.l.bf16 %v2047_v36 }
 0x1a8   : > { %v2044_v44 = vunpack.i.h.bf16 %v2042_v37  ;;  %v2043_v46 = vunpack.i.l.bf16 %v2042_v37  ;;  %v1152_v50 = vpack.c.bf16 %v1143_v39, %v1142_v38 }
 0x1aa   : > { %v1102_v52 = vsel %vm1092_vm5, %v1091_v42, %v2044_v44  ;;  %v1101_v53 = vsel %vm1092_vm5, %v1090_v47, %v2043_v46  ;;  %1300 = vmatmul.mubr.bf16.gmra.mxu1 %v1152_v50  ;;  %v2057_v5 = vpop.permute.xlu0 %2056 }
 0x1ab   : > { %v2052_v55 = vpop.permute.xlu1 %2051  ;;  %1742 = vmatprep.mubr.msk.bf16.mxu1 %vm720_vm2, %v1155_v54  ;;  %v1111_v59 = vsel %vm479_vm1, %v1101_v53, %v2048_v49  ;;  %v1112_v60 = vsel %vm479_vm1, %v1102_v52, %v2049_v48  ;;  %v2059_v43 = vunpack.i.h.bf16 %v2057_v5  ;;  %v2058_v57 = vunpack.i.l.bf16 %v2057_v5 }
 0x1ac   : > { %v2054_v56 = vunpack.i.h.bf16 %v2052_v55  ;;  %v2053_v58 = vunpack.i.l.bf16 %v2052_v55 }
 0x1ae   : > { %v1122_v61 = vsel %vm1113_vm6, %v1111_v59, %v2053_v58  ;;  %v1123_v62 = vsel %vm1113_vm6, %v1112_v60, %v2054_v56 }
 0x1af   : > { %v2062_v63 = vpop.permute.xlu1 %2061  ;;  %v1134_v45 = vsel %vm1124_vm7, %v1123_v62, %v2059_v43  ;;  %v1133_v3 = vsel %vm1124_vm7, %v1122_v61, %v2058_v57 }
 0x1b0   : > { %v2064_v0 = vunpack.i.h.bf16 %v2062_v63  ;;  %v2063_v2 = vunpack.i.l.bf16 %v2062_v63 }
 0x1b2   : > { %v1144_v4 = vsel %vm1135_vm8, %v1133_v3, %v2063_v2  ;;  %v1145_v6 = vsel %vm1135_vm8, %v1134_v45, %v2064_v0  ;;  %v2559_v2 = vld [vmem:[%s2640_s9] ss:$0 sm:$0xff] }
 0x1b3   : > { %v1154_v7 = vpack.c.bf16 %v1145_v6, %v1144_v4 }
 0x1b5   : > { %1308 = vmatmul.mubr.bf16.gmra.mxu1 %v1154_v7  ;;  %v1753_v7 = vld [vmem:[%s2222_s21 + $0xa] sm:$0xff] }
 0x1b6   : > { %1842 = vmatprep.mubr.msk.bf16.mxu1 %vm2104_vm0, %v2103_v1 }
 0x23d   : > { %v1277_v9 = vpop.f32.mrf.mxu1 }
 0x23e   : > { %v1323_v10 = vmul.f32 %v1743_v8, %v1277_v9 }
 0x23f   : > { %v1279_v12 = vpop.f32.mrf.mxu1 }
 0x240   : > { %v1340_v14 = vadd.f32 %v1744_v11, %v1323_v10 }
 0x241   : > { %v1280_v13 = vpop.f32.mrf.mxu1 }
 0x242   : > { %v1324_v15 = vmul.f32 %v1743_v8, %v1280_v13  ;;  %v1350_v18 = vmax.f32 %v1340_v14, 0.0  ;;  %v1754_v14 = vld [vmem:[%s2222_s21 + $0x12] sm:$0xff] }
 0x243   : > { %v1282_v16 = vpop.f32.mrf.mxu1 }
 0x244   : > { %v1341_v17 = vadd.f32 %v1744_v11, %v1324_v15 }
 0x246   : > { %v1351_v19 = vmax.f32 %v1341_v17, 0.0  ;;  %v1551_v17 = vpop.permute.xlu0 %1550 }
 0x248   : > { %v1360_v20 = vpack.c.bf16 %v1351_v19, %v1350_v18 }
 0x24a   : > { %1831 = vmatmul.mubr.msk.bf16.vlgmr.msra.gmra.mxu0 %vm720_vm2, %v1360_v20 }
 0x24b   : > { %1834 = vmatprep.mubr.msk.bf16.mxu0 %vm2104_vm0, %v2103_v1 }
 0x24e   : > { %v1285_v21 = vpop.f32.mrf.mxu1 }
 0x24f   : > { %v1325_v22 = vmul.f32 %v1743_v8, %v1285_v21  ;;  %v1556_v21 = vpop.permute.xlu1 %1555 }
 0x250   : > { %v1287_v23 = vpop.f32.mrf.mxu1 }
 0x251   : > { %v1342_v25 = vadd.f32 %v1744_v11, %v1325_v22 }
 0x252   : > { %v1288_v24 = vpop.f32.mrf.mxu1 }
 0x253   : > { %v1326_v26 = vmul.f32 %v1743_v8, %v1288_v24  ;;  %v1352_v29 = vmax.f32 %v1342_v25, 0.0 }
 0x254   : > { %v1290_v27 = vpop.f32.mrf.mxu1 }
 0x255   : > { %v1343_v28 = vadd.f32 %v1744_v11, %v1326_v26  ;;  %v1755_v27 = vld [vmem:[%s2222_s21 + $0x1a] sm:$0xff] }
 0x257   : > { %v1353_v30 = vmax.f32 %v1343_v28, 0.0 }
 0x259   : > { %v1361_v31 = vpack.c.bf16 %v1353_v30, %v1352_v29  ;;  %v1293_v32 = vpop.f32.mrf.mxu1 }
 0x25a   : > { %v1327_v33 = vmul.f32 %v1743_v8, %v1293_v32 }
 0x25b   : > { %1835 = vmatmul.mubr.msk.bf16.gmra.mxu0 %vm720_vm2, %v1361_v31  ;;  %v1295_v34 = vpop.f32.mrf.mxu1 }
 0x25c   : > { %1838 = vmatprep.mubr.msk.bf16.mxu0 %vm2104_vm0, %v2103_v1  ;;  %v1344_v36 = vadd.f32 %v1744_v11, %v1327_v33  ;;  %v1756_v34 = vld [vmem:[%s2222_s21 + $0x22] sm:$0xff] }
 0x25d   : > { %v1296_v35 = vpop.f32.mrf.mxu1 }
 0x25e   : > { %v1328_v37 = vmul.f32 %v1743_v8, %v1296_v35  ;;  %v1354_v40 = vmax.f32 %v1344_v36, 0.0 }
 0x25f   : > { %v1298_v38 = vpop.f32.mrf.mxu1 }
 0x260   : > { %v1345_v39 = vadd.f32 %v1744_v11, %v1328_v37  ;;  %v1561_v37 = vpop.permute.xlu0 %1560 }
 0x262   : > { %v1355_v41 = vmax.f32 %v1345_v39, 0.0 }
 0x264   : > { %v1362_v42 = vpack.c.bf16 %v1355_v41, %v1354_v40 }
 0x266   : > { %1839 = vmatmul.mubr.msk.bf16.gmra.mxu0 %vm720_vm2, %v1362_v42 }
 0x26a   : > { %v1301_v44 = vpop.f32.mrf.mxu1 }
 0x26b   : > { %v1329_v46 = vmul.f32 %v1743_v8, %v1301_v44  ;;  %v1566_v44 = vpop.permute.xlu1 %1565 }
 0x26c   : > { %v1303_v47 = vpop.f32.mrf.mxu1 }
 0x26d   : > { %v1346_v49 = vadd.f32 %v1744_v11, %v1329_v46 }
 0x26e   : > { %v1304_v48 = vpop.f32.mrf.mxu1 }
 0x26f   : > { %v1330_v50 = vmul.f32 %v1743_v8, %v1304_v48  ;;  %v1356_v53 = vmax.f32 %v1346_v49, 0.0  ;;  %v1757_v49 = vld [vmem:[%s2222_s21 + $0x2a] sm:$0xff] }
 0x270   : > { %v1306_v51 = vpop.f32.mrf.mxu1 }
 0x271   : > { %v1347_v52 = vadd.f32 %v1744_v11, %v1330_v50 }
 0x273   : > { %v1357_v54 = vmax.f32 %v1347_v52, 0.0 }
 0x275   : > { %v1309_v55 = vpop.f32.mrf.mxu1  ;;  %v1363_v5 = vpack.c.bf16 %v1357_v54, %v1356_v53 }
 0x276   : > { %v1331_v56 = vmul.f32 %v1743_v8, %v1309_v55 }
 0x277   : > { %v1311_v58 = vpop.f32.mrf.mxu1  ;;  %1843 = vmatmul.mubr.msk.bf16.vlgmr.msra.gmra.mxu1 %vm720_vm2, %v1363_v5  ;;  %v1758_v5 = vld [vmem:[%s2222_s21 + $0x32] sm:$0xff] }
 0x278   : > { %1846 = vmatprep.mubr.msk.bf16.mxu1 %vm2104_vm0, %v2103_v1  ;;  %v1348_v60 = vadd.f32 %v1744_v11, %v1331_v56  ;;  %v2564_v1 = vld [vmem:[%s2641_s10] ss:$0 sm:$0xff] }
 0x279   : > { %v1312_v59 = vpop.f32.mrf.mxu1 }
 0x27a   : > { %v1332_v43 = vmul.f32 %v1743_v8, %v1312_v59  ;;  %v1358_v62 = vmax.f32 %v1348_v60, 0.0  ;;  %v1571_v59 = vpop.permute.xlu0 %1570 }
 0x27b   : > { %v1314_v57 = vpop.f32.mrf.mxu1 }
 0x27c   : > { %v1349_v61 = vadd.f32 %v1744_v11, %v1332_v43 }
 0x27e   : > { %v1359_v63 = vmax.f32 %v1349_v61, 0.0  ;;  %v1576_v61 = vpop.permute.xlu1 %1575 }
 0x280   : > { %v1364_v0 = vpack.c.bf16 %v1359_v63, %v1358_v62 }
 0x282   : > { %1847 = vmatmul.mubr.msk.bf16.gmra.mxu1 %vm720_vm2, %v1364_v0 }
 0x30a   : > { %v1422_v45 = vpop.f32.mrf.mxu0 }
 0x30b   : > { %v1468_v3 = vmul.f32 %v2559_v2, %v1422_v45 }
 0x30c   : > { %v1832_v4 = vpop.f32.mrf.mxu0 }
 0x30d   : > { %v1485_v6 = vadd.f32 %v2564_v1, %v1468_v3  ;;  %v1759_v4 = vld [vmem:[%s2222_s21 + $0x3a] sm:$0xff] }
 0x30e   : > { %v1425_v8 = vpop.f32.mrf.mxu0 }
 0x30f   : > { %v1495_v9 = vmax.f32 %v1485_v6, 0.0  ;;  %v1469_v10 = vmul.f32 %v2559_v2, %v1425_v8 }
 0x310   : > { %v1833_v11 = vpop.f32.mrf.mxu0 }
 0x311   : > { %v1528_v12 = vadd.f32 %v1753_v7, %v1495_v9  ;;  %v1486_v13 = vadd.f32 %v2564_v1, %v1469_v10 }
 0x313   : > { %v1538_v15 = vmax.f32 %v1528_v12, 0.0  ;;  %v1496_v16 = vmax.f32 %v1486_v13, 0.0  ;;  %v1760_v12 = vld [vmem:[%s2222_s21 + $0x42] sm:$0xff] }
 0x315   : > { %v1598_v18 = vmul.f32 %v1551_v17, %v1538_v15  ;;  %v1529_v19 = vadd.f32 %v1754_v14, %v1496_v16  ;;  %v1581_v15 = vpop.permute.xlu0 %1580 }
 0x317   : > { %1608 = vst.msk [vmem:[%s2576_s22] sm:$0xff] %vm479_vm1, %v1598_v18  ;;  %v1539_v20 = vmax.f32 %v1529_v19, 0.0 }
 0x319   : > { %v1599_v22 = vmul.f32 %v1556_v21, %v1539_v20 }
 0x31b   : > { %v1430_v23 = vpop.f32.mrf.mxu0  ;;  %1609 = vst.msk [vmem:[%s2576_s22 + $0x8] sm:$0xff] %vm479_vm1, %v1599_v22 }
 0x31c   : > { %v1470_v24 = vmul.f32 %v2559_v2, %v1430_v23  ;;  %v1586_v23 = vpop.permute.xlu1 %1585 }
 0x31d   : > { %v1836_v25 = vpop.f32.mrf.mxu0 }
 0x31e   : > { %v1487_v26 = vadd.f32 %v2564_v1, %v1470_v24  ;;  %v1761_v24 = vld [vmem:[%s2222_s21 + $0x4a] sm:$0xff] }
 0x31f   : > { %v1433_v28 = vpop.f32.mrf.mxu0 }
 0x320   : > { %v1497_v29 = vmax.f32 %v1487_v26, 0.0  ;;  %v1471_v30 = vmul.f32 %v2559_v2, %v1433_v28 }
 0x321   : > { %v1837_v31 = vpop.f32.mrf.mxu0 }
 0x322   : > { %v1530_v32 = vadd.f32 %v1755_v27, %v1497_v29  ;;  %v1488_v33 = vadd.f32 %v2564_v1, %v1471_v30 }
 0x324   : > { %v1540_v35 = vmax.f32 %v1530_v32, 0.0  ;;  %v1498_v36 = vmax.f32 %v1488_v33, 0.0  ;;  %v1762_v32 = vld [vmem:[%s2222_s21 + $0x52] sm:$0xff] }
 0x326   : > { %v1600_v38 = vmul.f32 %v1561_v37, %v1540_v35  ;;  %v1531_v39 = vadd.f32 %v1756_v34, %v1498_v36  ;;  %v1438_v40 = vpop.f32.mrf.mxu0  ;;  %v1591_v35 = vpop.permute.xlu0 %1590 }
 0x327   : > { %v1472_v42 = vmul.f32 %v2559_v2, %v1438_v40 }
 0x328   : > { %1610 = vst.msk [vmem:[%s2576_s22 + $0x10] sm:$0xff] %vm479_vm1, %v1600_v38  ;;  %v1541_v41 = vmax.f32 %v1531_v39, 0.0  ;;  %v1840_v46 = vpop.f32.mrf.mxu0  ;;  %v1596_v39 = vpop.permute.xlu1 %1595 }
 0x329   : > { %v1489_v48 = vadd.f32 %v2564_v1, %v1472_v42 }
 0x32a   : > { %v1601_v47 = vmul.f32 %v1566_v44, %v1541_v41  ;;  %v1441_v50 = vpop.f32.mrf.mxu0 }
 0x32b   : > { %v1499_v51 = vmax.f32 %v1489_v48, 0.0  ;;  %v1473_v52 = vmul.f32 %v2559_v2, %v1441_v50 }
 0x32c   : > { %1611 = vst.msk [vmem:[%s2576_s22 + $0x18] sm:$0xff] %vm479_vm1, %v1601_v47  ;;  %v1841_v53 = vpop.f32.mrf.mxu0 }
 0x32d   : > { %v1532_v54 = vadd.f32 %v1757_v49, %v1499_v51  ;;  %v1490_v55 = vadd.f32 %v2564_v1, %v1473_v52 }
 0x32f   : > { %v1542_v56 = vmax.f32 %v1532_v54, 0.0  ;;  %v1500_v58 = vmax.f32 %v1490_v55, 0.0 }
 0x331   : > { %v1602_v60 = vmul.f32 %v1571_v59, %v1542_v56  ;;  %v1533_v43 = vadd.f32 %v1758_v5, %v1500_v58 }
 0x333   : > { %1612 = vst.msk [vmem:[%s2576_s22 + $0x20] sm:$0xff] %vm479_vm1, %v1602_v60  ;;  %v1543_v57 = vmax.f32 %v1533_v43, 0.0 }
 0x335   : > { %v1603_v62 = vmul.f32 %v1576_v61, %v1543_v57 }
 0x337   : > { %v1446_v63 = vpop.f32.mrf.mxu1  ;;  %1613 = vst.msk [vmem:[%s2576_s22 + $0x28] sm:$0xff] %vm479_vm1, %v1603_v62 }
 0x338   : > { %v1474_v0 = vmul.f32 %v2559_v2, %v1446_v63 }
 0x339   : > { %v1844_v45 = vpop.f32.mrf.mxu1 }
 0x33a   : > { %v1491_v3 = vadd.f32 %v2564_v1, %v1474_v0 }
 0x33b   : > { %v1449_v6 = vpop.f32.mrf.mxu1 }
 0x33c   : > { %v1501_v7 = vmax.f32 %v1491_v3, 0.0  ;;  %v1475_v8 = vmul.f32 %v2559_v2, %v1449_v6 }
 0x33d   : > { %v1845_v9 = vpop.f32.mrf.mxu1 }
 0x33e   : > { %v1534_v10 = vadd.f32 %v1759_v4, %v1501_v7  ;;  %v1492_v11 = vadd.f32 %v2564_v1, %v1475_v8 }
 0x340   : > { %v1544_v13 = vmax.f32 %v1534_v10, 0.0  ;;  %v1502_v14 = vmax.f32 %v1492_v11, 0.0 }
 0x342   : > { %v1454_v16 = vpop.f32.mrf.mxu1  ;;  %v1604_v17 = vmul.f32 %v1581_v15, %v1544_v13  ;;  %v1535_v18 = vadd.f32 %v1760_v12, %v1502_v14 }
 0x343   : > { %v1476_v19 = vmul.f32 %v2559_v2, %v1454_v16 }
 0x344   : > { %v1848_v20 = vpop.f32.mrf.mxu1  ;;  %1614 = vst.msk [vmem:[%s2576_s22 + $0x30] sm:$0xff] %vm479_vm1, %v1604_v17  ;;  %v1545_v21 = vmax.f32 %v1535_v18, 0.0 }
 0x345   : > { %v1493_v22 = vadd.f32 %v2564_v1, %v1476_v19 }
 0x346   : > { %v1457_v25 = vpop.f32.mrf.mxu1  ;;  %v1605_v26 = vmul.f32 %v1586_v23, %v1545_v21 }
 0x347   : > { %v1503_v27 = vmax.f32 %v1493_v22, 0.0  ;;  %v1477_v28 = vmul.f32 %v2559_v2, %v1457_v25 }
 0x348   : > { %v1849_v29 = vpop.f32.mrf.mxu1  ;;  %1615 = vst.msk [vmem:[%s2576_s22 + $0x38] sm:$0xff] %vm479_vm1, %v1605_v26 }
 0x349   : > { %v1536_v30 = vadd.f32 %v1761_v24, %v1503_v27  ;;  %v1494_v31 = vadd.f32 %v2564_v1, %v1477_v28 }
 0x34b   : > { %v1546_v33 = vmax.f32 %v1536_v30, 0.0  ;;  %v1504_v34 = vmax.f32 %v1494_v31, 0.0 }
 0x34d   : > { %v1606_v36 = vmul.f32 %v1591_v35, %v1546_v33  ;;  %v1537_v37 = vadd.f32 %v1762_v32, %v1504_v34 }
 0x34f   : > { %1616 = vst.msk [vmem:[%s2576_s22 + $0x40] sm:$0xff] %vm479_vm1, %v1606_v36  ;;  %v1547_v38 = vmax.f32 %v1537_v37, 0.0 }
 0x351   : > { %v1607_v40 = vmul.f32 %v1596_v39, %v1547_v38 }
 0x353   : > { %1617 = vst.msk [vmem:[%s2576_s22 + $0x48] sm:$0xff] %vm479_vm1, %v1607_v40 }
 0x354 PF: > { %s21_s19 = sadd.s32 1, %s2101_s19   ;;  %s2643_s17 = smov %s2097_s18 }
 0x355   : > { %p18_p5 = scmp.ge.s32.totalorder %s21_s19, 4   ;;  %s2644_s18 = smov %s2646_s20 }
 0x357   :  { %20 = sbr.rel (!%p18_p5) target bundleno = 2 (0x2), region = 98 }

// kernel: decoder_forward.6
= control target key start
LH: loop header
LB: loop body
LE: loop exit
PB: predicated region body
PF: predicated region fallthrough
CT: control target
= control target key end

     0   :  { %s2325_s18 = smov 0   ;;  %s2327_s19 = smov 0   ;;  %s2746_s0 = inlined_call_operand.vmem [shape: f32[2,36,128], index: 0, kind: input, shape index: {}]   ;;  %s2747_s1 = inlined_call_operand.vmem [shape: f32[36,1], index: 1, kind: input, shape index: {}]   ;;  %s2748_s2 = inlined_call_operand.vmem [shape: s32[2,24,64], index: 2, kind: input, shape index: {}]   ;;  %s2749_s3 = inlined_call_operand.vmem [shape: bf16[128,64], index: 3, kind: input, shape index: {}]   ;;  %s2750_s4 = inlined_call_operand.vmem [shape: f32[1,64], index: 4, kind: input, shape index: {}]   ;;  %s2751_s5 = inlined_call_operand.vmem [shape: f32[1,64], index: 5, kind: input, shape index: {}]   ;;  %s2752_s6 = inlined_call_operand.vmem [shape: bf16[128,16], index: 6, kind: input, shape index: {}]   ;;  %s2753_s7 = inlined_call_operand.vmem [shape: f32[1,16], index: 7, kind: input, shape index: {}]   ;;  %s2754_s8 = inlined_call_operand.vmem [shape: f32[1,16], index: 8, kind: input, shape index: {}]   ;;  %s2755_s9 = inlined_call_operand.vmem [shape: bf16[4,64,16], index: 9, kind: input, shape index: {}]   ;;  %s2756_s10 = inlined_call_operand.vmem [shape: f32[1,16], index: 10, kind: input, shape index: {}]   ;;  %s2757_s11 = inlined_call_operand.vmem [shape: f32[1,16], index: 11, kind: input, shape index: {}]   ;;  %s2758_s12 = inlined_call_operand.vmem [shape: bf16[16,64], index: 12, kind: input, shape index: {}]   ;;  %s2759_s13 = inlined_call_operand.vmem [shape: f32[1,64], index: 13, kind: input, shape index: {}]   ;;  %s2760_s14 = inlined_call_operand.vmem [shape: f32[1,64], index: 14, kind: input, shape index: {}]   ;;  %s2761_s15 = inlined_call_operand.vmem [shape: f32[2,24,256], index: 15, kind: output, shape index: {}]  }
   0x1   :  { %s2329_s20 = smov 0  }
   0x2 LB: > { %s37_s21 = sadd.s32 1, %s2232_s19  ;;  %p1860_p0 = scmp.ge.s32.totalorder %s2236_s20, 1  ;;  %s2236_s20 = sphi %s2329_s20, %s25_s20   ;;  %s2232_s19 = sphi %s2327_s19, %s2763_s19   ;;  %s2228_s18 = sphi %s2325_s18, %s2762_s18  }
   0x3   : > { %p39_p1 = scmp.ge.s32.totalorder %s37_s21, 2  ;;  %p468_p2 = scmp.lt.s32.totalorder %s2236_s20, 3 }
   0x5   : > { %s2765_s21 = smov (%p39_p1, %s37_s21), 0  ;;  %p469_p3 = pnand %p1860_p0, %p468_p2 }
   0x6   : > { %p530_p4 = scmp.lt.s32.totalorder (!%p469_p3), %s2228_s18, 1  ;;  %s2241_s30 = smov (!%p469_p3), 16  }
   0x7   : > { %472 = sbr.rel (%p469_p3) target bundleno = 1394 (0x572), region = 80  ;;  %s2243_s16 = smov (!%p469_p3), 48  }
   0xc   : > { %v2181_v0 = vld [vmem:[%s2752_s6 + $0x38] sm:$0xff]   ;;  %v2238_v1 = vmov 0.0   ;;  %v2182_v2 = vld [vmem:[%s2752_s6 + $0x30] sm:$0xff]   ;;  %vm2239_vm0 = vmmov 0   ;;  %v2240_v3 = vmov 0   ;;  %v2183_v4 = vld [vmem:[%s2752_s6 + $0x28] sm:$0xff]  }
   0xd   : > { %2010 = vmatprep.subr.bf16.mxu0 %v2238_v1  ;;  %2026 = vmatprep.mubr.msk.bf16.mxu0 %vm2239_vm0, %v2238_v1  ;;  %s2767_s18 = smov (!%p530_p4, %s2228_s18), 1  ;;  %v565_v5 = vld [vmem:[%s2747_s1] sm:$0xff]  ;;  %v567_v6 = vld [vmem:[%s2747_s1 + $0x10] sm:$0xff]  ;;  %v566_v8 = vld [vmem:[%s2747_s1 + $0x8] sm:$0xff]  ;;  %vm752_vm1 = vcmask 130048   ;;  %vm759_vm2 = vcmask 125952  }
   0xe   : > { %2011 = vmatpush3.bf16.msra.mxu0 %v2181_v0  ;;  %2164 = vset.pattern.permute.xlu0 %v2240_v3  ;;  %v2184_v7 = vld [vmem:[%s2752_s6 + $0x20] sm:$0xff]   ;;  %s2130_s25 = smul.u32 40, %s2767_s18  ;;  %v568_v9 = vld [vmem:[%s2747_s1 + $0x18] sm:$0xff]  ;;  %v2186_v12 = vld [vmem:[%s2752_s6 + $0x10] sm:$0xff]   ;;  %754 = vst.msk [vmem:[#allocation2 + $0x2c] sm:$0xff] %vm752_vm1, %v2238_v1  ;;  %vm958_vm3 = vcmask 261120  }
   0xf   : > { %2012 = vmatprep.subr.bf16.mxu0 %v2238_v1  ;;  %2165 = vset.pattern.permute.xlu1 %v2240_v3  ;;  %v2185_v10 = vld [vmem:[%s2752_s6 + $0x18] sm:$0xff]   ;;  %v569_v11 = vld [vmem:[%s2747_s1 + $0x20] sm:$0xf]  ;;  %v2187_v13 = vld [vmem:[%s2752_s6 + $0x8] sm:$0xff]   ;;  %vm962_vm4 = vcmask 392192   ;;  %vm1000_vm5 = vcmask 523264  }
  0x10   : > { %724 = vperm.xlu0 %2164, %v565_v5   ;;  %734 = vperm.xlu1 %2165, %v567_v6   ;;  %s2386_s28 = scalar_lea.vmem %s2746_s0, %s2130_s25  ;;  %v2188_v14 = vld [vmem:[%s2752_s6] sm:$0xff]   ;;  %v2189_v23 = vld [vmem:[%s2749_s3 + $0x38] sm:$0xff]   ;;  %v2190_v24 = vld [vmem:[%s2749_s3 + $0x30] sm:$0xff]   ;;  %s2242_s25 = smov 32  }
  0x11   : > { %v559_v15 = vld [vmem:[%s2386_s28] sm:$0xff]  ;;  %v560_v16 = vld [vmem:[%s2386_s28 + $0x8] sm:$0xff]  ;;  %v561_v18 = vld [vmem:[%s2386_s28 + $0x10] sm:$0xff]  ;;  %2038 = vmatprep.subr.bf16.mxu1 %v2189_v23  ;;  %s2131_s29 = smul.u32 24, %s2767_s18 }
  0x12   : > { %2013 = vmatpush3.bf16.msra.mxu0 %v2182_v2  ;;  %v570_v17 = vpack.c.bf16 %v560_v16, %v559_v15  ;;  %v562_v19 = vld [vmem:[%s2386_s28 + $0x18] sm:$0xff]  ;;  %v563_v21 = vld [vmem:[%s2386_s28 + $0x20] sm:$0xf]  ;;  %v1874_v25 = vld [vmem:[%s2386_s28 + $0x6] sm:$0xff]  ;;  %2039 = vmatpush3.bf16.msra.mxu1 %v2189_v23  ;;  %s2132_s23 = smul.u32 48, %s2767_s18 }
  0x13   : > { %2014 = vmatprep.subr.bf16.mxu0 %v2238_v1  ;;  %v571_v20 = vpack.c.bf16 %v562_v19, %v561_v18  ;;  %v572_v22 = vpack.c.bf16 %v563_v21, %v563_v21  ;;  %v1875_v26 = vld [vmem:[%s2386_s28 + $0xe] sm:$0xff]  ;;  %2040 = vmatprep.subr.bf16.mxu1 %v2190_v24  ;;  %v2192_v29 = vld [vmem:[%s2749_s3 + $0x20] sm:$0xff]   ;;  %v2193_v30 = vld [vmem:[%s2749_s3 + $0x18] sm:$0xff]  }
  0x14   : > { %729 = vperm.xlu0 %2164, %v566_v8   ;;  %739 = vperm.xlu1 %2165, %v568_v9   ;;  %v2191_v27 = vld [vmem:[%s2749_s3 + $0x28] sm:$0xff]   ;;  %v770_v28 = vpack.c.bf16 %v1875_v26, %v1874_v25  ;;  %v2194_v31 = vld [vmem:[%s2749_s3 + $0x10] sm:$0xff]   ;;  %v2196_v33 = vld [vmem:[%s2749_s3] sm:$0xff]   ;;  %s2684_s27 = scalar_lea.vmem %s2761_s15, %s2132_s23 }
  0x15   : > { %v2195_v32 = vld [vmem:[%s2749_s3 + $0x8] sm:$0xff]   ;;  %v1876_v34 = vld [vmem:[%s2386_s28 + $0x16] sm:$0xff]  ;;  %v1872_v37 = vld [vmem:[%s2753_s7] ss:$0 sm:$0xff] }
  0x16   : > { %2015 = vmatpush3.bf16.msra.mxu0 %v2183_v4  ;;  %2054 = vmatprep.mubr.bf16.mxu1 %v770_v28  ;;  %v2197_v35 = vld [vmem:[%s2755_s9 + $0x18] sm:$0xff]   ;;  %v771_v36 = vpack.c.bf16 %v1876_v34, %v1876_v34  ;;  %v1873_v39 = vld [vmem:[%s2754_s8] ss:$0 sm:$0xff]  ;;  %v2198_v62 = vld [vmem:[%s2755_s9 + $0x10] sm:$0xff]  }
  0x17   : > { %2016 = vmatprep.subr.bf16.mxu0 %v2238_v1  ;;  %2041 = vmatpush3.bf16.msra.mxu1 %v2190_v24  ;;  %v2199_v6 = vld [vmem:[%s2755_s9 + $0x8] sm:$0xff]   ;;  %v2451_v18 = vld [vmem:[%s2755_s9 + $0x38] sm:$0xff]  }
  0x18   : > { %744 = vperm.xlu0 %2164, %v569_v11   ;;  %2042 = vmatprep.subr.bf16.mxu1 %v2191_v27  ;;  %v1877_v28 = vld [vmem:[%s2747_s1 + $0x6] sm:$0xff] }
  0x1a   : > { %2017 = vmatpush3.bf16.msra.mxu0 %v2184_v7 }
  0x1b   : > { %2018 = vmatprep.subr.bf16.mxu0 %v2238_v1  ;;  %2043 = vmatpush3.bf16.msra.mxu1 %v2191_v27 }
  0x1c   : > { %2044 = vmatprep.subr.bf16.mxu1 %v2192_v29 }
  0x1e   : > { %2019 = vmatpush3.bf16.msra.mxu0 %v2185_v10 }
  0x1f   : > { %2020 = vmatprep.subr.bf16.mxu0 %v2238_v1  ;;  %2045 = vmatpush3.bf16.msra.mxu1 %v2192_v29  ;;  %v1878_v29 = vld [vmem:[%s2747_s1 + $0xe] sm:$0xff] }
  0x20   : > { %2046 = vmatprep.subr.bf16.mxu1 %v2193_v30 }
  0x22   : > { %2021 = vmatpush3.bf16.msra.mxu0 %v2186_v12 }
  0x23   : > { %2022 = vmatprep.subr.bf16.mxu0 %v2238_v1  ;;  %2047 = vmatpush3.bf16.msra.mxu1 %v2193_v30  ;;  %v1879_v30 = vld [vmem:[%s2747_s1 + $0x16] sm:$0xff] }
  0x24   : > { %2048 = vmatprep.subr.bf16.mxu1 %v2194_v31 }
  0x26   : > { %2023 = vmatpush3.bf16.msra.mxu0 %v2187_v13  ;;  %v2200_v13 = vld [vmem:[%s2755_s9] sm:$0xff]  }
  0x27   : > { %2024 = vmatprep.subr.bf16.mxu0 %v2238_v1  ;;  %2049 = vmatpush3.bf16.msra.mxu1 %v2194_v31  ;;  %v2466_v31 = vld [vmem:[%s2758_s12] sm:$0xff]  }
  0x28   : > { %2050 = vmatprep.subr.bf16.mxu1 %v2195_v32 }
  0x2a   : > { %2025 = vmatpush3.bf16.msra.mxu0 %v2188_v14 }
  0x2b   : > { %2051 = vmatpush3.bf16.msra.mxu1 %v2195_v32  ;;  %2070 = vmatprep.subr.bf16.mxu0 %v2466_v31 }
  0x2c   : > { %2052 = vmatprep.subr.bf16.mxu1 %v2196_v33 }
  0x2d   : > { %2027 = vmatmul.mubr.bf16.vlgmr.msra.gmra.mxu0 %v570_v17 }
  0x2e   : > { %2030 = vmatprep.mubr.msk.bf16.mxu0 %vm2239_vm0, %v2238_v1  ;;  %2071 = vmatpush3.bf16.msra.mxu0 %v2466_v31 }
  0x2f   : > { %2053 = vmatpush3.bf16.msra.mxu1 %v2196_v33  ;;  %2088 = vmatprep.subr.bf16.mxu0 %v2466_v31 }
  0x30   : > { %2058 = vmatprep.subr.bf16.mxu1 %v2197_v35 }
  0x32   : > { %2055 = vmatmul.mubr.bf16.vlgmr.msra.gmra.mxu1 %v771_v36 }
  0x33   : > { %2059 = vmatpush3.bf16.msra.mxu1 %v2197_v35 }
  0x34   : > { %2060 = vmatprep.subr.bf16.mxu1 %v2198_v62 }
  0x35   : > { %2031 = vmatmul.mubr.bf16.gmra.mxu0 %v571_v20 }
  0x36   : > { %2034 = vmatprep.mubr.msk.bf16.mxu0 %vm2239_vm0, %v2238_v1 }
  0x37   : > { %2061 = vmatpush3.bf16.msra.mxu1 %v2198_v62  ;;  %v2203_v62 = vld [vmem:[%s2755_s9 + $0x28] sm:$0xff]  }
  0x38   : > { %2062 = vmatprep.subr.bf16.mxu1 %v2199_v6 }
  0x3b   : > { %2063 = vmatpush3.bf16.msra.mxu1 %v2199_v6 }
  0x3c   : > { %2064 = vmatprep.subr.bf16.mxu1 %v2200_v13 }
  0x3d   : > { %2035 = vmatmul.mubr.bf16.gmra.mxu0 %v572_v22 }
  0x3f   : > { %2065 = vmatpush3.bf16.msra.mxu1 %v2200_v13 }
  0x40   : > { %2076 = vmatprep.subr.bf16.mxu1 %v2451_v18 }
  0x8b   : > { %v725_v43 = vpop.permute.xlu0 %724  ;;  %v735_v57 = vpop.permute.xlu1 %734 }
  0x8f   : > { %v730_v53 = vpop.permute.xlu0 %729  ;;  %v740_v4 = vpop.permute.xlu1 %739 }
  0x93   : > { %v745_v11 = vpop.permute.xlu0 %744 }
  0xed   : > { %v671_v38 = vpop.f32.mrf.mxu0 }
  0xee   : > { %v700_v40 = vmul.f32 %v1872_v37, %v671_v38 }
  0xef   : > { %v2028_v41 = vpop.f32.mrf.mxu0 }
  0xf0   : > { %v712_v42 = vadd.f32 %v1873_v39, %v700_v40 }
  0xf1   : > { %v674_v44 = vpop.f32.mrf.mxu0 }
  0xf2   : > { %v717_v45 = vmax.f32 %v712_v42, 0.0  ;;  %v701_v46 = vmul.f32 %v1872_v37, %v674_v44  ;;  %v2056_v33 = vpop.f32.mrf.mxu1 }
  0xf3   : > { %v2029_v47 = vpop.f32.mrf.mxu0 }
  0xf4   : > { %v747_v48 = vmul.f32 %v725_v43, %v717_v45  ;;  %v713_v49 = vadd.f32 %v1873_v39, %v701_v46  ;;  %v870_v35 = vpop.f32.mrf.mxu1 }
  0xf5   : > { %v679_v50 = vpop.f32.mrf.mxu0 }
  0xf6   : > { %755 = vst.msk [vmem:[#allocation2 + $0x8] sm:$0xff] %vm752_vm1, %v747_v48  ;;  %v718_v51 = vmax.f32 %v713_v49, 0.0  ;;  %v702_v52 = vmul.f32 %v1872_v37, %v679_v50  ;;  %v2057_v38 = vpop.f32.mrf.mxu1 }
  0xf7   : > { %v2032_v54 = vpop.f32.mrf.mxu0 }
  0xf8   : > { %v748_v55 = vmul.f32 %v730_v53, %v718_v51  ;;  %v714_v56 = vadd.f32 %v1873_v39, %v702_v52 }
  0xf9   : > { %v682_v58 = vpop.f32.mrf.mxu0 }
  0xfa   : > { %756 = vst.msk [vmem:[#allocation2 + $0x10] sm:$0xff] %vm752_vm1, %v748_v55  ;;  %v719_v59 = vmax.f32 %v714_v56, 0.0  ;;  %v703_v60 = vmul.f32 %v1872_v37, %v682_v58 }
  0xfb   : > { %v2033_v61 = vpop.f32.mrf.mxu0 }
  0xfc   : > { %v749_v63 = vmul.f32 %v735_v57, %v719_v59  ;;  %v715_v0 = vadd.f32 %v1873_v39, %v703_v60  ;;  %v2202_v61 = vld [vmem:[%s2755_s9 + $0x30] sm:$0xff]  }
  0xfd   : > { %v687_v1 = vpop.f32.mrf.mxu0 }
  0xfe   : > { %757 = vst.msk [vmem:[#allocation2 + $0x18] sm:$0xff] %vm752_vm1, %v749_v63  ;;  %v720_v2 = vmax.f32 %v715_v0, 0.0  ;;  %v704_v3 = vmul.f32 %v1872_v37, %v687_v1  ;;  %v2204_v63 = vld [vmem:[%s2755_s9 + $0x20] sm:$0xff]   ;;  %v873_v1 = vpop.f32.mrf.mxu1 }
  0xff   : > { %v2036_v5 = vpop.f32.mrf.mxu0  ;;  %v1888_v0 = vld [vmem:[%s2750_s4] ss:$0 sm:$0xff] }
 0x100   : > { %v750_v7 = vmul.f32 %v740_v4, %v720_v2  ;;  %v716_v8 = vadd.f32 %v1873_v39, %v704_v3  ;;  %v893_v2 = vmul.f32 %v2056_v33, %v1888_v0  ;;  %v891_v3 = vmul.f32 %v1888_v0, %v870_v35  ;;  %v1889_v5 = vld [vmem:[%s2751_s5] ss:$0 sm:$0xff] }
 0x101   : > { %v690_v9 = vpop.f32.mrf.mxu0  ;;  %v910_v15 = vld [vmem:[#allocation2 + $0xf] sm:$0xff]  ;;  %v892_v4 = vmul.f32 %v1888_v0, %v873_v1 }
 0x102   : > { %758 = vst.msk [vmem:[#allocation2 + $0x20] sm:$0xff] %vm752_vm1, %v750_v7  ;;  %v721_v10 = vmax.f32 %v716_v8, 0.0  ;;  %v907_v43 = vld [vmem:[#allocation2 + $0xe] sm:$0xff]  ;;  %v2505_v6 = vadd.f32 %v1889_v5, %v893_v2  ;;  %v2507_v7 = vadd.f32 %v1889_v5, %v891_v3 }
 0x103   : > { %v2037_v12 = vpop.f32.mrf.mxu0  ;;  %v2509_v8 = vadd.f32 %v1889_v5, %v892_v4 }
 0x104   : > { %v751_v14 = vmul.f32 %v745_v11, %v721_v10 }
 0x105   : > { %v911_v16 = vld [vmem:[#allocation2 + $0x17] sm:$0xff] }
 0x106   : > { %760 = vst.msk [vmem:[#allocation2 + $0x28] sm:$0xf] %vm759_vm2, %v751_v14  ;;  %v2166_v17 = vpack.i.bf16 %v911_v16, %v910_v15  ;;  %v913_v20 = vld [vmem:[#allocation2 + $0x14] sm:$0xff] }
 0x107   : > { %v916_v25 = vld [vmem:[#allocation2 + $0x15] sm:$0xff] }
 0x108   : > { %2167 = vrot.lane.b32.xlu1 %v2166_v17, %s2241_s30  ;;  %v908_v44 = vld [vmem:[#allocation2 + $0x16] sm:$0xff] }
 0x109   : > { %v912_v19 = vld [vmem:[#allocation2 + $0x1f] sm:$0xff] }
 0x10a   : > { %v914_v21 = vld [vmem:[#allocation2 + $0x1c] sm:$0xff]  ;;  %926 = vrot.lane.b32.xlu0 %v912_v19, %s2241_s30 }
 0x10b   : > { %v2171_v22 = vpack.i.bf16 %v914_v21, %v913_v20  ;;  %v917_v23 = vld [vmem:[#allocation2 + $0x1d] sm:$0xff] }
 0x10c   : > { %v2176_v26 = vpack.i.bf16 %v917_v23, %v916_v25  ;;  %v909_v46 = vld [vmem:[#allocation2 + $0x1e] sm:$0xff] }
 0x10d   : > { %2172 = vrot.lane.b32.xlu1 %v2171_v22, %s2242_s25  ;;  %v915_v24 = vld [vmem:[#allocation2 + $0x24] sm:$0xff]  ;;  %v2559_v21 = vld [vmem:[%s2756_s10] ss:$0 sm:$0xff] }
 0x10e   : > { %938 = vrot.lane.b32.xlu0 %v915_v24, %s2242_s25  ;;  %v918_v27 = vld [vmem:[#allocation2 + $0x25] sm:$0xff]  ;;  %v2565_v25 = vld [vmem:[%s2757_s11] ss:$0 sm:$0xff] }
 0x111   : > { %2177 = vrot.lane.b32.xlu1 %v2176_v26, %s2243_s16 }
 0x112   : > { %950 = vrot.lane.b32.xlu0 %v918_v27, %s2243_s16  ;;  %s543_s16 = scalar_lea.vmem %s2748_s2, %s2131_s29  ;;  %s2244_s29 = smov 64  }
 0x113   : > { %v2514_v9 = vld [vmem:[%s543_s16 + $0x10] sm:$0xff]  ;;  %v2516_v10 = vld [vmem:[%s543_s16] sm:$0xff]  ;;  %v2518_v11 = vld [vmem:[%s543_s16 + $0x8] sm:$0xff] }
 0x114   : > { %vm1167_vm6 = vcmp.eq.s32.totalorder %v2514_v9, 0  ;;  %vm1165_vm7 = vcmp.eq.s32.totalorder %v2516_v10, 0  ;;  %vm1166_vm8 = vcmp.eq.s32.totalorder %v2518_v11, 0  ;;  %vm1522_vm9 = vcmp.eq.s32.totalorder %v2514_v9, 2 }
 0x115   : > { %1179 = vperm.xlu1 %2165, %v1877_v28   ;;  %v2524_v12 = vsel %vm1167_vm6, %v2505_v6, 0.0  ;;  %v2527_v13 = vsel %vm1165_vm7, %v2507_v7, 0.0  ;;  %v2530_v14 = vsel %vm1166_vm8, %v2509_v8, 0.0  ;;  %vm1520_vm10 = vcmp.eq.s32.totalorder %v2516_v10, 2 }
 0x116   : > { %1184 = vperm.xlu0 %2164, %v1878_v29   ;;  %v2535_v15 = vsel %vm1522_vm9, %v2505_v6, 0.0  ;;  %v2538_v16 = vsel %vm1520_vm10, %v2507_v7, 0.0  ;;  %vm1521_vm11 = vcmp.eq.s32.totalorder %v2518_v11, 2  ;;  %vm1692_vm12 = vcmp.eq.s32.totalorder %v2514_v9, 3 }
 0x117   : > { %vm1690_vm13 = vcmp.eq.s32.totalorder %v2516_v10, 3  ;;  %vm1691_vm14 = vcmp.eq.s32.totalorder %v2518_v11, 3  ;;  %v2545_v17 = vsel %vm1521_vm11, %v2509_v8, 0.0  ;;  %vm1352_vm15 = vcmp.eq.s32.totalorder %v2514_v9, 1 }
 0x118   : > { %v2551_v19 = vsel %vm1690_vm13, %v2507_v7, 0.0  ;;  %v2554_v20 = vsel %vm1691_vm14, %v2509_v8, 0.0  ;;  %vm1350_vm0 = vcmp.eq.s32.totalorder %v2516_v10, 1  ;;  %vm1351_vm2 = vcmp.eq.s32.totalorder %v2518_v11, 1 }
 0x119   : > { %1189 = vperm.xlu1 %2165, %v1879_v30  }
 0x17a   : > { %v2168_v32 = vpop.permute.xlu1 %2167 }
 0x17b   : > { %v2169_v36 = vunpack.i.l.bf16 %v2168_v32  ;;  %v2170_v39 = vunpack.i.h.bf16 %v2168_v32 }
 0x17c   : > { %v927_v34 = vpop.permute.xlu0 %926 }
 0x17d   : > { %v955_v45 = vsel %vm752_vm1, %v907_v43, %v2169_v36  ;;  %v956_v48 = vsel %vm752_vm1, %v908_v44, %v2170_v39  ;;  %v957_v49 = vsel %vm752_vm1, %v909_v46, %v927_v34  ;;  %v2206_v39 = vld [vmem:[%s2755_s9 + $0x58] sm:$0xff]  }
 0x17f   : > { %v2173_v37 = vpop.permute.xlu1 %2172 }
 0x180   : > { %v2175_v40 = vunpack.i.h.bf16 %v2173_v37  ;;  %v2174_v41 = vunpack.i.l.bf16 %v2173_v37  ;;  %v939_v42 = vpop.permute.xlu0 %938 }
 0x181   : > { %v961_v54 = vsel %vm958_vm3, %v957_v49, %v939_v42 }
 0x182   : > { %v959_v52 = vsel %vm958_vm3, %v955_v45, %v2174_v41  ;;  %v960_v53 = vsel %vm958_vm3, %v956_v48, %v2175_v40 }
 0x183   : > { %v2178_v47 = vpop.permute.xlu1 %2177 }
 0x184   : > { %v2180_v50 = vunpack.i.h.bf16 %v2178_v47  ;;  %v2179_v51 = vunpack.i.l.bf16 %v2178_v47  ;;  %v951_v55 = vpop.permute.xlu0 %950 }
 0x185   : > { %v965_v58 = vsel %vm962_vm4, %v961_v54, %v951_v55  ;;  %v2207_v55 = vld [vmem:[%s2755_s9 + $0x50] sm:$0xff]  }
 0x186   : > { %v963_v56 = vsel %vm962_vm4, %v959_v52, %v2179_v51  ;;  %v964_v57 = vsel %vm962_vm4, %v960_v53, %v2180_v50  ;;  %v2476_v60 = vpack.c.bf16 %v965_v58, %v965_v58  ;;  %v2604_v58 = vld [vmem:[%s2755_s9 + $0x78] sm:$0xff]  }
 0x187   : > { %v2474_v59 = vpack.c.bf16 %v964_v57, %v963_v56  ;;  %v2208_v56 = vld [vmem:[%s2755_s9 + $0x48] sm:$0xff]   ;;  %v2209_v57 = vld [vmem:[%s2755_s9 + $0x40] sm:$0xff]  }
 0x189   : > { %2066 = vmatprep.mubr.msk.bf16.mxu1 %vm1000_vm5, %v2474_v59 }
 0x18a   : > { %2067 = vmatmul.mubr.msk.bf16.vlgmr.msra.gmra.mxu1 %vm1000_vm5, %v2476_v60 }
 0x18b   : > { %2077 = vmatpush3.bf16.msra.mxu1 %v2451_v18  ;;  %2084 = vmatprep.mubr.msk.bf16.mxu1 %vm1000_vm5, %v2474_v59  ;;  %v2548_v18 = vsel %vm1692_vm12, %v2505_v6, 0.0 }
 0x18c   : > { %2078 = vmatprep.subr.bf16.mxu1 %v2202_v61 }
 0x18f   : > { %2079 = vmatpush3.bf16.msra.mxu1 %v2202_v61  ;;  %v2610_v61 = vld [vmem:[%s2759_s13] ss:$0 sm:$0xff] }
 0x190   : > { %2080 = vmatprep.subr.bf16.mxu1 %v2203_v62 }
 0x193   : > { %2081 = vmatpush3.bf16.msra.mxu1 %v2203_v62 }
 0x194   : > { %2082 = vmatprep.subr.bf16.mxu1 %v2204_v63 }
 0x197   : > { %2083 = vmatpush3.bf16.msra.mxu1 %v2204_v63  ;;  %v2615_v63 = vld [vmem:[%s2760_s14] ss:$0 sm:$0xff] }
 0x198   : > { %2106 = vmatprep.subr.bf16.mxu1 %v2466_v31 }
 0x19a   : > { %2085 = vmatmul.mubr.msk.bf16.vlgmr.msra.gmra.mxu1 %vm1000_vm5, %v2476_v60 }
 0x19b   : > { %2107 = vmatpush3.bf16.msra.mxu1 %v2466_v31 }
 0x19c   : > { %2112 = vmatprep.subr.bf16.mxu1 %v2604_v58 }
 0x24a   : > { %v2068_v22 = vpop.f32.mrf.mxu1 }
 0x24b   : > { %v1064_v23 = vmul.f32 %v2068_v22, %v2559_v21 }
 0x24c   : > { %v1041_v24 = vpop.f32.mrf.mxu1 }
 0x24d   : > { %v1062_v26 = vmul.f32 %v2559_v21, %v1041_v24  ;;  %v1074_v28 = vadd.f32 %v2565_v25, %v1064_v23 }
 0x24e   : > { %v2069_v27 = vpop.f32.mrf.mxu1 }
 0x24f   : > { %v1072_v30 = vadd.f32 %v2565_v25, %v1062_v26  ;;  %v1077_v34 = vmax.f32 %v1074_v28, 0.0 }
 0x250   : > { %v1044_v29 = vpop.f32.mrf.mxu1 }
 0x251   : > { %v1063_v32 = vmul.f32 %v2559_v21, %v1044_v29  ;;  %v1075_v35 = vmax.f32 %v1072_v30, 0.0  ;;  %v1079_v38 = vpack.c.bf16 %v1077_v34, %v1077_v34 }
 0x253   : > { %v1073_v33 = vadd.f32 %v2565_v25, %v1063_v32 }
 0x255   : > { %v1076_v36 = vmax.f32 %v1073_v33, 0.0 }
 0x257   : > { %v1078_v37 = vpack.c.bf16 %v1076_v36, %v1075_v35  ;;  %v2636_v36 = vpop.permute.xlu1 %1179 }
 0x259   : > { %2072 = vmatprep.mubr.msk.bf16.mxu0 %vm752_vm1, %v1078_v37 }
 0x25a   : > { %v2086_v40 = vpop.f32.mrf.mxu1  ;;  %2073 = vmatmul.mubr.msk.bf16.vlgmr.msra.gmra.mxu0 %vm752_vm1, %v1079_v38 }
 0x25b   : > { %2089 = vmatpush3.bf16.msra.mxu0 %v2466_v31  ;;  %v1278_v41 = vmul.f32 %v2086_v40, %v2559_v21 }
 0x25c   : > { %v1262_v42 = vpop.f32.mrf.mxu1  ;;  %2094 = vmatprep.subr.bf16.mxu0 %v2206_v39 }
 0x25d   : > { %v1276_v43 = vmul.f32 %v2559_v21, %v1262_v42  ;;  %v1281_v45 = vadd.f32 %v2565_v25, %v1278_v41 }
 0x25e   : > { %v2087_v44 = vpop.f32.mrf.mxu1 }
 0x25f   : > { %v1279_v47 = vadd.f32 %v2565_v25, %v1276_v43  ;;  %v1284_v50 = vmax.f32 %v1281_v45, 0.0  ;;  %v1353_v43 = vsel %vm1350_vm0, %v2507_v7, 0.0 }
 0x260   : > { %v1265_v46 = vpop.f32.mrf.mxu1 }
 0x261   : > { %v1277_v48 = vmul.f32 %v2559_v21, %v1265_v46  ;;  %v1282_v51 = vmax.f32 %v1279_v47, 0.0  ;;  %v1286_v54 = vpack.c.bf16 %v1284_v50, %v1284_v50  ;;  %v2645_v46 = vpop.permute.xlu1 %1189 }
 0x263   : > { %v1280_v49 = vadd.f32 %v2565_v25, %v1277_v48 }
 0x265   : > { %v1283_v52 = vmax.f32 %v1280_v49, 0.0 }
 0x267   : > { %v1285_v53 = vpack.c.bf16 %v1283_v52, %v1282_v51  ;;  %v2651_v51 = vpop.permute.xlu0 %1184 }
 0x269   : > { %2090 = vmatprep.mubr.msk.bf16.mxu0 %vm752_vm1, %v1285_v53 }
 0x26a   : > { %2091 = vmatmul.mubr.msk.bf16.vlgmr.msra.gmra.mxu0 %vm752_vm1, %v1286_v54 }
 0x26b   : > { %2095 = vmatpush3.bf16.msra.mxu0 %v2206_v39  ;;  %2102 = vmatprep.mubr.msk.bf16.mxu0 %vm1000_vm5, %v2474_v59 }
 0x26c   : > { %2096 = vmatprep.subr.bf16.mxu0 %v2207_v55 }
 0x26f   : > { %2097 = vmatpush3.bf16.msra.mxu0 %v2207_v55 }
 0x270   : > { %2098 = vmatprep.subr.bf16.mxu0 %v2208_v56 }
 0x273   : > { %2099 = vmatpush3.bf16.msra.mxu0 %v2208_v56 }
 0x274   : > { %2100 = vmatprep.subr.bf16.mxu0 %v2209_v57 }
 0x277   : > { %2101 = vmatpush3.bf16.msra.mxu0 %v2209_v57 }
 0x278   : > { %2124 = vmatprep.subr.bf16.mxu0 %v2466_v31 }
 0x27a   : > { %2103 = vmatmul.mubr.msk.bf16.vlgmr.msra.gmra.mxu0 %vm1000_vm5, %v2476_v60 }
 0x27b   : > { %2125 = vmatpush3.bf16.msra.mxu0 %v2466_v31 }
 0x31a   : > { %v2074_v62 = vpop.f32.mrf.mxu0 }
 0x31b   : > { %v1151_v31 = vmul.f32 %v2074_v62, %v2610_v61 }
 0x31c   : > { %v1128_v0 = vpop.f32.mrf.mxu0 }
 0x31d   : > { %v1161_v1 = vadd.f32 %v2615_v63, %v1151_v31  ;;  %v1149_v2 = vmul.f32 %v2610_v61, %v1128_v0 }
 0x31e   : > { %v2075_v3 = vpop.f32.mrf.mxu0 }
 0x31f   : > { %v1164_v4 = vmax.f32 %v1161_v1, 0.0  ;;  %v1159_v5 = vadd.f32 %v2615_v63, %v1149_v2 }
 0x320   : > { %v1131_v22 = vpop.f32.mrf.mxu0 }
 0x321   : > { %v2622_v23 = vadd.f32 %v2524_v12, %v1164_v4  ;;  %v1162_v24 = vmax.f32 %v1159_v5, 0.0  ;;  %v1150_v26 = vmul.f32 %v2610_v61, %v1131_v22  ;;  %v2211_v22 = vld [vmem:[%s2755_s9 + $0x70] sm:$0xff]  }
 0x323   : > { %v2626_v27 = vadd.f32 %v2527_v13, %v1162_v24  ;;  %v1160_v28 = vadd.f32 %v2615_v63, %v1150_v26  ;;  %v2212_v24 = vld [vmem:[%s2755_s9 + $0x68] sm:$0xff]   ;;  %v2213_v26 = vld [vmem:[%s2755_s9 + $0x60] sm:$0xff]  }
 0x325   : > { %v1163_v29 = vmax.f32 %v1160_v28, 0.0 }
 0x327   : > { %v2630_v30 = vadd.f32 %v2530_v14, %v1163_v29  ;;  %v1355_v14 = vsel %vm1352_vm15, %v2505_v6, 0.0  ;;  %v1354_v6 = vsel %vm1351_vm2, %v2509_v8, 0.0 }
 0x32a   : > { %v2092_v32 = vpop.f32.mrf.mxu0 }
 0x32b   : > { %v1343_v33 = vmul.f32 %v2092_v32, %v2610_v61  ;;  %v1175_v32 = vmax.f32 %v2630_v30, 0.0 }
 0x32c   : > { %v1327_v34 = vpop.f32.mrf.mxu0 }
 0x32d   : > { %v1346_v35 = vadd.f32 %v2615_v63, %v1343_v33  ;;  %v1341_v12 = vmul.f32 %v2610_v61, %v1327_v34  ;;  %v1193_v34 = vmul.f32 %v2651_v51, %v1175_v32 }
 0x32e   : > { %v2093_v13 = vpop.f32.mrf.mxu0 }
 0x32f   : > { %v1349_v37 = vmax.f32 %v1346_v35, 0.0  ;;  %v1344_v38 = vadd.f32 %v2615_v63, %v1341_v12 }
 0x330   : > { %v1330_v39 = vpop.f32.mrf.mxu0 }
 0x331   : > { %v1358_v40 = vadd.f32 %v1355_v14, %v1349_v37  ;;  %v1347_v41 = vmax.f32 %v1344_v38, 0.0  ;;  %v1342_v42 = vmul.f32 %v2610_v61, %v1330_v39 }
 0x333   : > { %v1361_v9 = vmax.f32 %v1358_v40, 0.0  ;;  %v1356_v44 = vadd.f32 %v1353_v43, %v1347_v41  ;;  %v1345_v45 = vadd.f32 %v2615_v63, %v1342_v42 }
 0x335   : > { %v1359_v47 = vmax.f32 %v1356_v44, 0.0  ;;  %v1348_v48 = vmax.f32 %v1345_v45, 0.0  ;;  %v1364_v10 = vmul.f32 %v1361_v9, %v2645_v46 }
 0x337   : > { %v1357_v49 = vadd.f32 %v1354_v6, %v1348_v48  ;;  %1712 = vrot.lane.b32.xlu0 %v1364_v10, %s2244_s29  ;;  %v1362_v7 = vmul.f32 %v1359_v47, %v2636_v36 }
 0x339   : > { %v1360_v50 = vmax.f32 %v1357_v49, 0.0 }
 0x33a   : > { %v2104_v52 = vpop.f32.mrf.mxu0 }
 0x33b   : > { %1708 = vrot.lane.b32.xlu0 %v1362_v7, %s2244_s29  ;;  %v1363_v11 = vmul.f32 %v1360_v50, %v2651_v51  ;;  %v1448_v53 = vmul.f32 %v2104_v52, %v2559_v21 }
 0x33c   : > { %v1432_v54 = vpop.f32.mrf.mxu0 }
 0x33d   : > { %v1446_v55 = vmul.f32 %v2559_v21, %v1432_v54  ;;  %1710 = vrot.lane.b32.xlu1 %v1363_v11, %s2244_s29  ;;  %v1451_v56 = vadd.f32 %v2565_v25, %v1448_v53 }
 0x33e   : > { %v2105_v8 = vpop.f32.mrf.mxu0 }
 0x33f   : > { %v1449_v62 = vadd.f32 %v2565_v25, %v1446_v55  ;;  %v1454_v1 = vmax.f32 %v1451_v56, 0.0 }
 0x340   : > { %v1435_v57 = vpop.f32.mrf.mxu0 }
 0x341   : > { %v1447_v31 = vmul.f32 %v2559_v21, %v1435_v57  ;;  %v1452_v2 = vmax.f32 %v1449_v62, 0.0  ;;  %v1456_v5 = vpack.c.bf16 %v1454_v1, %v1454_v1 }
 0x343   : > { %v1450_v0 = vadd.f32 %v2565_v25, %v1447_v31 }
 0x345   : > { %v1453_v3 = vmax.f32 %v1450_v0, 0.0 }
 0x347   : > { %v1455_v4 = vpack.c.bf16 %v1453_v3, %v1452_v2 }
 0x349   : > { %2108 = vmatprep.mubr.msk.bf16.mxu1 %vm752_vm1, %v1455_v4 }
 0x34a   : > { %2109 = vmatmul.mubr.msk.bf16.vlgmr.msra.gmra.mxu1 %vm752_vm1, %v1456_v5 }
 0x34b   : > { %2113 = vmatpush3.bf16.msra.mxu1 %v2604_v58  ;;  %2120 = vmatprep.mubr.msk.bf16.mxu1 %vm1000_vm5, %v2474_v59  ;;  %v1176_v58 = vmax.f32 %v2622_v23, 0.0  ;;  %v1174_v59 = vmax.f32 %v2626_v27, 0.0 }
 0x34c   : > { %2114 = vmatprep.subr.bf16.mxu1 %v2211_v22 }
 0x34d   : > { %v1194_v28 = vmul.f32 %v2645_v46, %v1176_v58  ;;  %v1192_v23 = vmul.f32 %v2636_v36, %v1174_v59 }
 0x34f   : > { %2115 = vmatpush3.bf16.msra.mxu1 %v2211_v22 }
 0x350   : > { %2116 = vmatprep.subr.bf16.mxu1 %v2212_v24 }
 0x353   : > { %2117 = vmatpush3.bf16.msra.mxu1 %v2212_v24 }
 0x354   : > { %2118 = vmatprep.subr.bf16.mxu1 %v2213_v26 }
 0x357   : > { %2119 = vmatpush3.bf16.msra.mxu1 %v2213_v26 }
 0x35a   : > { %2121 = vmatmul.mubr.msk.bf16.vlgmr.msra.gmra.mxu1 %vm1000_vm5, %v2476_v60 }
 0x3a9   : > { %v1713_v29 = vpop.permute.xlu0 %1712 }
 0x3aa   : > { %v1731_v60 = vsel %vm1000_vm5, %v1194_v28, %v1713_v29 }
 0x3ab   : > { %1739 = vst [vmem:[%s2684_s27 + $0x20] sm:$0xff] %v1731_v60 }
 0x3ad   : > { %v1709_v33 = vpop.permute.xlu0 %1708 }
 0x3ae   : > { %v1729_v27 = vsel %vm1000_vm5, %v1192_v23, %v1709_v33 }
 0x3af   : > { %1735 = vst [vmem:[%s2684_s27] sm:$0xff] %v1729_v27  ;;  %v1711_v35 = vpop.permute.xlu1 %1710 }
 0x3b0   : > { %v1730_v12 = vsel %vm1000_vm5, %v1193_v34, %v1711_v35 }
 0x3b1   : > { %1737 = vst [vmem:[%s2684_s27 + $0x10] sm:$0xff] %v1730_v12 }
 0x40a   : > { %v2110_v13 = vpop.f32.mrf.mxu1 }
 0x40b   : > { %v1513_v37 = vmul.f32 %v2110_v13, %v2610_v61 }
 0x40c   : > { %v1497_v38 = vpop.f32.mrf.mxu1 }
 0x40d   : > { %v1516_v30 = vadd.f32 %v2615_v63, %v1513_v37  ;;  %v1511_v14 = vmul.f32 %v2610_v61, %v1497_v38 }
 0x40e   : > { %v2111_v39 = vpop.f32.mrf.mxu1 }
 0x40f   : > { %v1519_v40 = vmax.f32 %v1516_v30, 0.0  ;;  %v1514_v41 = vadd.f32 %v2615_v63, %v1511_v14 }
 0x410   : > { %v1500_v42 = vpop.f32.mrf.mxu1 }
 0x411   : > { %v1528_v43 = vadd.f32 %v2535_v15, %v1519_v40  ;;  %v1517_v9 = vmax.f32 %v1514_v41, 0.0  ;;  %v1512_v44 = vmul.f32 %v2610_v61, %v1500_v42 }
 0x413   : > { %v1526_v45 = vadd.f32 %v2538_v16, %v1517_v9  ;;  %v1515_v47 = vadd.f32 %v2615_v63, %v1512_v44 }
 0x415   : > { %v1518_v48 = vmax.f32 %v1515_v47, 0.0 }
 0x417   : > { %v1527_v10 = vadd.f32 %v2545_v17, %v1518_v48 }
 0x41a   : > { %v2122_v6 = vpop.f32.mrf.mxu1 }
 0x41b   : > { %v1618_v49 = vmul.f32 %v2122_v6, %v2559_v21 }
 0x41c   : > { %v1602_v50 = vpop.f32.mrf.mxu1 }
 0x41d   : > { %v1616_v7 = vmul.f32 %v2559_v21, %v1602_v50  ;;  %v1621_v11 = vadd.f32 %v2565_v25, %v1618_v49 }
 0x41e   : > { %v2123_v52 = vpop.f32.mrf.mxu1 }
 0x41f   : > { %v1619_v53 = vadd.f32 %v2565_v25, %v1616_v7  ;;  %v1624_v55 = vmax.f32 %v1621_v11, 0.0 }
 0x420   : > { %v1605_v15 = vpop.f32.mrf.mxu1 }
 0x421   : > { %v1617_v54 = vmul.f32 %v2559_v21, %v1605_v15  ;;  %v1622_v8 = vmax.f32 %v1619_v53, 0.0  ;;  %v1626_v57 = vpack.c.bf16 %v1624_v55, %v1624_v55 }
 0x423   : > { %v1620_v16 = vadd.f32 %v2565_v25, %v1617_v54 }
 0x425   : > { %v1623_v56 = vmax.f32 %v1620_v16, 0.0 }
 0x427   : > { %v1625_v17 = vpack.c.bf16 %v1623_v56, %v1622_v8 }
 0x429   : > { %2126 = vmatprep.mubr.msk.bf16.mxu0 %vm752_vm1, %v1625_v17 }
 0x42a   : > { %2127 = vmatmul.mubr.msk.bf16.vlgmr.msra.gmra.mxu0 %vm752_vm1, %v1626_v57 }
 0x4ea   : > { %v2128_v62 = vpop.f32.mrf.mxu0 }
 0x4eb   : > { %v1683_v31 = vmul.f32 %v2128_v62, %v2610_v61 }
 0x4ec   : > { %v1667_v0 = vpop.f32.mrf.mxu0 }
 0x4ed   : > { %v1686_v1 = vadd.f32 %v2615_v63, %v1683_v31  ;;  %v1681_v2 = vmul.f32 %v2610_v61, %v1667_v0 }
 0x4ee   : > { %v2129_v21 = vpop.f32.mrf.mxu0 }
 0x4ef   : > { %v1689_v3 = vmax.f32 %v1686_v1, 0.0  ;;  %v1684_v25 = vadd.f32 %v2615_v63, %v1681_v2 }
 0x4f0   : > { %v1670_v4 = vpop.f32.mrf.mxu0 }
 0x4f1   : > { %v1687_v5 = vmax.f32 %v1684_v25, 0.0  ;;  %v1682_v22 = vmul.f32 %v2610_v61, %v1670_v4  ;;  %v1698_v24 = vadd.f32 %v2548_v18, %v1689_v3  ;;  %v1529_v18 = vmax.f32 %v1526_v45, 0.0 }
 0x4f3   : > { %v1696_v26 = vadd.f32 %v2551_v19, %v1687_v5  ;;  %v1685_v58 = vadd.f32 %v2615_v63, %v1682_v22  ;;  %v1701_v29 = vmax.f32 %v1698_v24, 0.0  ;;  %v1531_v19 = vmax.f32 %v1528_v43, 0.0 }
 0x4f4   : > { %v1530_v63 = vmax.f32 %v1527_v10, 0.0 }
 0x4f5   : > { %v1699_v59 = vmax.f32 %v1696_v26, 0.0  ;;  %v1688_v28 = vmax.f32 %v1685_v58, 0.0  ;;  %v1704_v61 = vmul.f32 %v1701_v29, %v2645_v46  ;;  %v1534_v12 = vmul.f32 %v1531_v19, %v2645_v46 }
 0x4f6   : > { %v1533_v35 = vmul.f32 %v1530_v63, %v2651_v51 }
 0x4f7   : > { %v1697_v32 = vadd.f32 %v2554_v20, %v1688_v28  ;;  %v1702_v60 = vmul.f32 %v1699_v59, %v2636_v36  ;;  %v1532_v20 = vmul.f32 %v1529_v18, %v2636_v36 }
 0x4f9   : > { %v1700_v23 = vmax.f32 %v1697_v32, 0.0  ;;  %1720 = vrot.lane.b32.xlu1 %v1702_v60, %s2244_s29 }
 0x4fb   : > { %v1703_v33 = vmul.f32 %v1700_v23, %v2651_v51 }
 0x4fd   : > { %1722 = vrot.lane.b32.xlu0 %v1703_v33, %s2244_s29  ;;  %1724 = vrot.lane.b32.xlu1 %v1704_v61, %s2244_s29 }
 0x56b   : > { %v1721_v27 = vpop.permute.xlu1 %1720 }
 0x56c   : > { %v1732_v34 = vsel %vm1000_vm5, %v1532_v20, %v1721_v27 }
 0x56d   : > { %1736 = vst [vmem:[%s2684_s27 + $0x8] sm:$0xff] %v1732_v34 }
 0x56f   : > { %v1723_v13 = vpop.permute.xlu0 %1722  ;;  %v1725_v37 = vpop.permute.xlu1 %1724 }
 0x570   : > { %v1733_v38 = vsel %vm1000_vm5, %v1533_v35, %v1723_v13  ;;  %v1734_v30 = vsel %vm1000_vm5, %v1534_v12, %v1725_v37 }
 0x571   : > { %1738 = vst [vmem:[%s2684_s27 + $0x18] sm:$0xff] %v1733_v38  ;;  %1740 = vst [vmem:[%s2684_s27 + $0x28] sm:$0xff] %v1734_v30 }
 0x572 PF: > { %s25_s20 = sadd.s32 1, %s2236_s20   ;;  %s2762_s18 = smov %s2232_s19 }
 0x573   : > { %p22_p5 = scmp.ge.s32.totalorder %s25_s20, 4   ;;  %s2763_s19 = smov %s2765_s21 }
 0x575   :  { %24 = sbr.rel (!%p22_p5) target bundleno = 2 (0x2), region = 120 }

// kernel: decoder_forward.9
= control target key start
LH: loop header
LB: loop body
LE: loop exit
PB: predicated region body
PF: predicated region fallthrough
CT: control target
= control target key end

     0   :  { %s3446_s18 = smov 0   ;;  %s3448_s19 = smov 0   ;;  %s4511_s0 = inlined_call_operand.vmem [shape: f32[2,100,64], index: 0, kind: input, shape index: {}]   ;;  %s4512_s1 = inlined_call_operand.vmem [shape: f32[100,1], index: 1, kind: input, shape index: {}]   ;;  %s4513_s2 = inlined_call_operand.vmem [shape: s32[2,80,16], index: 2, kind: input, shape index: {}]   ;;  %s4514_s3 = inlined_call_operand.vmem [shape: bf16[64,16], index: 3, kind: input, shape index: {}]   ;;  %s4515_s4 = inlined_call_operand.vmem [shape: f32[1,16], index: 4, kind: input, shape index: {}]   ;;  %s4516_s5 = inlined_call_operand.vmem [shape: f32[1,16], index: 5, kind: input, shape index: {}]   ;;  %s4517_s6 = inlined_call_operand.vmem [shape: bf16[64,4], index: 6, kind: input, shape index: {}]   ;;  %s4518_s7 = inlined_call_operand.vmem [shape: f32[1,4], index: 7, kind: input, shape index: {}]   ;;  %s4519_s8 = inlined_call_operand.vmem [shape: f32[1,4], index: 8, kind: input, shape index: {}]   ;;  %s4520_s9 = inlined_call_operand.vmem [shape: bf16[4,16,4], index: 9, kind: input, shape index: {}]   ;;  %s4521_s10 = inlined_call_operand.vmem [shape: f32[1,4], index: 10, kind: input, shape index: {}]   ;;  %s4522_s11 = inlined_call_operand.vmem [shape: f32[1,4], index: 11, kind: input, shape index: {}]   ;;  %s4523_s12 = inlined_call_operand.vmem [shape: bf16[4,16], index: 12, kind: input, shape index: {}]   ;;  %s4524_s13 = inlined_call_operand.vmem [shape: f32[1,16], index: 13, kind: input, shape index: {}]   ;;  %s4525_s14 = inlined_call_operand.vmem [shape: f32[1,16], index: 14, kind: input, shape index: {}]   ;;  %s4526_s15 = inlined_call_operand.vmem [shape: f32[2,80,64], index: 15, kind: output, shape index: {}]  }
   0x1   :  { %s3450_s20 = smov 0  }
   0x2 LB: > { %s37_s21 = sadd.s32 1, %s3351_s19  ;;  %p2783_p0 = scmp.ge.s32.totalorder %s3355_s20, 1  ;;  %s3355_s20 = sphi %s3450_s20, %s25_s20   ;;  %s3351_s19 = sphi %s3448_s19, %s4541_s19   ;;  %s3347_s18 = sphi %s3446_s18, %s4540_s18  }
   0x3   : > { %p39_p1 = scmp.ge.s32.totalorder %s37_s21, 2  ;;  %p468_p2 = scmp.lt.s32.totalorder %s3355_s20, 3 }
   0x5   : > { %s4543_s21 = smov (%p39_p1, %s37_s21), 0  ;;  %p469_p3 = pnand %p2783_p0, %p468_p2 }
   0x7   : > { %472 = sbr.rel (%p469_p3) target bundleno = 1266 (0x4f2), region = 80 }
   0xc   : > { %v3309_v0 = vld [vmem:[%s4517_s6 + $0x18] sm:$0xff]   ;;  %v4527_v1 = vmov 0.0   ;;  %v3310_v2 = vld [vmem:[%s4517_s6 + $0x10] sm:$0xff]   ;;  %vm3358_vm0 = vmmov 0   ;;  %p529_p4 = scmp.lt.s32.totalorder %s3347_s18, 1  ;;  %v572_v3 = vld [vmem:[%s4512_s1 + $0x8] sm:$0xff] }
   0xd   : > { %2955 = vmatprep.subr.bf16.mxu0 %v4527_v1  ;;  %2991 = vmatprep.subr.bf16.mxu1 %v4527_v1  ;;  %v574_v4 = vld [vmem:[%s4512_s1 + $0x18] sm:$0xff]  ;;  %v3359_v5 = vmov 0   ;;  %v3311_v6 = vld [vmem:[%s4517_s6 + $0x8] sm:$0xff]   ;;  %v573_v7 = vld [vmem:[%s4512_s1 + $0x10] sm:$0xff]  ;;  %vm623_vm1 = vcmask 523264   ;;  %vm864_vm2 = vcmask 31744  }
   0xe   : > { %2956 = vmatpush3.bf16.msra.mxu0 %v3309_v0  ;;  %2963 = vmatprep.mubr.msk.bf16.mxu0 %vm3358_vm0, %v4527_v1  ;;  %s4545_s18 = smov (!%p529_p4, %s3347_s18), 1  ;;  %v575_v8 = vld [vmem:[%s4512_s1 + $0x20] sm:$0xff]  ;;  %v576_v12 = vld [vmem:[%s4512_s1 + $0x28] sm:$0xff]  ;;  %v577_v13 = vld [vmem:[%s4512_s1 + $0x30] sm:$0xff]  ;;  %866 = vst.msk [vmem:[#allocation2 + $0x6c] sm:$0xff] %vm864_vm2, %v4527_v1  ;;  %s3361_s16 = smov 12  }
   0xf   : > { %2957 = vmatprep.subr.bf16.mxu0 %v4527_v1  ;;  %2999 = vmatprep.mubr.msk.bf16.mxu1 %vm3358_vm0, %v4527_v1  ;;  %s3197_s17 = smul.u32 104, %s4545_s18  ;;  %v3312_v9 = vld [vmem:[%s4517_s6] sm:$0xff]   ;;  %v578_v15 = vld [vmem:[%s4512_s1 + $0x38] sm:$0xff]  ;;  %v580_v19 = vld [vmem:[%s4512_s1 + $0x48] sm:$0xff]  ;;  %s3362_s22 = smov 8   ;;  %vm879_vm3 = vcmask 27648  }
  0x10   : > { %3232 = vset.pattern.permute.xlu0 %v3359_v5  ;;  %3233 = vset.pattern.permute.xlu1 %v3359_v5  ;;  %v579_v16 = vld [vmem:[%s4512_s1 + $0x40] sm:$0xff]  ;;  %v581_v20 = vld [vmem:[%s4512_s1 + $0x50] sm:$0xff]  ;;  %v582_v22 = vld [vmem:[%s4512_s1 + $0x58] sm:$0xff]  ;;  %vm1243_vm4 = vcmask 64512   ;;  %vm1254_vm5 = vcmask 97280   ;;  %vm1278_vm6 = vcmask 130048  }
  0x11   : > { %793 = vperm.xlu0 %3232, %v572_v3   ;;  %803 = vperm.xlu1 %3233, %v574_v4   ;;  %s3499_s28 = scalar_lea.vmem %s4511_s0, %s3197_s17  ;;  %v583_v23 = vld [vmem:[%s4512_s1 + $0x60] sm:$0xf]  ;;  %v3313_v38 = vld [vmem:[%s4514_s3 + $0x18] sm:$0xff]   ;;  %v3314_v39 = vld [vmem:[%s4514_s3 + $0x10] sm:$0xff]   ;;  %s3198_s26 = smul.u32 80, %s4545_s18 }
  0x12   : > { %2958 = vmatpush3.bf16.msra.mxu0 %v3310_v2  ;;  %v557_v10 = vld [vmem:[%s3499_s28] sm:$0xff]  ;;  %v558_v11 = vld [vmem:[%s3499_s28 + $0x8] sm:$0xff]  ;;  %v559_v17 = vld [vmem:[%s3499_s28 + $0x10] sm:$0xff]  ;;  %2992 = vmatpush3.bf16.msra.mxu1 %v3313_v38  ;;  %s3363_s27 = smov 16   ;;  %s3364_s29 = smov 32  }
  0x13   : > { %2959 = vmatprep.subr.bf16.mxu0 %v4527_v1  ;;  %v584_v14 = vpack.c.bf16 %v558_v11, %v557_v10  ;;  %v560_v18 = vld [vmem:[%s3499_s28 + $0x18] sm:$0xff]  ;;  %v561_v24 = vld [vmem:[%s3499_s28 + $0x20] sm:$0xff]  ;;  %v562_v25 = vld [vmem:[%s3499_s28 + $0x28] sm:$0xff]  ;;  %2993 = vmatprep.subr.bf16.mxu1 %v4527_v1  ;;  %s3778_s30 = scalar_lea.vmem %s4513_s2, %s3198_s26  ;;  %s4426_s25 = scalar_lea.vmem %s4526_s15, %s3198_s26 }
  0x14   : > { %v585_v21 = vpack.c.bf16 %v560_v18, %v559_v17  ;;  %v586_v26 = vpack.c.bf16 %v562_v25, %v561_v24  ;;  %v563_v27 = vld [vmem:[%s3499_s28 + $0x30] sm:$0xff]  ;;  %v564_v28 = vld [vmem:[%s3499_s28 + $0x38] sm:$0xff]  ;;  %v565_v30 = vld [vmem:[%s3499_s28 + $0x40] sm:$0xff] }
  0x15   : > { %798 = vperm.xlu0 %3232, %v573_v7   ;;  %808 = vperm.xlu1 %3233, %v575_v8   ;;  %v587_v29 = vpack.c.bf16 %v564_v28, %v563_v27  ;;  %v566_v31 = vld [vmem:[%s3499_s28 + $0x48] sm:$0xff]  ;;  %v567_v33 = vld [vmem:[%s3499_s28 + $0x50] sm:$0xff]  ;;  %v568_v34 = vld [vmem:[%s3499_s28 + $0x58] sm:$0xff] }
  0x16   : > { %2960 = vmatpush3.bf16.msra.mxu0 %v3311_v6  ;;  %v588_v32 = vpack.c.bf16 %v566_v31, %v565_v30  ;;  %v589_v35 = vpack.c.bf16 %v568_v34, %v567_v33  ;;  %v569_v36 = vld [vmem:[%s3499_s28 + $0x60] sm:$0xf]  ;;  %2994 = vmatpush3.bf16.msra.mxu1 %v3314_v39  ;;  %v3315_v40 = vld [vmem:[%s4514_s3 + $0x8] sm:$0xff]   ;;  %v2801_v43 = vld [vmem:[%s3499_s28 + $0x12] sm:$0xff] }
  0x17   : > { %2961 = vmatprep.subr.bf16.mxu0 %v4527_v1  ;;  %v590_v37 = vpack.c.bf16 %v569_v36, %v569_v36  ;;  %2995 = vmatprep.subr.bf16.mxu1 %v4527_v1  ;;  %v3316_v41 = vld [vmem:[%s4514_s3] sm:$0xff]   ;;  %v2800_v42 = vld [vmem:[%s3499_s28 + $0xa] sm:$0xff]  ;;  %v2805_v50 = vld [vmem:[%s3499_s28 + $0x32] sm:$0xff] }
  0x18   : > { %v904_v44 = vpack.c.bf16 %v2801_v43, %v2800_v42  ;;  %v3317_v45 = vld [vmem:[%s4520_s9] sm:$0xff]   ;;  %v2804_v49 = vld [vmem:[%s3499_s28 + $0x2a] sm:$0xff]  ;;  %v2809_v62 = vld [vmem:[%s3499_s28 + $0x52] sm:$0xff] }
  0x19   : > { %813 = vperm.xlu0 %3232, %v576_v12   ;;  %818 = vperm.xlu1 %3233, %v577_v13   ;;  %v2802_v46 = vld [vmem:[%s3499_s28 + $0x1a] sm:$0xff]  ;;  %v2803_v47 = vld [vmem:[%s3499_s28 + $0x22] sm:$0xff]  ;;  %v906_v51 = vpack.c.bf16 %v2805_v50, %v2804_v49  ;;  %v2808_v61 = vld [vmem:[%s3499_s28 + $0x4a] sm:$0xff] }
  0x1a   : > { %2962 = vmatpush3.bf16.msra.mxu0 %v3312_v9  ;;  %2996 = vmatpush3.bf16.msra.mxu1 %v3315_v40  ;;  %v905_v48 = vpack.c.bf16 %v2803_v47, %v2802_v46  ;;  %v2806_v52 = vld [vmem:[%s3499_s28 + $0x3a] sm:$0xff]  ;;  %v2807_v53 = vld [vmem:[%s3499_s28 + $0x42] sm:$0xff]  ;;  %v908_v4 = vpack.c.bf16 %v2809_v62, %v2808_v61  ;;  %s3360_s28 = smov 4  }
  0x1b   : > { %3041 = vmatprep.subr.bf16.mxu0 %v4527_v1  ;;  %2997 = vmatprep.subr.bf16.mxu1 %v4527_v1  ;;  %v3606_v54 = vld [vmem:[%s4518_s7] ss:$0 sm:$0xff]  ;;  %v907_v57 = vpack.c.bf16 %v2807_v53, %v2806_v52 }
  0x1c   : > { %v3611_v56 = vld [vmem:[%s4519_s8] ss:$0 sm:$0xff] }
  0x1d   : > { %2964 = vmatmul.mubr.msk.bf16.vlgmr.msra.gmra.mxu0 %vm623_vm1, %v584_v14  ;;  %823 = vperm.xlu0 %3232, %v578_v15  }
  0x1e   : > { %2967 = vmatprep.mubr.msk.bf16.mxu0 %vm3358_vm0, %v4527_v1  ;;  %828 = vperm.xlu1 %3233, %v579_v16  }
  0x1f   : > { %2998 = vmatpush3.bf16.msra.mxu1 %v3316_v41 }
  0x20   : > { %3019 = vmatprep.subr.bf16.mxu1 %v4527_v1 }
  0x21   : > { %833 = vperm.xlu0 %3232, %v580_v19  }
  0x22   : > { %838 = vperm.xlu1 %3233, %v581_v20   ;;  %3000 = vmatmul.mubr.msk.bf16.vlgmr.msra.gmra.mxu1 %vm623_vm1, %v904_v44 }
  0x23   : > { %3020 = vmatpush3.bf16.msra.mxu1 %v3317_v45  ;;  %3003 = vmatprep.mubr.msk.bf16.mxu1 %vm3358_vm0, %v4527_v1 }
  0x24   : > { %3195 = vmatprep.subr.bf16.mxu1 %v4527_v1 }
  0x25   : > { %2968 = vmatmul.mubr.msk.bf16.gmra.mxu0 %vm623_vm1, %v585_v21  ;;  %843 = vperm.xlu0 %3232, %v582_v22  }
  0x26   : > { %2971 = vmatprep.mubr.msk.bf16.mxu0 %vm3358_vm0, %v4527_v1  ;;  %848 = vperm.xlu1 %3233, %v583_v23  }
  0x2a   : > { %3004 = vmatmul.mubr.msk.bf16.gmra.mxu1 %vm623_vm1, %v905_v48 }
  0x2b   : > { %3007 = vmatprep.mubr.msk.bf16.mxu1 %vm3358_vm0, %v4527_v1 }
  0x2d   : > { %2972 = vmatmul.mubr.msk.bf16.gmra.mxu0 %vm623_vm1, %v586_v26 }
  0x2e   : > { %2975 = vmatprep.mubr.msk.bf16.mxu0 %vm3358_vm0, %v4527_v1 }
  0x32   : > { %3008 = vmatmul.mubr.msk.bf16.gmra.mxu1 %vm623_vm1, %v906_v51 }
  0x33   : > { %3011 = vmatprep.mubr.msk.bf16.mxu1 %vm3358_vm0, %v4527_v1 }
  0x35   : > { %2976 = vmatmul.mubr.msk.bf16.gmra.mxu0 %vm623_vm1, %v587_v29 }
  0x36   : > { %2979 = vmatprep.mubr.msk.bf16.mxu0 %vm3358_vm0, %v4527_v1 }
  0x3a   : > { %3012 = vmatmul.mubr.msk.bf16.gmra.mxu1 %vm623_vm1, %v907_v57 }
  0x3b   : > { %3015 = vmatprep.mubr.msk.bf16.mxu1 %vm3358_vm0, %v4527_v1 }
  0x3d   : > { %2980 = vmatmul.mubr.msk.bf16.gmra.mxu0 %vm623_vm1, %v588_v32 }
  0x3e   : > { %2983 = vmatprep.mubr.msk.bf16.mxu0 %vm3358_vm0, %v4527_v1 }
  0x42   : > { %3016 = vmatmul.mubr.msk.bf16.gmra.mxu1 %vm623_vm1, %v908_v4 }
  0x43   : > { %3021 = vmatprep.mubr.msk.bf16.mxu1 %vm3358_vm0, %v4527_v1 }
  0x45   : > { %2984 = vmatmul.mubr.msk.bf16.gmra.mxu0 %vm623_vm1, %v589_v35 }
  0x46   : > { %2987 = vmatprep.mubr.msk.bf16.mxu0 %vm3358_vm0, %v4527_v1 }
  0x4d   : > { %2988 = vmatmul.mubr.msk.bf16.gmra.mxu0 %vm623_vm1, %v590_v37 }
  0x4e   : > { %3043 = vmatprep.mubr.msk.bf16.mxu0 %vm3358_vm0, %v4527_v1 }
  0x8c   : > { %v794_v2 = vpop.permute.xlu0 %793  ;;  %v804_v17 = vpop.permute.xlu1 %803 }
  0x90   : > { %v799_v13 = vpop.permute.xlu0 %798  ;;  %v809_v27 = vpop.permute.xlu1 %808 }
  0x94   : > { %v814_v34 = vpop.permute.xlu0 %813  ;;  %v819_v44 = vpop.permute.xlu1 %818 }
  0xdd   : > { %v679_v55 = vpop.f32.mrf.mxu0 }
  0xdf   : > { %v2965_v58 = vpop.f32.mrf.mxu0 }
  0xe1   : > { %v682_v59 = vpop.f32.mrf.mxu0 }
  0xe2   : > { %v741_v60 = vmul.f32 %v3606_v54, %v682_v59  ;;  %v824_v59 = vpop.permute.xlu0 %823 }
  0xe3   : > { %v2966_v63 = vpop.f32.mrf.mxu0 }
  0xe4   : > { %v761_v0 = vadd.f32 %v3611_v56, %v741_v60 }
  0xe5   : > { %v687_v3 = vpop.f32.mrf.mxu0 }
  0xe6   : > { %v774_v5 = vmax.f32 %v761_v0, 0.0  ;;  %v742_v6 = vmul.f32 %v3606_v54, %v687_v3 }
  0xe7   : > { %v2969_v7 = vpop.f32.mrf.mxu0 }
  0xe8   : > { %v852_v8 = vmul.f32 %v794_v2, %v774_v5  ;;  %v762_v9 = vadd.f32 %v3611_v56, %v742_v6  ;;  %v829_v6 = vpop.permute.xlu1 %828 }
  0xe9   : > { %v690_v10 = vpop.f32.mrf.mxu0 }
  0xea   : > { %868 = vst.msk [vmem:[#allocation2 + $0x10] sm:$0xff] %vm864_vm2, %v852_v8  ;;  %v775_v11 = vmax.f32 %v762_v9, 0.0  ;;  %v743_v12 = vmul.f32 %v3606_v54, %v690_v10 }
  0xeb   : > { %v2970_v14 = vpop.f32.mrf.mxu0 }
  0xec   : > { %v853_v15 = vmul.f32 %v799_v13, %v775_v11  ;;  %v763_v16 = vadd.f32 %v3611_v56, %v743_v12 }
  0xed   : > { %v695_v18 = vpop.f32.mrf.mxu0 }
  0xee   : > { %869 = vst.msk [vmem:[#allocation2 + $0x18] sm:$0xff] %vm864_vm2, %v853_v15  ;;  %v776_v19 = vmax.f32 %v763_v16, 0.0  ;;  %v744_v20 = vmul.f32 %v3606_v54, %v695_v18 }
  0xef   : > { %v2973_v21 = vpop.f32.mrf.mxu0 }
  0xf0   : > { %v854_v22 = vmul.f32 %v804_v17, %v776_v19  ;;  %v764_v23 = vadd.f32 %v3611_v56, %v744_v20  ;;  %v834_v19 = vpop.permute.xlu0 %833 }
  0xf1   : > { %v698_v24 = vpop.f32.mrf.mxu0 }
  0xf2   : > { %870 = vst.msk [vmem:[#allocation2 + $0x20] sm:$0xff] %vm864_vm2, %v854_v22  ;;  %v777_v25 = vmax.f32 %v764_v23, 0.0  ;;  %v745_v26 = vmul.f32 %v3606_v54, %v698_v24 }
  0xf3   : > { %v2974_v28 = vpop.f32.mrf.mxu0 }
  0xf4   : > { %v855_v29 = vmul.f32 %v809_v27, %v777_v25  ;;  %v765_v30 = vadd.f32 %v3611_v56, %v745_v26 }
  0xf5   : > { %v703_v31 = vpop.f32.mrf.mxu0  ;;  %v1083_v39 = vld [vmem:[#allocation2 + $0x13] sm:$0xff] }
  0xf6   : > { %871 = vst.msk [vmem:[#allocation2 + $0x28] sm:$0xff] %vm864_vm2, %v855_v29  ;;  %v778_v32 = vmax.f32 %v765_v30, 0.0  ;;  %v746_v33 = vmul.f32 %v3606_v54, %v703_v31  ;;  %v839_v29 = vpop.permute.xlu1 %838 }
  0xf7   : > { %v2977_v35 = vpop.f32.mrf.mxu0 }
  0xf8   : > { %v856_v36 = vmul.f32 %v814_v34, %v778_v32  ;;  %v766_v37 = vadd.f32 %v3611_v56, %v746_v33 }
  0xf9   : > { %v706_v38 = vpop.f32.mrf.mxu0  ;;  %v1084_v40 = vld [vmem:[#allocation2 + $0x1b] sm:$0xff] }
  0xfa   : > { %872 = vst.msk [vmem:[#allocation2 + $0x30] sm:$0xff] %vm864_vm2, %v856_v36  ;;  %v779_v41 = vmax.f32 %v766_v37, 0.0  ;;  %v747_v42 = vmul.f32 %v3606_v54, %v706_v38  ;;  %v3234_v43 = vpack.i.bf16 %v1084_v40, %v1083_v39  ;;  %v1103_v48 = vld [vmem:[#allocation2 + $0x1d] sm:$0xff] }
  0xfb   : > { %v2978_v45 = vpop.f32.mrf.mxu0  ;;  %v1093_v51 = vld [vmem:[#allocation2 + $0x1c] sm:$0xff] }
  0xfc   : > { %v857_v46 = vmul.f32 %v819_v44, %v779_v41  ;;  %v767_v47 = vadd.f32 %v3611_v56, %v747_v42  ;;  %3235 = vrot.lane.b32.xlu0 %v3234_v43, %s3360_s28  ;;  %v844_v42 = vpop.permute.xlu0 %843 }
  0xfd   : > { %v711_v49 = vpop.f32.mrf.mxu0  ;;  %v1104_v50 = vld [vmem:[#allocation2 + $0x25] sm:$0xff] }
  0xfe   : > { %v1094_v52 = vld [vmem:[#allocation2 + $0x24] sm:$0xff]  ;;  %873 = vst.msk [vmem:[#allocation2 + $0x38] sm:$0xff] %vm864_vm2, %v857_v46  ;;  %v780_v53 = vmax.f32 %v767_v47, 0.0  ;;  %v748_v55 = vmul.f32 %v3606_v54, %v711_v49  ;;  %v3244_v57 = vpack.i.bf16 %v1104_v50, %v1103_v48 }
  0xff   : > { %v3239_v58 = vpack.i.bf16 %v1094_v52, %v1093_v51  ;;  %v2981_v60 = vpop.f32.mrf.mxu0  ;;  %v1085_v0 = vld [vmem:[#allocation2 + $0x23] sm:$0xff]  ;;  %v849_v51 = vpop.permute.xlu1 %848 }
 0x100   : > { %v858_v61 = vmul.f32 %v824_v59, %v780_v53  ;;  %v768_v62 = vadd.f32 %v3611_v56, %v748_v55  ;;  %3245 = vrot.lane.b32.xlu0 %v3244_v57, %s3361_s16 }
 0x101   : > { %3240 = vrot.lane.b32.xlu1 %v3239_v58, %s3362_s22  ;;  %v714_v63 = vpop.f32.mrf.mxu0  ;;  %v1086_v2 = vld [vmem:[#allocation2 + $0x2b] sm:$0xff] }
 0x102   : > { %874 = vst.msk [vmem:[#allocation2 + $0x40] sm:$0xff] %vm864_vm2, %v858_v61  ;;  %v781_v3 = vmax.f32 %v768_v62, 0.0  ;;  %v749_v4 = vmul.f32 %v3606_v54, %v714_v63  ;;  %v3249_v5 = vpack.i.bf16 %v1086_v2, %v1085_v0  ;;  %v1105_v10 = vld [vmem:[#allocation2 + $0x2d] sm:$0xff] }
 0x103   : > { %v2982_v7 = vpop.f32.mrf.mxu0  ;;  %v1095_v13 = vld [vmem:[#allocation2 + $0x2c] sm:$0xff] }
 0x104   : > { %v859_v8 = vmul.f32 %v829_v6, %v781_v3  ;;  %v769_v9 = vadd.f32 %v3611_v56, %v749_v4  ;;  %v2811_v6 = vld [vmem:[%s4512_s1 + $0x12] sm:$0xff]  ;;  %v2810_v7 = vld [vmem:[%s4512_s1 + $0xa] sm:$0xff] }
 0x105   : > { %3250 = vrot.lane.b32.xlu1 %v3249_v5, %s3360_s28  ;;  %v719_v11 = vpop.f32.mrf.mxu0  ;;  %v1106_v12 = vld [vmem:[#allocation2 + $0x35] sm:$0xff] }
 0x106   : > { %v1096_v14 = vld [vmem:[#allocation2 + $0x34] sm:$0xff]  ;;  %875 = vst.msk [vmem:[#allocation2 + $0x48] sm:$0xff] %vm864_vm2, %v859_v8  ;;  %v782_v15 = vmax.f32 %v769_v9, 0.0  ;;  %v750_v16 = vmul.f32 %v3606_v54, %v719_v11  ;;  %v3259_v17 = vpack.i.bf16 %v1106_v12, %v1105_v10  ;;  %v2813_v8 = vld [vmem:[%s4512_s1 + $0x22] sm:$0xff]  ;;  %v2814_v11 = vld [vmem:[%s4512_s1 + $0x2a] sm:$0xff] }
 0x107   : > { %v3254_v18 = vpack.i.bf16 %v1096_v14, %v1095_v13  ;;  %v2985_v20 = vpop.f32.mrf.mxu0  ;;  %v1087_v24 = vld [vmem:[#allocation2 + $0x33] sm:$0xff]  ;;  %v2817_v12 = vld [vmem:[%s4512_s1 + $0x42] sm:$0xff] }
 0x108   : > { %v860_v21 = vmul.f32 %v834_v19, %v782_v15  ;;  %v770_v22 = vadd.f32 %v3611_v56, %v750_v16  ;;  %v2812_v9 = vld [vmem:[%s4512_s1 + $0x1a] sm:$0xff]  ;;  %v2815_v10 = vld [vmem:[%s4512_s1 + $0x32] sm:$0xff]  ;;  %v2818_v15 = vld [vmem:[%s4512_s1 + $0x4a] sm:$0xff] }
 0x109   : > { %3260 = vrot.lane.b32.xlu1 %v3259_v17, %s3361_s16  ;;  %3255 = vrot.lane.b32.xlu0 %v3254_v18, %s3362_s22  ;;  %v722_v23 = vpop.f32.mrf.mxu0  ;;  %v1088_v25 = vld [vmem:[#allocation2 + $0x3b] sm:$0xff]  ;;  %v2819_v14 = vld [vmem:[%s4512_s1 + $0x52] sm:$0xff] }
 0x10a   : > { %876 = vst.msk [vmem:[#allocation2 + $0x50] sm:$0xff] %vm864_vm2, %v860_v21  ;;  %v783_v26 = vmax.f32 %v770_v22, 0.0  ;;  %v751_v27 = vmul.f32 %v3606_v54, %v722_v23  ;;  %v3264_v28 = vpack.i.bf16 %v1088_v25, %v1087_v24  ;;  %v1107_v33 = vld [vmem:[#allocation2 + $0x3d] sm:$0xff]  ;;  %v1073_v22 = vld [vmem:[#allocation2 + $0x12] sm:$0xff] }
 0x10b   : > { %v2986_v30 = vpop.f32.mrf.mxu0  ;;  %v1097_v36 = vld [vmem:[#allocation2 + $0x3c] sm:$0xff] }
 0x10c   : > { %v861_v31 = vmul.f32 %v839_v29, %v783_v26  ;;  %v771_v32 = vadd.f32 %v3611_v56, %v751_v27  ;;  %v2816_v13 = vld [vmem:[%s4512_s1 + $0x3a] sm:$0xff] }
 0x10d   : > { %3265 = vrot.lane.b32.xlu0 %v3264_v28, %s3360_s28  ;;  %v727_v34 = vpop.f32.mrf.mxu0  ;;  %v1108_v35 = vld [vmem:[#allocation2 + $0x45] sm:$0xff]  ;;  %v1074_v23 = vld [vmem:[#allocation2 + $0x1a] sm:$0xff] }
 0x10e   : > { %v1098_v37 = vld [vmem:[#allocation2 + $0x44] sm:$0xff]  ;;  %877 = vst.msk [vmem:[#allocation2 + $0x58] sm:$0xff] %vm864_vm2, %v861_v31  ;;  %v784_v38 = vmax.f32 %v771_v32, 0.0  ;;  %v752_v39 = vmul.f32 %v3606_v54, %v727_v34  ;;  %v3274_v40 = vpack.i.bf16 %v1108_v35, %v1107_v33 }
 0x10f   : > { %v3269_v41 = vpack.i.bf16 %v1098_v37, %v1097_v36  ;;  %v2989_v43 = vpop.f32.mrf.mxu0  ;;  %v1089_v47 = vld [vmem:[#allocation2 + $0x43] sm:$0xff] }
 0x110   : > { %v862_v44 = vmul.f32 %v844_v42, %v784_v38  ;;  %v772_v45 = vadd.f32 %v3611_v56, %v752_v39  ;;  %v571_v16 = vld [vmem:[%s4512_s1] sm:$0xff] }
 0x111   : > { %3275 = vrot.lane.b32.xlu0 %v3274_v40, %s3361_s16  ;;  %3270 = vrot.lane.b32.xlu1 %v3269_v41, %s3362_s22  ;;  %v730_v46 = vpop.f32.mrf.mxu0  ;;  %v1090_v48 = vld [vmem:[#allocation2 + $0x4b] sm:$0xff]  ;;  %v1075_v40 = vld [vmem:[#allocation2 + $0x22] sm:$0xff] }
 0x112   : > { %878 = vst.msk [vmem:[#allocation2 + $0x60] sm:$0xff] %vm864_vm2, %v862_v44  ;;  %v785_v49 = vmax.f32 %v772_v45, 0.0  ;;  %v3279_v50 = vpack.i.bf16 %v1090_v48, %v1089_v47  ;;  %v1109_v53 = vld [vmem:[#allocation2 + $0x4d] sm:$0xff] }
 0x113   : > { %v2990_v54 = vpop.f32.mrf.mxu0  ;;  %v1099_v56 = vld [vmem:[#allocation2 + $0x4c] sm:$0xff] }
 0x114   : > { %v863_v52 = vmul.f32 %v849_v51, %v785_v49  ;;  %v1076_v41 = vld [vmem:[#allocation2 + $0x2a] sm:$0xff] }
 0x115   : > { %3280 = vrot.lane.b32.xlu1 %v3279_v50, %s3360_s28  ;;  %v1110_v55 = vld [vmem:[#allocation2 + $0x55] sm:$0xff] }
 0x116   : > { %v1100_v57 = vld [vmem:[#allocation2 + $0x54] sm:$0xff]  ;;  %880 = vst.msk [vmem:[#allocation2 + $0x68] sm:$0xf] %vm879_vm3, %v863_v52  ;;  %v3289_v58 = vpack.i.bf16 %v1110_v55, %v1109_v53 }
 0x117   : > { %v3284_v59 = vpack.i.bf16 %v1100_v57, %v1099_v56  ;;  %v1091_v60 = vld [vmem:[#allocation2 + $0x53] sm:$0xff] }
 0x119   : > { %3290 = vrot.lane.b32.xlu1 %v3289_v58, %s3361_s16  ;;  %3285 = vrot.lane.b32.xlu0 %v3284_v59, %s3362_s22  ;;  %v1092_v61 = vld [vmem:[#allocation2 + $0x5b] sm:$0xff]  ;;  %v1077_v58 = vld [vmem:[#allocation2 + $0x32] sm:$0xff] }
 0x11a   : > { %v3294_v62 = vpack.i.bf16 %v1092_v61, %v1091_v60  ;;  %v1111_v63 = vld [vmem:[#allocation2 + $0x5d] sm:$0xff] }
 0x11b   : > { %v1101_v2 = vld [vmem:[#allocation2 + $0x5c] sm:$0xff] }
 0x11c   : > { %v1078_v59 = vld [vmem:[#allocation2 + $0x3a] sm:$0xff] }
 0x11d   : > { %3295 = vrot.lane.b32.xlu0 %v3294_v62, %s3360_s28  ;;  %v1112_v0 = vld [vmem:[#allocation2 + $0x65] sm:$0xff] }
 0x11e   : > { %v1102_v3 = vld [vmem:[#allocation2 + $0x64] sm:$0xff]  ;;  %v3304_v4 = vpack.i.bf16 %v1112_v0, %v1111_v63 }
 0x11f   : > { %v3299_v5 = vpack.i.bf16 %v1102_v3, %v1101_v2 }
 0x121   : > { %3305 = vrot.lane.b32.xlu0 %v3304_v4, %s3361_s16  ;;  %3300 = vrot.lane.b32.xlu1 %v3299_v5, %s3362_s22 }
 0x125   : > { %1600 = vperm.xlu0 %3232, %v2811_v6   ;;  %1595 = vperm.xlu1 %3233, %v2810_v7  }
 0x129   : > { %1610 = vperm.xlu0 %3232, %v2813_v8   ;;  %1605 = vperm.xlu1 %3233, %v2812_v9  }
 0x12d   : > { %1620 = vperm.xlu0 %3232, %v2815_v10   ;;  %1615 = vperm.xlu1 %3233, %v2814_v11   ;;  %v990_v11 = vpop.f32.mrf.mxu1 }
 0x131   : > { %1630 = vperm.xlu0 %3232, %v2817_v12   ;;  %1625 = vperm.xlu1 %3233, %v2816_v13  }
 0x135   : > { %1640 = vperm.xlu0 %3232, %v2819_v14   ;;  %1635 = vperm.xlu1 %3233, %v2818_v15   ;;  %v1079_v14 = vld [vmem:[#allocation2 + $0x42] sm:$0xff]  ;;  %v1080_v15 = vld [vmem:[#allocation2 + $0x4a] sm:$0xff] }
 0x139   : > { %788 = vperm.xlu1 %3233, %v571_v16  }
 0x16e   : > { %v3236_v17 = vpop.permute.xlu0 %3235 }
 0x16f   : > { %v3238_v18 = vunpack.i.h.bf16 %v3236_v17  ;;  %v3237_v19 = vunpack.i.l.bf16 %v3236_v17 }
 0x171   : > { %v1233_v28 = vsel %vm864_vm2, %v1073_v22, %v3237_v19  ;;  %v1234_v29 = vsel %vm864_vm2, %v1074_v23, %v3238_v18 }
 0x172   : > { %v3246_v20 = vpop.permute.xlu0 %3245 }
 0x173   : > { %v3241_v21 = vpop.permute.xlu1 %3240  ;;  %v3248_v24 = vunpack.i.h.bf16 %v3246_v20  ;;  %v3247_v25 = vunpack.i.l.bf16 %v3246_v20  ;;  %v3743_v20 = vld [vmem:[%s4515_s4] ss:$0 sm:$0xff] }
 0x174   : > { %v3243_v26 = vunpack.i.h.bf16 %v3241_v21  ;;  %v3242_v27 = vunpack.i.l.bf16 %v3241_v21  ;;  %v3001_v21 = vpop.f32.mrf.mxu1 }
 0x176   : > { %v1245_v30 = vsel %vm1243_vm4, %v1234_v29, %v3243_v26  ;;  %v1244_v31 = vsel %vm1243_vm4, %v1233_v28, %v3242_v27  ;;  %v993_v26 = vpop.f32.mrf.mxu1 }
 0x177   : > { %v1256_v32 = vsel %vm1254_vm5, %v1245_v30, %v3248_v24  ;;  %v1255_v33 = vsel %vm1254_vm5, %v1244_v31, %v3247_v25  ;;  %v3251_v34 = vpop.permute.xlu1 %3250  ;;  %v1036_v30 = vmul.f32 %v3743_v20, %v990_v11  ;;  %v3821_v11 = vld [vmem:[%s3778_s30 + $0x10] sm:$0xff] }
 0x178   : > { %v3710_v35 = vpack.c.bf16 %v1256_v32, %v1255_v33  ;;  %v3253_v36 = vunpack.i.h.bf16 %v3251_v34  ;;  %v3252_v37 = vunpack.i.l.bf16 %v3251_v34  ;;  %v3757_v32 = vld [vmem:[%s4516_s5] ss:$0 sm:$0xff]  ;;  %v3002_v33 = vpop.f32.mrf.mxu1  ;;  %vm1555_vm11 = vcmp.eq.s32.totalorder %v3821_v11, 0 }
 0x179   : > { %vm2460_vm13 = vcmp.eq.s32.totalorder %v3821_v11, 3 }
 0x17a   : > { %3022 = vmatmul.mubr.msk.bf16.vlgmr.msra.gmra.mxu1 %vm1278_vm6, %v3710_v35  ;;  %v1235_v46 = vsel %vm864_vm2, %v1075_v40, %v3252_v37  ;;  %v1236_v47 = vsel %vm864_vm2, %v1076_v41, %v3253_v36  ;;  %v1037_v37 = vmul.f32 %v3743_v20, %v993_v26  ;;  %v3765_v41 = vadd.f32 %v3757_v32, %v1036_v30 }
 0x17b   : > { %v3261_v38 = vpop.permute.xlu1 %3260  ;;  %v3256_v39 = vpop.permute.xlu0 %3255  ;;  %3025 = vmatprep.mubr.msk.bf16.mxu1 %vm3358_vm0, %v4527_v1 }
 0x17c   : > { %v3263_v42 = vunpack.i.h.bf16 %v3261_v38  ;;  %v3262_v43 = vunpack.i.l.bf16 %v3261_v38  ;;  %v3258_v44 = vunpack.i.h.bf16 %v3256_v39  ;;  %v3257_v45 = vunpack.i.l.bf16 %v3256_v39  ;;  %v998_v38 = vpop.f32.mrf.mxu1 }
 0x17e   : > { %v1247_v48 = vsel %vm1243_vm4, %v1236_v47, %v3258_v44  ;;  %v1246_v49 = vsel %vm1243_vm4, %v1235_v46, %v3257_v45 }
 0x17f   : > { %v3266_v50 = vpop.permute.xlu0 %3265  ;;  %v1257_v51 = vsel %vm1254_vm5, %v1246_v49, %v3262_v43  ;;  %v1258_v54 = vsel %vm1254_vm5, %v1247_v48, %v3263_v42  ;;  %v1081_v42 = vld [vmem:[#allocation2 + $0x52] sm:$0xff]  ;;  %v1082_v43 = vld [vmem:[#allocation2 + $0x5a] sm:$0xff]  ;;  %v3005_v48 = vpop.f32.mrf.mxu1 }
 0x180   : > { %v3722_v52 = vpack.c.bf16 %v1258_v54, %v1257_v51  ;;  %v3268_v53 = vunpack.i.h.bf16 %v3266_v50  ;;  %v3267_v55 = vunpack.i.l.bf16 %v3266_v50  ;;  %v3771_v51 = vadd.f32 %v3757_v32, %v1037_v37  ;;  %v3892_v48 = vld [vmem:[%s3778_s30 + $0x38] sm:$0xff] }
 0x182   : > { %3026 = vmatmul.mubr.msk.bf16.gmra.mxu1 %vm1278_vm6, %v3722_v52  ;;  %v1237_v0 = vsel %vm864_vm2, %v1077_v58, %v3267_v55  ;;  %v1238_v2 = vsel %vm864_vm2, %v1078_v59, %v3268_v53  ;;  %v1001_v55 = vpop.f32.mrf.mxu1 }
 0x183   : > { %v3276_v56 = vpop.permute.xlu0 %3275  ;;  %v3271_v57 = vpop.permute.xlu1 %3270  ;;  %3029 = vmatprep.mubr.msk.bf16.mxu1 %vm3358_vm0, %v4527_v1 }
 0x184   : > { %v3278_v60 = vunpack.i.h.bf16 %v3276_v56  ;;  %v3277_v61 = vunpack.i.l.bf16 %v3276_v56  ;;  %v3273_v62 = vunpack.i.h.bf16 %v3271_v57  ;;  %v3272_v63 = vunpack.i.l.bf16 %v3271_v57  ;;  %v3783_v56 = vld [vmem:[%s3778_s30] sm:$0xff]  ;;  %v3786_v57 = vld [vmem:[%s3778_s30 + $0x8] sm:$0xff] }
 0x185   : > { %vm1553_vm7 = vcmp.eq.s32.totalorder %v3783_v56, 0  ;;  %vm1554_vm8 = vcmp.eq.s32.totalorder %v3786_v57, 0  ;;  %vm2458_vm9 = vcmp.eq.s32.totalorder %v3783_v56, 3  ;;  %vm2459_vm10 = vcmp.eq.s32.totalorder %v3786_v57, 3 }
 0x186   : > { %v1249_v3 = vsel %vm1243_vm4, %v1238_v2, %v3273_v62  ;;  %v1248_v4 = vsel %vm1243_vm4, %v1237_v0, %v3272_v63  ;;  %v1039_v62 = vmul.f32 %v3743_v20, %v1001_v55  ;;  %v3006_v63 = vpop.f32.mrf.mxu1  ;;  %v3796_v0 = vsel %vm1553_vm7, %v3765_v41, 0.0 }
 0x187   : > { %v3281_v5 = vpop.permute.xlu1 %3280  ;;  %v1259_v6 = vsel %vm1254_vm5, %v1248_v4, %v3277_v61  ;;  %v1260_v7 = vsel %vm1254_vm5, %v1249_v3, %v3278_v60  ;;  %v1038_v60 = vmul.f32 %v3743_v20, %v998_v38  ;;  %v3800_v2 = vsel %vm1554_vm8, %v3771_v51, 0.0 }
 0x188   : > { %v3734_v8 = vpack.c.bf16 %v1260_v7, %v1259_v6  ;;  %v3283_v9 = vunpack.i.h.bf16 %v3281_v5  ;;  %v3282_v10 = vunpack.i.l.bf16 %v3281_v5  ;;  %v1006_v3 = vpop.f32.mrf.mxu1  ;;  %v3808_v4 = vsel %vm2458_vm9, %v3765_v41, 0.0 }
 0x189   : > { %v3811_v5 = vadd.f32 %v3757_v32, %v1038_v60  ;;  %v3814_v6 = vadd.f32 %v3757_v32, %v1039_v62  ;;  %vm1560_vm8 = vcmp.eq.s32.totalorder %v3892_v48, 0 }
 0x18a   : > { %3030 = vmatmul.mubr.msk.bf16.gmra.mxu1 %vm1278_vm6, %v3734_v8  ;;  %v1239_v22 = vsel %vm864_vm2, %v1079_v14, %v3282_v10  ;;  %v1240_v23 = vsel %vm864_vm2, %v1080_v15, %v3283_v9  ;;  %v3009_v7 = vpop.f32.mrf.mxu1  ;;  %v3818_v9 = vsel %vm2459_vm10, %v3771_v51, 0.0  ;;  %v1040_v14 = vmul.f32 %v3743_v20, %v1006_v3 }
 0x18b   : > { %v3291_v12 = vpop.permute.xlu1 %3290  ;;  %v3286_v13 = vpop.permute.xlu0 %3285  ;;  %3033 = vmatprep.mubr.msk.bf16.mxu1 %vm3358_vm0, %v4527_v1  ;;  %v3841_v21 = vsel %vm2460_vm13, %v3811_v5, 0.0  ;;  %vm2465_vm10 = vcmp.eq.s32.totalorder %v3892_v48, 3  ;;  %v3921_v7 = vld [vmem:[%s3778_s30 + $0x40] sm:$0xff] }
 0x18c   : > { %v3293_v16 = vunpack.i.h.bf16 %v3291_v12  ;;  %v3292_v17 = vunpack.i.l.bf16 %v3291_v12  ;;  %v3288_v18 = vunpack.i.h.bf16 %v3286_v13  ;;  %v3287_v19 = vunpack.i.l.bf16 %v3286_v13  ;;  %v1009_v10 = vpop.f32.mrf.mxu1  ;;  %v3824_v12 = vld [vmem:[%s3778_s30 + $0x18] sm:$0xff] }
 0x18d   : > { %vm1556_vm12 = vcmp.eq.s32.totalorder %v3824_v12, 0  ;;  %v1041_v15 = vmul.f32 %v3743_v20, %v1009_v10  ;;  %vm2461_vm14 = vcmp.eq.s32.totalorder %v3824_v12, 3  ;;  %v3924_v10 = vld [vmem:[%s3778_s30 + $0x48] sm:$0xff]  ;;  %vm2466_vm13 = vcmp.eq.s32.totalorder %v3921_v7, 3 }
 0x18e   : > { %v1251_v24 = vsel %vm1243_vm4, %v1240_v23, %v3288_v18  ;;  %v1250_v25 = vsel %vm1243_vm4, %v1239_v22, %v3287_v19  ;;  %v3010_v18 = vpop.f32.mrf.mxu1  ;;  %v3844_v22 = vsel %vm2461_vm14, %v3814_v6, 0.0  ;;  %vm2467_vm14 = vcmp.eq.s32.totalorder %v3924_v10, 3 }
 0x18f   : > { %v3296_v27 = vpop.permute.xlu0 %3295  ;;  %v1261_v28 = vsel %vm1254_vm5, %v1250_v25, %v3292_v17  ;;  %v1262_v29 = vsel %vm1254_vm5, %v1251_v24, %v3293_v16  ;;  %v3833_v16 = vsel %vm1555_vm11, %v3811_v5, 0.0  ;;  %v3836_v17 = vsel %vm1556_vm12, %v3814_v6, 0.0 }
 0x190   : > { %v3752_v31 = vpack.c.bf16 %v1262_v29, %v1261_v28  ;;  %v3298_v34 = vunpack.i.h.bf16 %v3296_v27  ;;  %v3297_v36 = vunpack.i.l.bf16 %v3296_v27  ;;  %v1014_v19 = vpop.f32.mrf.mxu1  ;;  %v3849_v24 = vadd.f32 %v3757_v32, %v1040_v14  ;;  %v3855_v27 = vld [vmem:[%s3778_s30 + $0x20] sm:$0xff]  ;;  %v3858_v28 = vld [vmem:[%s3778_s30 + $0x28] sm:$0xff] }
 0x191   : > { %v3852_v25 = vadd.f32 %v3757_v32, %v1041_v15  ;;  %vm1557_vm15 = vcmp.eq.s32.totalorder %v3855_v27, 0  ;;  %vm1558_vm3 = vcmp.eq.s32.totalorder %v3858_v28, 0  ;;  %v1042_v33 = vmul.f32 %v3743_v20, %v1014_v19  ;;  %v1416_v19 = vld [vmem:[%s4523_s12] sm:$0x3] }
 0x192   : > { %3034 = vmatmul.mubr.msk.bf16.gmra.mxu1 %vm1278_vm6, %v3752_v31  ;;  %v1241_v49 = vsel %vm864_vm2, %v1081_v42, %v3297_v36  ;;  %v1242_v50 = vsel %vm864_vm2, %v1082_v43, %v3298_v34  ;;  %v3013_v26 = vpop.f32.mrf.mxu1  ;;  %v3867_v36 = vsel %vm1557_vm15, %v3849_v24, 0.0  ;;  %vm1561_vm11 = vcmp.eq.s32.totalorder %v3921_v7, 0 }
 0x193   : > { %v3306_v39 = vpop.permute.xlu0 %3305  ;;  %v3301_v40 = vpop.permute.xlu1 %3300  ;;  %3037 = vmatprep.mubr.msk.bf16.mxu1 %vm3358_vm0, %v4527_v1  ;;  %v3870_v37 = vsel %vm1558_vm3, %v3852_v25, 0.0  ;;  %v3880_v43 = vadd.f32 %v3757_v32, %v1042_v33  ;;  %vm1562_vm12 = vcmp.eq.s32.totalorder %v3924_v10, 0  ;;  %vm1432_vm15 = vcmask 1041408  }
 0x194   : > { %v3308_v44 = vunpack.i.h.bf16 %v3306_v39  ;;  %v3307_v45 = vunpack.i.l.bf16 %v3306_v39  ;;  %v3303_v46 = vunpack.i.h.bf16 %v3301_v40  ;;  %v3302_v47 = vunpack.i.l.bf16 %v3301_v40  ;;  %v1017_v29 = vpop.f32.mrf.mxu1 }
 0x195   : > { %v1043_v34 = vmul.f32 %v3743_v20, %v1017_v29  ;;  %v3945_v26 = vsel %vm1432_vm15, %v1416_v19, 0  ;;  %v3954_v29 = vld [vmem:[%s4521_s10] ss:$0 sm:$0xff]  ;;  %vm1888_vm3 = vcmp.eq.s32.totalorder %v3783_v56, 1 }
 0x196   : > { %v1253_v54 = vsel %vm1243_vm4, %v1242_v50, %v3303_v46  ;;  %v1252_v53 = vsel %vm1243_vm4, %v1241_v49, %v3302_v47  ;;  %v3014_v38 = vpop.f32.mrf.mxu1  ;;  %vm2462_vm4 = vcmp.eq.s32.totalorder %v3855_v27, 3  ;;  %v3889_v47 = vld [vmem:[%s3778_s30 + $0x30] sm:$0xff]  ;;  %3196 = vmatpush3.bf16.msra.mxu1 %v3945_v26  ;;  %3042 = vmatpush3.bf16.msra.mxu0 %v3945_v26 }
 0x197   : > { %v1263_v58 = vsel %vm1254_vm5, %v1252_v53, %v3307_v45  ;;  %v1264_v59 = vsel %vm1254_vm5, %v1253_v54, %v3308_v44  ;;  %v3874_v39 = vsel %vm2462_vm4, %v3849_v24, 0.0  ;;  %vm2463_vm5 = vcmp.eq.s32.totalorder %v3858_v28, 3  ;;  %3063 = vmatprep.subr.bf16.mxu1 %v4527_v1  ;;  %3085 = vmatprep.subr.bf16.mxu0 %v4527_v1  ;;  %v3960_v38 = vld [vmem:[%s4522_s11] ss:$0 sm:$0xff] }
 0x198   : > { %v3792_v61 = vpack.c.bf16 %v1264_v59, %v1263_v58  ;;  %v1022_v40 = vpop.f32.mrf.mxu1  ;;  %v3883_v44 = vadd.f32 %v3757_v32, %v1043_v34  ;;  %v3886_v45 = vsel %vm2463_vm5, %v3852_v25, 0.0  ;;  %vm1559_vm7 = vcmp.eq.s32.totalorder %v3889_v47, 0 }
 0x199   : > { %4529 = vst [vmem:[#allocation3_spill] sm:$0xff] %v3886_v45  ;;  %v1044_v54 = vmul.f32 %v3743_v20, %v1022_v40  ;;  %v3901_v55 = vsel %vm1559_vm7, %v3880_v43, 0.0  ;;  %vm2464_vm9 = vcmp.eq.s32.totalorder %v3889_v47, 3  ;;  %v4534_v45 = vmov 0.0  }
 0x19a   : > { %3038 = vmatmul.mubr.msk.bf16.gmra.mxu1 %vm1278_vm6, %v3792_v61  ;;  %v3017_v46 = vpop.f32.mrf.mxu1  ;;  %v3904_v58 = vsel %vm1560_vm8, %v3883_v44, 0.0  ;;  %v3908_v60 = vsel %vm2464_vm9, %v3880_v43, 0.0  ;;  %v3918_v3 = vsel %vm2465_vm10, %v3883_v44, 0.0  ;;  %vm1891_vm4 = vcmp.eq.s32.totalorder %v3824_v12, 1 }
 0x19b   : > { %3059 = vmatprep.mubr.msk.bf16.mxu1 %vm3358_vm0, %v4527_v1  ;;  %4530 = vst [vmem:[#allocation4_spill] sm:$0xff] %v3908_v60  ;;  %v3912_v63 = vadd.f32 %v3757_v32, %v1044_v54  ;;  %4531 = vst [vmem:[#allocation5_spill] sm:$0xff] %v3918_v3  ;;  %vm1892_vm5 = vcmp.eq.s32.totalorder %v3855_v27, 1  ;;  %vm1893_vm7 = vcmp.eq.s32.totalorder %v3858_v28, 1  ;;  %vm1894_vm8 = vcmp.eq.s32.totalorder %v3889_v47, 1 }
 0x19c   : > { %v1025_v49 = vpop.f32.mrf.mxu1  ;;  %vm1895_vm9 = vcmp.eq.s32.totalorder %v3892_v48, 1  ;;  %vm1896_vm10 = vcmp.eq.s32.totalorder %v3921_v7, 1 }
 0x19d   : > { %v1045_v53 = vmul.f32 %v3743_v20, %v1025_v49  ;;  %v3929_v14 = vsel %vm1561_vm11, %v3912_v63, 0.0  ;;  %vm1897_vm11 = vcmp.eq.s32.totalorder %v3924_v10, 1 }
 0x19e   : > { %v3018_v59 = vpop.f32.mrf.mxu1 }
 0x19f   : > { %v3915_v20 = vadd.f32 %v3757_v32, %v1045_v53  ;;  %v3937_v32 = vsel %vm2466_vm13, %v3912_v63, 0.0 }
 0x1a0   : > { %v3828_v13 = vpop.permute.xlu1 %1595  ;;  %4532 = vst [vmem:[#allocation6_spill] sm:$0xff] %v3937_v32 }
 0x1a1   : > { %v3932_v15 = vsel %vm1562_vm12, %v3915_v20, 0.0  ;;  %v3940_v18 = vsel %vm2467_vm14, %v3915_v20, 0.0 }
 0x1a2   : > { %4533 = vst [vmem:[#allocation7_spill] sm:$0xff] %v3940_v18 }
 0x1a4   : > { %v3846_v23 = vpop.permute.xlu1 %1605 }
 0x1a8   : > { %v3862_v30 = vpop.permute.xlu1 %1615 }
 0x1ac   : > { %v3877_v42 = vpop.permute.xlu1 %1625 }
 0x1b0   : > { %v3896_v50 = vpop.permute.xlu1 %1635 }
 0x1b4   : > { %v789_v62 = vpop.permute.xlu1 %788 }
 0x23a   : > { %v1328_v33 = vpop.f32.mrf.mxu1 }
 0x23b   : > { %v1374_v34 = vmul.f32 %v3954_v29, %v1328_v33 }
 0x23c   : > { %v3023_v40 = vpop.f32.mrf.mxu1 }
 0x23d   : > { %v1391_v49 = vadd.f32 %v3960_v38, %v1374_v34 }
 0x23e   : > { %v1331_v46 = vpop.f32.mrf.mxu1 }
 0x23f   : > { %v1375_v54 = vmul.f32 %v3954_v29, %v1331_v46  ;;  %v1401_v19 = vmax.f32 %v1391_v49, 0.0 }
 0x240   : > { %v3024_v53 = vpop.f32.mrf.mxu1 }
 0x241   : > { %v1392_v59 = vadd.f32 %v3960_v38, %v1375_v54 }
 0x242   : > { %v1336_v62 = vpop.f32.mrf.mxu1 }
 0x243   : > { %v1402_v1 = vmax.f32 %v1392_v59, 0.0  ;;  %v1376_v18 = vmul.f32 %v3954_v29, %v1336_v62 }
 0x244   : > { %v3027_v33 = vpop.f32.mrf.mxu1 }
 0x245   : > { %v1411_v32 = vpack.c.bf16 %v1402_v1, %v1401_v19  ;;  %v1393_v60 = vadd.f32 %v3960_v38, %v1376_v18 }
 0x246   : > { %v1339_v3 = vpop.f32.mrf.mxu1 }
 0x247   : > { %v1377_v40 = vmul.f32 %v3954_v29, %v1339_v3  ;;  %3044 = vmatmul.mubr.msk.bf16.vlgmr.msra.gmra.mxu0 %vm864_vm2, %v1411_v32  ;;  %v1403_v54 = vmax.f32 %v1393_v60, 0.0 }
 0x248   : > { %v3028_v34 = vpop.f32.mrf.mxu1  ;;  %3047 = vmatprep.mubr.msk.bf16.mxu0 %vm3358_vm0, %v4534_v45  ;;  %3086 = vmatpush3.bf16.msra.mxu0 %v3945_v26 }
 0x249   : > { %v1394_v46 = vadd.f32 %v3960_v38, %v1377_v40  ;;  %3129 = vmatprep.subr.bf16.mxu0 %v4534_v45 }
 0x24a   : > { %v1344_v49 = vpop.f32.mrf.mxu1 }
 0x24b   : > { %v1404_v1 = vmax.f32 %v1394_v46, 0.0  ;;  %v1378_v53 = vmul.f32 %v3954_v29, %v1344_v49 }
 0x24c   : > { %v3031_v18 = vpop.f32.mrf.mxu1 }
 0x24d   : > { %v1412_v59 = vpack.c.bf16 %v1404_v1, %v1403_v54  ;;  %v1395_v32 = vadd.f32 %v3960_v38, %v1378_v53 }
 0x24e   : > { %v1347_v3 = vpop.f32.mrf.mxu1 }
 0x24f   : > { %v1379_v62 = vmul.f32 %v3954_v29, %v1347_v3  ;;  %3048 = vmatmul.mubr.msk.bf16.gmra.mxu0 %vm864_vm2, %v1412_v59  ;;  %v1405_v60 = vmax.f32 %v1395_v32, 0.0 }
 0x250   : > { %v3032_v19 = vpop.f32.mrf.mxu1  ;;  %3051 = vmatprep.mubr.msk.bf16.mxu0 %vm3358_vm0, %v4534_v45 }
 0x251   : > { %v1396_v33 = vadd.f32 %v3960_v38, %v1379_v62 }
 0x252   : > { %v1352_v40 = vpop.f32.mrf.mxu1 }
 0x253   : > { %v1406_v34 = vmax.f32 %v1396_v33, 0.0  ;;  %v1380_v46 = vmul.f32 %v3954_v29, %v1352_v40 }
 0x254   : > { %v3035_v49 = vpop.f32.mrf.mxu1 }
 0x255   : > { %v1413_v54 = vpack.c.bf16 %v1406_v34, %v1405_v60  ;;  %v1397_v53 = vadd.f32 %v3960_v38, %v1380_v46 }
 0x256   : > { %v1355_v1 = vpop.f32.mrf.mxu1 }
 0x257   : > { %v1381_v18 = vmul.f32 %v3954_v29, %v1355_v1  ;;  %3052 = vmatmul.mubr.msk.bf16.gmra.mxu0 %vm864_vm2, %v1413_v54  ;;  %v1407_v32 = vmax.f32 %v1397_v53, 0.0 }
 0x258   : > { %v3036_v59 = vpop.f32.mrf.mxu1  ;;  %3055 = vmatprep.mubr.msk.bf16.mxu0 %vm3358_vm0, %v4534_v45 }
 0x259   : > { %v1398_v3 = vadd.f32 %v3960_v38, %v1381_v18  ;;  %v3318_v59 = vld [vmem:[%s4520_s9 + $0x8] sm:$0xff]  }
 0x25a   : > { %v1360_v62 = vpop.f32.mrf.mxu1 }
 0x25b   : > { %v1408_v19 = vmax.f32 %v1398_v3, 0.0  ;;  %v1382_v33 = vmul.f32 %v3954_v29, %v1360_v62  ;;  %v3319_v62 = vld [vmem:[%s4520_s9 + $0x10] sm:$0xff]  }
 0x25c   : > { %v3039_v40 = vpop.f32.mrf.mxu1 }
 0x25d   : > { %v1414_v60 = vpack.c.bf16 %v1408_v19, %v1407_v32  ;;  %v1399_v46 = vadd.f32 %v3960_v38, %v1382_v33  ;;  %v3320_v32 = vld [vmem:[%s4520_s9 + $0x18] sm:$0xff]  }
 0x25e   : > { %v1363_v34 = vpop.f32.mrf.mxu1 }
 0x25f   : > { %v1383_v49 = vmul.f32 %v3954_v29, %v1363_v34  ;;  %3056 = vmatmul.mubr.msk.bf16.gmra.mxu0 %vm864_vm2, %v1414_v60  ;;  %v1409_v18 = vmax.f32 %v1399_v46, 0.0 }
 0x260   : > { %v3040_v54 = vpop.f32.mrf.mxu1  ;;  %3087 = vmatprep.mubr.msk.bf16.mxu0 %vm3358_vm0, %v4534_v45 }
 0x261   : > { %v1400_v1 = vadd.f32 %v3960_v38, %v1383_v49 }
 0x263   : > { %v1410_v53 = vmax.f32 %v1400_v1, 0.0 }
 0x265   : > { %v1415_v3 = vpack.c.bf16 %v1410_v53, %v1409_v18 }
 0x267   : > { %3060 = vmatmul.mubr.msk.bf16.vlgmr.msra.gmra.mxu1 %vm864_vm2, %v1415_v3 }
 0x268   : > { %3064 = vmatpush3.bf16.msra.mxu1 %v3318_v59  ;;  %3065 = vmatprep.mubr.msk.bf16.mxu1 %vm3358_vm0, %v4534_v45 }
 0x269   : > { %3107 = vmatprep.subr.bf16.mxu1 %v4534_v45 }
 0x26f   : > { %3066 = vmatmul.mubr.msk.bf16.vlgmr.msra.gmra.mxu1 %vm1278_vm6, %v3710_v35 }
 0x270   : > { %3108 = vmatpush3.bf16.msra.mxu1 %v3319_v62  ;;  %3069 = vmatprep.mubr.msk.bf16.mxu1 %vm3358_vm0, %v4534_v45 }
 0x271   : > { %3151 = vmatprep.subr.bf16.mxu1 %v4534_v45 }
 0x277   : > { %3070 = vmatmul.mubr.msk.bf16.gmra.mxu1 %vm1278_vm6, %v3722_v52 }
 0x278   : > { %3073 = vmatprep.mubr.msk.bf16.mxu1 %vm3358_vm0, %v4534_v45 }
 0x27f   : > { %3074 = vmatmul.mubr.msk.bf16.gmra.mxu1 %vm1278_vm6, %v3734_v8 }
 0x280   : > { %3077 = vmatprep.mubr.msk.bf16.mxu1 %vm3358_vm0, %v4534_v45 }
 0x287   : > { %3078 = vmatmul.mubr.msk.bf16.gmra.mxu1 %vm1278_vm6, %v3752_v31 }
 0x288   : > { %3081 = vmatprep.mubr.msk.bf16.mxu1 %vm3358_vm0, %v4534_v45 }
 0x28f   : > { %3082 = vmatmul.mubr.msk.bf16.gmra.mxu1 %vm1278_vm6, %v3792_v61 }
 0x290   : > { %3109 = vmatprep.mubr.msk.bf16.mxu1 %vm3358_vm0, %v4534_v45 }
 0x297   : > { %3110 = vmatmul.mubr.msk.bf16.vlgmr.msra.gmra.mxu1 %vm1278_vm6, %v3710_v35 }
 0x298   : > { %3152 = vmatpush3.bf16.msra.mxu1 %v3320_v32  ;;  %3113 = vmatprep.mubr.msk.bf16.mxu1 %vm3358_vm0, %v4534_v45 }
 0x29f   : > { %3114 = vmatmul.mubr.msk.bf16.gmra.mxu1 %vm1278_vm6, %v3722_v52 }
 0x2a0   : > { %3117 = vmatprep.mubr.msk.bf16.mxu1 %vm3358_vm0, %v4534_v45 }
 0x2a7   : > { %3118 = vmatmul.mubr.msk.bf16.gmra.mxu1 %vm1278_vm6, %v3734_v8 }
 0x2a8   : > { %3121 = vmatprep.mubr.msk.bf16.mxu1 %vm3358_vm0, %v4534_v45 }
 0x2af   : > { %3122 = vmatmul.mubr.msk.bf16.gmra.mxu1 %vm1278_vm6, %v3752_v31 }
 0x2b0   : > { %3125 = vmatprep.mubr.msk.bf16.mxu1 %vm3358_vm0, %v4534_v45 }
 0x2b7   : > { %3126 = vmatmul.mubr.msk.bf16.gmra.mxu1 %vm1278_vm6, %v3792_v61 }
 0x2b8   : > { %3153 = vmatprep.mubr.msk.bf16.mxu1 %vm3358_vm0, %v4534_v45 }
 0x2bf   : > { %3154 = vmatmul.mubr.msk.bf16.vlgmr.msra.gmra.mxu1 %vm1278_vm6, %v3710_v35  ;;  %v4070_v35 = vld [vmem:[%s4524_s13] ss:$0 sm:$0xff] }
 0x2c0   : > { %3157 = vmatprep.mubr.msk.bf16.mxu1 %vm3358_vm0, %v4534_v45 }
 0x2c7   : > { %3158 = vmatmul.mubr.msk.bf16.gmra.mxu1 %vm1278_vm6, %v3722_v52 }
 0x2c8   : > { %3161 = vmatprep.mubr.msk.bf16.mxu1 %vm3358_vm0, %v4534_v45 }
 0x2cf   : > { %3162 = vmatmul.mubr.msk.bf16.gmra.mxu1 %vm1278_vm6, %v3734_v8  ;;  %v4075_v8 = vld [vmem:[%s4525_s14] ss:$0 sm:$0xff] }
 0x2d0   : > { %3165 = vmatprep.mubr.msk.bf16.mxu1 %vm3358_vm0, %v4534_v45 }
 0x2d7   : > { %3166 = vmatmul.mubr.msk.bf16.gmra.mxu1 %vm1278_vm6, %v3752_v31 }
 0x2d8   : > { %3169 = vmatprep.mubr.msk.bf16.mxu1 %vm3358_vm0, %v4534_v45 }
 0x2df   : > { %3170 = vmatmul.mubr.msk.bf16.gmra.mxu1 %vm1278_vm6, %v3792_v61 }
 0x307   : > { %v1470_v52 = vpop.f32.mrf.mxu0 }
 0x308   : > { %v1516_v19 = vmul.f32 %v4070_v35, %v1470_v52 }
 0x309   : > { %v3045_v31 = vpop.f32.mrf.mxu0 }
 0x30a   : > { %v1533_v33 = vadd.f32 %v4075_v8, %v1516_v19 }
 0x30b   : > { %v1473_v40 = vpop.f32.mrf.mxu0 }
 0x30c   : > { %v1543_v60 = vmax.f32 %v1533_v33, 0.0  ;;  %v1517_v61 = vmul.f32 %v4070_v35, %v1473_v40 }
 0x30d   : > { %v3046_v34 = vpop.f32.mrf.mxu0 }
 0x30e   : > { %v4081_v46 = vadd.f32 %v3796_v0, %v1543_v60  ;;  %v1534_v49 = vadd.f32 %v4075_v8, %v1517_v61 }
 0x30f   : > { %v1478_v54 = vpop.f32.mrf.mxu0 }
 0x310   : > { %v1544_v1 = vmax.f32 %v1534_v49, 0.0  ;;  %v1518_v18 = vmul.f32 %v4070_v35, %v1478_v54 }
 0x311   : > { %v3049_v53 = vpop.f32.mrf.mxu0 }
 0x312   : > { %v4086_v59 = vadd.f32 %v3800_v2, %v1544_v1  ;;  %v1535_v3 = vadd.f32 %v4075_v8, %v1518_v18 }
 0x313   : > { %v1481_v62 = vpop.f32.mrf.mxu0 }
 0x314   : > { %v1545_v32 = vmax.f32 %v1535_v3, 0.0  ;;  %v1519_v52 = vmul.f32 %v4070_v35, %v1481_v62 }
 0x315   : > { %v3050_v19 = vpop.f32.mrf.mxu0 }
 0x316   : > { %v4091_v0 = vadd.f32 %v3833_v16, %v1545_v32  ;;  %v1536_v31 = vadd.f32 %v4075_v8, %v1519_v52 }
 0x317   : > { %v1486_v33 = vpop.f32.mrf.mxu0 }
 0x318   : > { %v1546_v40 = vmax.f32 %v1536_v31, 0.0  ;;  %v1520_v60 = vmul.f32 %v4070_v35, %v1486_v33 }
 0x319   : > { %v3053_v61 = vpop.f32.mrf.mxu0 }
 0x31a   : > { %v4096_v2 = vadd.f32 %v3836_v17, %v1546_v40  ;;  %v1537_v34 = vadd.f32 %v4075_v8, %v1520_v60 }
 0x31b   : > { %v1489_v49 = vpop.f32.mrf.mxu0 }
 0x31c   : > { %v1547_v54 = vmax.f32 %v1537_v34, 0.0  ;;  %v1521_v1 = vmul.f32 %v4070_v35, %v1489_v49 }
 0x31d   : > { %v3054_v18 = vpop.f32.mrf.mxu0 }
 0x31e   : > { %v4101_v16 = vadd.f32 %v3867_v36, %v1547_v54  ;;  %v1538_v53 = vadd.f32 %v4075_v8, %v1521_v1 }
 0x31f   : > { %v1494_v3 = vpop.f32.mrf.mxu0 }
 0x320   : > { %v1548_v62 = vmax.f32 %v1538_v53, 0.0  ;;  %v1522_v32 = vmul.f32 %v4070_v35, %v1494_v3 }
 0x321   : > { %v3057_v52 = vpop.f32.mrf.mxu0 }
 0x322   : > { %v4106_v17 = vadd.f32 %v3870_v37, %v1548_v62  ;;  %v1539_v19 = vadd.f32 %v4075_v8, %v1522_v32 }
 0x323   : > { %v1497_v31 = vpop.f32.mrf.mxu0 }
 0x324   : > { %v1549_v33 = vmax.f32 %v1539_v19, 0.0  ;;  %v1523_v40 = vmul.f32 %v4070_v35, %v1497_v31 }
 0x325   : > { %v3058_v60 = vpop.f32.mrf.mxu0 }
 0x326   : > { %v4111_v36 = vadd.f32 %v3901_v55, %v1549_v33  ;;  %v1540_v61 = vadd.f32 %v4075_v8, %v1523_v40 }
 0x327   : > { %v1502_v34 = vpop.f32.mrf.mxu1 }
 0x328   : > { %v1550_v49 = vmax.f32 %v1540_v61, 0.0  ;;  %v1524_v54 = vmul.f32 %v4070_v35, %v1502_v34 }
 0x329   : > { %v3061_v1 = vpop.f32.mrf.mxu1 }
 0x32a   : > { %v4116_v37 = vadd.f32 %v3904_v58, %v1550_v49  ;;  %v1541_v18 = vadd.f32 %v4075_v8, %v1524_v54 }
 0x32b   : > { %v1505_v53 = vpop.f32.mrf.mxu1 }
 0x32c   : > { %v1551_v3 = vmax.f32 %v1541_v18, 0.0  ;;  %v1525_v62 = vmul.f32 %v4070_v35, %v1505_v53 }
 0x32d   : > { %v3062_v32 = vpop.f32.mrf.mxu1 }
 0x32e   : > { %v4121_v55 = vadd.f32 %v3929_v14, %v1551_v3  ;;  %v1542_v52 = vadd.f32 %v4075_v8, %v1525_v62 }
 0x32f   : > { %v1696_v19 = vpop.f32.mrf.mxu1 }
 0x330   : > { %v1552_v31 = vmax.f32 %v1542_v52, 0.0  ;;  %v1735_v33 = vmul.f32 %v3954_v29, %v1696_v19 }
 0x331   : > { %v3067_v40 = vpop.f32.mrf.mxu1 }
 0x332   : > { %v4126_v58 = vadd.f32 %v3932_v15, %v1552_v31  ;;  %v1745_v61 = vadd.f32 %v3960_v38, %v1735_v33 }
 0x333   : > { %v1699_v60 = vpop.f32.mrf.mxu1 }
 0x334   : > { %v1736_v34 = vmul.f32 %v3954_v29, %v1699_v60  ;;  %v1755_v1 = vmax.f32 %v1745_v61, 0.0 }
 0x335   : > { %v3068_v49 = vpop.f32.mrf.mxu1 }
 0x336   : > { %v1746_v54 = vadd.f32 %v3960_v38, %v1736_v34 }
 0x337   : > { %v1704_v14 = vpop.f32.mrf.mxu1 }
 0x338   : > { %v1756_v18 = vmax.f32 %v1746_v54, 0.0  ;;  %v1737_v53 = vmul.f32 %v3954_v29, %v1704_v14 }
 0x339   : > { %v3071_v3 = vpop.f32.mrf.mxu1 }
 0x33a   : > { %v1765_v62 = vpack.c.bf16 %v1756_v18, %v1755_v1  ;;  %v1747_v52 = vadd.f32 %v3960_v38, %v1737_v53 }
 0x33b   : > { %v1707_v32 = vpop.f32.mrf.mxu1 }
 0x33c   : > { %v1738_v15 = vmul.f32 %v3954_v29, %v1707_v32  ;;  %3088 = vmatmul.mubr.msk.bf16.vlgmr.msra.gmra.mxu0 %vm864_vm2, %v1765_v62  ;;  %v1757_v40 = vmax.f32 %v1747_v52, 0.0 }
 0x33d   : > { %3130 = vmatpush3.bf16.msra.mxu0 %v3945_v26  ;;  %v3072_v19 = vpop.f32.mrf.mxu1  ;;  %3091 = vmatprep.mubr.msk.bf16.mxu0 %vm3358_vm0, %v4534_v45 }
 0x33e   : > { %v1748_v31 = vadd.f32 %v3960_v38, %v1738_v15  ;;  %3173 = vmatprep.subr.bf16.mxu0 %v4534_v45 }
 0x33f   : > { %v1712_v33 = vpop.f32.mrf.mxu1 }
 0x340   : > { %v1758_v60 = vmax.f32 %v1748_v31, 0.0  ;;  %v1739_v61 = vmul.f32 %v3954_v29, %v1712_v33 }
 0x341   : > { %v3075_v34 = vpop.f32.mrf.mxu1 }
 0x342   : > { %v1766_v49 = vpack.c.bf16 %v1758_v60, %v1757_v40  ;;  %v1749_v14 = vadd.f32 %v3960_v38, %v1739_v61 }
 0x343   : > { %v1715_v54 = vpop.f32.mrf.mxu1 }
 0x344   : > { %v1740_v1 = vmul.f32 %v3954_v29, %v1715_v54  ;;  %3092 = vmatmul.mubr.msk.bf16.gmra.mxu0 %vm864_vm2, %v1766_v49  ;;  %v1759_v62 = vmax.f32 %v1749_v14, 0.0 }
 0x345   : > { %v3076_v18 = vpop.f32.mrf.mxu1  ;;  %3095 = vmatprep.mubr.msk.bf16.mxu0 %vm3358_vm0, %v4534_v45 }
 0x346   : > { %v1750_v53 = vadd.f32 %v3960_v38, %v1740_v1 }
 0x347   : > { %v1720_v3 = vpop.f32.mrf.mxu1 }
 0x348   : > { %v1760_v32 = vmax.f32 %v1750_v53, 0.0  ;;  %v1741_v52 = vmul.f32 %v3954_v29, %v1720_v3 }
 0x349   : > { %v3079_v15 = vpop.f32.mrf.mxu1 }
 0x34a   : > { %v1767_v19 = vpack.c.bf16 %v1760_v32, %v1759_v62  ;;  %v1751_v33 = vadd.f32 %v3960_v38, %v1741_v52 }
 0x34b   : > { %v1723_v31 = vpop.f32.mrf.mxu1 }
 0x34c   : > { %v1742_v40 = vmul.f32 %v3954_v29, %v1723_v31  ;;  %3096 = vmatmul.mubr.msk.bf16.gmra.mxu0 %vm864_vm2, %v1767_v19  ;;  %v1761_v49 = vmax.f32 %v1751_v33, 0.0 }
 0x34d   : > { %v3080_v60 = vpop.f32.mrf.mxu1  ;;  %3099 = vmatprep.mubr.msk.bf16.mxu0 %vm3358_vm0, %v4534_v45 }
 0x34e   : > { %v1752_v61 = vadd.f32 %v3960_v38, %v1742_v40 }
 0x34f   : > { %v1728_v34 = vpop.f32.mrf.mxu1 }
 0x350   : > { %v1762_v54 = vmax.f32 %v1752_v61, 0.0  ;;  %v1743_v14 = vmul.f32 %v3954_v29, %v1728_v34 }
 0x351   : > { %v3083_v1 = vpop.f32.mrf.mxu1 }
 0x352   : > { %v1768_v18 = vpack.c.bf16 %v1762_v54, %v1761_v49  ;;  %v1753_v3 = vadd.f32 %v3960_v38, %v1743_v14 }
 0x353   : > { %v1731_v53 = vpop.f32.mrf.mxu1 }
 0x354   : > { %v1744_v62 = vmul.f32 %v3954_v29, %v1731_v53  ;;  %3100 = vmatmul.mubr.msk.bf16.gmra.mxu0 %vm864_vm2, %v1768_v18  ;;  %v1763_v19 = vmax.f32 %v1753_v3, 0.0 }
 0x355   : > { %v3084_v32 = vpop.f32.mrf.mxu1  ;;  %3103 = vmatprep.mubr.msk.bf16.mxu0 %vm3358_vm0, %v4534_v45 }
 0x356   : > { %v1754_v52 = vadd.f32 %v3960_v38, %v1744_v62 }
 0x357   : > { %v1981_v15 = vpop.f32.mrf.mxu1 }
 0x358   : > { %v1764_v31 = vmax.f32 %v1754_v52, 0.0  ;;  %v2020_v33 = vmul.f32 %v3954_v29, %v1981_v15 }
 0x359   : > { %v3111_v40 = vpop.f32.mrf.mxu1 }
 0x35a   : > { %v1769_v60 = vpack.c.bf16 %v1764_v31, %v1763_v19  ;;  %v2030_v34 = vadd.f32 %v3960_v38, %v2020_v33 }
 0x35b   : > { %v1984_v61 = vpop.f32.mrf.mxu1 }
 0x35c   : > { %v2021_v49 = vmul.f32 %v3954_v29, %v1984_v61  ;;  %3104 = vmatmul.mubr.msk.bf16.gmra.mxu0 %vm864_vm2, %v1769_v60  ;;  %v2040_v18 = vmax.f32 %v2030_v34, 0.0 }
 0x35d   : > { %v3112_v54 = vpop.f32.mrf.mxu1  ;;  %3131 = vmatprep.mubr.msk.bf16.mxu0 %vm3358_vm0, %v4534_v45 }
 0x35e   : > { %v2031_v14 = vadd.f32 %v3960_v38, %v2021_v49 }
 0x35f   : > { %v1989_v1 = vpop.f32.mrf.mxu1 }
 0x360   : > { %v2041_v53 = vmax.f32 %v2031_v14, 0.0  ;;  %v2022_v3 = vmul.f32 %v3954_v29, %v1989_v1 }
 0x361   : > { %v3115_v62 = vpop.f32.mrf.mxu1 }
 0x362   : > { %v2050_v32 = vpack.c.bf16 %v2041_v53, %v2040_v18  ;;  %v2032_v15 = vadd.f32 %v3960_v38, %v2022_v3 }
 0x363   : > { %v1992_v52 = vpop.f32.mrf.mxu1 }
 0x364   : > { %v2023_v19 = vmul.f32 %v3954_v29, %v1992_v52  ;;  %3132 = vmatmul.mubr.msk.bf16.vlgmr.msra.gmra.mxu0 %vm864_vm2, %v2050_v32  ;;  %v2042_v60 = vmax.f32 %v2032_v15, 0.0 }
 0x365   : > { %3174 = vmatpush3.bf16.msra.mxu0 %v3945_v26  ;;  %v3116_v31 = vpop.f32.mrf.mxu1  ;;  %3135 = vmatprep.mubr.msk.bf16.mxu0 %vm3358_vm0, %v4534_v45 }
 0x366   : > { %v2033_v33 = vadd.f32 %v3960_v38, %v2023_v19 }
 0x367   : > { %v1997_v40 = vpop.f32.mrf.mxu1 }
 0x368   : > { %v2043_v61 = vmax.f32 %v2033_v33, 0.0  ;;  %v2024_v34 = vmul.f32 %v3954_v29, %v1997_v40 }
 0x369   : > { %v3119_v49 = vpop.f32.mrf.mxu1 }
 0x36a   : > { %v2051_v54 = vpack.c.bf16 %v2043_v61, %v2042_v60  ;;  %v2034_v1 = vadd.f32 %v3960_v38, %v2024_v34 }
 0x36b   : > { %v2000_v14 = vpop.f32.mrf.mxu1 }
 0x36c   : > { %v2025_v18 = vmul.f32 %v3954_v29, %v2000_v14  ;;  %3136 = vmatmul.mubr.msk.bf16.gmra.mxu0 %vm864_vm2, %v2051_v54  ;;  %v2044_v62 = vmax.f32 %v2034_v1, 0.0 }
 0x36d   : > { %v3120_v26 = vpop.f32.mrf.mxu1  ;;  %3139 = vmatprep.mubr.msk.bf16.mxu0 %vm3358_vm0, %v4534_v45 }
 0x36e   : > { %v2035_v53 = vadd.f32 %v3960_v38, %v2025_v18 }
 0x36f   : > { %v2005_v3 = vpop.f32.mrf.mxu1 }
 0x370   : > { %v2045_v32 = vmax.f32 %v2035_v53, 0.0  ;;  %v2026_v52 = vmul.f32 %v3954_v29, %v2005_v3 }
 0x371   : > { %v3123_v15 = vpop.f32.mrf.mxu1 }
 0x372   : > { %v2052_v19 = vpack.c.bf16 %v2045_v32, %v2044_v62  ;;  %v2036_v33 = vadd.f32 %v3960_v38, %v2026_v52 }
 0x373   : > { %v2008_v31 = vpop.f32.mrf.mxu1 }
 0x374   : > { %v2027_v40 = vmul.f32 %v3954_v29, %v2008_v31  ;;  %3140 = vmatmul.mubr.msk.bf16.gmra.mxu0 %vm864_vm2, %v2052_v19  ;;  %v2046_v49 = vmax.f32 %v2036_v33, 0.0 }
 0x375   : > { %v3124_v60 = vpop.f32.mrf.mxu1  ;;  %3143 = vmatprep.mubr.msk.bf16.mxu0 %vm3358_vm0, %v4534_v45 }
 0x376   : > { %v2037_v61 = vadd.f32 %v3960_v38, %v2027_v40 }
 0x377   : > { %v2013_v34 = vpop.f32.mrf.mxu1 }
 0x378   : > { %v2047_v54 = vmax.f32 %v2037_v61, 0.0  ;;  %v2028_v14 = vmul.f32 %v3954_v29, %v2013_v34 }
 0x379   : > { %v3127_v1 = vpop.f32.mrf.mxu1 }
 0x37a   : > { %v2053_v18 = vpack.c.bf16 %v2047_v54, %v2046_v49  ;;  %v2038_v53 = vadd.f32 %v3960_v38, %v2028_v14 }
 0x37b   : > { %v2016_v26 = vpop.f32.mrf.mxu1 }
 0x37c   : > { %v2029_v3 = vmul.f32 %v3954_v29, %v2016_v26  ;;  %3144 = vmatmul.mubr.msk.bf16.gmra.mxu0 %vm864_vm2, %v2053_v18  ;;  %v2048_v15 = vmax.f32 %v2038_v53, 0.0 }
 0x37d   : > { %v3128_v62 = vpop.f32.mrf.mxu1  ;;  %3147 = vmatprep.mubr.msk.bf16.mxu0 %vm3358_vm0, %v4534_v45 }
 0x37e   : > { %v2039_v32 = vadd.f32 %v3960_v38, %v2029_v3 }
 0x37f   : > { %v2266_v52 = vpop.f32.mrf.mxu1 }
 0x380   : > { %v2049_v19 = vmax.f32 %v2039_v32, 0.0  ;;  %v2305_v31 = vmul.f32 %v3954_v29, %v2266_v52 }
 0x381   : > { %v3155_v33 = vpop.f32.mrf.mxu1 }
 0x382   : > { %v2054_v40 = vpack.c.bf16 %v2049_v19, %v2048_v15  ;;  %v2315_v61 = vadd.f32 %v3960_v38, %v2305_v31 }
 0x383   : > { %v2269_v60 = vpop.f32.mrf.mxu1 }
 0x384   : > { %v2306_v34 = vmul.f32 %v3954_v29, %v2269_v60  ;;  %3148 = vmatmul.mubr.msk.bf16.gmra.mxu0 %vm864_vm2, %v2054_v40  ;;  %v2325_v1 = vmax.f32 %v2315_v61, 0.0 }
 0x385   : > { %v3156_v49 = vpop.f32.mrf.mxu1  ;;  %3175 = vmatprep.mubr.msk.bf16.mxu0 %vm3358_vm0, %v4534_v45 }
 0x386   : > { %v2316_v54 = vadd.f32 %v3960_v38, %v2306_v34 }
 0x387   : > { %v2274_v14 = vpop.f32.mrf.mxu1 }
 0x388   : > { %v2326_v18 = vmax.f32 %v2316_v54, 0.0  ;;  %v2307_v26 = vmul.f32 %v3954_v29, %v2274_v14 }
 0x389   : > { %v3159_v53 = vpop.f32.mrf.mxu1 }
 0x38a   : > { %v2335_v3 = vpack.c.bf16 %v2326_v18, %v2325_v1  ;;  %v2317_v32 = vadd.f32 %v3960_v38, %v2307_v26 }
 0x38b   : > { %v2277_v62 = vpop.f32.mrf.mxu1 }
 0x38c   : > { %v2308_v52 = vmul.f32 %v3954_v29, %v2277_v62  ;;  %3176 = vmatmul.mubr.msk.bf16.vlgmr.msra.gmra.mxu0 %vm864_vm2, %v2335_v3  ;;  %v2327_v33 = vmax.f32 %v2317_v32, 0.0 }
 0x38d   : > { %v3160_v15 = vpop.f32.mrf.mxu1  ;;  %3179 = vmatprep.mubr.msk.bf16.mxu0 %vm3358_vm0, %v4534_v45 }
 0x38e   : > { %v2318_v19 = vadd.f32 %v3960_v38, %v2308_v52 }
 0x38f   : > { %v2282_v31 = vpop.f32.mrf.mxu1 }
 0x390   : > { %v2328_v40 = vmax.f32 %v2318_v19, 0.0  ;;  %v2309_v60 = vmul.f32 %v3954_v29, %v2282_v31 }
 0x391   : > { %v3163_v61 = vpop.f32.mrf.mxu1 }
 0x392   : > { %v2336_v34 = vpack.c.bf16 %v2328_v40, %v2327_v33  ;;  %v2319_v54 = vadd.f32 %v3960_v38, %v2309_v60 }
 0x393   : > { %v2285_v49 = vpop.f32.mrf.mxu1 }
 0x394   : > { %v2310_v14 = vmul.f32 %v3954_v29, %v2285_v49  ;;  %3180 = vmatmul.mubr.msk.bf16.gmra.mxu0 %vm864_vm2, %v2336_v34  ;;  %v2329_v53 = vmax.f32 %v2319_v54, 0.0 }
 0x395   : > { %v3164_v1 = vpop.f32.mrf.mxu1  ;;  %3183 = vmatprep.mubr.msk.bf16.mxu0 %vm3358_vm0, %v4534_v45 }
 0x396   : > { %v2320_v18 = vadd.f32 %v3960_v38, %v2310_v14 }
 0x397   : > { %v2290_v26 = vpop.f32.mrf.mxu1 }
 0x398   : > { %v2330_v3 = vmax.f32 %v2320_v18, 0.0  ;;  %v2311_v62 = vmul.f32 %v3954_v29, %v2290_v26 }
 0x399   : > { %v3167_v32 = vpop.f32.mrf.mxu1 }
 0x39a   : > { %v2337_v52 = vpack.c.bf16 %v2330_v3, %v2329_v53  ;;  %v2321_v19 = vadd.f32 %v3960_v38, %v2311_v62 }
 0x39b   : > { %v2293_v15 = vpop.f32.mrf.mxu1 }
 0x39c   : > { %v2312_v31 = vmul.f32 %v3954_v29, %v2293_v15  ;;  %3184 = vmatmul.mubr.msk.bf16.gmra.mxu0 %vm864_vm2, %v2337_v52  ;;  %v2331_v61 = vmax.f32 %v2321_v19, 0.0 }
 0x39d   : > { %v3168_v33 = vpop.f32.mrf.mxu1  ;;  %3187 = vmatprep.mubr.msk.bf16.mxu0 %vm3358_vm0, %v4534_v45 }
 0x39e   : > { %v2322_v40 = vadd.f32 %v3960_v38, %v2312_v31 }
 0x39f   : > { %v2298_v60 = vpop.f32.mrf.mxu1 }
 0x3a0   : > { %v2332_v34 = vmax.f32 %v2322_v40, 0.0  ;;  %v2313_v49 = vmul.f32 %v3954_v29, %v2298_v60 }
 0x3a1   : > { %v3171_v54 = vpop.f32.mrf.mxu1 }
 0x3a2   : > { %v2338_v14 = vpack.c.bf16 %v2332_v34, %v2331_v61  ;;  %v2323_v18 = vadd.f32 %v3960_v38, %v2313_v49 }
 0x3a3   : > { %v2301_v1 = vpop.f32.mrf.mxu1 }
 0x3a4   : > { %v2314_v26 = vmul.f32 %v3954_v29, %v2301_v1  ;;  %3188 = vmatmul.mubr.msk.bf16.gmra.mxu0 %vm864_vm2, %v2338_v14  ;;  %v2333_v62 = vmax.f32 %v2323_v18, 0.0 }
 0x3a5   : > { %v3172_v53 = vpop.f32.mrf.mxu1  ;;  %3191 = vmatprep.mubr.msk.bf16.mxu0 %vm3358_vm0, %v4534_v45  ;;  %v1898_v45 = vsel %vm1888_vm3, %v3765_v41, 0.0  ;;  %vm1889_vm0 = vcmp.eq.s32.totalorder %v3786_v57, 1 }
 0x3a6   : > { %v2324_v3 = vadd.f32 %v3960_v38, %v2314_v26  ;;  %v1899_v18 = vsel %vm1889_vm0, %v3771_v51, 0.0 }
 0x3a8   : > { %v2334_v32 = vmax.f32 %v2324_v3, 0.0 }
 0x3aa   : > { %v2339_v52 = vpack.c.bf16 %v2334_v32, %v2333_v62 }
 0x3ac   : > { %3192 = vmatmul.mubr.msk.bf16.gmra.mxu0 %vm864_vm2, %v2339_v52  ;;  %vm1890_vm2 = vcmp.eq.s32.totalorder %v3821_v11, 1 }
 0x3fc   : > { %v1819_v15 = vpop.f32.mrf.mxu0 }
 0x3fd   : > { %v1858_v19 = vmul.f32 %v4070_v35, %v1819_v15  ;;  %v4247_v15 = vpop.permute.xlu0 %1600 }
 0x3fe   : > { %v3089_v31 = vpop.f32.mrf.mxu0 }
 0x3ff   : > { %v1868_v33 = vadd.f32 %v4075_v8, %v1858_v19  ;;  %v1900_v19 = vsel %vm1890_vm2, %v3811_v5, 0.0 }
 0x400   : > { %v1822_v29 = vpop.f32.mrf.mxu0 }
 0x401   : > { %v1878_v40 = vmax.f32 %v1868_v33, 0.0  ;;  %v1859_v60 = vmul.f32 %v4070_v35, %v1822_v29 }
 0x402   : > { %v3090_v38 = vpop.f32.mrf.mxu0 }
 0x403   : > { %v1908_v61 = vadd.f32 %v1898_v45, %v1878_v40  ;;  %v1869_v34 = vadd.f32 %v4075_v8, %v1859_v60 }
 0x404   : > { %v1827_v49 = vpop.f32.mrf.mxu0 }
 0x405   : > { %v1918_v54 = vmax.f32 %v1908_v61, 0.0  ;;  %v1879_v14 = vmax.f32 %v1869_v34, 0.0  ;;  %v1860_v1 = vmul.f32 %v4070_v35, %v1827_v49  ;;  %v1901_v61 = vsel %vm1891_vm4, %v3814_v6, 0.0 }
 0x406   : > { %v3093_v56 = vpop.f32.mrf.mxu0 }
 0x407   : > { %v1909_v26 = vadd.f32 %v1899_v18, %v1879_v14  ;;  %v1870_v53 = vadd.f32 %v4075_v8, %v1860_v1  ;;  %v1928_v3 = vmul.f32 %v1918_v54, %v3828_v13 }
 0x408   : > { %v1830_v62 = vpop.f32.mrf.mxu0 }
 0x409   : > { %v1919_v32 = vmax.f32 %v1909_v26, 0.0  ;;  %v1880_v52 = vmax.f32 %v1870_v53, 0.0  ;;  %v1861_v57 = vmul.f32 %v4070_v35, %v1830_v62  ;;  %2518 = vrot.lane.b32.xlu0 %v1928_v3, %s3363_s27  ;;  %v4261_v26 = vpop.permute.xlu0 %1610  ;;  %v1902_v53 = vsel %vm1892_vm5, %v3849_v24, 0.0 }
 0x40a   : > { %v3094_v31 = vpop.f32.mrf.mxu0 }
 0x40b   : > { %v1910_v33 = vadd.f32 %v1900_v19, %v1880_v52  ;;  %v1871_v29 = vadd.f32 %v4075_v8, %v1861_v57  ;;  %v1929_v11 = vmul.f32 %v1919_v32, %v4247_v15 }
 0x40c   : > { %v1835_v40 = vpop.f32.mrf.mxu0 }
 0x40d   : > { %v1920_v60 = vmax.f32 %v1910_v33, 0.0  ;;  %v1881_v45 = vmax.f32 %v1871_v29, 0.0  ;;  %v1862_v38 = vmul.f32 %v4070_v35, %v1835_v40  ;;  %2520 = vrot.lane.b32.xlu1 %v1929_v11, %s3363_s27  ;;  %v1903_v33 = vsel %vm1893_vm7, %v3852_v25, 0.0 }
 0x40e   : > { %v3097_v34 = vpop.f32.mrf.mxu0 }
 0x40f   : > { %v1911_v49 = vadd.f32 %v1901_v61, %v1881_v45  ;;  %v1872_v54 = vadd.f32 %v4075_v8, %v1862_v38  ;;  %v1930_v14 = vmul.f32 %v1920_v60, %v3846_v23  ;;  %v4275_v34 = vpop.permute.xlu0 %1620 }
 0x410   : > { %v1838_v12 = vpop.f32.mrf.mxu0 }
 0x411   : > { %v1921_v1 = vmax.f32 %v1911_v49, 0.0  ;;  %v1882_v18 = vmax.f32 %v1872_v54, 0.0  ;;  %v1863_v56 = vmul.f32 %v4070_v35, %v1838_v12  ;;  %2522 = vrot.lane.b32.xlu0 %v1930_v14, %s3363_s27  ;;  %v1904_v49 = vsel %vm1894_vm8, %v3880_v43, 0.0 }
 0x412   : > { %v3098_v3 = vpop.f32.mrf.mxu0  ;;  %vm2638_vm8 = vcmask 261120  }
 0x413   : > { %v1912_v62 = vadd.f32 %v1902_v53, %v1882_v18  ;;  %v1873_v32 = vadd.f32 %v4075_v8, %v1863_v56  ;;  %v1931_v27 = vmul.f32 %v1921_v1, %v4261_v26  ;;  %v1905_v3 = vsel %vm1895_vm9, %v3883_v44, 0.0 }
 0x414   : > { %v1843_v52 = vpop.f32.mrf.mxu0  ;;  %vm2649_vm9 = vcmask 392192  }
 0x415   : > { %v1922_v57 = vmax.f32 %v1912_v62, 0.0  ;;  %v1883_v19 = vmax.f32 %v1873_v32, 0.0  ;;  %v1864_v31 = vmul.f32 %v4070_v35, %v1843_v52  ;;  %2524 = vrot.lane.b32.xlu1 %v1931_v27, %s3363_s27 }
 0x416   : > { %v3101_v29 = vpop.f32.mrf.mxu0 }
 0x417   : > { %v1913_v11 = vadd.f32 %v1903_v33, %v1883_v19  ;;  %v1874_v40 = vadd.f32 %v4075_v8, %v1864_v31  ;;  %v1932_v60 = vmul.f32 %v1922_v57, %v3862_v30  ;;  %v4289_v33 = vpop.permute.xlu0 %1630  ;;  %v1906_v29 = vsel %vm1896_vm10, %v3912_v63, 0.0 }
 0x418   : > { %v1846_v28 = vpop.f32.mrf.mxu0 }
 0x419   : > { %v1923_v45 = vmax.f32 %v1913_v11, 0.0  ;;  %v1884_v38 = vmax.f32 %v1874_v40, 0.0  ;;  %v1865_v61 = vmul.f32 %v4070_v35, %v1846_v28  ;;  %2526 = vrot.lane.b32.xlu0 %v1932_v60, %s3363_s27 }
 0x41a   : > { %v3102_v54 = vpop.f32.mrf.mxu0 }
 0x41b   : > { %v1914_v14 = vadd.f32 %v1904_v49, %v1884_v38  ;;  %v1875_v12 = vadd.f32 %v4075_v8, %v1865_v61  ;;  %v1933_v47 = vmul.f32 %v1923_v45, %v4275_v34  ;;  %v1907_v49 = vsel %vm1897_vm11, %v3915_v20, 0.0 }
 0x41c   : > { %v1851_v1 = vpop.f32.mrf.mxu0 }
 0x41d   : > { %v1924_v18 = vmax.f32 %v1914_v14, 0.0  ;;  %v1885_v56 = vmax.f32 %v1875_v12, 0.0  ;;  %v1866_v53 = vmul.f32 %v4070_v35, %v1851_v1  ;;  %2528 = vrot.lane.b32.xlu1 %v1933_v47, %s3363_s27  ;;  %v3321_v47 = vld [vmem:[%s3778_s30] sm:$0xff] }
 0x41e   : > { %v3105_v62 = vpop.f32.mrf.mxu0  ;;  %vm2173_vm12 = vcmp.eq.s32.totalorder %v3321_v47, 2 }
 0x41f   : > { %v1915_v32 = vadd.f32 %v1905_v3, %v1885_v56  ;;  %v1876_v27 = vadd.f32 %v4075_v8, %v1866_v53  ;;  %v1934_v52 = vmul.f32 %v1924_v18, %v3877_v42  ;;  %v4303_v3 = vpop.permute.xlu0 %1640  ;;  %v2183_v62 = vsel %vm2173_vm12, %v3765_v41, 0.0 }
 0x420   : > { %v1854_v48 = vpop.f32.mrf.mxu0 }
 0x421   : > { %v1925_v57 = vmax.f32 %v1915_v32, 0.0  ;;  %v1886_v19 = vmax.f32 %v1876_v27, 0.0  ;;  %v1867_v31 = vmul.f32 %v4070_v35, %v1854_v48  ;;  %2530 = vrot.lane.b32.xlu0 %v1934_v52, %s3363_s27  ;;  %v3322_v48 = vld [vmem:[%s3778_s30 + $0x8] sm:$0xff] }
 0x422   : > { %v3106_v11 = vpop.f32.mrf.mxu0  ;;  %vm2174_vm13 = vcmp.eq.s32.totalorder %v3322_v48, 2  ;;  %v3325_v48 = vld [vmem:[%s3778_s30 + $0x20] sm:$0xff] }
 0x423   : > { %v1916_v40 = vadd.f32 %v1906_v29, %v1886_v19  ;;  %v1877_v60 = vadd.f32 %v4075_v8, %v1867_v31  ;;  %v1935_v7 = vmul.f32 %v1925_v57, %v4289_v33  ;;  %vm2177_vm3 = vcmp.eq.s32.totalorder %v3325_v48, 2 }
 0x424   : > { %v2104_v28 = vpop.f32.mrf.mxu0 }
 0x425   : > { %v1926_v45 = vmax.f32 %v1916_v40, 0.0  ;;  %v1887_v38 = vmax.f32 %v1877_v60, 0.0  ;;  %v2143_v61 = vmul.f32 %v4070_v35, %v2104_v28  ;;  %2532 = vrot.lane.b32.xlu1 %v1935_v7, %s3363_s27  ;;  %v2184_v40 = vsel %vm2174_vm13, %v3771_v51, 0.0  ;;  %v3323_v28 = vld [vmem:[%s3778_s30 + $0x10] sm:$0xff] }
 0x426   : > { %v3133_v54 = vpop.f32.mrf.mxu0  ;;  %vm2175_vm14 = vcmp.eq.s32.totalorder %v3323_v28, 2 }
 0x427   : > { %v1917_v14 = vadd.f32 %v1907_v49, %v1887_v38  ;;  %v2153_v12 = vadd.f32 %v4075_v8, %v2143_v61  ;;  %v1936_v10 = vmul.f32 %v1926_v45, %v3896_v50 }
 0x428   : > { %v2107_v1 = vpop.f32.mrf.mxu0 }
 0x429   : > { %v1927_v18 = vmax.f32 %v1917_v14, 0.0  ;;  %v2163_v56 = vmax.f32 %v2153_v12, 0.0  ;;  %v2144_v53 = vmul.f32 %v4070_v35, %v2107_v1  ;;  %2534 = vrot.lane.b32.xlu0 %v1936_v10, %s3363_s27  ;;  %v2185_v14 = vsel %vm2175_vm14, %v3811_v5, 0.0  ;;  %v3324_v10 = vld [vmem:[%s3778_s30 + $0x18] sm:$0xff] }
 0x42a   : > { %v3134_v32 = vpop.f32.mrf.mxu0  ;;  %vm2176_vm15 = vcmp.eq.s32.totalorder %v3324_v10, 2 }
 0x42b   : > { %v2193_v27 = vadd.f32 %v2183_v62, %v2163_v56  ;;  %v2154_v52 = vadd.f32 %v4075_v8, %v2144_v53  ;;  %v1937_v57 = vmul.f32 %v1927_v18, %v4303_v3  ;;  %v2186_v32 = vsel %vm2176_vm15, %v3814_v6, 0.0 }
 0x42c   : > { %v2112_v19 = vpop.f32.mrf.mxu0 }
 0x42d   : > { %v2203_v31 = vmax.f32 %v2193_v27, 0.0  ;;  %v2164_v29 = vmax.f32 %v2154_v52, 0.0  ;;  %v2145_v11 = vmul.f32 %v4070_v35, %v2112_v19  ;;  %2536 = vrot.lane.b32.xlu1 %v1937_v57, %s3363_s27 }
 0x42e   : > { %v3137_v60 = vpop.f32.mrf.mxu0 }
 0x42f   : > { %v2194_v41 = vadd.f32 %v2184_v40, %v2164_v29  ;;  %v2155_v7 = vadd.f32 %v4075_v8, %v2145_v11  ;;  %v2213_v45 = vmul.f32 %v2203_v31, %v3828_v13  ;;  %v2187_v40 = vsel %vm2177_vm3, %v3849_v24, 0.0 }
 0x430   : > { %v2115_v38 = vpop.f32.mrf.mxu0 }
 0x431   : > { %v2204_v61 = vmax.f32 %v2194_v41, 0.0  ;;  %v2165_v49 = vmax.f32 %v2155_v7, 0.0  ;;  %v2146_v54 = vmul.f32 %v4070_v35, %v2115_v38  ;;  %2558 = vrot.lane.b32.xlu0 %v2213_v45, %s3364_s29  ;;  %v3326_v7 = vld [vmem:[%s3778_s30 + $0x28] sm:$0xff] }
 0x432   : > { %v3138_v51 = vpop.f32.mrf.mxu0  ;;  %vm2178_vm0 = vcmp.eq.s32.totalorder %v3326_v7, 2 }
 0x433   : > { %v2195_v12 = vadd.f32 %v2185_v14, %v2165_v49  ;;  %v2156_v47 = vadd.f32 %v4075_v8, %v2146_v54  ;;  %v2214_v1 = vmul.f32 %v2204_v61, %v4247_v15  ;;  %v2188_v54 = vsel %vm2178_vm0, %v3852_v25, 0.0 }
 0x434   : > { %v2120_v18 = vpop.f32.mrf.mxu0 }
 0x435   : > { %v2205_v56 = vmax.f32 %v2195_v12, 0.0  ;;  %v2166_v53 = vmax.f32 %v2156_v47, 0.0  ;;  %v2147_v62 = vmul.f32 %v4070_v35, %v2120_v18  ;;  %2560 = vrot.lane.b32.xlu1 %v2214_v1, %s3364_s29  ;;  %v3327_v12 = vld [vmem:[%s3778_s30 + $0x30] sm:$0xff] }
 0x436   : > { %v3141_v5 = vpop.f32.mrf.mxu0  ;;  %vm2179_vm2 = vcmp.eq.s32.totalorder %v3327_v12, 2 }
 0x437   : > { %v2196_v27 = vadd.f32 %v2186_v32, %v2166_v53  ;;  %v2157_v52 = vadd.f32 %v4075_v8, %v2147_v62  ;;  %v2215_v57 = vmul.f32 %v2205_v56, %v3846_v23  ;;  %v2189_v53 = vsel %vm2179_vm2, %v3880_v43, 0.0  ;;  %v3328_v5 = vld [vmem:[%s3778_s30 + $0x38] sm:$0xff] }
 0x438   : > { %v2123_v19 = vpop.f32.mrf.mxu0  ;;  %vm2180_vm4 = vcmp.eq.s32.totalorder %v3328_v5, 2 }
 0x439   : > { %v2206_v31 = vmax.f32 %v2196_v27, 0.0  ;;  %v2167_v29 = vmax.f32 %v2157_v52, 0.0  ;;  %v2148_v11 = vmul.f32 %v4070_v35, %v2123_v19  ;;  %2562 = vrot.lane.b32.xlu0 %v2215_v57, %s3364_s29 }
 0x43a   : > { %v3142_v6 = vpop.f32.mrf.mxu0 }
 0x43b   : > { %v2197_v60 = vadd.f32 %v2187_v40, %v2167_v29  ;;  %v2158_v41 = vadd.f32 %v4075_v8, %v2148_v11  ;;  %v2216_v28 = vmul.f32 %v2206_v31, %v4261_v26  ;;  %v2190_v31 = vsel %vm2180_vm4, %v3883_v44, 0.0  ;;  %v3329_v40 = vld [vmem:[%s3778_s30 + $0x40] sm:$0xff] }
 0x43c   : > { %v2128_v45 = vpop.f32.mrf.mxu0  ;;  %vm2181_vm5 = vcmp.eq.s32.totalorder %v3329_v40, 2 }
 0x43d   : > { %v2207_v38 = vmax.f32 %v2197_v60, 0.0  ;;  %v2168_v61 = vmax.f32 %v2158_v41, 0.0  ;;  %v2149_v49 = vmul.f32 %v4070_v35, %v2128_v45  ;;  %2564 = vrot.lane.b32.xlu1 %v2216_v28, %s3364_s29  ;;  %v2191_v45 = vsel %vm2181_vm5, %v3912_v63, 0.0 }
 0x43e   : > { %v3145_v24 = vpop.f32.mrf.mxu0 }
 0x43f   : > { %v2198_v14 = vadd.f32 %v2188_v54, %v2168_v61  ;;  %v2159_v51 = vadd.f32 %v4075_v8, %v2149_v49  ;;  %v2217_v47 = vmul.f32 %v2207_v38, %v3862_v30  ;;  %v3330_v49 = vld [vmem:[%s3778_s30 + $0x48] sm:$0xff]  ;;  %s3365_s30 = smov 48  }
 0x440   : > { %v2131_v10 = vpop.f32.mrf.mxu0  ;;  %vm2182_vm7 = vcmp.eq.s32.totalorder %v3330_v49, 2 }
 0x441   : > { %v2208_v1 = vmax.f32 %v2198_v14, 0.0  ;;  %v2169_v18 = vmax.f32 %v2159_v51, 0.0  ;;  %v2150_v56 = vmul.f32 %v4070_v35, %v2131_v10  ;;  %2566 = vrot.lane.b32.xlu0 %v2217_v47, %s3364_s29  ;;  %v2192_v47 = vsel %vm2182_vm7, %v3915_v20, 0.0 }
 0x442   : > { %v3146_v25 = vpop.f32.mrf.mxu0 }
 0x443   : > { %v2199_v62 = vadd.f32 %v2189_v53, %v2169_v18  ;;  %v2160_v32 = vadd.f32 %v4075_v8, %v2150_v56  ;;  %v2218_v27 = vmul.f32 %v2208_v1, %v4275_v34 }
 0x444   : > { %v2136_v52 = vpop.f32.mrf.mxu0 }
 0x445   : > { %v2209_v48 = vmax.f32 %v2199_v62, 0.0  ;;  %v2170_v57 = vmax.f32 %v2160_v32, 0.0  ;;  %v2151_v19 = vmul.f32 %v4070_v35, %v2136_v52  ;;  %2568 = vrot.lane.b32.xlu1 %v2218_v27, %s3364_s29 }
 0x446   : > { %v3149_v43 = vpop.f32.mrf.mxu0 }
 0x447   : > { %v2200_v29 = vadd.f32 %v2190_v31, %v2170_v57  ;;  %v2161_v11 = vadd.f32 %v4075_v8, %v2151_v19  ;;  %v2219_v6 = vmul.f32 %v2209_v48, %v3877_v42 }
 0x448   : > { %v2139_v60 = vpop.f32.mrf.mxu0 }
 0x449   : > { %v2210_v41 = vmax.f32 %v2200_v29, 0.0  ;;  %v2171_v7 = vmax.f32 %v2161_v11, 0.0  ;;  %v2152_v28 = vmul.f32 %v4070_v35, %v2139_v60  ;;  %2570 = vrot.lane.b32.xlu0 %v2219_v6, %s3364_s29 }
 0x44a   : > { %v3150_v38 = vpop.f32.mrf.mxu0 }
 0x44b   : > { %v2201_v44 = vadd.f32 %v2191_v45, %v2171_v7  ;;  %v2162_v61 = vadd.f32 %v4075_v8, %v2152_v28  ;;  %v2220_v54 = vmul.f32 %v2210_v41, %v4289_v33 }
 0x44c   : > { %v2389_v24 = vpop.f32.mrf.mxu0 }
 0x44d   : > { %v2211_v14 = vmax.f32 %v2201_v44, 0.0  ;;  %v2172_v51 = vmax.f32 %v2162_v61, 0.0  ;;  %v2428_v12 = vmul.f32 %v4070_v35, %v2389_v24  ;;  %2572 = vrot.lane.b32.xlu1 %v2220_v54, %s3364_s29  ;;  %v3331_v61 = vld [vmem:[%s4524_s13] ss:$0 sm:$0xff] }
 0x44e   : > { %v3177_v10 = vpop.f32.mrf.mxu0 }
 0x44f   : > { %v2202_v1 = vadd.f32 %v2192_v47, %v2172_v51  ;;  %v2438_v63 = vadd.f32 %v4075_v8, %v2428_v12  ;;  %v2221_v18 = vmul.f32 %v2211_v14, %v3896_v50 }
 0x450   : > { %v2392_v56 = vpop.f32.mrf.mxu0 }
 0x451   : > { %v2212_v53 = vmax.f32 %v2202_v1, 0.0  ;;  %v2448_v25 = vmax.f32 %v2438_v63, 0.0  ;;  %v2429_v62 = vmul.f32 %v4070_v35, %v2392_v56  ;;  %2574 = vrot.lane.b32.xlu0 %v2221_v18, %s3364_s29 }
 0x452   : > { %v3178_v32 = vpop.f32.mrf.mxu0 }
 0x453   : > { %v2478_v5 = vadd.f32 %v3808_v4, %v2448_v25  ;;  %v2439_v27 = vadd.f32 %v4075_v8, %v2429_v62  ;;  %v2222_v20 = vmul.f32 %v2212_v53, %v4303_v3  ;;  %v4535_v32 = vld [vmem:[#allocation3_spill] sm:$0xff] }
 0x454   : > { %v2397_v52 = vpop.f32.mrf.mxu0 }
 0x455   : > { %v2488_v48 = vmax.f32 %v2478_v5, 0.0  ;;  %v2449_v57 = vmax.f32 %v2439_v27, 0.0  ;;  %v2430_v19 = vmul.f32 %v4070_v35, %v2397_v52  ;;  %2576 = vrot.lane.b32.xlu1 %v2222_v20, %s3364_s29 }
 0x456   : > { %v3181_v31 = vpop.f32.mrf.mxu0 }
 0x457   : > { %v2479_v43 = vadd.f32 %v3818_v9, %v2449_v57  ;;  %v2440_v29 = vadd.f32 %v4075_v8, %v2430_v19  ;;  %v2498_v11 = vmul.f32 %v2488_v48, %v3828_v13  ;;  %v4536_v31 = vld [vmem:[#allocation4_spill] sm:$0xff] }
 0x458   : > { %v2400_v40 = vpop.f32.mrf.mxu0 }
 0x459   : > { %v2489_v4 = vmax.f32 %v2479_v43, 0.0  ;;  %v2450_v6 = vmax.f32 %v2440_v29, 0.0  ;;  %v2431_v60 = vmul.f32 %v4070_v35, %v2400_v40  ;;  %2598 = vrot.lane.b32.xlu0 %v2498_v11, %s3365_s30 }
 0x45a   : > { %v3182_v41 = vpop.f32.mrf.mxu0 }
 0x45b   : > { %v2480_v7 = vadd.f32 %v3841_v21, %v2450_v6  ;;  %v2441_v28 = vadd.f32 %v4075_v8, %v2431_v60  ;;  %v2499_v45 = vmul.f32 %v2489_v4, %v4247_v15  ;;  %v3332_v21 = vld [vmem:[%s4525_s14] ss:$0 sm:$0xff] }
 0x45c   : > { %v2405_v9 = vpop.f32.mrf.mxu0 }
 0x45d   : > { %v2490_v38 = vmax.f32 %v2480_v7, 0.0  ;;  %v2451_v44 = vmax.f32 %v2441_v28, 0.0  ;;  %v2432_v49 = vmul.f32 %v3331_v61, %v2405_v9  ;;  %2600 = vrot.lane.b32.xlu1 %v2499_v45, %s3365_s30  ;;  %v4537_v7 = vld [vmem:[#allocation5_spill] sm:$0xff] }
 0x45e   : > { %v3185_v35 = vpop.f32.mrf.mxu0 }
 0x45f   : > { %v2481_v54 = vadd.f32 %v3844_v22, %v2451_v44  ;;  %v2442_v8 = vadd.f32 %v3332_v21, %v2432_v49  ;;  %v2500_v24 = vmul.f32 %v2490_v38, %v3846_v23 }
 0x460   : > { %v2408_v14 = vpop.f32.mrf.mxu0 }
 0x461   : > { %v2491_v51 = vmax.f32 %v2481_v54, 0.0  ;;  %v2452_v12 = vmax.f32 %v2442_v8, 0.0  ;;  %v2433_v47 = vmul.f32 %v3331_v61, %v2408_v14  ;;  %2602 = vrot.lane.b32.xlu0 %v2500_v24, %s3365_s30  ;;  %v4538_v8 = vld [vmem:[#allocation6_spill] sm:$0xff] }
 0x462   : > { %v3186_v10 = vpop.f32.mrf.mxu0 }
 0x463   : > { %v2482_v1 = vadd.f32 %v3874_v39, %v2452_v12  ;;  %v2443_v63 = vadd.f32 %v3332_v21, %v2433_v47  ;;  %v2501_v18 = vmul.f32 %v2491_v51, %v4261_v26  ;;  %v4539_v10 = vld [vmem:[#allocation7_spill] sm:$0xff] }
 0x464   : > { %v2413_v22 = vpop.f32.mrf.mxu0 }
 0x465   : > { %v2492_v56 = vmax.f32 %v2482_v1, 0.0  ;;  %v2453_v53 = vmax.f32 %v2443_v63, 0.0  ;;  %v2434_v25 = vmul.f32 %v3331_v61, %v2413_v22  ;;  %2604 = vrot.lane.b32.xlu1 %v2501_v18, %s3365_s30 }
 0x466   : > { %v3189_v62 = vpop.f32.mrf.mxu0 }
 0x467   : > { %v2483_v5 = vadd.f32 %v4535_v32, %v2453_v53  ;;  %v2444_v27 = vadd.f32 %v3332_v21, %v2434_v25  ;;  %v2502_v20 = vmul.f32 %v2492_v56, %v3862_v30 }
 0x468   : > { %v2416_v52 = vpop.f32.mrf.mxu0 }
 0x469   : > { %v2493_v48 = vmax.f32 %v2483_v5, 0.0  ;;  %v2454_v57 = vmax.f32 %v2444_v27, 0.0  ;;  %v2435_v19 = vmul.f32 %v3331_v61, %v2416_v52  ;;  %2606 = vrot.lane.b32.xlu0 %v2502_v20, %s3365_s30 }
 0x46a   : > { %v3190_v39 = vpop.f32.mrf.mxu0 }
 0x46b   : > { %v2484_v43 = vadd.f32 %v4536_v31, %v2454_v57  ;;  %v2445_v29 = vadd.f32 %v3332_v21, %v2435_v19  ;;  %v2503_v11 = vmul.f32 %v2493_v48, %v4275_v34 }
 0x46c   : > { %v2421_v40 = vpop.f32.mrf.mxu0 }
 0x46d   : > { %v2494_v4 = vmax.f32 %v2484_v43, 0.0  ;;  %v2455_v6 = vmax.f32 %v2445_v29, 0.0  ;;  %v2436_v60 = vmul.f32 %v3331_v61, %v2421_v40  ;;  %2608 = vrot.lane.b32.xlu1 %v2503_v11, %s3365_s30  ;;  %v1583_v29 = vmax.f32 %v4081_v46, 0.0 }
 0x46e   : > { %v3193_v41 = vpop.f32.mrf.mxu0 }
 0x46f   : > { %v2485_v28 = vadd.f32 %v4537_v7, %v2455_v6  ;;  %v2446_v45 = vadd.f32 %v3332_v21, %v2436_v60  ;;  %v2504_v9 = vmul.f32 %v2494_v4, %v3877_v42  ;;  %v1584_v4 = vmax.f32 %v4086_v59, 0.0 }
 0x470   : > { %v2424_v38 = vpop.f32.mrf.mxu0  ;;  %v1643_v6 = vmul.f32 %v3828_v13, %v1583_v29  ;;  %v1585_v59 = vmax.f32 %v4091_v0, 0.0 }
 0x471   : > { %v2495_v44 = vmax.f32 %v2485_v28, 0.0  ;;  %v2456_v49 = vmax.f32 %v2446_v45, 0.0  ;;  %v2437_v35 = vmul.f32 %v3331_v61, %v2424_v38  ;;  %2610 = vrot.lane.b32.xlu0 %v2504_v9, %s3365_s30  ;;  %v1644_v13 = vmul.f32 %v4247_v15, %v1584_v4 }
 0x472   : > { %v3194_v54 = vpop.f32.mrf.mxu0 }
 0x473   : > { %v2486_v24 = vadd.f32 %v4538_v8, %v2456_v49  ;;  %v2447_v14 = vadd.f32 %v3332_v21, %v2437_v35  ;;  %v2505_v51 = vmul.f32 %v2495_v44, %v4289_v33  ;;  %v1586_v44 = vmax.f32 %v4096_v2, 0.0 }
 0x474   : > { %v1645_v49 = vmul.f32 %v3846_v23, %v1585_v59  ;;  %v1587_v8 = vmax.f32 %v4101_v16, 0.0 }
 0x475   : > { %v2496_v12 = vmax.f32 %v2486_v24, 0.0  ;;  %v2457_v47 = vmax.f32 %v2447_v14, 0.0  ;;  %2612 = vrot.lane.b32.xlu1 %v2505_v51, %s3365_s30  ;;  %v1646_v24 = vmul.f32 %v4261_v26, %v1586_v44 }
 0x477   : > { %v2487_v1 = vadd.f32 %v4539_v10, %v2457_v47  ;;  %v2506_v63 = vmul.f32 %v2496_v12, %v3896_v50  ;;  %v1588_v12 = vmax.f32 %v4106_v17, 0.0  ;;  %v1647_v47 = vmul.f32 %v3862_v30, %v1587_v8 }
 0x479   : > { %v2497_v18 = vmax.f32 %v2487_v1, 0.0  ;;  %2614 = vrot.lane.b32.xlu0 %v2506_v63, %s3365_s30  ;;  %v1589_v63 = vmax.f32 %v4111_v36, 0.0 }
 0x47b   : > { %v2507_v61 = vmul.f32 %v2497_v18, %v4303_v3  ;;  %v2519_v22 = vpop.permute.xlu0 %2518  ;;  %v1648_v18 = vmul.f32 %v4275_v34, %v1588_v12 }
 0x47c   : > { %v2628_v60 = vsel %vm1278_vm6, %v1643_v6, %v2519_v22 }
 0x47d   : > { %2616 = vrot.lane.b32.xlu1 %v2507_v61, %s3365_s30 }
 0x47f   : > { %v2521_v56 = vpop.permute.xlu1 %2520 }
 0x480   : > { %v2629_v45 = vsel %vm1278_vm6, %v1644_v13, %v2521_v56  ;;  %v1590_v56 = vmax.f32 %v4116_v37, 0.0 }
 0x483   : > { %v2523_v21 = vpop.permute.xlu0 %2522 }
 0x484   : > { %v2630_v0 = vsel %vm1278_vm6, %v1645_v49, %v2523_v21  ;;  %v1649_v21 = vmul.f32 %v3877_v42, %v1589_v63 }
 0x487   : > { %v2525_v53 = vpop.permute.xlu1 %2524 }
 0x488   : > { %v2631_v23 = vsel %vm1278_vm6, %v1646_v24, %v2525_v53 }
 0x48b   : > { %v2527_v25 = vpop.permute.xlu0 %2526 }
 0x48c   : > { %v2632_v16 = vsel %vm1278_vm6, %v1647_v47, %v2527_v25 }
 0x48f   : > { %v2529_v62 = vpop.permute.xlu1 %2528 }
 0x490   : > { %v2633_v30 = vsel %vm1278_vm6, %v1648_v18, %v2529_v62  ;;  %v1591_v62 = vmax.f32 %v4121_v55, 0.0 }
 0x493   : > { %v4407_v32 = vpop.permute.xlu0 %2530 }
 0x494   : > { %v2634_v36 = vsel %vm1278_vm6, %v1649_v21, %v4407_v32  ;;  %v1592_v32 = vmax.f32 %v4126_v58, 0.0 }
 0x497   : > { %v4409_v5 = vpop.permute.xlu1 %2532 }
 0x49b   : > { %v4411_v27 = vpop.permute.xlu0 %2534 }
 0x49f   : > { %v4413_v20 = vpop.permute.xlu1 %2536 }
 0x4a3   : > { %v2559_v52 = vpop.permute.xlu0 %2558 }
 0x4a4   : > { %v2639_v46 = vsel %vm2638_vm8, %v2628_v60, %v2559_v52  ;;  %v1650_v52 = vmul.f32 %v4289_v33, %v1590_v56 }
 0x4a6   : > { %v2635_v42 = vsel %vm1278_vm6, %v1650_v52, %v4409_v5  ;;  %v1652_v5 = vmul.f32 %v4303_v3, %v1592_v32 }
 0x4a7   : > { %v2561_v48 = vpop.permute.xlu1 %2560 }
 0x4a8   : > { %v2640_v9 = vsel %vm2638_vm8, %v2629_v45, %v2561_v48 }
 0x4ab   : > { %v2563_v57 = vpop.permute.xlu0 %2562 }
 0x4ac   : > { %v2641_v15 = vsel %vm2638_vm8, %v2630_v0, %v2563_v57 }
 0x4af   : > { %v2565_v19 = vpop.permute.xlu1 %2564 }
 0x4b0   : > { %v2642_v2 = vsel %vm2638_vm8, %v2631_v23, %v2565_v19  ;;  %v1651_v19 = vmul.f32 %v3896_v50, %v1591_v62  ;;  %v2637_v50 = vsel %vm1278_vm6, %v1652_v5, %v4413_v20 }
 0x4b2   : > { %v2636_v33 = vsel %vm1278_vm6, %v1651_v19, %v4411_v27 }
 0x4b3   : > { %v2567_v39 = vpop.permute.xlu0 %2566 }
 0x4b4   : > { %v2643_v26 = vsel %vm2638_vm8, %v2632_v16, %v2567_v39 }
 0x4b7   : > { %v2569_v31 = vpop.permute.xlu1 %2568 }
 0x4b8   : > { %v2644_v17 = vsel %vm2638_vm8, %v2633_v30, %v2569_v31 }
 0x4bb   : > { %v2571_v43 = vpop.permute.xlu0 %2570 }
 0x4bc   : > { %v2645_v34 = vsel %vm2638_vm8, %v2634_v36, %v2571_v43 }
 0x4bf   : > { %v2573_v11 = vpop.permute.xlu1 %2572 }
 0x4c0   : > { %v2646_v48 = vsel %vm2638_vm8, %v2635_v42, %v2573_v11 }
 0x4c3   : > { %v4416_v40 = vpop.permute.xlu0 %2574 }
 0x4c4   : > { %v2647_v39 = vsel %vm2638_vm8, %v2636_v33, %v4416_v40 }
 0x4c7   : > { %v4429_v41 = vpop.permute.xlu1 %2576 }
 0x4c8   : > { %v2648_v58 = vsel %vm2638_vm8, %v2637_v50, %v4429_v41 }
 0x4cb   : > { %v2599_v7 = vpop.permute.xlu0 %2598 }
 0x4cc   : > { %v2650_v28 = vsel %vm2649_vm9, %v2639_v46, %v2599_v7 }
 0x4cd   : > { %2660 = vst.msk [vmem:[%s4426_s25] sm:$0xff] %vm623_vm1, %v2650_v28 }
 0x4cf   : > { %v2601_v38 = vpop.permute.xlu1 %2600 }
 0x4d0   : > { %v2651_v35 = vsel %vm2649_vm9, %v2640_v9, %v2601_v38 }
 0x4d1   : > { %2661 = vst.msk [vmem:[%s4426_s25 + $0x8] sm:$0xff] %vm623_vm1, %v2651_v35 }
 0x4d3   : > { %v2603_v54 = vpop.permute.xlu0 %2602 }
 0x4d4   : > { %v2652_v14 = vsel %vm2649_vm9, %v2641_v15, %v2603_v54 }
 0x4d5   : > { %2662 = vst.msk [vmem:[%s4426_s25 + $0x10] sm:$0xff] %vm623_vm1, %v2652_v14 }
 0x4d7   : > { %v2605_v51 = vpop.permute.xlu1 %2604 }
 0x4d8   : > { %v2653_v10 = vsel %vm2649_vm9, %v2642_v2, %v2605_v51 }
 0x4d9   : > { %2663 = vst.msk [vmem:[%s4426_s25 + $0x18] sm:$0xff] %vm623_vm1, %v2653_v10 }
 0x4db   : > { %v2607_v1 = vpop.permute.xlu0 %2606 }
 0x4dc   : > { %v2654_v61 = vsel %vm2649_vm9, %v2643_v26, %v2607_v1 }
 0x4dd   : > { %2664 = vst.msk [vmem:[%s4426_s25 + $0x20] sm:$0xff] %vm623_vm1, %v2654_v61 }
 0x4df   : > { %v2609_v22 = vpop.permute.xlu1 %2608 }
 0x4e0   : > { %v2655_v53 = vsel %vm2649_vm9, %v2644_v17, %v2609_v22 }
 0x4e1   : > { %2665 = vst.msk [vmem:[%s4426_s25 + $0x28] sm:$0xff] %vm623_vm1, %v2655_v53 }
 0x4e3   : > { %v2611_v25 = vpop.permute.xlu0 %2610 }
 0x4e4   : > { %v2656_v37 = vsel %vm2649_vm9, %v2645_v34, %v2611_v25 }
 0x4e5   : > { %2666 = vst.msk [vmem:[%s4426_s25 + $0x30] sm:$0xff] %vm623_vm1, %v2656_v37 }
 0x4e7   : > { %v2613_v57 = vpop.permute.xlu1 %2612 }
 0x4e8   : > { %v2657_v55 = vsel %vm2649_vm9, %v2646_v48, %v2613_v57 }
 0x4e9   : > { %2667 = vst.msk [vmem:[%s4426_s25 + $0x38] sm:$0xff] %vm623_vm1, %v2657_v55 }
 0x4eb   : > { %v2615_v31 = vpop.permute.xlu0 %2614 }
 0x4ec   : > { %v2658_v43 = vsel %vm2649_vm9, %v2647_v39, %v2615_v31 }
 0x4ed   : > { %2668 = vst.msk [vmem:[%s4426_s25 + $0x40] sm:$0xff] %vm623_vm1, %v2658_v43 }
 0x4ef   : > { %v2617_v29 = vpop.permute.xlu1 %2616 }
 0x4f0   : > { %v2659_v11 = vsel %vm2649_vm9, %v2648_v58, %v2617_v29 }
 0x4f1   : > { %2669 = vst.msk [vmem:[%s4426_s25 + $0x48] sm:$0xff] %vm623_vm1, %v2659_v11 }
 0x4f2 PF: > { %s25_s20 = sadd.s32 1, %s3355_s20   ;;  %s4540_s18 = smov %s3351_s19 }
 0x4f3   : > { %p22_p5 = scmp.ge.s32.totalorder %s25_s20, 4   ;;  %s4541_s19 = smov %s4543_s21 }
 0x4f5   :  { %24 = sbr.rel (!%p22_p5) target bundleno = 2 (0x2), region = 120 }

// kernel: decoder_forward.11
= control target key start
LH: loop header
LB: loop body
LE: loop exit
PB: predicated region body
PF: predicated region fallthrough
CT: control target
= control target key end

     0   :  { %s580_s12 = smov 0   ;;  %s582_s13 = smov 0   ;;  %s670_s0 = inlined_call_operand.vmem [shape: f32[2,288,16], index: 0, kind: input, shape index: {}]   ;;  %s671_s1 = inlined_call_operand.vmem [shape: bf16[16,20], index: 1, kind: input, shape index: {}]   ;;  %s672_s2 = inlined_call_operand.vmem [shape: f32[1,20], index: 2, kind: input, shape index: {}]   ;;  %s673_s3 = inlined_call_operand.vmem [shape: f32[2,288,20], index: 3, kind: output, shape index: {}]  }
   0x1   :  { %s584_s14 = smov 0   ;;  %s586_s15 = smov 0  }
   0x2   :  { %s588_s16 = smov 0  }
   0x3 LB: > { %s22_s17 = sadd.s32 1, %s548_s14  ;;  %s25_s18 = sadd.s32 1, %s552_s15  ;;  %s556_s16 = sphi %s588_s16, %s13_s16   ;;  %s552_s15 = sphi %s586_s15, %s677_s15   ;;  %s548_s14 = sphi %s584_s14, %s676_s14   ;;  %s544_s13 = sphi %s582_s13, %s675_s13   ;;  %s540_s12 = sphi %s580_s12, %s674_s12  }
   0x4   : > { %p23_p0 = scmp.ge.s32.totalorder %s22_s17, 4  ;;  %p432_p1 = scmp.ge.s32.totalorder %s556_s16, 1 }
   0x5   : > { %p158_p2 = scmp.lt.s32.totalorder %s556_s16, 9 }
   0x6   : > { %s679_s17 = smov (%p23_p0, %s22_s17), 0  ;;  %s681_s18 = smov (!%p23_p0, %s25_s18), %s552_s15 }
   0x7   : > { %p159_p3 = pnand %p432_p1, %p158_p2  ;;  %p27_p4 = scmp.ge.s32.totalorder %s681_s18, 2 }
   0x8   : > { %s190_s21 = smul.u32 (!%p159_p3), 9, %s540_s12  ;;  %p191_p5 = scmp.lt.s32.totalorder (!%p159_p3), %s544_s13, 1 }
   0x9   : > { %s683_s18 = smov (%p27_p4, %s681_s18), 0  ;;  %162 = sbr.rel (%p159_p3) target bundleno = 239 (0xef), region = 32 }
   0xa   : > { %p193_p6 = scmp.lt.s32.totalorder (!%p159_p3), %s190_s21, 35 }
   0xe   : > { %v517_v0 = vld [vmem:[%s671_s1] sm:$0xff]   ;;  %v558_v1 = vmov 0.0   ;;  %vm559_vm0 = vmmov 0   ;;  %s685_s13 = smov (!%p191_p5, %s544_s13), 1  ;;  %s687_s21 = smov (!%p193_p6, %s190_s21), 35  ;;  %vm240_vm1 = vcmask 130048  }
   0xf   : > { %450 = vmatprep.subr.bf16.mxu0 %v558_v1  ;;  %472 = vmatprep.subr.bf16.mxu1 %v558_v1  ;;  %s474_s22 = smul.u32 36, %s685_s13  ;;  %v435_v16 = vld [vmem:[%s672_s2] ss:$0 sm:$0xff]  ;;  %vm328_vm2 = vcmask 162816  }
  0x10   : > { %451 = vmatpush3.bf16.msra.mxu0 %v517_v0  ;;  %452 = vmatprep.mubr.msk.bf16.mxu0 %vm559_vm0, %v558_v1 }
  0x11   : > { %473 = vmatpush3.bf16.msra.mxu1 %v517_v0  ;;  %464 = vmatprep.mubr.msk.bf16.mxu1 %vm559_vm0, %v558_v1  ;;  %s196_s23 = sadd.s32 %s474_s22, %s687_s21 }
  0x12   : > { %s433_s24 = sshll.u32 %s196_s23, 3 }
  0x13   : > { %s198_s27 = scalar_lea.vmem %s670_s0, %s433_s24  ;;  %s635_s5 = scalar_lea.vmem %s673_s3, %s433_s24 }
  0x14   : > { %v211_v2 = vld [vmem:[%s198_s27] sm:$0xff]  ;;  %v212_v3 = vld [vmem:[%s198_s27 + $0x8] sm:$0xff]  ;;  %v217_v4 = vld [vmem:[%s198_s27 + $0x30] sm:$0xff] }
  0x15   : > { %v220_v5 = vpack.c.bf16 %v212_v3, %v211_v2  ;;  %v218_v6 = vld [vmem:[%s198_s27 + $0x38] sm:$0xff]  ;;  %v213_v8 = vld [vmem:[%s198_s27 + $0x10] sm:$0xff]  ;;  %v219_v10 = vld [vmem:[%s198_s27 + $0x40] sm:$0xff] }
  0x16   : > { %v223_v7 = vpack.c.bf16 %v218_v6, %v217_v4  ;;  %v214_v9 = vld [vmem:[%s198_s27 + $0x18] sm:$0xff]  ;;  %v224_v12 = vpack.c.bf16 %v219_v10, %v219_v10  ;;  %v215_v13 = vld [vmem:[%s198_s27 + $0x20] sm:$0xff]  ;;  %v216_v14 = vld [vmem:[%s198_s27 + $0x28] sm:$0xff] }
  0x17   : > { %453 = vmatmul.mubr.msk.bf16.vlgmr.msra.gmra.mxu0 %vm240_vm1, %v220_v5  ;;  %v221_v11 = vpack.c.bf16 %v214_v9, %v213_v8  ;;  %v222_v15 = vpack.c.bf16 %v216_v14, %v215_v13 }
  0x18   : > { %465 = vmatmul.mubr.msk.bf16.vlgmr.msra.gmra.mxu1 %vm240_vm1, %v223_v7  ;;  %456 = vmatprep.mubr.msk.bf16.mxu0 %vm559_vm0, %v558_v1 }
  0x19   : > { %468 = vmatprep.mubr.msk.bf16.mxu1 %vm559_vm0, %v558_v1 }
  0x1f   : > { %457 = vmatmul.mubr.msk.bf16.gmra.mxu0 %vm240_vm1, %v221_v11 }
  0x20   : > { %469 = vmatmul.mubr.msk.bf16.gmra.mxu1 %vm240_vm1, %v224_v12  ;;  %460 = vmatprep.mubr.msk.bf16.mxu0 %vm559_vm0, %v558_v1 }
  0x27   : > { %461 = vmatmul.mubr.msk.bf16.gmra.mxu0 %vm240_vm1, %v222_v15 }
  0xd7   : > { %v290_v17 = vpop.f32.mrf.mxu0 }
  0xd8   : > { %v291_v18 = vadd.f32 %v435_v16, %v290_v17  ;;  %v314_v19 = vpop.f32.mrf.mxu1 }
  0xd9   : > { %v454_v20 = vpop.f32.mrf.mxu0  ;;  %v315_v21 = vadd.f32 %v435_v16, %v314_v19 }
  0xda   : > { %329 = vst.msk [vmem:[%s635_s5] sm:$0xff] %vm328_vm2, %v291_v18  ;;  %v466_v22 = vpop.f32.mrf.mxu1 }
  0xdb   : > { %335 = vst.msk [vmem:[%s635_s5 + $0x30] sm:$0xff] %vm328_vm2, %v315_v21  ;;  %v293_v23 = vpop.f32.mrf.mxu0 }
  0xdc   : > { %v294_v24 = vadd.f32 %v435_v16, %v293_v23  ;;  %v317_v25 = vpop.f32.mrf.mxu1 }
  0xdd   : > { %v455_v26 = vpop.f32.mrf.mxu0  ;;  %v318_v27 = vadd.f32 %v435_v16, %v317_v25 }
  0xde   : > { %330 = vst.msk [vmem:[%s635_s5 + $0x8] sm:$0xff] %vm328_vm2, %v294_v24  ;;  %v467_v28 = vpop.f32.mrf.mxu1 }
  0xdf   : > { %336 = vst.msk [vmem:[%s635_s5 + $0x38] sm:$0xff] %vm328_vm2, %v318_v27  ;;  %v298_v29 = vpop.f32.mrf.mxu0 }
  0xe0   : > { %v299_v30 = vadd.f32 %v435_v16, %v298_v29  ;;  %v322_v31 = vpop.f32.mrf.mxu1 }
  0xe1   : > { %v458_v32 = vpop.f32.mrf.mxu0  ;;  %v323_v33 = vadd.f32 %v435_v16, %v322_v31 }
  0xe2   : > { %331 = vst.msk [vmem:[%s635_s5 + $0x10] sm:$0xff] %vm328_vm2, %v299_v30  ;;  %v470_v34 = vpop.f32.mrf.mxu1 }
  0xe3   : > { %337 = vst.msk [vmem:[%s635_s5 + $0x40] sm:$0xff] %vm328_vm2, %v323_v33  ;;  %v301_v35 = vpop.f32.mrf.mxu0 }
  0xe4   : > { %v302_v36 = vadd.f32 %v435_v16, %v301_v35  ;;  %v325_v37 = vpop.f32.mrf.mxu1 }
  0xe5   : > { %v459_v38 = vpop.f32.mrf.mxu0 }
  0xe6   : > { %332 = vst.msk [vmem:[%s635_s5 + $0x18] sm:$0xff] %vm328_vm2, %v302_v36  ;;  %v471_v39 = vpop.f32.mrf.mxu1 }
  0xe7   : > { %v306_v40 = vpop.f32.mrf.mxu0 }
  0xe8   : > { %v307_v41 = vadd.f32 %v435_v16, %v306_v40 }
  0xe9   : > { %v462_v42 = vpop.f32.mrf.mxu0 }
  0xea   : > { %333 = vst.msk [vmem:[%s635_s5 + $0x20] sm:$0xff] %vm328_vm2, %v307_v41 }
  0xeb   : > { %v309_v43 = vpop.f32.mrf.mxu0 }
  0xec   : > { %v310_v44 = vadd.f32 %v435_v16, %v309_v43 }
  0xed   : > { %v463_v45 = vpop.f32.mrf.mxu0 }
  0xee   : > { %334 = vst.msk [vmem:[%s635_s5 + $0x28] sm:$0xff] %vm328_vm2, %v310_v44 }
  0xef PF: > { %s13_s16 = sadd.s32 1, %s556_s16   ;;  %s674_s12 = smov %s548_s14 }
  0xf0   : > { %p10_p7 = scmp.ge.s32.totalorder %s13_s16, 10   ;;  %s675_s13 = smov %s552_s15 }
  0xf1   : > { %s676_s14 = smov %s679_s17  ;;  %s677_s15 = smov %s683_s18 }
  0xf2   :  { %12 = sbr.rel (!%p10_p7) target bundleno = 3 (0x3), region = 62 }

// kernel: decoder_forward.10
= control target key start
LH: loop header
LB: loop body
LE: loop exit
PB: predicated region body
PF: predicated region fallthrough
CT: control target
= control target key end

     0   :  { %s2126_s17 = smov 0   ;;  %s2128_s18 = smov 0   ;;  %s2553_s0 = inlined_call_operand.vmem [shape: f32[2,324,16], index: 0, kind: input, shape index: {}]   ;;  %s2554_s1 = inlined_call_operand.vmem [shape: f32[324,1], index: 1, kind: input, shape index: {}]   ;;  %s2555_s2 = inlined_call_operand.vmem [shape: bf16[16,4], index: 2, kind: input, shape index: {}]   ;;  %s2556_s3 = inlined_call_operand.vmem [shape: f32[1,4], index: 3, kind: input, shape index: {}]   ;;  %s2557_s4 = inlined_call_operand.vmem [shape: f32[1,4], index: 4, kind: input, shape index: {}]   ;;  %s2558_s5 = inlined_call_operand.vmem [shape: bf16[36,4], index: 5, kind: input, shape index: {}]   ;;  %s2559_s6 = inlined_call_operand.vmem [shape: f32[1,4], index: 6, kind: input, shape index: {}]   ;;  %s2560_s7 = inlined_call_operand.vmem [shape: f32[1,4], index: 7, kind: input, shape index: {}]   ;;  %s2561_s8 = inlined_call_operand.vmem [shape: bf16[4,16], index: 8, kind: input, shape index: {}]   ;;  %s2562_s9 = inlined_call_operand.vmem [shape: f32[1,16], index: 9, kind: input, shape index: {}]   ;;  %s2563_s10 = inlined_call_operand.vmem [shape: f32[1,16], index: 10, kind: input, shape index: {}]   ;;  %s2564_s11 = inlined_call_operand.vmem [shape: f32[2,288,16], index: 11, kind: output, shape index: {}]  }
   0x1   :  { %s2130_s19 = smov 0   ;;  %s2132_s20 = smov 0  }
   0x2   :  { %s2134_s21 = smov 0  }
   0x3 LB: > { %s30_s22 = sadd.s32 1, %s2045_s19  ;;  %s33_s23 = sadd.s32 1, %s2049_s20  ;;  %s2053_s21 = sphi %s2134_s21, %s21_s21   ;;  %s2049_s20 = sphi %s2132_s20, %s2568_s20   ;;  %s2045_s19 = sphi %s2130_s19, %s2567_s19   ;;  %s2041_s18 = sphi %s2128_s18, %s2566_s18   ;;  %s2037_s17 = sphi %s2126_s17, %s2565_s17  }
   0x4   : > { %p31_p0 = scmp.ge.s32.totalorder %s30_s22, 4  ;;  %p1640_p1 = scmp.ge.s32.totalorder %s2053_s21, 1 }
   0x5   : > { %p351_p2 = scmp.lt.s32.totalorder %s2053_s21, 9 }
   0x6   : > { %s2570_s22 = smov (%p31_p0, %s30_s22), 0  ;;  %s2572_s23 = smov (!%p31_p0, %s33_s23), %s2049_s20 }
   0x7   : > { %p352_p3 = pnand %p1640_p1, %p351_p2  ;;  %p35_p4 = scmp.ge.s32.totalorder %s2572_s23, 2 }
   0x8   : > { %p395_p5 = scmp.lt.s32.totalorder (!%p352_p3), %s2041_s18, 1  ;;  %s411_s26 = smul.u32 (!%p352_p3), 72, %s2037_s17 }
   0x9   : > { %s2574_s23 = smov (%p35_p4, %s2572_s23), 0  ;;  %355 = sbr.rel (%p352_p3) target bundleno = 848 (0x350), region = 64 }
   0xa   : > { %s2171_s29 = scalar_lea.vmem (!%p352_p3), %s2554_s1, %s411_s26  ;;  %s2059_s12 = smov (!%p352_p3), 8  }
   0xb   : > { %s2060_s16 = smov (!%p352_p3), 16   ;;  %s2061_s24 = smov (!%p352_p3), 12  }
   0xc   : > { %s2062_s27 = smov (!%p352_p3), 20   ;;  %s2063_s28 = smov (!%p352_p3), 24  }
   0xd   : > { %s2064_s13 = smov (!%p352_p3), 28  }
   0xe   : > { %v2011_v0 = vld [vmem:[%s2555_s2] sm:$0xff]   ;;  %v2055_v1 = vmov 0.0   ;;  %vm2056_vm0 = vmmov 0   ;;  %s2576_s18 = smov (!%p395_p5, %s2041_s18), 1  ;;  %v2057_v2 = vmov 0   ;;  %v430_v4 = vld [vmem:[%s2171_s29 + $0x10] sm:$0xff] }
   0xf   : > { %1712 = vmatprep.subr.bf16.mxu0 %v2055_v1  ;;  %1790 = vmatprep.subr.bf16.mxu1 %v2055_v1  ;;  %s1796_s30 = smul.u32 328, %s2576_s18  ;;  %v428_v3 = vld [vmem:[%s2171_s29] sm:$0xff]  ;;  %v429_v5 = vld [vmem:[%s2171_s29 + $0x8] sm:$0xff]  ;;  %v431_v6 = vld [vmem:[%s2171_s29 + $0x18] sm:$0xff]  ;;  %vm457_vm1 = vcmask 130048   ;;  %vm708_vm2 = vcmask 31744  }
  0x10   : > { %1713 = vmatpush3.bf16.msra.mxu0 %v2011_v0  ;;  %1714 = vmatprep.mubr.msk.bf16.mxu0 %vm2056_vm0, %v2055_v1  ;;  %v432_v10 = vld [vmem:[%s2171_s29 + $0x20] sm:$0xff]  ;;  %v433_v11 = vld [vmem:[%s2171_s29 + $0x28] sm:$0xff]  ;;  %v434_v14 = vld [vmem:[%s2171_s29 + $0x30] sm:$0xff]  ;;  %709 = vst.msk [vmem:[#allocation2] sm:$0xff] %vm708_vm2, %v2055_v1  ;;  %vm1186_vm3 = vcmask 1041408   ;;  %vm724_vm4 = vcmask 27648  }
  0x11   : > { %1849 = vset.pattern.permute.xlu0 %v2057_v2  ;;  %1850 = vset.pattern.permute.xlu1 %v2057_v2  ;;  %s399_s14 = scalar_lea.vmem %s2553_s0, %s1796_s30  ;;  %v435_v15 = vld [vmem:[%s2171_s29 + $0x38] sm:$0xff]  ;;  %v436_v17 = vld [vmem:[%s2171_s29 + $0x40] sm:$0xff]  ;;  %v437_v18 = vld [vmem:[%s2171_s29 + $0x48] sm:$0xff]  ;;  %710 = vst.msk [vmem:[#allocation2 + $0x74] sm:$0xff] %vm708_vm2, %v2055_v1  ;;  %s2058_s30 = smov 4   ;;  %vm1076_vm5 = vcmask 64512  }
  0x12   : > { %1742 = vmatprep.subr.bf16.mxu0 %v2055_v1  ;;  %1756 = vmatprep.mubr.msk.bf16.mxu1 %vm2056_vm0, %v2055_v1  ;;  %s2184_s15 = scalar_lea.vmem %s399_s14, %s411_s26  ;;  %v438_v21 = vld [vmem:[%s2171_s29 + $0x50] sm:$0xff]  ;;  %v439_v22 = vld [vmem:[%s2171_s29 + $0x58] sm:$0xff]  ;;  %v440_v24 = vld [vmem:[%s2171_s29 + $0x60] sm:$0xff]  ;;  %s2065_s14 = smov 32   ;;  %vm1086_vm6 = vcmask 97280   ;;  %vm1105_vm7 = vcmask 162816  }
  0x13   : > { %626 = vperm.xlu0 %1849, %v428_v3   ;;  %636 = vperm.xlu1 %1850, %v430_v4   ;;  %v413_v7 = vld [vmem:[%s2184_s15] sm:$0xff]  ;;  %v414_v8 = vld [vmem:[%s2184_s15 + $0x8] sm:$0xff]  ;;  %v415_v12 = vld [vmem:[%s2184_s15 + $0x10] sm:$0xff]  ;;  %vm1115_vm8 = vcmask 195584   ;;  %vm1125_vm9 = vcmask 228352   ;;  %vm1135_vm10 = vcmask 261120  }
  0x14   : > { %v442_v9 = vpack.c.bf16 %v414_v8, %v413_v7  ;;  %v416_v13 = vld [vmem:[%s2184_s15 + $0x18] sm:$0xff]  ;;  %v417_v19 = vld [vmem:[%s2184_s15 + $0x20] sm:$0xff]  ;;  %v418_v20 = vld [vmem:[%s2184_s15 + $0x28] sm:$0xff]  ;;  %vm1170_vm11 = vcmask 293888   ;;  %s400_s26 = smul.u32 9, %s2037_s17 }
  0x15   : > { %v443_v16 = vpack.c.bf16 %v416_v13, %v415_v12  ;;  %v444_v23 = vpack.c.bf16 %v418_v20, %v417_v19  ;;  %v441_v25 = vld [vmem:[%s2171_s29 + $0x68] sm:$0xf]  ;;  %v419_v26 = vld [vmem:[%s2184_s15 + $0x30] sm:$0xff]  ;;  %v420_v27 = vld [vmem:[%s2184_s15 + $0x38] sm:$0xff] }
  0x16   : > { %1715 = vmatmul.mubr.msk.bf16.vlgmr.msra.gmra.mxu0 %vm457_vm1, %v442_v9  ;;  %v445_v28 = vpack.c.bf16 %v420_v27, %v419_v26  ;;  %v421_v29 = vld [vmem:[%s2184_s15 + $0x40] sm:$0xff]  ;;  %v422_v30 = vld [vmem:[%s2184_s15 + $0x48] sm:$0xff]  ;;  %v423_v32 = vld [vmem:[%s2184_s15 + $0x50] sm:$0xff]  ;;  %p403_p6 = scmp.lt.s32.totalorder %s400_s26, 35 }
  0x17   : > { %631 = vperm.xlu0 %1849, %v429_v5   ;;  %641 = vperm.xlu1 %1850, %v431_v6   ;;  %v446_v31 = vpack.c.bf16 %v422_v30, %v421_v29  ;;  %v424_v33 = vld [vmem:[%s2184_s15 + $0x58] sm:$0xff]  ;;  %v425_v35 = vld [vmem:[%s2184_s15 + $0x60] sm:$0xff]  ;;  %v426_v36 = vld [vmem:[%s2184_s15 + $0x68] sm:$0xf] }
  0x18   : > { %1718 = vmatprep.mubr.msk.bf16.mxu0 %vm2056_vm0, %v2055_v1  ;;  %v447_v34 = vpack.c.bf16 %v424_v33, %v423_v32  ;;  %v448_v37 = vpack.c.bf16 %v426_v36, %v425_v35  ;;  %v2012_v38 = vld [vmem:[%s2558_s5 + $0x10] ss:$0 sps:$4 sm:$0x33]   ;;  %v2242_v40 = vld [vmem:[%s2556_s3] ss:$0 sm:$0xff]  ;;  %s2578_s26 = smov (!%p403_p6, %s400_s26), 35 }
  0x19   : > { %v1188_v39 = vsel %vm1186_vm3, %v2012_v38, 0  ;;  %v2249_v42 = vld [vmem:[%s2557_s4] ss:$0 sm:$0xff] }
  0x1a   : > { %1743 = vmatpush3.bf16.msra.mxu0 %v1188_v39  ;;  %1793 = vmatpush3.bf16.msra.mxu1 %v1188_v39 }
  0x1b   : > { %646 = vperm.xlu0 %1849, %v432_v10   ;;  %651 = vperm.xlu1 %1850, %v433_v11  }
  0x1c   : > { %1744 = vmatprep.subr.bf16.mxu0 %v2055_v1  ;;  %1791 = vmatprep.subr.bf16.mxu1 %v2055_v1 }
  0x1e   : > { %1719 = vmatmul.mubr.msk.bf16.gmra.mxu0 %vm457_vm1, %v443_v16 }
  0x1f   : > { %656 = vperm.xlu0 %1849, %v434_v14   ;;  %661 = vperm.xlu1 %1850, %v435_v15  }
  0x20   : > { %1722 = vmatprep.mubr.msk.bf16.mxu0 %vm2056_vm0, %v2055_v1 }
  0x23   : > { %666 = vperm.xlu0 %1849, %v436_v17   ;;  %671 = vperm.xlu1 %1850, %v437_v18  }
  0x26   : > { %1723 = vmatmul.mubr.msk.bf16.gmra.mxu0 %vm457_vm1, %v444_v23 }
  0x27   : > { %676 = vperm.xlu0 %1849, %v438_v21   ;;  %681 = vperm.xlu1 %1850, %v439_v22  }
  0x28   : > { %1726 = vmatprep.mubr.msk.bf16.mxu0 %vm2056_vm0, %v2055_v1 }
  0x2b   : > { %686 = vperm.xlu0 %1849, %v440_v24   ;;  %691 = vperm.xlu1 %1850, %v441_v25  }
  0x2e   : > { %1727 = vmatmul.mubr.msk.bf16.gmra.mxu0 %vm457_vm1, %v445_v28 }
  0x2f   : > { %1730 = vmatprep.mubr.msk.bf16.mxu0 %vm2056_vm0, %v2055_v1 }
  0x36   : > { %1731 = vmatmul.mubr.msk.bf16.gmra.mxu0 %vm457_vm1, %v446_v31 }
  0x37   : > { %1734 = vmatprep.mubr.msk.bf16.mxu0 %vm2056_vm0, %v2055_v1 }
  0x3e   : > { %1735 = vmatmul.mubr.msk.bf16.gmra.mxu0 %vm457_vm1, %v447_v34 }
  0x3f   : > { %1738 = vmatprep.mubr.msk.bf16.mxu0 %vm2056_vm0, %v2055_v1 }
  0x46   : > { %1739 = vmatmul.mubr.msk.bf16.gmra.mxu0 %vm457_vm1, %v448_v37  ;;  %v2013_v37 = vld [vmem:[%s2558_s5 + $0x8] sm:$0xff]  }
  0x47   : > { %1748 = vmatprep.mubr.msk.bf16.mxu0 %vm2056_vm0, %v2055_v1  ;;  %1745 = vmatpush3.bf16.msra.mxu0 %v2013_v37 }
  0x48   : > { %1746 = vmatprep.subr.bf16.mxu0 %v2055_v1  ;;  %1794 = vmatpush3.bf16.msra.mxu1 %v2013_v37 }
  0x49   : > { %1792 = vmatprep.subr.bf16.mxu1 %v2055_v1 }
  0x8e   : > { %v627_v46 = vpop.permute.xlu0 %626  ;;  %v637_v60 = vpop.permute.xlu1 %636 }
  0x92   : > { %v632_v56 = vpop.permute.xlu0 %631  ;;  %v642_v7 = vpop.permute.xlu1 %641 }
  0x96   : > { %v647_v17 = vpop.permute.xlu0 %646  ;;  %v652_v27 = vpop.permute.xlu1 %651 }
  0x9a   : > { %v657_v38 = vpop.permute.xlu0 %656 }
  0xd6   : > { %v513_v41 = vpop.f32.mrf.mxu0 }
  0xd7   : > { %v575_v43 = vmul.f32 %v2242_v40, %v513_v41 }
  0xd8   : > { %v1716_v44 = vpop.f32.mrf.mxu0 }
  0xd9   : > { %v596_v45 = vadd.f32 %v2249_v42, %v575_v43 }
  0xda   : > { %v516_v47 = vpop.f32.mrf.mxu0 }
  0xdb   : > { %v610_v48 = vmax.f32 %v596_v45, 0.0  ;;  %v576_v49 = vmul.f32 %v2242_v40, %v516_v47 }
  0xdc   : > { %v1717_v50 = vpop.f32.mrf.mxu0 }
  0xdd   : > { %v694_v51 = vmul.f32 %v627_v46, %v610_v48  ;;  %v597_v52 = vadd.f32 %v2249_v42, %v576_v49 }
  0xde   : > { %v521_v53 = vpop.f32.mrf.mxu0 }
  0xdf   : > { %711 = vst.msk [vmem:[#allocation2 + $0x8] sm:$0xff] %vm708_vm2, %v694_v51  ;;  %v611_v54 = vmax.f32 %v597_v52, 0.0  ;;  %v577_v55 = vmul.f32 %v2242_v40, %v521_v53  ;;  %v662_v53 = vpop.permute.xlu1 %661 }
  0xe0   : > { %v1720_v57 = vpop.f32.mrf.mxu0 }
  0xe1   : > { %v695_v58 = vmul.f32 %v632_v56, %v611_v54  ;;  %v598_v59 = vadd.f32 %v2249_v42, %v577_v55 }
  0xe2   : > { %v524_v61 = vpop.f32.mrf.mxu0 }
  0xe3   : > { %712 = vst.msk [vmem:[#allocation2 + $0x10] sm:$0xff] %vm708_vm2, %v695_v58  ;;  %v612_v62 = vmax.f32 %v598_v59, 0.0  ;;  %v578_v63 = vmul.f32 %v2242_v40, %v524_v61 }
  0xe4   : > { %v1721_v0 = vpop.f32.mrf.mxu0 }
  0xe5   : > { %v696_v2 = vmul.f32 %v637_v60, %v612_v62  ;;  %v599_v3 = vadd.f32 %v2249_v42, %v578_v63  ;;  %v667_v63 = vpop.permute.xlu0 %666 }
  0xe6   : > { %v529_v4 = vpop.f32.mrf.mxu0  ;;  %v735_v12 = vld [vmem:[#allocation2 + $0x8] sm:$0xff] }
  0xe7   : > { %713 = vst.msk [vmem:[#allocation2 + $0x18] sm:$0xff] %vm708_vm2, %v696_v2  ;;  %v613_v5 = vmax.f32 %v599_v3, 0.0  ;;  %v579_v6 = vmul.f32 %v2242_v40, %v529_v4  ;;  %v2014_v3 = vld [vmem:[%s2558_s5] sm:$0xff]  }
  0xe8   : > { %v1724_v8 = vpop.f32.mrf.mxu0  ;;  %1747 = vmatpush3.bf16.msra.mxu0 %v2014_v3  ;;  %1795 = vmatpush3.bf16.msra.mxu1 %v2014_v3 }
  0xe9   : > { %v697_v9 = vmul.f32 %v642_v7, %v613_v5  ;;  %v600_v10 = vadd.f32 %v2249_v42, %v579_v6  ;;  %1768 = vmatprep.subr.bf16.mxu1 %v2055_v1 }
  0xea   : > { %v532_v11 = vpop.f32.mrf.mxu0  ;;  %v736_v13 = vld [vmem:[#allocation2 + $0x10] sm:$0xff] }
  0xeb   : > { %714 = vst.msk [vmem:[#allocation2 + $0x20] sm:$0xff] %vm708_vm2, %v697_v9  ;;  %v614_v14 = vmax.f32 %v600_v10, 0.0  ;;  %v580_v15 = vmul.f32 %v2242_v40, %v532_v11  ;;  %v1851_v16 = vpack.i.bf16 %v736_v13, %v735_v12  ;;  %v744_v22 = vld [vmem:[#allocation2 + $0x9] sm:$0xff] }
  0xec   : > { %v1725_v18 = vpop.f32.mrf.mxu0 }
  0xed   : > { %v698_v19 = vmul.f32 %v647_v17, %v614_v14  ;;  %v601_v20 = vadd.f32 %v2249_v42, %v580_v15  ;;  %1852 = vrot.lane.b32.xlu0 %v1851_v16, %s2058_s30  ;;  %v672_v14 = vpop.permute.xlu1 %671 }
  0xee   : > { %v537_v21 = vpop.f32.mrf.mxu0  ;;  %v745_v23 = vld [vmem:[#allocation2 + $0x11] sm:$0xff] }
  0xef   : > { %715 = vst.msk [vmem:[#allocation2 + $0x28] sm:$0xff] %vm708_vm2, %v698_v19  ;;  %v615_v24 = vmax.f32 %v601_v20, 0.0  ;;  %v581_v25 = vmul.f32 %v2242_v40, %v537_v21  ;;  %v1856_v26 = vpack.i.bf16 %v745_v23, %v744_v22  ;;  %v737_v32 = vld [vmem:[#allocation2 + $0x18] sm:$0xff] }
  0xf0   : > { %v1728_v28 = vpop.f32.mrf.mxu0 }
  0xf1   : > { %v699_v29 = vmul.f32 %v652_v27, %v615_v24  ;;  %v602_v30 = vadd.f32 %v2249_v42, %v581_v25  ;;  %1857 = vrot.lane.b32.xlu1 %v1856_v26, %s2059_s12  ;;  %v677_v27 = vpop.permute.xlu0 %676 }
  0xf2   : > { %v540_v31 = vpop.f32.mrf.mxu0  ;;  %v738_v33 = vld [vmem:[#allocation2 + $0x20] sm:$0xff] }
  0xf3   : > { %716 = vst.msk [vmem:[#allocation2 + $0x30] sm:$0xff] %vm708_vm2, %v699_v29  ;;  %v616_v34 = vmax.f32 %v602_v30, 0.0  ;;  %v582_v35 = vmul.f32 %v2242_v40, %v540_v31  ;;  %v1861_v36 = vpack.i.bf16 %v738_v33, %v737_v32  ;;  %v755_v44 = vld [vmem:[#allocation2 + $0x1a] sm:$0xff] }
  0xf4   : > { %v1729_v39 = vpop.f32.mrf.mxu0  ;;  %v746_v47 = vld [vmem:[#allocation2 + $0x19] sm:$0xff] }
  0xf5   : > { %v700_v41 = vmul.f32 %v657_v38, %v616_v34  ;;  %v603_v43 = vadd.f32 %v2249_v42, %v582_v35  ;;  %1862 = vrot.lane.b32.xlu0 %v1861_v36, %s2058_s30  ;;  %v764_v59 = vld [vmem:[#allocation2 + $0x1b] sm:$0xff] }
  0xf6   : > { %v545_v45 = vpop.f32.mrf.mxu0  ;;  %v756_v46 = vld [vmem:[#allocation2 + $0x22] sm:$0xff] }
  0xf7   : > { %v747_v48 = vld [vmem:[#allocation2 + $0x21] sm:$0xff]  ;;  %717 = vst.msk [vmem:[#allocation2 + $0x38] sm:$0xff] %vm708_vm2, %v700_v41  ;;  %v617_v49 = vmax.f32 %v603_v43, 0.0  ;;  %v583_v50 = vmul.f32 %v2242_v40, %v545_v45  ;;  %v1871_v51 = vpack.i.bf16 %v756_v46, %v755_v44  ;;  %v682_v41 = vpop.permute.xlu1 %681 }
  0xf8   : > { %v1866_v52 = vpack.i.bf16 %v747_v48, %v746_v47  ;;  %v1732_v54 = vpop.f32.mrf.mxu0  ;;  %v765_v55 = vld [vmem:[#allocation2 + $0x23] sm:$0xff] }
  0xf9   : > { %v701_v56 = vmul.f32 %v662_v53, %v617_v49  ;;  %v604_v57 = vadd.f32 %v2249_v42, %v583_v50  ;;  %1872 = vrot.lane.b32.xlu1 %v1871_v51, %s2060_s16  ;;  %v1876_v62 = vpack.i.bf16 %v765_v55, %v764_v59  ;;  %v739_v7 = vld [vmem:[#allocation2 + $0x28] sm:$0xff]  ;;  %v687_v49 = vpop.permute.xlu0 %686 }
  0xfa   : > { %1867 = vrot.lane.b32.xlu0 %v1866_v52, %s2061_s24  ;;  %v548_v58 = vpop.f32.mrf.mxu0  ;;  %v740_v2 = vld [vmem:[#allocation2 + $0x30] sm:$0xff] }
  0xfb   : > { %718 = vst.msk [vmem:[#allocation2 + $0x40] sm:$0xff] %vm708_vm2, %v701_v56  ;;  %v618_v60 = vmax.f32 %v604_v57, 0.0  ;;  %v584_v61 = vmul.f32 %v2242_v40, %v548_v58  ;;  %v766_v8 = vld [vmem:[#allocation2 + $0x2b] sm:$0xff]  ;;  %v1886_v12 = vpack.i.bf16 %v740_v2, %v739_v7 }
  0xfc   : > { %v1733_v0 = vpop.f32.mrf.mxu0  ;;  %v775_v21 = vld [vmem:[#allocation2 + $0x2c] sm:$0xff] }
  0xfd   : > { %v702_v4 = vmul.f32 %v667_v63, %v618_v60  ;;  %v605_v5 = vadd.f32 %v2249_v42, %v584_v61  ;;  %1882 = vrot.lane.b32.xlu1 %v1866_v52, %s2059_s12  ;;  %v784_v22 = vld [vmem:[#allocation2 + $0x2d] sm:$0xff]  ;;  %v692_v60 = vpop.permute.xlu1 %691 }
  0xfe   : > { %1877 = vrot.lane.b32.xlu0 %v1876_v62, %s2062_s27  ;;  %v553_v6 = vpop.f32.mrf.mxu0  ;;  %v767_v9 = vld [vmem:[#allocation2 + $0x33] sm:$0xff]  ;;  %v757_v34 = vld [vmem:[#allocation2 + $0x2a] sm:$0xff] }
  0xff   : > { %719 = vst.msk [vmem:[#allocation2 + $0x48] sm:$0xff] %vm708_vm2, %v702_v4  ;;  %v619_v10 = vmax.f32 %v605_v5, 0.0  ;;  %v585_v11 = vmul.f32 %v2242_v40, %v553_v6  ;;  %v1891_v13 = vpack.i.bf16 %v767_v9, %v766_v8  ;;  %v776_v16 = vld [vmem:[#allocation2 + $0x34] sm:$0xff]  ;;  %v748_v35 = vld [vmem:[#allocation2 + $0x29] sm:$0xff] }
 0x100   : > { %v1736_v15 = vpop.f32.mrf.mxu0  ;;  %v785_v17 = vld [vmem:[#allocation2 + $0x35] sm:$0xff]  ;;  %v1896_v25 = vpack.i.bf16 %v776_v16, %v775_v21 }
 0x101   : > { %v703_v18 = vmul.f32 %v672_v14, %v619_v10  ;;  %v606_v19 = vadd.f32 %v2249_v42, %v585_v11  ;;  %1892 = vrot.lane.b32.xlu1 %v1891_v13, %s2063_s28  ;;  %v1901_v26 = vpack.i.bf16 %v785_v17, %v784_v22  ;;  %v758_v29 = vld [vmem:[#allocation2 + $0x32] sm:$0xff] }
 0x102   : > { %1887 = vrot.lane.b32.xlu0 %v1886_v12, %s2058_s30  ;;  %v556_v20 = vpop.f32.mrf.mxu0  ;;  %v749_v30 = vld [vmem:[#allocation2 + $0x31] sm:$0xff]  ;;  %v1911_v38 = vpack.i.bf16 %v758_v29, %v757_v34  ;;  %v742_v50 = vld [vmem:[#allocation2 + $0x40] sm:$0xff] }
 0x103   : > { %720 = vst.msk [vmem:[#allocation2 + $0x50] sm:$0xff] %vm708_vm2, %v703_v18  ;;  %v620_v23 = vmax.f32 %v606_v19, 0.0  ;;  %v586_v24 = vmul.f32 %v2242_v40, %v556_v20  ;;  %v1906_v39 = vpack.i.bf16 %v749_v30, %v748_v35  ;;  %v741_v55 = vld [vmem:[#allocation2 + $0x38] sm:$0xff] }
 0x104   : > { %v1737_v28 = vpop.f32.mrf.mxu0  ;;  %v768_v56 = vld [vmem:[#allocation2 + $0x3b] sm:$0xff]  ;;  %v1926_v58 = vpack.i.bf16 %v742_v50, %v741_v55 }
 0x105   : > { %v704_v31 = vmul.f32 %v677_v27, %v620_v23  ;;  %v607_v32 = vadd.f32 %v2249_v42, %v586_v24  ;;  %1902 = vrot.lane.b32.xlu1 %v1901_v26, %s2065_s14  ;;  %v786_v63 = vld [vmem:[#allocation2 + $0x3d] sm:$0xff] }
 0x106   : > { %1897 = vrot.lane.b32.xlu0 %v1896_v25, %s2064_s13  ;;  %v561_v33 = vpop.f32.mrf.mxu0  ;;  %v769_v51 = vld [vmem:[#allocation2 + $0x43] sm:$0xff]  ;;  %v759_v5 = vld [vmem:[#allocation2 + $0x3a] sm:$0xff] }
 0x107   : > { %721 = vst.msk [vmem:[#allocation2 + $0x58] sm:$0xff] %vm708_vm2, %v704_v31  ;;  %v621_v36 = vmax.f32 %v607_v32, 0.0  ;;  %v587_v37 = vmul.f32 %v2242_v40, %v561_v33  ;;  %v1931_v59 = vpack.i.bf16 %v769_v51, %v768_v56  ;;  %v787_v61 = vld [vmem:[#allocation2 + $0x45] sm:$0xff]  ;;  %v750_v6 = vld [vmem:[#allocation2 + $0x39] sm:$0xff] }
 0x108   : > { %v1740_v43 = vpop.f32.mrf.mxu0  ;;  %v1941_v2 = vpack.i.bf16 %v787_v61, %v786_v63  ;;  %v760_v3 = vld [vmem:[#allocation2 + $0x42] sm:$0xff] }
 0x109   : > { %v705_v44 = vmul.f32 %v682_v41, %v621_v36  ;;  %v608_v45 = vadd.f32 %v2249_v42, %v587_v37  ;;  %1912 = vrot.lane.b32.xlu1 %v1911_v38, %s2060_s16  ;;  %v751_v4 = vld [vmem:[#allocation2 + $0x41] sm:$0xff]  ;;  %v1951_v7 = vpack.i.bf16 %v760_v3, %v759_v5  ;;  %v1679_v38 = vld [vmem:[%s2171_s29 + $0x12] sm:$0xff] }
 0x10a   : > { %1907 = vrot.lane.b32.xlu0 %v1906_v39, %s2061_s24  ;;  %v564_v46 = vpop.f32.mrf.mxu0  ;;  %v1946_v8 = vpack.i.bf16 %v751_v4, %v750_v6  ;;  %v743_v9 = vld [vmem:[#allocation2 + $0x48] sm:$0xff]  ;;  %v1680_v43 = vld [vmem:[%s2171_s29 + $0x1a] sm:$0xff] }
 0x10b   : > { %722 = vst.msk [vmem:[#allocation2 + $0x60] sm:$0xff] %vm708_vm2, %v705_v44  ;;  %v622_v47 = vmax.f32 %v608_v45, 0.0  ;;  %v588_v48 = vmul.f32 %v2242_v40, %v564_v46  ;;  %v778_v40 = vld [vmem:[#allocation2 + $0x44] sm:$0xff]  ;;  %v788_v19 = vld [vmem:[#allocation2 + $0x4d] sm:$0xff] }
 0x10c   : > { %v1741_v52 = vpop.f32.mrf.mxu0  ;;  %v752_v10 = vld [vmem:[#allocation2 + $0x49] sm:$0xff]  ;;  %v1683_v44 = vld [vmem:[%s2171_s29 + $0x32] sm:$0xff] }
 0x10d   : > { %v706_v53 = vmul.f32 %v687_v49, %v622_v47  ;;  %v609_v54 = vadd.f32 %v2249_v42, %v588_v48  ;;  %1922 = vrot.lane.b32.xlu1 %v1906_v39, %s2059_s12  ;;  %v777_v42 = vld [vmem:[#allocation2 + $0x3c] sm:$0xff]  ;;  %v770_v14 = vld [vmem:[#allocation2 + $0x4b] sm:$0xff] }
 0x10e   : > { %1917 = vrot.lane.b32.xlu0 %v1891_v13, %s2062_s27  ;;  %v1936_v0 = vpack.i.bf16 %v778_v40, %v777_v42  ;;  %v780_v11 = vld [vmem:[#allocation2 + $0x54] sm:$0xff]  ;;  %v779_v13 = vld [vmem:[#allocation2 + $0x4c] sm:$0xff]  ;;  %v1681_v41 = vld [vmem:[%s2171_s29 + $0x22] sm:$0xff] }
 0x10f   : > { %723 = vst.msk [vmem:[#allocation2 + $0x68] sm:$0xff] %vm708_vm2, %v706_v53  ;;  %v623_v57 = vmax.f32 %v609_v54, 0.0  ;;  %v771_v12 = vld [vmem:[#allocation2 + $0x53] sm:$0xff]  ;;  %v1971_v15 = vpack.i.bf16 %v780_v11, %v779_v13  ;;  %v761_v23 = vld [vmem:[#allocation2 + $0x4a] sm:$0xff]  ;;  %v1685_v46 = vld [vmem:[%s2171_s29 + $0x42] sm:$0xff] }
 0x110   : > { %v1966_v16 = vpack.i.bf16 %v771_v12, %v770_v14  ;;  %v753_v17 = vld [vmem:[#allocation2 + $0x51] sm:$0xff]  ;;  %v1684_v47 = vld [vmem:[%s2171_s29 + $0x3a] sm:$0xff] }
 0x111   : > { %v707_v62 = vmul.f32 %v692_v60, %v623_v57  ;;  %1932 = vrot.lane.b32.xlu1 %v1931_v59, %s2063_s28  ;;  %v789_v18 = vld [vmem:[#allocation2 + $0x55] sm:$0xff]  ;;  %v1981_v20 = vpack.i.bf16 %v753_v17, %v752_v10  ;;  %v1682_v45 = vld [vmem:[%s2171_s29 + $0x2a] sm:$0xff] }
 0x112   : > { %1927 = vrot.lane.b32.xlu0 %v1926_v58, %s2058_s30  ;;  %v1976_v21 = vpack.i.bf16 %v789_v18, %v788_v19  ;;  %v762_v22 = vld [vmem:[#allocation2 + $0x52] sm:$0xff]  ;;  %v781_v27 = vld [vmem:[#allocation2 + $0x5c] sm:$0xff]  ;;  %v1686_v49 = vld [vmem:[%s2171_s29 + $0x4a] sm:$0xff] }
 0x113   : > { %725 = vst.msk [vmem:[#allocation2 + $0x70] sm:$0xf] %vm724_vm4, %v707_v62  ;;  %v1986_v24 = vpack.i.bf16 %v762_v22, %v761_v23  ;;  %v772_v28 = vld [vmem:[#allocation2 + $0x5b] sm:$0xff]  ;;  %v1687_v48 = vld [vmem:[%s2171_s29 + $0x52] sm:$0xff]  ;;  %v726_v62 = vld [vmem:[#allocation2 + $0x7] sm:$0xff] }
 0x114   : > { %v790_v32 = vld [vmem:[#allocation2 + $0x5d] sm:$0xff]  ;;  %v727_v42 = vld [vmem:[#allocation2 + $0xf] sm:$0xff] }
 0x115   : > { %1942 = vrot.lane.b32.xlu1 %v1941_v2, %s2065_s14  ;;  %v754_v34 = vld [vmem:[#allocation2 + $0x59] sm:$0xff] }
 0x116   : > { %1937 = vrot.lane.b32.xlu0 %v1936_v0, %s2064_s13  ;;  %v782_v25 = vld [vmem:[#allocation2 + $0x64] sm:$0xff]  ;;  %v763_v35 = vld [vmem:[#allocation2 + $0x5a] sm:$0xff] }
 0x117   : > { %v773_v26 = vld [vmem:[#allocation2 + $0x63] sm:$0xff]  ;;  %v2001_v29 = vpack.i.bf16 %v782_v25, %v781_v27 }
 0x118   : > { %v1996_v30 = vpack.i.bf16 %v773_v26, %v772_v28  ;;  %v791_v31 = vld [vmem:[#allocation2 + $0x65] sm:$0xff] }
 0x119   : > { %1952 = vrot.lane.b32.xlu1 %v1951_v7, %s2060_s16  ;;  %v2006_v33 = vpack.i.bf16 %v791_v31, %v790_v32 }
 0x11a   : > { %1947 = vrot.lane.b32.xlu0 %v1946_v8, %s2061_s24  ;;  %v783_v36 = vld [vmem:[#allocation2 + $0x6c] sm:$0xff] }
 0x11b   : > { %v774_v37 = vld [vmem:[#allocation2 + $0x6b] sm:$0xff] }
 0x11c   : > { %v792_v39 = vld [vmem:[#allocation2 + $0x6d] sm:$0xff] }
 0x11d   : > { %1962 = vrot.lane.b32.xlu1 %v1946_v8, %s2059_s12 }
 0x11e   : > { %1957 = vrot.lane.b32.xlu0 %v1931_v59, %s2062_s27 }
 0x121   : > { %854 = vrot.lane.b32.xlu1 %v752_v10, %s2059_s12 }
 0x122   : > { %818 = vrot.lane.b32.xlu0 %v743_v9, %s2058_s30 }
 0x125   : > { %1967 = vrot.lane.b32.xlu1 %v1966_v16, %s2063_s28 }
 0x126   : > { %1972 = vrot.lane.b32.xlu0 %v1971_v15, %s2064_s13 }
 0x129   : > { %1977 = vrot.lane.b32.xlu1 %v1976_v21, %s2065_s14 }
 0x12a   : > { %1982 = vrot.lane.b32.xlu0 %v1981_v20, %s2061_s24 }
 0x12d   : > { %1987 = vrot.lane.b32.xlu1 %v1986_v24, %s2060_s16 }
 0x12e   : > { %1992 = vrot.lane.b32.xlu0 %v1966_v16, %s2062_s27 }
 0x131   : > { %1997 = vrot.lane.b32.xlu1 %v1996_v30, %s2063_s28 }
 0x132   : > { %2002 = vrot.lane.b32.xlu0 %v2001_v29, %s2064_s13 }
 0x135   : > { %2007 = vrot.lane.b32.xlu1 %v2006_v33, %s2065_s14 }
 0x136   : > { %883 = vrot.lane.b32.xlu0 %v754_v34, %s2061_s24 }
 0x139   : > { %919 = vrot.lane.b32.xlu1 %v763_v35, %s2060_s16 }
 0x13a   : > { %955 = vrot.lane.b32.xlu0 %v772_v28, %s2062_s27 }
 0x13d   : > { %984 = vrot.lane.b32.xlu1 %v774_v37, %s2063_s28 }
 0x13e   : > { %1020 = vrot.lane.b32.xlu0 %v783_v36, %s2064_s13  ;;  %s1797_s13 = smul.u32 36, %s2576_s18 }
 0x140   : > { %s406_s17 = sadd.s32 %s1797_s13, %s2578_s26 }
 0x141   : > { %1056 = vrot.lane.b32.xlu1 %v792_v39, %s2065_s14  ;;  %s1642_s18 = sshll.u32 %s406_s17, 3 }
 0x142   : > { %1481 = vperm.xlu0 %1849, %v1679_v38   ;;  %s2497_s16 = scalar_lea.vmem %s2564_s11, %s1642_s18 }
 0x145   : > { %1486 = vperm.xlu1 %1850, %v1680_v43   ;;  %v728_v43 = vld [vmem:[#allocation2 + $0x17] sm:$0xff] }
 0x146   : > { %1491 = vperm.xlu0 %1849, %v1681_v41  }
 0x149   : > { %1496 = vperm.xlu1 %1850, %v1682_v45  }
 0x14a   : > { %1501 = vperm.xlu0 %1849, %v1683_v44   ;;  %v729_v44 = vld [vmem:[#allocation2 + $0x1f] sm:$0xff] }
 0x14d   : > { %1506 = vperm.xlu1 %1850, %v1684_v47  }
 0x14e   : > { %1511 = vperm.xlu0 %1849, %v1685_v46  }
 0x151   : > { %1516 = vperm.xlu1 %1850, %v1686_v49  }
 0x152   : > { %1521 = vperm.xlu0 %1849, %v1687_v48  }
 0x15f   : > { %v1853_v50 = vpop.permute.xlu0 %1852 }
 0x160   : > { %v1855_v55 = vunpack.i.h.bf16 %v1853_v50  ;;  %v1854_v56 = vunpack.i.l.bf16 %v1853_v50 }
 0x162   : > { %v1067_v63 = vsel %vm708_vm2, %v726_v62, %v1854_v56  ;;  %v1068_v0 = vsel %vm708_vm2, %v727_v42, %v1855_v55 }
 0x163   : > { %v1858_v51 = vpop.permute.xlu1 %1857 }
 0x164   : > { %v1860_v57 = vunpack.i.h.bf16 %v1858_v51  ;;  %v1859_v58 = vunpack.i.l.bf16 %v1858_v51 }
 0x166   : > { %v1078_v2 = vsel %vm1076_vm5, %v1068_v0, %v1860_v57  ;;  %v1077_v3 = vsel %vm1076_vm5, %v1067_v63, %v1859_v58 }
 0x167   : > { %v2350_v52 = vpop.permute.xlu0 %1862 }
 0x168   : > { %v1865_v33 = vunpack.i.h.bf16 %v2350_v52  ;;  %v1864_v34 = vunpack.i.l.bf16 %v2350_v52 }
 0x16a   : > { %v1069_v45 = vsel %vm708_vm2, %v728_v43, %v1864_v34  ;;  %v1070_v46 = vsel %vm708_vm2, %v729_v44, %v1865_v33 }
 0x16b   : > { %v1873_v53 = vpop.permute.xlu1 %1872 }
 0x16c   : > { %v1868_v54 = vpop.permute.xlu0 %1867  ;;  %v1875_v4 = vunpack.i.h.bf16 %v1873_v53  ;;  %v1874_v5 = vunpack.i.l.bf16 %v1873_v53 }
 0x16d   : > { %v1870_v59 = vunpack.i.h.bf16 %v1868_v54  ;;  %v1869_v60 = vunpack.i.l.bf16 %v1868_v54 }
 0x16f   : > { %v1883_v40 = vpop.permute.xlu1 %1882  ;;  %v1088_v6 = vsel %vm1086_vm6, %v1078_v2, %v1870_v59  ;;  %v1087_v7 = vsel %vm1086_vm6, %v1077_v3, %v1869_v60 }
 0x170   : > { %v1878_v61 = vpop.permute.xlu0 %1877  ;;  %v1096_v14 = vsel %vm457_vm1, %v1087_v7, %v1874_v5  ;;  %v1097_v15 = vsel %vm457_vm1, %v1088_v6, %v1875_v4  ;;  %v1885_v35 = vunpack.i.h.bf16 %v1883_v40  ;;  %v1884_v36 = vunpack.i.l.bf16 %v1883_v40 }
 0x171   : > { %v1880_v8 = vunpack.i.h.bf16 %v1878_v61  ;;  %v1879_v9 = vunpack.i.l.bf16 %v1878_v61 }
 0x172   : > { %v1080_v47 = vsel %vm1076_vm5, %v1070_v46, %v1885_v35  ;;  %v1079_v48 = vsel %vm1076_vm5, %v1069_v45, %v1884_v36 }
 0x173   : > { %v1893_v11 = vpop.permute.xlu1 %1892  ;;  %v1106_v16 = vsel %vm1105_vm7, %v1096_v14, %v1879_v9  ;;  %v1107_v17 = vsel %vm1105_vm7, %v1097_v15, %v1880_v8 }
 0x174   : > { %v2358_v10 = vpop.permute.xlu0 %1887  ;;  %v1895_v12 = vunpack.i.h.bf16 %v1893_v11  ;;  %v1894_v13 = vunpack.i.l.bf16 %v1893_v11 }
 0x175   : > { %v1890_v14 = vunpack.i.h.bf16 %v2358_v10  ;;  %v1889_v15 = vunpack.i.l.bf16 %v2358_v10 }
 0x176   : > { %v1117_v24 = vsel %vm1115_vm8, %v1107_v17, %v1895_v12  ;;  %v1116_v25 = vsel %vm1115_vm8, %v1106_v16, %v1894_v13 }
 0x177   : > { %v1903_v19 = vpop.permute.xlu1 %1902 }
 0x178   : > { %v1898_v18 = vpop.permute.xlu0 %1897  ;;  %v1905_v22 = vunpack.i.h.bf16 %v1903_v19  ;;  %v1904_v23 = vunpack.i.l.bf16 %v1903_v19 }
 0x179   : > { %v1900_v20 = vunpack.i.h.bf16 %v1898_v18  ;;  %v1899_v21 = vunpack.i.l.bf16 %v1898_v18 }
 0x17b   : > { %v1126_v26 = vsel %vm1125_vm9, %v1116_v25, %v1899_v21  ;;  %v1127_v27 = vsel %vm1125_vm9, %v1117_v24, %v1900_v20  ;;  %v1913_v30 = vpop.permute.xlu1 %1912 }
 0x17c   : > { %v1136_v28 = vsel %vm1135_vm10, %v1126_v26, %v1904_v23  ;;  %v1137_v29 = vsel %vm1135_vm10, %v1127_v27, %v1905_v22  ;;  %v1908_v31 = vpop.permute.xlu0 %1907  ;;  %v1915_v49 = vunpack.i.h.bf16 %v1913_v30  ;;  %v1914_v50 = vunpack.i.l.bf16 %v1913_v30  ;;  %v730_v22 = vld [vmem:[#allocation2 + $0x27] sm:$0xff]  ;;  %v731_v23 = vld [vmem:[#allocation2 + $0x2f] sm:$0xff] }
 0x17d   : > { %v1145_v32 = vpack.c.bf16 %v1137_v29, %v1136_v28  ;;  %v1910_v37 = vunpack.i.h.bf16 %v1908_v31  ;;  %v1909_v38 = vunpack.i.l.bf16 %v1908_v31  ;;  %v1071_v24 = vsel %vm708_vm2, %v730_v22, %v1889_v15 }
 0x17e   : > { %v1072_v25 = vsel %vm708_vm2, %v731_v23, %v1890_v14 }
 0x17f   : > { %1749 = vmatmul.mubr.msk.bf16.vlgmr.msra.gmra.mxu0 %vm1170_vm11, %v1145_v32  ;;  %v1923_v39 = vpop.permute.xlu1 %1922  ;;  %v1090_v51 = vsel %vm1086_vm6, %v1080_v47, %v1910_v37  ;;  %v1089_v52 = vsel %vm1086_vm6, %v1079_v48, %v1909_v38 }
 0x180   : > { %v1918_v41 = vpop.permute.xlu0 %1917  ;;  %1752 = vmatprep.mubr.msk.bf16.mxu0 %vm2056_vm0, %v2055_v1  ;;  %v1098_v59 = vsel %vm457_vm1, %v1089_v52, %v1914_v50  ;;  %v1099_v60 = vsel %vm457_vm1, %v1090_v51, %v1915_v49  ;;  %v1925_v18 = vunpack.i.h.bf16 %v1923_v39  ;;  %v1924_v19 = vunpack.i.l.bf16 %v1923_v39 }
 0x181   : > { %v1920_v53 = vunpack.i.h.bf16 %v1918_v41  ;;  %v1919_v54 = vunpack.i.l.bf16 %v1918_v41 }
 0x182   : > { %v1082_v28 = vsel %vm1076_vm5, %v1072_v25, %v1925_v18  ;;  %v1081_v10 = vsel %vm1076_vm5, %v1071_v24, %v1924_v19  ;;  %v734_v24 = vld [vmem:[#allocation2 + $0x47] sm:$0xff] }
 0x183   : > { %v1933_v56 = vpop.permute.xlu1 %1932  ;;  %v1108_v40 = vsel %vm1105_vm7, %v1098_v59, %v1919_v54  ;;  %v1109_v61 = vsel %vm1105_vm7, %v1099_v60, %v1920_v53 }
 0x184   : > { %v2381_v55 = vpop.permute.xlu0 %1927  ;;  %v1935_v57 = vunpack.i.h.bf16 %v1933_v56  ;;  %v1934_v58 = vunpack.i.l.bf16 %v1933_v56 }
 0x185   : > { %v1930_v49 = vunpack.i.h.bf16 %v2381_v55  ;;  %v1929_v50 = vunpack.i.l.bf16 %v2381_v55 }
 0x186   : > { %v1119_v4 = vsel %vm1115_vm8, %v1109_v61, %v1935_v57  ;;  %v1118_v5 = vsel %vm1115_vm8, %v1108_v40, %v1934_v58  ;;  %v732_v61 = vld [vmem:[#allocation2 + $0x37] sm:$0xff] }
 0x187   : > { %v1943_v42 = vpop.permute.xlu1 %1942  ;;  %v1073_v55 = vsel %vm708_vm2, %v732_v61, %v1929_v50 }
 0x188   : > { %v1938_v62 = vpop.permute.xlu0 %1937  ;;  %v1945_v2 = vunpack.i.h.bf16 %v1943_v42  ;;  %v1944_v3 = vunpack.i.l.bf16 %v1943_v42 }
 0x189   : > { %v1940_v63 = vunpack.i.h.bf16 %v1938_v62  ;;  %v1939_v0 = vunpack.i.l.bf16 %v1938_v62  ;;  %v733_v62 = vld [vmem:[#allocation2 + $0x3f] sm:$0xff] }
 0x18b   : > { %v1128_v6 = vsel %vm1125_vm9, %v1118_v5, %v1939_v0  ;;  %v1129_v7 = vsel %vm1125_vm9, %v1119_v4, %v1940_v63  ;;  %v1953_v11 = vpop.permute.xlu1 %1952  ;;  %v1074_v0 = vsel %vm708_vm2, %v733_v62, %v1930_v49 }
 0x18c   : > { %v1138_v8 = vsel %vm1135_vm10, %v1128_v6, %v1944_v3  ;;  %v1139_v9 = vsel %vm1135_vm10, %v1129_v7, %v1945_v2  ;;  %v1948_v12 = vpop.permute.xlu0 %1947  ;;  %v1955_v29 = vunpack.i.h.bf16 %v1953_v11  ;;  %v1954_v30 = vunpack.i.l.bf16 %v1953_v11 }
 0x18d   : > { %v1146_v13 = vpack.c.bf16 %v1139_v9, %v1138_v8  ;;  %v1950_v20 = vunpack.i.h.bf16 %v1948_v12  ;;  %v1949_v21 = vunpack.i.l.bf16 %v1948_v12 }
 0x18f   : > { %1753 = vmatmul.mubr.msk.bf16.gmra.mxu0 %vm1170_vm11, %v1146_v13  ;;  %v1963_v16 = vpop.permute.xlu1 %1962  ;;  %v1092_v31 = vsel %vm1086_vm6, %v1082_v28, %v1950_v20  ;;  %v1091_v32 = vsel %vm1086_vm6, %v1081_v10, %v1949_v21 }
 0x190   : > { %v1958_v17 = vpop.permute.xlu0 %1957  ;;  %v1100_v37 = vsel %vm457_vm1, %v1091_v32, %v1954_v30  ;;  %v1101_v38 = vsel %vm457_vm1, %v1092_v31, %v1955_v29  ;;  %v1965_v53 = vunpack.i.h.bf16 %v1963_v16  ;;  %v1964_v54 = vunpack.i.l.bf16 %v1963_v16 }
 0x191   : > { %v1960_v33 = vunpack.i.h.bf16 %v1958_v17  ;;  %v1959_v34 = vunpack.i.l.bf16 %v1958_v17 }
 0x192   : > { %v1084_v5 = vsel %vm1076_vm5, %v1074_v0, %v1965_v53  ;;  %v1083_v6 = vsel %vm1076_vm5, %v1073_v55, %v1964_v54  ;;  %v1661_v53 = vld [vmem:[%s2559_s6] ss:$0 sm:$0xff] }
 0x193   : > { %v2400_v27 = vpop.permute.xlu1 %854  ;;  %v1110_v43 = vsel %vm1105_vm7, %v1100_v37, %v1959_v34  ;;  %v1111_v44 = vsel %vm1105_vm7, %v1101_v38, %v1960_v33 }
 0x194   : > { %v2398_v26 = vpop.permute.xlu0 %818 }
 0x195   : > { %v1075_v10 = vsel %vm708_vm2, %v734_v24, %v2398_v26 }
 0x197   : > { %v1968_v36 = vpop.permute.xlu1 %1967 }
 0x198   : > { %v1973_v35 = vpop.permute.xlu0 %1972  ;;  %v1970_v39 = vunpack.i.h.bf16 %v1968_v36  ;;  %v1969_v41 = vunpack.i.l.bf16 %v1968_v36 }
 0x199   : > { %v1975_v45 = vunpack.i.h.bf16 %v1973_v35  ;;  %v1974_v46 = vunpack.i.l.bf16 %v1973_v35  ;;  %v1085_v35 = vsel %vm1076_vm5, %v1075_v10, %v2400_v27 }
 0x19a   : > { %v1121_v47 = vsel %vm1115_vm8, %v1111_v44, %v1970_v39  ;;  %v1120_v48 = vsel %vm1115_vm8, %v1110_v43, %v1969_v41 }
 0x19b   : > { %v1978_v51 = vpop.permute.xlu1 %1977  ;;  %v1130_v58 = vsel %vm1125_vm9, %v1120_v48, %v1974_v46  ;;  %v1131_v59 = vsel %vm1125_vm9, %v1121_v47, %v1975_v45 }
 0x19c   : > { %v1983_v52 = vpop.permute.xlu0 %1982  ;;  %v1980_v56 = vunpack.i.h.bf16 %v1978_v51  ;;  %v1979_v57 = vunpack.i.l.bf16 %v1978_v51  ;;  %v1308_v51 = vld [vmem:[%s2561_s8] sm:$0x3] }
 0x19d   : > { %v1985_v60 = vunpack.i.h.bf16 %v1983_v52  ;;  %v1984_v40 = vunpack.i.l.bf16 %v1983_v52  ;;  %v1325_v52 = vsel %vm1186_vm3, %v1308_v51, 0 }
 0x19e   : > { %v1140_v42 = vsel %vm1135_vm10, %v1130_v58, %v1979_v57  ;;  %v1141_v63 = vsel %vm1135_vm10, %v1131_v59, %v1980_v56  ;;  %v1662_v57 = vld [vmem:[%s2560_s7] ss:$0 sm:$0xff] }
 0x19f   : > { %v1147_v2 = vpack.c.bf16 %v1141_v63, %v1140_v42  ;;  %v1988_v3 = vpop.permute.xlu1 %1987  ;;  %v1094_v9 = vsel %vm1086_vm6, %v1084_v5, %v1985_v60  ;;  %v1093_v11 = vsel %vm1086_vm6, %v1083_v6, %v1984_v40 }
 0x1a0   : > { %v1993_v4 = vpop.permute.xlu0 %1992  ;;  %v1990_v7 = vunpack.i.h.bf16 %v1988_v3  ;;  %v1989_v8 = vunpack.i.l.bf16 %v1988_v3 }
 0x1a1   : > { %v1995_v12 = vunpack.i.h.bf16 %v1993_v4  ;;  %v1994_v13 = vunpack.i.l.bf16 %v1993_v4  ;;  %1757 = vmatmul.mubr.msk.bf16.vlgmr.msra.gmra.mxu1 %vm1170_vm11, %v1147_v2 }
 0x1a2   : > { %v1102_v14 = vsel %vm457_vm1, %v1093_v11, %v1989_v8  ;;  %v1103_v15 = vsel %vm457_vm1, %v1094_v9, %v1990_v7  ;;  %1760 = vmatprep.mubr.msk.bf16.mxu1 %vm2056_vm0, %v2055_v1  ;;  %1769 = vmatpush3.bf16.msra.mxu1 %v1325_v52 }
 0x1a3   : > { %v1998_v17 = vpop.permute.xlu1 %1997  ;;  %v1112_v20 = vsel %vm1105_vm7, %v1102_v14, %v1994_v13  ;;  %v1113_v21 = vsel %vm1105_vm7, %v1103_v15, %v1995_v12 }
 0x1a4   : > { %v2003_v16 = vpop.permute.xlu0 %2002  ;;  %v2000_v18 = vunpack.i.h.bf16 %v1998_v17  ;;  %v1999_v19 = vunpack.i.l.bf16 %v1998_v17 }
 0x1a5   : > { %v2005_v22 = vunpack.i.h.bf16 %v2003_v16  ;;  %v2004_v23 = vunpack.i.l.bf16 %v2003_v16 }
 0x1a6   : > { %v1123_v25 = vsel %vm1115_vm8, %v1113_v21, %v2000_v18  ;;  %v1122_v28 = vsel %vm1115_vm8, %v1112_v20, %v1999_v19 }
 0x1a7   : > { %v2008_v30 = vpop.permute.xlu1 %2007  ;;  %v1132_v33 = vsel %vm1125_vm9, %v1122_v28, %v2004_v23  ;;  %v1133_v34 = vsel %vm1125_vm9, %v1123_v25, %v2005_v22 }
 0x1a8   : > { %v884_v29 = vpop.permute.xlu0 %883  ;;  %v2010_v31 = vunpack.i.h.bf16 %v2008_v30  ;;  %v2009_v32 = vunpack.i.l.bf16 %v2008_v30 }
 0x1a9   : > { %v1095_v38 = vsel %vm1086_vm6, %v1085_v35, %v884_v29 }
 0x1aa   : > { %v1142_v36 = vsel %vm1135_vm10, %v1132_v33, %v2009_v32  ;;  %v1143_v37 = vsel %vm1135_vm10, %v1133_v34, %v2010_v31 }
 0x1ab   : > { %v1148_v39 = vpack.c.bf16 %v1143_v37, %v1142_v36  ;;  %v920_v26 = vpop.permute.xlu1 %919 }
 0x1ac   : > { %v956_v41 = vpop.permute.xlu0 %955  ;;  %v1104_v43 = vsel %vm457_vm1, %v1095_v38, %v920_v26 }
 0x1ad   : > { %1761 = vmatmul.mubr.msk.bf16.gmra.mxu1 %vm1170_vm11, %v1148_v39  ;;  %v1114_v44 = vsel %vm1105_vm7, %v1104_v43, %v956_v41 }
 0x1ae   : > { %1764 = vmatprep.mubr.msk.bf16.mxu1 %vm2056_vm0, %v2055_v1 }
 0x1af   : > { %v985_v45 = vpop.permute.xlu1 %984 }
 0x1b0   : > { %v1021_v27 = vpop.permute.xlu0 %1020  ;;  %v1124_v46 = vsel %vm1115_vm8, %v1114_v44, %v985_v45  ;;  %v2480_v45 = vld [vmem:[%s2562_s9] ss:$0 sm:$0xff] }
 0x1b1   : > { %v1134_v47 = vsel %vm1125_vm9, %v1124_v46, %v1021_v27 }
 0x1b3   : > { %v1057_v48 = vpop.permute.xlu1 %1056 }
 0x1b4   : > { %v1144_v49 = vsel %vm1135_vm10, %v1134_v47, %v1057_v48 }
 0x1b5   : > { %v1149_v50 = vpack.c.bf16 %v1144_v49, %v1144_v49  ;;  %v1670_v49 = vld [vmem:[%s2184_s15 + $0x12] sm:$0xff] }
 0x1b7   : > { %1765 = vmatmul.mubr.msk.bf16.gmra.mxu1 %vm1170_vm11, %v1149_v50 }
 0x1b8   : > { %1770 = vmatprep.mubr.msk.bf16.mxu1 %vm2056_vm0, %v2055_v1 }
 0x23f   : > { %v1224_v54 = vpop.f32.mrf.mxu0 }
 0x240   : > { %v1269_v56 = vmul.f32 %v1661_v53, %v1224_v54 }
 0x241   : > { %v1750_v58 = vpop.f32.mrf.mxu0 }
 0x242   : > { %v1285_v60 = vadd.f32 %v1662_v57, %v1269_v56 }
 0x243   : > { %v1227_v59 = vpop.f32.mrf.mxu0 }
 0x244   : > { %v1270_v40 = vmul.f32 %v1661_v53, %v1227_v59  ;;  %v1294_v42 = vmax.f32 %v1285_v60, 0.0  ;;  %v1482_v60 = vpop.permute.xlu0 %1481 }
 0x245   : > { %v1751_v61 = vpop.f32.mrf.mxu0 }
 0x246   : > { %v1286_v62 = vadd.f32 %v1662_v57, %v1270_v40 }
 0x248   : > { %v1295_v63 = vmax.f32 %v1286_v62, 0.0 }
 0x24a   : > { %v1303_v55 = vpack.c.bf16 %v1295_v63, %v1294_v42  ;;  %v1487_v42 = vpop.permute.xlu1 %1486 }
 0x24c   : > { %1771 = vmatmul.mubr.msk.bf16.vlgmr.msra.gmra.mxu1 %vm708_vm2, %v1303_v55 }
 0x24d   : > { %1774 = vmatprep.mubr.msk.bf16.mxu1 %vm2056_vm0, %v2055_v1 }
 0x24f   : > { %v1232_v0 = vpop.f32.mrf.mxu0 }
 0x250   : > { %v1271_v2 = vmul.f32 %v1661_v53, %v1232_v0 }
 0x251   : > { %v1754_v3 = vpop.f32.mrf.mxu0 }
 0x252   : > { %v1287_v5 = vadd.f32 %v1662_v57, %v1271_v2 }
 0x253   : > { %v1235_v4 = vpop.f32.mrf.mxu0 }
 0x254   : > { %v1272_v6 = vmul.f32 %v1661_v53, %v1235_v4  ;;  %v1296_v9 = vmax.f32 %v1287_v5, 0.0  ;;  %v1672_v4 = vld [vmem:[%s2184_s15 + $0x22] sm:$0xff] }
 0x255   : > { %v1755_v7 = vpop.f32.mrf.mxu0 }
 0x256   : > { %v1288_v8 = vadd.f32 %v1662_v57, %v1272_v6 }
 0x258   : > { %v1297_v11 = vmax.f32 %v1288_v8, 0.0 }
 0x25a   : > { %v1304_v12 = vpack.c.bf16 %v1297_v11, %v1296_v9 }
 0x25c   : > { %1775 = vmatmul.mubr.msk.bf16.gmra.mxu1 %vm708_vm2, %v1304_v12  ;;  %v1673_v12 = vld [vmem:[%s2184_s15 + $0x2a] sm:$0xff] }
 0x25d   : > { %1778 = vmatprep.mubr.msk.bf16.mxu1 %vm2056_vm0, %v2055_v1 }
 0x261   : > { %v1240_v13 = vpop.f32.mrf.mxu1 }
 0x262   : > { %v1273_v14 = vmul.f32 %v1661_v53, %v1240_v13 }
 0x263   : > { %v1758_v15 = vpop.f32.mrf.mxu1 }
 0x264   : > { %v1289_v17 = vadd.f32 %v1662_v57, %v1273_v14  ;;  %v1492_v15 = vpop.permute.xlu0 %1491 }
 0x265   : > { %v1243_v16 = vpop.f32.mrf.mxu1 }
 0x266   : > { %v1274_v18 = vmul.f32 %v1661_v53, %v1243_v16  ;;  %v1298_v21 = vmax.f32 %v1289_v17, 0.0 }
 0x267   : > { %v1759_v19 = vpop.f32.mrf.mxu1 }
 0x268   : > { %v1290_v20 = vadd.f32 %v1662_v57, %v1274_v18  ;;  %v1497_v19 = vpop.permute.xlu1 %1496 }
 0x26a   : > { %v1299_v22 = vmax.f32 %v1290_v20, 0.0 }
 0x26c   : > { %v1305_v23 = vpack.c.bf16 %v1299_v22, %v1298_v21 }
 0x26d   : > { %v1248_v24 = vpop.f32.mrf.mxu1 }
 0x26e   : > { %v1275_v25 = vmul.f32 %v1661_v53, %v1248_v24  ;;  %1779 = vmatmul.mubr.msk.bf16.gmra.mxu1 %vm708_vm2, %v1305_v23 }
 0x26f   : > { %v1762_v28 = vpop.f32.mrf.mxu1  ;;  %1782 = vmatprep.mubr.msk.bf16.mxu1 %vm2056_vm0, %v2055_v1 }
 0x270   : > { %v1291_v29 = vadd.f32 %v1662_v57, %v1275_v25  ;;  %v1674_v25 = vld [vmem:[%s2184_s15 + $0x32] sm:$0xff] }
 0x271   : > { %v1251_v10 = vpop.f32.mrf.mxu1 }
 0x272   : > { %v1276_v30 = vmul.f32 %v1661_v53, %v1251_v10  ;;  %v1300_v33 = vmax.f32 %v1291_v29, 0.0 }
 0x273   : > { %v1763_v31 = vpop.f32.mrf.mxu1 }
 0x274   : > { %v1292_v32 = vadd.f32 %v1662_v57, %v1276_v30 }
 0x276   : > { %v1301_v34 = vmax.f32 %v1292_v32, 0.0 }
 0x277   : > { %v1256_v35 = vpop.f32.mrf.mxu1 }
 0x278   : > { %v1306_v36 = vpack.c.bf16 %v1301_v34, %v1300_v33  ;;  %v1277_v37 = vmul.f32 %v1661_v53, %v1256_v35  ;;  %v1675_v33 = vld [vmem:[%s2184_s15 + $0x3a] sm:$0xff] }
 0x279   : > { %v1766_v38 = vpop.f32.mrf.mxu1 }
 0x27a   : > { %v1293_v39 = vadd.f32 %v1662_v57, %v1277_v37  ;;  %1783 = vmatmul.mubr.msk.bf16.gmra.mxu1 %vm708_vm2, %v1306_v36  ;;  %v1671_v57 = vld [vmem:[%s2184_s15 + $0x1a] sm:$0xff]  ;;  %v1502_v36 = vpop.permute.xlu0 %1501 }
 0x27b   : > { %v1259_v41 = vpop.f32.mrf.mxu1  ;;  %1786 = vmatprep.mubr.msk.bf16.mxu1 %vm2056_vm0, %v2055_v1  ;;  %v2486_v1 = vld [vmem:[%s2563_s10] ss:$0 sm:$0xff] }
 0x27c   : > { %v1302_v26 = vmax.f32 %v1293_v39, 0.0 }
 0x27d   : > { %v1767_v43 = vpop.f32.mrf.mxu1 }
 0x27e   : > { %v1307_v44 = vpack.c.bf16 %v1302_v26, %v1302_v26  ;;  %v1507_v43 = vpop.permute.xlu1 %1506 }
 0x282   : > { %1787 = vmatmul.mubr.msk.bf16.gmra.mxu1 %vm708_vm2, %v1307_v44 }
 0x30c   : > { %v1361_v27 = vpop.f32.mrf.mxu1 }
 0x30d   : > { %v1406_v46 = vmul.f32 %v2480_v45, %v1361_v27 }
 0x30e   : > { %v1772_v47 = vpop.f32.mrf.mxu1 }
 0x30f   : > { %v1422_v48 = vadd.f32 %v2486_v1, %v1406_v46  ;;  %v1676_v47 = vld [vmem:[%s2184_s15 + $0x42] sm:$0xff] }
 0x310   : > { %v1364_v50 = vpop.f32.mrf.mxu1 }
 0x311   : > { %v1431_v51 = vmax.f32 %v1422_v48, 0.0  ;;  %v1407_v52 = vmul.f32 %v2480_v45, %v1364_v50 }
 0x312   : > { %v1773_v53 = vpop.f32.mrf.mxu1 }
 0x313   : > { %v1461_v54 = vadd.f32 %v1670_v49, %v1431_v51  ;;  %v1423_v56 = vadd.f32 %v2486_v1, %v1407_v52 }
 0x315   : > { %v1470_v58 = vmax.f32 %v1461_v54, 0.0  ;;  %v1432_v59 = vmax.f32 %v1423_v56, 0.0  ;;  %v1677_v54 = vld [vmem:[%s2184_s15 + $0x4a] sm:$0xff] }
 0x317   : > { %v1524_v40 = vmul.f32 %v1482_v60, %v1470_v58  ;;  %v1462_v61 = vadd.f32 %v1671_v57, %v1432_v59  ;;  %v1512_v60 = vpop.permute.xlu0 %1511 }
 0x319   : > { %1533 = vst.msk [vmem:[%s2497_s16] sm:$0xff] %vm457_vm1, %v1524_v40  ;;  %v1471_v62 = vmax.f32 %v1462_v61, 0.0 }
 0x31b   : > { %v1525_v63 = vmul.f32 %v1487_v42, %v1471_v62 }
 0x31c   : > { %v1369_v55 = vpop.f32.mrf.mxu1 }
 0x31d   : > { %1534 = vst.msk [vmem:[%s2497_s16 + $0x8] sm:$0xff] %vm457_vm1, %v1525_v63  ;;  %v1408_v0 = vmul.f32 %v2480_v45, %v1369_v55  ;;  %v1678_v63 = vld [vmem:[%s2184_s15 + $0x52] sm:$0xff] }
 0x31e   : > { %v1776_v2 = vpop.f32.mrf.mxu1 }
 0x31f   : > { %v1424_v3 = vadd.f32 %v2486_v1, %v1408_v0 }
 0x320   : > { %v1372_v5 = vpop.f32.mrf.mxu1 }
 0x321   : > { %v1433_v6 = vmax.f32 %v1424_v3, 0.0  ;;  %v1409_v7 = vmul.f32 %v2480_v45, %v1372_v5  ;;  %v1517_v3 = vpop.permute.xlu1 %1516 }
 0x322   : > { %v1777_v8 = vpop.f32.mrf.mxu1 }
 0x323   : > { %v1463_v9 = vadd.f32 %v1672_v4, %v1433_v6  ;;  %v1425_v11 = vadd.f32 %v2486_v1, %v1409_v7  ;;  %v1522_v7 = vpop.permute.xlu0 %1521 }
 0x325   : > { %v1472_v13 = vmax.f32 %v1463_v9, 0.0  ;;  %v1434_v14 = vmax.f32 %v1425_v11, 0.0 }
 0x327   : > { %v1526_v16 = vmul.f32 %v1492_v15, %v1472_v13  ;;  %v1464_v17 = vadd.f32 %v1673_v12, %v1434_v14 }
 0x329   : > { %1535 = vst.msk [vmem:[%s2497_s16 + $0x10] sm:$0xff] %vm457_vm1, %v1526_v16  ;;  %v1473_v18 = vmax.f32 %v1464_v17, 0.0 }
 0x32b   : > { %v1527_v20 = vmul.f32 %v1497_v19, %v1473_v18 }
 0x32d   : > { %1536 = vst.msk [vmem:[%s2497_s16 + $0x18] sm:$0xff] %vm457_vm1, %v1527_v20 }
 0x32e   : > { %v1377_v21 = vpop.f32.mrf.mxu1 }
 0x32f   : > { %v1410_v22 = vmul.f32 %v2480_v45, %v1377_v21 }
 0x330   : > { %v1780_v23 = vpop.f32.mrf.mxu1 }
 0x331   : > { %v1426_v24 = vadd.f32 %v2486_v1, %v1410_v22 }
 0x332   : > { %v1380_v28 = vpop.f32.mrf.mxu1 }
 0x333   : > { %v1435_v10 = vmax.f32 %v1426_v24, 0.0  ;;  %v1411_v29 = vmul.f32 %v2480_v45, %v1380_v28 }
 0x334   : > { %v1781_v30 = vpop.f32.mrf.mxu1 }
 0x335   : > { %v1465_v31 = vadd.f32 %v1674_v25, %v1435_v10  ;;  %v1427_v32 = vadd.f32 %v2486_v1, %v1411_v29 }
 0x337   : > { %v1474_v34 = vmax.f32 %v1465_v31, 0.0  ;;  %v1436_v35 = vmax.f32 %v1427_v32, 0.0 }
 0x339   : > { %v1528_v37 = vmul.f32 %v1502_v36, %v1474_v34  ;;  %v1466_v38 = vadd.f32 %v1675_v33, %v1436_v35 }
 0x33a   : > { %v1385_v39 = vpop.f32.mrf.mxu1 }
 0x33b   : > { %1537 = vst.msk [vmem:[%s2497_s16 + $0x20] sm:$0xff] %vm457_vm1, %v1528_v37  ;;  %v1475_v41 = vmax.f32 %v1466_v38, 0.0  ;;  %v1412_v26 = vmul.f32 %v2480_v45, %v1385_v39 }
 0x33c   : > { %v1784_v44 = vpop.f32.mrf.mxu1 }
 0x33d   : > { %v1529_v27 = vmul.f32 %v1507_v43, %v1475_v41  ;;  %v1428_v46 = vadd.f32 %v2486_v1, %v1412_v26 }
 0x33e   : > { %v1388_v48 = vpop.f32.mrf.mxu1 }
 0x33f   : > { %1538 = vst.msk [vmem:[%s2497_s16 + $0x28] sm:$0xff] %vm457_vm1, %v1529_v27  ;;  %v1437_v49 = vmax.f32 %v1428_v46, 0.0  ;;  %v1413_v50 = vmul.f32 %v2480_v45, %v1388_v48 }
 0x340   : > { %v1785_v51 = vpop.f32.mrf.mxu1 }
 0x341   : > { %v1467_v52 = vadd.f32 %v1676_v47, %v1437_v49  ;;  %v1429_v53 = vadd.f32 %v2486_v1, %v1413_v50 }
 0x342   : > { %v1393_v56 = vpop.f32.mrf.mxu1 }
 0x343   : > { %v1476_v57 = vmax.f32 %v1467_v52, 0.0  ;;  %v1438_v58 = vmax.f32 %v1429_v53, 0.0  ;;  %v1414_v59 = vmul.f32 %v2480_v45, %v1393_v56 }
 0x344   : > { %v1788_v40 = vpop.f32.mrf.mxu1 }
 0x345   : > { %v1530_v61 = vmul.f32 %v1512_v60, %v1476_v57  ;;  %v1468_v62 = vadd.f32 %v1677_v54, %v1438_v58  ;;  %v1430_v42 = vadd.f32 %v2486_v1, %v1414_v59 }
 0x346   : > { %v1396_v55 = vpop.f32.mrf.mxu1 }
 0x347   : > { %1539 = vst.msk [vmem:[%s2497_s16 + $0x30] sm:$0xff] %vm457_vm1, %v1530_v61  ;;  %v1477_v0 = vmax.f32 %v1468_v62, 0.0  ;;  %v1439_v2 = vmax.f32 %v1430_v42, 0.0 }
 0x348   : > { %v1789_v4 = vpop.f32.mrf.mxu1 }
 0x349   : > { %v1531_v5 = vmul.f32 %v1517_v3, %v1477_v0  ;;  %v1469_v6 = vadd.f32 %v1678_v63, %v1439_v2 }
 0x34b   : > { %1540 = vst.msk [vmem:[%s2497_s16 + $0x38] sm:$0xff] %vm457_vm1, %v1531_v5  ;;  %v1478_v45 = vmax.f32 %v1469_v6, 0.0 }
 0x34d   : > { %v1532_v8 = vmul.f32 %v1522_v7, %v1478_v45 }
 0x34f   : > { %1541 = vst.msk [vmem:[%s2497_s16 + $0x40] sm:$0xff] %vm457_vm1, %v1532_v8 }
 0x350 PF: > { %s21_s21 = sadd.s32 1, %s2053_s21   ;;  %s2565_s17 = smov %s2045_s19 }
 0x351   : > { %p18_p7 = scmp.ge.s32.totalorder %s21_s21, 10   ;;  %s2566_s18 = smov %s2049_s20 }
 0x352   : > { %s2567_s19 = smov %s2570_s22  ;;  %s2568_s20 = smov %s2574_s23 }
 0x353   :  { %20 = sbr.rel (!%p18_p7) target bundleno = 3 (0x3), region = 98 }

</bundles_post_ra>
